<compile_context>
chip_gen: v7x
topology: tpu7x:2x2x1
jax: 0.10.0
libtpu: 0.0.40
codegen_flags: <defaults>
</compile_context>

<pallas_src>
import functools

import jax
import jax.numpy as jnp
from jax import lax
from jax.experimental import pallas as pl
from jax.experimental.pallas import tpu as pltpu


CONV_FLAT = 32 * 22 * 22                     # 15488  (c1 output, flattened)
K_IN = CONV_FLAT + 64                        # 15552  (l0 fan-in)
K_BLOCK = 3968                               # l0 reduction tile (31 * 128)
K_PAD = ((K_IN + K_BLOCK - 1) // K_BLOCK) * K_BLOCK   # 15872 (4 K-steps)


# ----------------------------------------------------------------------------
# Kernel 1: out = act(x @ w + b), M-tiled, K/N resident, no scratch accumulator
# (used for the im2col'ed 3x3 convolutions).
# ----------------------------------------------------------------------------
def _matmul_bias_act_kernel(x_ref, w_ref, b_ref, o_ref, *, act):
    h = jnp.dot(x_ref[...], w_ref[...], preferred_element_type=jnp.float32)
    h = h + b_ref[...]
    if act == "relu":
        h = jnp.maximum(h, 0.0)
    o_ref[...] = h.astype(o_ref.dtype)


def matmul_bias_act(x, w, b, act="none", *, tm=256, out_dtype=jnp.bfloat16):
    """act(x @ w + b). x:(M,K) bf16, w:(K,N) bf16, b:(N,) f32. Row-tiled grid."""
    rows, K = x.shape
    Kw, N = w.shape
    assert K == Kw
    tm = min(tm, rows)
    b2 = b.reshape(1, N).astype(jnp.float32)
    kernel = functools.partial(_matmul_bias_act_kernel, act=act)
    return pl.pallas_call(
        kernel,
        out_shape=jax.ShapeDtypeStruct((rows, N), out_dtype),
        grid_spec=pltpu.PrefetchScalarGridSpec(
            num_scalar_prefetch=0,
            grid=(pl.cdiv(rows, tm),),
            in_specs=[
                pl.BlockSpec((tm, K), lambda i: (i, 0)),
                pl.BlockSpec((K, N), lambda i: (0, 0)),
                pl.BlockSpec((1, N), lambda i: (0, 0)),
            ],
            out_specs=pl.BlockSpec((tm, N), lambda i: (i, 0)),
        ),
        compiler_params=pltpu.CompilerParams(
            dimension_semantics=("parallel",),
            vmem_limit_bytes=32 << 20,
        ),
    )(x, w, b2)


# ----------------------------------------------------------------------------
# Kernel 2: fused MLP head  l2(relu(l1(relu(l0(x)))))  with K-tiled l0.
# ----------------------------------------------------------------------------
def _mlp_head_kernel(x_ref, w0_ref, b0_ref, w1_ref, b1_ref, w2_ref, b2_ref,
                     o_ref, acc_ref):
    k = pl.program_id(0)

    @pl.when(k == 0)
    def _():
        acc_ref[...] = jnp.zeros_like(acc_ref)

    acc_ref[...] += jnp.dot(x_ref[...], w0_ref[...],
                            preferred_element_type=jnp.float32)

    @pl.when(k == pl.num_programs(0) - 1)
    def _():
        h0 = jnp.maximum(acc_ref[...] + b0_ref[...], 0.0)          # (B,512) f32
        h1 = jnp.dot(h0.astype(jnp.bfloat16), w1_ref[...],
                     preferred_element_type=jnp.float32) + b1_ref[...]
        h1 = jnp.maximum(h1, 0.0)                                  # (B,512) f32
        # N=1 projection fused as an elementwise multiply + lane reduction:
        # no 1-wide MXU matmul, no extra pallas_call / HBM round-trip.
        out = jnp.sum(h1 * w2_ref[...], axis=-1, keepdims=True) + b2_ref[...]
        o_ref[...] = out.astype(o_ref.dtype)


def mlp_head(x, w0, b0, w1, b1, w2_row, b2):
    """x:(B, K_PAD) bf16 -> (B, 1) f32. l0 is K-tiled; l1/l2 in the epilogue."""
    B, Kp = x.shape
    assert Kp % K_BLOCK == 0
    n_k = Kp // K_BLOCK
    return pl.pallas_call(
        _mlp_head_kernel,
        out_shape=jax.ShapeDtypeStruct((B, 1), jnp.float32),
        grid_spec=pltpu.PrefetchScalarGridSpec(
            num_scalar_prefetch=0,
            grid=(n_k,),
            in_specs=[
                pl.BlockSpec((B, K_BLOCK), lambda k: (0, k)),      # activation
                pl.BlockSpec((K_BLOCK, 512), lambda k: (k, 0)),    # l0 weight tile
                pl.BlockSpec((1, 512), lambda k: (0, 0)),          # l0 bias
                pl.BlockSpec((512, 512), lambda k: (0, 0)),        # l1 weight (resident)
                pl.BlockSpec((1, 512), lambda k: (0, 0)),          # l1 bias
                pl.BlockSpec((1, 512), lambda k: (0, 0)),          # l2 weight (row)
                pl.BlockSpec((1, 1), lambda k: (0, 0)),            # l2 bias
            ],
            out_specs=pl.BlockSpec((B, 1), lambda k: (0, 0)),
            scratch_shapes=[pltpu.VMEM((B, 512), jnp.float32)],
        ),
        compiler_params=pltpu.CompilerParams(
            dimension_semantics=("arbitrary",),
            vmem_limit_bytes=32 << 20,
        ),
    )(x, w0, b0.reshape(1, 512), w1, b1.reshape(1, 512),
      w2_row.reshape(1, 512), b2.reshape(1, 1))


# ----------------------------------------------------------------------------
# Glue: im2col for 3x3 valid conv (NHWC), column order (dy, dx, cin).
# ----------------------------------------------------------------------------
def im2col3x3(x_nhwc):
    B, H, W, C = x_nhwc.shape
    OH, OW = H - 2, W - 2
    cols = [x_nhwc[:, dy:dy + OH, dx:dx + OW, :]
            for dy in range(3) for dx in range(3)]
    patches = jnp.stack(cols, axis=3)                  # (B, OH, OW, 9, C)
    return patches.reshape(B * OH * OW, 9 * C)


def conv3x3(x_nhwc, w_rows, b, act):
    B, H, W, _ = x_nhwc.shape
    OH, OW = H - 2, W - 2
    cout = w_rows.shape[1]
    out = matmul_bias_act(im2col3x3(x_nhwc), w_rows, b, act=act)
    return out.reshape(B, OH, OW, cout)


# ----------------------------------------------------------------------------
# GlobalDiscriminator forward
# ----------------------------------------------------------------------------
@jax.jit
def global_discriminator(p, y, M):
    B = y.shape[0]
    x = jnp.transpose(M, (0, 2, 3, 1)).astype(jnp.bfloat16)     # NCHW -> NHWC
    h = conv3x3(x, p["c0_w"], p["c0_b"], act="relu")            # (B,24,24,64)
    h = conv3x3(h, p["c1_w"], p["c1_b"], act="none")            # (B,22,22,32)
    h_flat = h.reshape(B, CONV_FLAT)     # NHWC flatten; l0 weight rows permuted to match
    x_head = jnp.concatenate(
        [y.astype(jnp.bfloat16), h_flat,
         jnp.zeros((B, K_PAD - K_IN), jnp.bfloat16)], axis=1)   # (B, K_PAD)
    return mlp_head(x_head, p["l0_w"], p["l0_b"], p["l1_w"], p["l1_b"],
                    p["l2_w"], p["l2_b"])


# ----------------------------------------------------------------------------
# Parameter init: f32 reference params (PyTorch layout/semantics) + kernel-ready
# params (bf16 operands, im2col-ordered conv weights, permuted+padded l0 weight).
# ----------------------------------------------------------------------------
def _uniform(key, shape, fan_in):
    s = 1.0 / (fan_in ** 0.5)
    return jax.random.uniform(key, shape, jnp.float32, -s, s)


def init_params(key):
    ks = jax.random.split(key, 10)
    ref = {}
    ref["c0_w"] = _uniform(ks[0], (3, 3, 128, 64), 128 * 9)     # HWIO
    ref["c0_b"] = _uniform(ks[1], (64,), 128 * 9)
    ref["c1_w"] = _uniform(ks[2], (3, 3, 64, 32), 64 * 9)
    ref["c1_b"] = _uniform(ks[3], (32,), 64 * 9)
    # l0 rows: [ y (64) | conv features in PyTorch NCHW-flatten order (15488) ]
    ref["l0_w"] = _uniform(ks[4], (K_IN, 512), K_IN)
    ref["l0_b"] = _uniform(ks[5], (512,), K_IN)
    ref["l1_w"] = _uniform(ks[6], (512, 512), 512)
    ref["l1_b"] = _uniform(ks[7], (512,), 512)
    ref["l2_w"] = _uniform(ks[8], (512, 1), 512)
    ref["l2_b"] = _uniform(ks[9], (1,), 512)

    p = {}
    # Conv weights flattened to (dy, dx, cin) rows == im2col column order.
    # (Importing real PyTorch weights: permute (O,I,KH,KW) -> (KH,KW,I,O) first.)
    p["c0_w"] = ref["c0_w"].reshape(9 * 128, 64).astype(jnp.bfloat16)
    p["c0_b"] = ref["c0_b"]
    p["c1_w"] = ref["c1_w"].reshape(9 * 64, 32).astype(jnp.bfloat16)
    p["c1_b"] = ref["c1_b"]
    # Reorder l0 conv rows from NCHW-flat (c,h,w) to NHWC-flat (h,w,c) and
    # zero-pad K to a multiple of K_BLOCK -- once, at init.
    j_chw = jnp.arange(CONV_FLAT).reshape(32, 22, 22)           # (c,h,w) -> old row
    hwc_order = jnp.transpose(j_chw, (1, 2, 0)).reshape(-1)     # new (h,w,c) order
    w0 = jnp.concatenate(
        [ref["l0_w"][:64],
         ref["l0_w"][64:][hwc_order],
         jnp.zeros((K_PAD - K_IN, 512), jnp.float32)], axis=0)
    p["l0_w"] = w0.astype(jnp.bfloat16)
    p["l0_b"] = ref["l0_b"]
    p["l1_w"] = ref["l1_w"].astype(jnp.bfloat16)
    p["l1_b"] = ref["l1_b"]
    p["l2_w"] = ref["l2_w"].reshape(1, 512)                     # f32 epilogue row
    p["l2_b"] = ref["l2_b"]
    return p, ref


# ----------------------------------------------------------------------------
# Plain-JAX f32 reference (mirrors the PyTorch module exactly) for validation.
# ----------------------------------------------------------------------------
def reference_forward(ref, y, M):
    dn = ("NHWC", "HWIO", "NHWC")
    x = jnp.transpose(M, (0, 2, 3, 1))
    h = lax.conv_general_dilated(x, ref["c0_w"], (1, 1), "VALID",
                                 dimension_numbers=dn) + ref["c0_b"]
    h = jnp.maximum(h, 0.0)
    h = lax.conv_general_dilated(h, ref["c1_w"], (1, 1), "VALID",
                                 dimension_numbers=dn) + ref["c1_b"]
    h = jnp.transpose(h, (0, 3, 1, 2)).reshape(y.shape[0], -1)  # PyTorch .view (NCHW)
    h = jnp.concatenate([y, h], axis=1)
    h = jnp.maximum(h @ ref["l0_w"] + ref["l0_b"], 0.0)
    h = jnp.maximum(h @ ref["l1_w"] + ref["l1_b"], 0.0)
    return h @ ref["l2_w"] + ref["l2_b"]


if __name__ == "__main__":
    key = jax.random.PRNGKey(0)
    k_y, k_m, k_p = jax.random.split(key, 3)

    B = 2  # batch; channel / spatial dims are fixed by the module architecture
    y = jax.random.normal(k_y, (B, 64), jnp.float32)
    M = jax.random.normal(k_m, (B, 128, 26, 26), jnp.float32)

    params, ref_params = init_params(k_p)

    out = jax.block_until_ready(global_discriminator(params, y, M))
    assert out.shape == (B, 1) and bool(jnp.all(jnp.isfinite(out)))

    ref = reference_forward(ref_params, y, M)
    err = float(jnp.max(jnp.abs(out - ref)))
    tol = 0.05 * (1.0 + float(jnp.max(jnp.abs(ref))))   # generous: bf16 MXU operands
    assert err <= tol, f"mismatch vs reference: max|err|={err} tol={tol}"

    print("KERNEL_OK")
</pallas_src>

<mosaic_0001>
module attributes {stable_mosaic.version = 11 : i64} {
  func.func @_matmul_bias_act_kernel(%arg0: i32, %arg1: memref<256x1152xbf16, #tpu.memory_space<vmem>>, %arg2: memref<1152x64xbf16, #tpu.memory_space<vmem>>, %arg3: memref<1x64xf32, #tpu.memory_space<vmem>>, %arg4: memref<256x64xbf16, #tpu.memory_space<vmem>>) attributes {dimension_semantics = [#tpu.dimension_semantics<parallel>], iteration_bounds = array<i64: 5>, scalar_prefetch = 0 : i64, scratch_operands = 0 : i64, tpu.core_type = #tpu.core_type<tc>, window_params = [{transform_indices = @transform_0, window_bounds = array<i64: 256, 1152>}, {pipeline_mode = #tpu.pipeline_mode<synchronous>, transform_indices = @transform_1, window_bounds = array<i64: 1152, 64>}, {pipeline_mode = #tpu.pipeline_mode<synchronous>, transform_indices = @transform_2, window_bounds = array<i64: 1, 64>}, {transform_indices = @transform_3, window_bounds = array<i64: 256, 64>}]} {
    %c0 = arith.constant 0 : index
    %c0_0 = arith.constant 0 : index
    %0 = vector.load %arg1[%c0, %c0_0] : memref<256x1152xbf16, #tpu.memory_space<vmem>>, vector<256x1152xbf16>
    %c0_1 = arith.constant 0 : index
    %c0_2 = arith.constant 0 : index
    %1 = vector.load %arg2[%c0_1, %c0_2] : memref<1152x64xbf16, #tpu.memory_space<vmem>>, vector<1152x64xbf16>
    %cst = arith.constant dense<0.000000e+00> : vector<256x64xf32>
    %2 = tpu.matmul %0, %1, %cst {dimension_numbers = #tpu.dot_dimension_numbers<[1], [0], [0], [1], [0, 0, 1, 1], [], []>} : vector<256x1152xbf16>, vector<1152x64xbf16>, vector<256x64xf32> -> vector<256x64xf32>
    %c0_3 = arith.constant 0 : index
    %c0_4 = arith.constant 0 : index
    %3 = vector.load %arg3[%c0_3, %c0_4] : memref<1x64xf32, #tpu.memory_space<vmem>>, vector<1x64xf32>
    %4 = vector.broadcast %3 : vector<1x64xf32> to vector<256x64xf32>
    %5 = arith.addf %2, %4 : vector<256x64xf32>
    %cst_5 = arith.constant 0.000000e+00 : f32
    %6 = vector.broadcast %cst_5 : f32 to vector<256x64xf32>
    %7 = arith.maximumf %5, %6 : vector<256x64xf32>
    %8 = arith.truncf %7 : vector<256x64xf32> to vector<256x64xbf16>
    %c0_6 = arith.constant 0 : index
    %c0_7 = arith.constant 0 : index
    %9 = vector.load %arg4[%c0_6, %c0_7] : memref<256x64xbf16, #tpu.memory_space<vmem>>, vector<256x64xbf16>
    tpu.vector_store %arg4[%c0_6, %c0_7], %8 {strides = array<i32>} : memref<256x64xbf16, #tpu.memory_space<vmem>>, vector<256x64xbf16>,
    return
  }
  func.func @transform_0(%arg0: i32) -> (i32, i32) {
    %c0_i32 = arith.constant 0 : i32
    %c0_i32_0 = arith.constant 0 : i32
    return %arg0, %c0_i32 : i32, i32
  }
  func.func @transform_1(%arg0: i32) -> (i32, i32) {
    %c0_i32 = arith.constant 0 : i32
    %c0_i32_0 = arith.constant 0 : i32
    %c0_i32_1 = arith.constant 0 : i32
    return %c0_i32, %c0_i32_0 : i32, i32
  }
  func.func @transform_2(%arg0: i32) -> (i32, i32) {
    %c0_i32 = arith.constant 0 : i32
    %c0_i32_0 = arith.constant 0 : i32
    %c0_i32_1 = arith.constant 0 : i32
    return %c0_i32, %c0_i32_0 : i32, i32
  }
  func.func @transform_3(%arg0: i32) -> (i32, i32) {
    %c0_i32 = arith.constant 0 : i32
    %c0_i32_0 = arith.constant 0 : i32
    return %arg0, %c0_i32 : i32, i32
  }
}

module attributes {stable_mosaic.version = 11 : i64} {
  func.func @_matmul_bias_act_kernel(%arg0: i32, %arg1: memref<256x576xbf16, #tpu.memory_space<vmem>>, %arg2: memref<576x32xbf16, #tpu.memory_space<vmem>>, %arg3: memref<1x32xf32, #tpu.memory_space<vmem>>, %arg4: memref<256x32xbf16, #tpu.memory_space<vmem>>) attributes {dimension_semantics = [#tpu.dimension_semantics<parallel>], iteration_bounds = array<i64: 4>, scalar_prefetch = 0 : i64, scratch_operands = 0 : i64, tpu.core_type = #tpu.core_type<tc>, window_params = [{transform_indices = @transform_0, window_bounds = array<i64: 256, 576>}, {pipeline_mode = #tpu.pipeline_mode<synchronous>, transform_indices = @transform_1, window_bounds = array<i64: 576, 32>}, {pipeline_mode = #tpu.pipeline_mode<synchronous>, transform_indices = @transform_2, window_bounds = array<i64: 1, 32>}, {transform_indices = @transform_3, window_bounds = array<i64: 256, 32>}]} {
    %c0 = arith.constant 0 : index
    %c0_0 = arith.constant 0 : index
    %0 = vector.load %arg1[%c0, %c0_0] : memref<256x576xbf16, #tpu.memory_space<vmem>>, vector<256x576xbf16>
    %c0_1 = arith.constant 0 : index
    %c0_2 = arith.constant 0 : index
    %1 = vector.load %arg2[%c0_1, %c0_2] : memref<576x32xbf16, #tpu.memory_space<vmem>>, vector<576x32xbf16>
    %cst = arith.constant dense<0.000000e+00> : vector<256x32xf32>
    %2 = tpu.matmul %0, %1, %cst {dimension_numbers = #tpu.dot_dimension_numbers<[1], [0], [0], [1], [0, 0, 1, 1], [], []>} : vector<256x576xbf16>, vector<576x32xbf16>, vector<256x32xf32> -> vector<256x32xf32>
    %c0_3 = arith.constant 0 : index
    %c0_4 = arith.constant 0 : index
    %3 = vector.load %arg3[%c0_3, %c0_4] : memref<1x32xf32, #tpu.memory_space<vmem>>, vector<1x32xf32>
    %4 = vector.broadcast %3 : vector<1x32xf32> to vector<256x32xf32>
    %5 = arith.addf %2, %4 : vector<256x32xf32>
    %6 = arith.truncf %5 : vector<256x32xf32> to vector<256x32xbf16>
    %c0_5 = arith.constant 0 : index
    %c0_6 = arith.constant 0 : index
    %7 = vector.load %arg4[%c0_5, %c0_6] : memref<256x32xbf16, #tpu.memory_space<vmem>>, vector<256x32xbf16>
    tpu.vector_store %arg4[%c0_5, %c0_6], %6 {strides = array<i32>} : memref<256x32xbf16, #tpu.memory_space<vmem>>, vector<256x32xbf16>,
    return
  }
  func.func @transform_0(%arg0: i32) -> (i32, i32) {
    %c0_i32 = arith.constant 0 : i32
    %c0_i32_0 = arith.constant 0 : i32
    return %arg0, %c0_i32 : i32, i32
  }
  func.func @transform_1(%arg0: i32) -> (i32, i32) {
    %c0_i32 = arith.constant 0 : i32
    %c0_i32_0 = arith.constant 0 : i32
    %c0_i32_1 = arith.constant 0 : i32
    return %c0_i32, %c0_i32_0 : i32, i32
  }
  func.func @transform_2(%arg0: i32) -> (i32, i32) {
    %c0_i32 = arith.constant 0 : i32
    %c0_i32_0 = arith.constant 0 : i32
    %c0_i32_1 = arith.constant 0 : i32
    return %c0_i32, %c0_i32_0 : i32, i32
  }
  func.func @transform_3(%arg0: i32) -> (i32, i32) {
    %c0_i32 = arith.constant 0 : i32
    %c0_i32_0 = arith.constant 0 : i32
    return %arg0, %c0_i32 : i32, i32
  }
}

module attributes {stable_mosaic.version = 11 : i64} {
  func.func @_mlp_head_kernel(%arg0: i32, %arg1: memref<2x3968xbf16, #tpu.memory_space<vmem>>, %arg2: memref<3968x512xbf16, #tpu.memory_space<vmem>>, %arg3: memref<1x512xf32, #tpu.memory_space<vmem>>, %arg4: memref<512x512xbf16, #tpu.memory_space<vmem>>, %arg5: memref<1x512xf32, #tpu.memory_space<vmem>>, %arg6: memref<1x512xf32, #tpu.memory_space<vmem>>, %arg7: memref<1x1xf32, #tpu.memory_space<vmem>>, %arg8: memref<2x1xf32, #tpu.memory_space<vmem>>, %arg9: memref<2x512xf32, #tpu.memory_space<vmem>>) attributes {dimension_semantics = [#tpu.dimension_semantics<arbitrary>], iteration_bounds = array<i64: 4>, scalar_prefetch = 0 : i64, scratch_operands = 1 : i64, tpu.core_type = #tpu.core_type<tc>, window_params = [{transform_indices = @transform_0, window_bounds = array<i64: 2, 3968>}, {transform_indices = @transform_1, window_bounds = array<i64: 3968, 512>}, {pipeline_mode = #tpu.pipeline_mode<synchronous>, transform_indices = @transform_2, window_bounds = array<i64: 1, 512>}, {pipeline_mode = #tpu.pipeline_mode<synchronous>, transform_indices = @transform_3, window_bounds = array<i64: 512, 512>}, {pipeline_mode = #tpu.pipeline_mode<synchronous>, transform_indices = @transform_4, window_bounds = array<i64: 1, 512>}, {pipeline_mode = #tpu.pipeline_mode<synchronous>, transform_indices = @transform_5, window_bounds = array<i64: 1, 512>}, {pipeline_mode = #tpu.pipeline_mode<synchronous>, transform_indices = @transform_6, window_bounds = array<i64: 1, 1>}, {pipeline_mode = #tpu.pipeline_mode<synchronous>, transform_indices = @transform_7, window_bounds = array<i64: 2, 1>}]} {
    %c0_i32 = arith.constant 0 : i32
    %0 = arith.cmpi eq, %arg0, %c0_i32 : i32
    %1 = arith.extui %0 : i1 to i32
    %c0_i32_0 = arith.constant 0 : i32
    %2 = arith.cmpi ne, %1, %c0_i32_0 : i32
    scf.if %2 {
      %cst_9 = arith.constant 0.000000e+00 : f32
      %12 = vector.broadcast %cst_9 : f32 to vector<2x512xf32>
      %c0_10 = arith.constant 0 : index
      %c0_11 = arith.constant 0 : index
      %13 = vector.load %arg9[%c0_10, %c0_11] : memref<2x512xf32, #tpu.memory_space<vmem>>, vector<2x512xf32>
      tpu.vector_store %arg9[%c0_10, %c0_11], %12 {strides = array<i32>} : memref<2x512xf32, #tpu.memory_space<vmem>>, vector<2x512xf32>,
    } else {
    }
    %c0 = arith.constant 0 : index
    %c0_1 = arith.constant 0 : index
    %3 = vector.load %arg9[%c0, %c0_1] : memref<2x512xf32, #tpu.memory_space<vmem>>, vector<2x512xf32>
    %c0_2 = arith.constant 0 : index
    %c0_3 = arith.constant 0 : index
    %4 = vector.load %arg1[%c0_2, %c0_3] : memref<2x3968xbf16, #tpu.memory_space<vmem>>, vector<2x3968xbf16>
    %c0_4 = arith.constant 0 : index
    %c0_5 = arith.constant 0 : index
    %5 = vector.load %arg2[%c0_4, %c0_5] : memref<3968x512xbf16, #tpu.memory_space<vmem>>, vector<3968x512xbf16>
    %cst = arith.constant dense<0.000000e+00> : vector<2x512xf32>
    %6 = tpu.matmul %4, %5, %cst {dimension_numbers = #tpu.dot_dimension_numbers<[1], [0], [0], [1], [0, 0, 1, 1], [], []>} : vector<2x3968xbf16>, vector<3968x512xbf16>, vector<2x512xf32> -> vector<2x512xf32>
    %7 = arith.addf %3, %6 : vector<2x512xf32>
    %c0_6 = arith.constant 0 : index
    %c0_7 = arith.constant 0 : index
    %8 = vector.load %arg9[%c0_6, %c0_7] : memref<2x512xf32, #tpu.memory_space<vmem>>, vector<2x512xf32>
    tpu.vector_store %arg9[%c0_6, %c0_7], %7 {strides = array<i32>} : memref<2x512xf32, #tpu.memory_space<vmem>>, vector<2x512xf32>,
    %c3_i32 = arith.constant 3 : i32
    %9 = arith.cmpi eq, %arg0, %c3_i32 : i32
    %10 = arith.extui %9 : i1 to i32
    %c0_i32_8 = arith.constant 0 : i32
    %11 = arith.cmpi ne, %10, %c0_i32_8 : i32
    scf.if %11 {
      %c0_9 = arith.constant 0 : index
      %c0_10 = arith.constant 0 : index
      %12 = vector.load %arg9[%c0_9, %c0_10] : memref<2x512xf32, #tpu.memory_space<vmem>>, vector<2x512xf32>
      %c0_11 = arith.constant 0 : index
      %c0_12 = arith.constant 0 : index
      %13 = vector.load %arg3[%c0_11, %c0_12] : memref<1x512xf32, #tpu.memory_space<vmem>>, vector<1x512xf32>
      %14 = vector.broadcast %13 : vector<1x512xf32> to vector<2x512xf32>
      %15 = arith.addf %12, %14 : vector<2x512xf32>
      %cst_13 = arith.constant 0.000000e+00 : f32
      %16 = vector.broadcast %cst_13 : f32 to vector<2x512xf32>
      %17 = arith.maximumf %15, %16 : vector<2x512xf32>
      %18 = arith.truncf %17 : vector<2x512xf32> to vector<2x512xbf16>
      %c0_14 = arith.constant 0 : index
      %c0_15 = arith.constant 0 : index
      %19 = vector.load %arg4[%c0_14, %c0_15] : memref<512x512xbf16, #tpu.memory_space<vmem>>, vector<512x512xbf16>
      %cst_16 = arith.constant dense<0.000000e+00> : vector<2x512xf32>
      %20 = tpu.matmul %18, %19, %cst_16 {dimension_numbers = #tpu.dot_dimension_numbers<[1], [0], [0], [1], [0, 0, 1, 1], [], []>} : vector<2x512xbf16>, vector<512x512xbf16>, vector<2x512xf32> -> vector<2x512xf32>
      %c0_17 = arith.constant 0 : index
      %c0_18 = arith.constant 0 : index
      %21 = vector.load %arg5[%c0_17, %c0_18] : memref<1x512xf32, #tpu.memory_space<vmem>>, vector<1x512xf32>
      %22 = vector.broadcast %21 : vector<1x512xf32> to vector<2x512xf32>
      %23 = arith.addf %20, %22 : vector<2x512xf32>
      %cst_19 = arith.constant 0.000000e+00 : f32
      %24 = vector.broadcast %cst_19 : f32 to vector<2x512xf32>
      %25 = arith.maximumf %23, %24 : vector<2x512xf32>
      %c0_20 = arith.constant 0 : index
      %c0_21 = arith.constant 0 : index
      %26 = vector.load %arg6[%c0_20, %c0_21] : memref<1x512xf32, #tpu.memory_space<vmem>>, vector<1x512xf32>
      %27 = vector.broadcast %26 : vector<1x512xf32> to vector<2x512xf32>
      %28 = arith.mulf %25, %27 : vector<2x512xf32>
      %cst_22 = arith.constant dense<0.000000e+00> : vector<2xf32>
      %29 = vector.multi_reduction <add>, %28, %cst_22 [1] : vector<2x512xf32> to vector<2xf32>
      %30 = vector.shape_cast %29 : vector<2xf32> to vector<2x1xf32>
      %c0_23 = arith.constant 0 : index
      %c0_24 = arith.constant 0 : index
      %31 = vector.load %arg7[%c0_23, %c0_24] : memref<1x1xf32, #tpu.memory_space<vmem>>, vector<1x1xf32>
      %32 = vector.broadcast %31 : vector<1x1xf32> to vector<2x1xf32>
      %33 = arith.addf %30, %32 : vector<2x1xf32>
      %c0_25 = arith.constant 0 : index
      %c0_26 = arith.constant 0 : index
      %34 = vector.load %arg8[%c0_25, %c0_26] : memref<2x1xf32, #tpu.memory_space<vmem>>, vector<2x1xf32>
      tpu.vector_store %arg8[%c0_25, %c0_26], %33 {strides = array<i32>} : memref<2x1xf32, #tpu.memory_space<vmem>>, vector<2x1xf32>,
    } else {
    }
    return
  }
  func.func @transform_0(%arg0: i32) -> (i32, i32) {
    %c0_i32 = arith.constant 0 : i32
    %c0_i32_0 = arith.constant 0 : i32
    return %c0_i32, %arg0 : i32, i32
  }
  func.func @transform_1(%arg0: i32) -> (i32, i32) {
    %c0_i32 = arith.constant 0 : i32
    %c0_i32_0 = arith.constant 0 : i32
    return %arg0, %c0_i32 : i32, i32
  }
  func.func @transform_2(%arg0: i32) -> (i32, i32) {
    %c0_i32 = arith.constant 0 : i32
    %c0_i32_0 = arith.constant 0 : i32
    %c0_i32_1 = arith.constant 0 : i32
    return %c0_i32, %c0_i32_0 : i32, i32
  }
  func.func @transform_3(%arg0: i32) -> (i32, i32) {
    %c0_i32 = arith.constant 0 : i32
    %c0_i32_0 = arith.constant 0 : i32
    %c0_i32_1 = arith.constant 0 : i32
    return %c0_i32, %c0_i32_0 : i32, i32
  }
  func.func @transform_4(%arg0: i32) -> (i32, i32) {
    %c0_i32 = arith.constant 0 : i32
    %c0_i32_0 = arith.constant 0 : i32
    %c0_i32_1 = arith.constant 0 : i32
    return %c0_i32, %c0_i32_0 : i32, i32
  }
  func.func @transform_5(%arg0: i32) -> (i32, i32) {
    %c0_i32 = arith.constant 0 : i32
    %c0_i32_0 = arith.constant 0 : i32
    %c0_i32_1 = arith.constant 0 : i32
    return %c0_i32, %c0_i32_0 : i32, i32
  }
  func.func @transform_6(%arg0: i32) -> (i32, i32) {
    %c0_i32 = arith.constant 0 : i32
    %c0_i32_0 = arith.constant 0 : i32
    %c0_i32_1 = arith.constant 0 : i32
    return %c0_i32, %c0_i32_0 : i32, i32
  }
  func.func @transform_7(%arg0: i32) -> (i32, i32) {
    %c0_i32 = arith.constant 0 : i32
    %c0_i32_0 = arith.constant 0 : i32
    %c0_i32_1 = arith.constant 0 : i32
    return %c0_i32, %c0_i32_0 : i32, i32
  }
}

</mosaic_0001>

<bundles_post_ra>
// kernel: global_discriminator.3
= control target key start
LH: loop header
LB: loop body
LE: loop exit
PB: predicated region body
PF: predicated region fallthrough
CT: control target
= control target key end

     0   :  { %s4337_s12 = smov 0   ;;  %s4339_s13 = smov 0   ;;  %s5323_s0 = inlined_call_operand.vmem [shape: bf16[1152,1152], index: 0, kind: input, shape index: {}]   ;;  %s5324_s1 = inlined_call_operand.vmem [shape: bf16[1152,64], index: 1, kind: input, shape index: {}]   ;;  %s5325_s2 = inlined_call_operand.vmem [shape: f32[1,64], index: 2, kind: input, shape index: {}]   ;;  %s5326_s3 = inlined_call_operand.vmem [shape: bf16[1152,64], index: 3, kind: output, shape index: {}]  }
   0x1   :  { %s4341_s14 = smov 0  }
   0x2 LB: > { %s4350_s15 = sadd.s32 4294967295, %s4283_s14   ;;  %s4352_s16 = sadd.s32 1, %s4283_s14   ;;  %s4283_s14 = sphi %s4341_s14, %s5333_s14   ;;  %s4279_s13 = sphi %s4339_s13, %s5332_s13   ;;  %s4275_s12 = sphi %s4337_s12, %s5331_s12  }
   0x3   : > { %s85_s17 = ssub.s32 %s4283_s14, %s4352_s16  ;;  %s88_s18 = sadd.s32 1, %s4279_s13 }
   0x4   : > { %p86_p0 = scmp.eq.s32.totalorder %s85_s17, 0  ;;  %p98_p1 = scmp.ne.s32.totalorder %s4279_s13, %s4275_s12 }
   0x5   : > { %p99_p2 = scmp.eq.s32.totalorder %s4350_s15, 4  ;;  %p3019_p3 = scmp.ge.s32.totalorder %s4283_s14, 1 }
   0x6   : > { %s4360_s19 = scalar_select %p86_p0, %s4279_s13, %s88_s18  }
   0x7   : > { %p4362_p4 = por %p99_p2, %p98_p1  ;;  %p149_p5 = scmp.lt.s32.totalorder %s4283_s14, 6 }
   0x9   : > { %p150_p6 = pnand %p3019_p3, %p149_p5 }
   0xa   : > { %v3949_v0 = vld [vmem:[%s5324_s1 + $0x40] sm:$0xff] (!%p150_p6)   ;;  %s4370_s23 = sshll.u32 (!%p150_p6), %s4350_s15, 5  ;;  %v3951_v2 = vld [vmem:[%s5324_s1 + $0x48] sm:$0xff] (!%p150_p6)   ;;  %v3953_v4 = vld [vmem:[%s5324_s1 + $0x50] sm:$0xff] (!%p150_p6)   ;;  %vm2645_vm0 = vcmask (!%p150_p6), 519168  }
   0xb   : > { %153 = sbr.rel (%p150_p6) target bundleno = 619 (0x26b), region = 32  ;;  %v3950_v1 = vld [vmem:[%s5324_s1] sm:$0xff] (!%p150_p6)   ;;  %3324 = vmatprep.subr.bf16.mxu0 (!%p150_p6), %v3949_v0  ;;  %3844 = vmatprep.subr.bf16.mxu1 (!%p150_p6), %v3949_v0  ;;  %p184_p7 = scmp.lt.s32.totalorder (!%p150_p6), %s4370_s23, 143  ;;  %v3952_v3 = vld [vmem:[%s5324_s1 + $0x8] sm:$0xff] (!%p150_p6)   ;;  %v3954_v5 = vld [vmem:[%s5324_s1 + $0x10] sm:$0xff] (!%p150_p6)  }
   0xc   : > { %3325 = vmatpush3.bf16.msra.mxu0 (!%p150_p6), %v3950_v1  ;;  %3852 = vmatpush3.bf16.msra.mxu1 (!%p150_p6), %v3950_v1  ;;  %v3955_v6 = vld [vmem:[%s5324_s1 + $0x58] sm:$0xff] (!%p150_p6)   ;;  %v3957_v8 = vld [vmem:[%s5324_s1 + $0x60] sm:$0xff] (!%p150_p6)   ;;  %v3959_v10 = vld [vmem:[%s5324_s1 + $0x68] sm:$0xff] (!%p150_p6)  }
   0xd   : > { %3326 = vmatprep.subr.bf16.mxu0 (!%p150_p6), %v3951_v2  ;;  %3845 = vmatprep.subr.bf16.mxu1 (!%p150_p6), %v3951_v2  ;;  %v3956_v7 = vld [vmem:[%s5324_s1 + $0x18] sm:$0xff] (!%p150_p6)   ;;  %v3958_v9 = vld [vmem:[%s5324_s1 + $0x20] sm:$0xff] (!%p150_p6)   ;;  %v3960_v13 = vld [vmem:[%s5324_s1 + $0x28] sm:$0xff] (!%p150_p6)  }
   0xe   : > { %v3961_v14 = vld [vmem:[%s5324_s1 + $0x70] sm:$0xff] (!%p150_p6)   ;;  %v3963_v16 = vld [vmem:[%s5324_s1 + $0x78] sm:$0xff] (!%p150_p6)   ;;  %v3971_v18 = vld [vmem:[%s5324_s1 + $0xc0] sm:$0xff] (!%p150_p6)  }
   0xf   : > { %v3962_v15 = vld [vmem:[%s5324_s1 + $0x30] sm:$0xff] (!%p150_p6)   ;;  %v3964_v17 = vld [vmem:[%s5324_s1 + $0x38] sm:$0xff] (!%p150_p6)   ;;  %v3974_v21 = vld [vmem:[%s5324_s1 + $0x140] sm:$0xff] (!%p150_p6)  }
  0x10   : > { %3327 = vmatpush3.bf16.msra.mxu0 (!%p150_p6), %v3952_v3  ;;  %3853 = vmatpush3.bf16.msra.mxu1 (!%p150_p6), %v3952_v3  ;;  %v3972_v22 = vld [vmem:[%s5324_s1 + $0x80] sm:$0xff] (!%p150_p6)   ;;  %v3973_v23 = vld [vmem:[%s5324_s1 + $0xc8] sm:$0xff] (!%p150_p6)   ;;  %v3983_v31 = vld [vmem:[%s5324_s1 + $0xd0] sm:$0xff] (!%p150_p6)  }
  0x11   : > { %3328 = vmatprep.subr.bf16.mxu0 (!%p150_p6), %v3953_v4  ;;  %3846 = vmatprep.subr.bf16.mxu1 (!%p150_p6), %v3953_v4  ;;  %v3976_v24 = vld [vmem:[%s5324_s1 + $0x100] sm:$0xff] (!%p150_p6)   ;;  %v3975_v27 = vld [vmem:[%s5324_s1 + $0x88] sm:$0xff] (!%p150_p6)   ;;  %v3984_v32 = vld [vmem:[%s5324_s1 + $0x90] sm:$0xff] (!%p150_p6)  }
  0x12   : > { %s185_s5 = scalar_select %p184_p7, %s4370_s23, 143  ;;  %v3994_v28 = vld [vmem:[%s5324_s1 + $0x148] sm:$0xff]   ;;  %v3985_v34 = vld [vmem:[%s5324_s1 + $0xd8] sm:$0xff]   ;;  %v3993_v40 = vld [vmem:[%s5324_s1 + $0xe0] sm:$0xff]  }
  0x13   : > { %v3996_v33 = vld [vmem:[%s5324_s1 + $0x108] sm:$0xff]   ;;  %v3986_v37 = vld [vmem:[%s5324_s1 + $0x98] sm:$0xff]   ;;  %v3995_v41 = vld [vmem:[%s5324_s1 + $0xa0] sm:$0xff]   ;;  %s2686_s17 = ssub.s32 (%p4362_p4), 144, %s4370_s23  ;;  %s3321_s18 = sshll.u32 (%p4362_p4), %s4350_s15, 7 }
  0x14   : > { %s3860_s10 = smul.u32 36, %s185_s5  ;;  %3329 = vmatpush3.bf16.msra.mxu0 %v3954_v5  ;;  %3854 = vmatpush3.bf16.msra.mxu1 %v3954_v5  ;;  %v3997_v42 = vld [vmem:[%s5324_s1 + $0xe8] sm:$0xff]   ;;  %v4008_v43 = vld [vmem:[%s5324_s1 + $0x150] sm:$0xff]   ;;  %v4007_v52 = vld [vmem:[%s5324_s1 + $0xf8] sm:$0xff]   ;;  %p2687_p8 = scmp.lt.s32.totalorder (%p4362_p4), %s2686_s17, 32 }
  0x15   : > { %3330 = vmatprep.subr.bf16.mxu0 %v3955_v6  ;;  %3847 = vmatprep.subr.bf16.mxu1 %v3955_v6  ;;  %v4010_v46 = vld [vmem:[%s5324_s1 + $0x110] sm:$0xff]   ;;  %v3998_v47 = vld [vmem:[%s5324_s1 + $0xa8] sm:$0xff]   ;;  %v4025_v55 = vld [vmem:[%s5324_s1 + $0x158] sm:$0xff]   ;;  %s5195_s25 = scalar_lea.vmem (%p4362_p4), %s5326_s3, %s3321_s18  }
  0x16   : > { %s4401_s24 = scalar_lea.vmem %s5323_s0, %s3860_s10  ;;  %v4005_v48 = vld [vmem:[%s5324_s1 + $0xf0] sm:$0xff]   ;;  %v4026_v56 = vld [vmem:[%s5324_s1 + $0x118] sm:$0xff]   ;;  %v4017_v60 = vld [vmem:[%s5324_s1 + $0x1c0] sm:$0xff]  }
  0x17   : > { %v3967_v11 = vld [vmem:[%s4401_s24 + $0x4] ss:$36 sps:$4 sm:$0xff]   ;;  %v3977_v25 = vld [vmem:[%s4401_s24 + $0x4c] ss:$36 sps:$4 sm:$0xff]   ;;  %v3987_v35 = vld [vmem:[%s4401_s24 + $0x94] ss:$36 sps:$4 sm:$0xff]  }
  0x18   : > { %3331 = vmatpush3.bf16.msra.mxu0 %v3956_v7  ;;  %3855 = vmatpush3.bf16.msra.mxu1 %v3956_v7  ;;  %v3970_v12 = vld [vmem:[%s4401_s24 + $0x364] ss:$36 sps:$4 sm:$0xff]   ;;  %v3979_v26 = vld [vmem:[%s4401_s24 + $0x3ac] ss:$36 sps:$4 sm:$0xff]   ;;  %v3989_v36 = vld [vmem:[%s4401_s24 + $0x3f4] ss:$36 sps:$4 sm:$0xff]  }
  0x19   : > { %3332 = vmatprep.subr.bf16.mxu0 %v3957_v8  ;;  %3848 = vmatprep.subr.bf16.mxu1 %v3957_v8  ;;  %v3965_v19 = vld [vmem:[%s4401_s24] ss:$36 sps:$4 sm:$0xff]   ;;  %v3981_v29 = vld [vmem:[%s4401_s24 + $0x48] ss:$36 sps:$4 sm:$0xff]   ;;  %v3991_v38 = vld [vmem:[%s4401_s24 + $0x90] ss:$36 sps:$4 sm:$0xff]  }
  0x1a   : > { %1712 = vmatprep.mubr.bf16.mxu0 %v3967_v11  ;;  %1808 = vmatprep.mubr.bf16.mxu1 %v3970_v12  ;;  %v3968_v20 = vld [vmem:[%s4401_s24 + $0x360] ss:$36 sps:$4 sm:$0xff]   ;;  %v3982_v30 = vld [vmem:[%s4401_s24 + $0x3a8] ss:$36 sps:$4 sm:$0xff]   ;;  %v3992_v39 = vld [vmem:[%s4401_s24 + $0x3f0] ss:$36 sps:$4 sm:$0xff]  }
  0x1b   : > { %v3999_v44 = vld [vmem:[%s4401_s24 + $0xdc] ss:$36 sps:$4 sm:$0xff]   ;;  %v4006_v51 = vld [vmem:[%s5324_s1 + $0xb0] sm:$0xff]   ;;  %v4011_v53 = vld [vmem:[%s4401_s24 + $0x124] ss:$36 sps:$4 sm:$0xff]  }
  0x1c   : > { %3333 = vmatpush3.bf16.msra.mxu0 %v3958_v9  ;;  %3856 = vmatpush3.bf16.msra.mxu1 %v3958_v9  ;;  %v4001_v45 = vld [vmem:[%s4401_s24 + $0x43c] ss:$36 sps:$4 sm:$0xff]   ;;  %v4015_v54 = vld [vmem:[%s4401_s24 + $0xc] ss:$36 sps:$4 sm:$0xff]   ;;  %v4021_v63 = vld [vmem:[%s4401_s24 + $0x54] ss:$36 sps:$4 sm:$0xff]  }
  0x1d   : > { %3334 = vmatprep.subr.bf16.mxu0 %v3959_v10  ;;  %3849 = vmatprep.subr.bf16.mxu1 %v3959_v10  ;;  %v4003_v49 = vld [vmem:[%s4401_s24 + $0xd8] ss:$36 sps:$4 sm:$0xff]   ;;  %v4013_v58 = vld [vmem:[%s4401_s24 + $0x8] ss:$36 sps:$4 sm:$0xff]   ;;  %v4016_v59 = vld [vmem:[%s4401_s24 + $0x120] ss:$36 sps:$4 sm:$0xff]  }
  0x1e   : > { %v4004_v50 = vld [vmem:[%s4401_s24 + $0x438] ss:$36 sps:$4 sm:$0xff]   ;;  %v4018_v61 = vld [vmem:[%s5324_s1 + $0x180] sm:$0xff]   ;;  %v4019_v62 = vld [vmem:[%s4401_s24 + $0x16c] ss:$36 sps:$4 sm:$0xff]  }
  0x1f   : > { %v4009_v57 = vld [vmem:[%s5324_s1 + $0xb8] sm:$0xff]   ;;  %v4035_v0 = vld [vmem:[%s5324_s1 + $0x160] sm:$0xff]   ;;  %v4033_v1 = vld [vmem:[%s5324_s1 + $0x1c8] sm:$0xff]  }
  0x20   : > { %3335 = vmatpush3.bf16.msra.mxu0 %v3960_v13  ;;  %3857 = vmatpush3.bf16.msra.mxu1 %v3960_v13  ;;  %v4036_v2 = vld [vmem:[%s5324_s1 + $0x120] sm:$0xff]   ;;  %v4034_v3 = vld [vmem:[%s5324_s1 + $0x188] sm:$0xff]   ;;  %v4024_v5 = vld [vmem:[%s4401_s24 + $0x50] ss:$36 sps:$4 sm:$0xff]  }
  0x21   : > { %3336 = vmatprep.subr.bf16.mxu0 %v3961_v14  ;;  %3850 = vmatprep.subr.bf16.mxu1 %v3961_v14  ;;  %v4023_v4 = vld [vmem:[%s4401_s24 + $0x168] ss:$36 sps:$4 sm:$0xff]   ;;  %v4027_v6 = vld [vmem:[%s4401_s24 + $0x1b4] ss:$36 sps:$4 sm:$0xff]   ;;  %v4029_v7 = vld [vmem:[%s4401_s24 + $0x9c] ss:$36 sps:$4 sm:$0xff]  }
  0x22   : > { %v4049_v8 = vld [vmem:[%s5324_s1 + $0x168] sm:$0xff]   ;;  %v4050_v9 = vld [vmem:[%s5324_s1 + $0x1d0] sm:$0xff]   ;;  %v4032_v13 = vld [vmem:[%s4401_s24 + $0x98] ss:$36 sps:$4 sm:$0xff]  }
  0x23   : > { %v4051_v10 = vld [vmem:[%s5324_s1 + $0x128] sm:$0xff]   ;;  %v4052_v11 = vld [vmem:[%s5324_s1 + $0x190] sm:$0xff]   ;;  %v4037_v14 = vld [vmem:[%s4401_s24 + $0x1fc] ss:$36 sps:$4 sm:$0xff]  }
  0x24   : > { %3337 = vmatpush3.bf16.msra.mxu0 %v3962_v15  ;;  %3858 = vmatpush3.bf16.msra.mxu1 %v3962_v15  ;;  %v4031_v12 = vld [vmem:[%s4401_s24 + $0x1b0] ss:$36 sps:$4 sm:$0xff]  }
  0x25   : > { %3338 = vmatprep.subr.bf16.mxu0 %v3963_v16  ;;  %3851 = vmatprep.subr.bf16.mxu1 %v3963_v16  ;;  %v4059_v15 = vld [vmem:[%s5324_s1 + $0x170] sm:$0xff]  }
  0x26   : > { %v4060_v16 = vld [vmem:[%s5324_s1 + $0x130] sm:$0xff]  }
  0x28   : > { %3339 = vmatpush3.bf16.msra.mxu0 %v3964_v17  ;;  %3859 = vmatpush3.bf16.msra.mxu1 %v3964_v17  ;;  %v4039_v17 = vld [vmem:[%s4401_s24 + $0xe4] ss:$36 sps:$4 sm:$0xff]  }
  0x29   : > { %3436 = vmatprep.subr.bf16.mxu1 %v3971_v18  ;;  %3548 = vmatprep.subr.bf16.mxu0 %v3974_v21  ;;  %v4067_v18 = vld [vmem:[%s5324_s1 + $0x1d8] sm:$0xff]   ;;  %v4042_v21 = vld [vmem:[%s4401_s24 + $0xe0] ss:$36 sps:$4 sm:$0xff]  }
  0x2b   : > { %1713 = vmatmul.mubr.bf16.vlgmr.msra.gmra.mrb[0].mxu0 %v3965_v19  ;;  %1809 = vmatmul.mubr.bf16.vlgmr.msra.gmra.mrb[0].mxu1 %v3968_v20  ;;  %v4068_v19 = vld [vmem:[%s5324_s1 + $0x198] sm:$0xff]  }
  0x2c   : > { %3437 = vmatpush3.bf16.msra.mxu1 %v3972_v22  ;;  %3549 = vmatpush3.bf16.msra.mxu0 %v3976_v24  ;;  %v4041_v20 = vld [vmem:[%s4401_s24 + $0x1f8] ss:$36 sps:$4 sm:$0xff]   ;;  %v4043_v22 = vld [vmem:[%s4401_s24 + $0x244] ss:$36 sps:$4 sm:$0xff]  }
  0x2d   : > { %3438 = vmatprep.subr.bf16.mxu1 %v3973_v23  ;;  %1720 = vmatprep.mubr.bf16.mxu0 %v3977_v25  ;;  %v4045_v23 = vld [vmem:[%s4401_s24 + $0x12c] ss:$36 sps:$4 sm:$0xff]   ;;  %v4075_v24 = vld [vmem:[%s5324_s1 + $0x178] sm:$0xff]  }
  0x2e   : > { %1816 = vmatprep.mubr.bf16.mxu1 %v3979_v26  ;;  %3550 = vmatprep.subr.bf16.mxu0 %v3994_v28  ;;  %v4076_v25 = vld [vmem:[%s5324_s1 + $0x138] sm:$0xff]   ;;  %v4083_v26 = vld [vmem:[%s5324_s1 + $0x1e0] sm:$0xff]  }
  0x2f   : > { %v4084_v28 = vld [vmem:[%s5324_s1 + $0x1a0] sm:$0xff]  }
  0x30   : > { %3439 = vmatpush3.bf16.msra.mxu1 %v3975_v27  ;;  %3551 = vmatpush3.bf16.msra.mxu0 %v3996_v33  ;;  %v4047_v27 = vld [vmem:[%s4401_s24 + $0x240] ss:$36 sps:$4 sm:$0xff]   ;;  %v4098_v33 = vld [vmem:[%s5324_s1 + $0x1e8] sm:$0xff]  }
  0x31   : > { %3440 = vmatprep.subr.bf16.mxu1 %v3983_v31  ;;  %3552 = vmatprep.subr.bf16.mxu0 %v4008_v43  ;;  %v4053_v31 = vld [vmem:[%s4401_s24 + $0x28c] ss:$36 sps:$4 sm:$0xff]   ;;  %v4069_v43 = vld [vmem:[%s4401_s24 + $0x31c] ss:$36 sps:$4 sm:$0xff]  }
  0x33   : > { %1721 = vmatmul.mubr.bf16.gmra.mrb[4].mxu0 %v3981_v29  ;;  %1817 = vmatmul.mubr.bf16.gmra.mrb[4].mxu1 %v3982_v30  ;;  %v4085_v29 = vld [vmem:[%s5324_s1 + $0x200] sm:$0xff]   ;;  %v4048_v30 = vld [vmem:[%s4401_s24 + $0x128] ss:$36 sps:$4 sm:$0xff]  }
  0x34   : > { %3441 = vmatpush3.bf16.msra.mxu1 %v3984_v32  ;;  %1728 = vmatprep.mubr.bf16.mxu0 %v3987_v35  ;;  %v4055_v32 = vld [vmem:[%s4401_s24 + $0x174] ss:$36 sps:$4 sm:$0xff]   ;;  %v4099_v35 = vld [vmem:[%s5324_s1 + $0x1a8] sm:$0xff]  }
  0x35   : > { %3442 = vmatprep.subr.bf16.mxu1 %v3985_v34  ;;  %1824 = vmatprep.mubr.bf16.mxu1 %v3989_v36  ;;  %v4057_v34 = vld [vmem:[%s4401_s24 + $0x288] ss:$36 sps:$4 sm:$0xff]   ;;  %v4058_v36 = vld [vmem:[%s4401_s24 + $0x170] ss:$36 sps:$4 sm:$0xff]  }
  0x36   : > { %3553 = vmatpush3.bf16.msra.mxu0 %v4010_v46  ;;  %v4074_v46 = vld [vmem:[%s4401_s24 + $0x200] ss:$36 sps:$4 sm:$0xff]  }
  0x37   : > { %3554 = vmatprep.subr.bf16.mxu0 %v4025_v55  ;;  %v4100_v55 = vld [vmem:[%s5324_s1 + $0x208] sm:$0xff]  }
  0x38   : > { %3443 = vmatpush3.bf16.msra.mxu1 %v3986_v37  ;;  %v4061_v37 = vld [vmem:[%s4401_s24 + $0x2d4] ss:$36 sps:$4 sm:$0xff]  }
  0x39   : > { %3444 = vmatprep.subr.bf16.mxu1 %v3993_v40  ;;  %v4066_v40 = vld [vmem:[%s4401_s24 + $0x1b8] ss:$36 sps:$4 sm:$0xff]  }
  0x3a   : > { %3555 = vmatpush3.bf16.msra.mxu0 %v4026_v56  ;;  %v4115_v56 = vld [vmem:[%s5324_s1 + $0x210] sm:$0xff]  }
  0x3b   : > { %1729 = vmatmul.mubr.bf16.gmra.mrb[8].mxu0 %v3991_v38  ;;  %1825 = vmatmul.mubr.bf16.gmra.mrb[8].mxu1 %v3992_v39  ;;  %v4063_v38 = vld [vmem:[%s4401_s24 + $0x1bc] ss:$36 sps:$4 sm:$0xff]   ;;  %v4065_v39 = vld [vmem:[%s4401_s24 + $0x2d0] ss:$36 sps:$4 sm:$0xff]  }
  0x3c   : > { %3445 = vmatpush3.bf16.msra.mxu1 %v3995_v41  ;;  %1736 = vmatprep.mubr.bf16.mxu0 %v3999_v44  ;;  %v4113_v41 = vld [vmem:[%s5324_s1 + $0x1f0] sm:$0xff]   ;;  %v4071_v44 = vld [vmem:[%s4401_s24 + $0x204] ss:$36 sps:$4 sm:$0xff]  }
  0x3d   : > { %3446 = vmatprep.subr.bf16.mxu1 %v3997_v42  ;;  %1832 = vmatprep.mubr.bf16.mxu1 %v4001_v45  ;;  %v4114_v42 = vld [vmem:[%s5324_s1 + $0x1b0] sm:$0xff]   ;;  %v4073_v45 = vld [vmem:[%s4401_s24 + $0x318] ss:$36 sps:$4 sm:$0xff]  }
  0x3e   : > { %3556 = vmatprep.subr.bf16.mxu0 %v4035_v0  ;;  %v4097_v0 = vld [vmem:[%s4401_s24 + $0xa0] ss:$36 sps:$4 sm:$0xff]  }
  0x3f   : > { %3557 = vmatpush3.bf16.msra.mxu0 %v4036_v2  ;;  %v4103_v2 = vld [vmem:[%s4401_s24 + $0xec] ss:$36 sps:$4 sm:$0xff]  }
  0x40   : > { %3447 = vmatpush3.bf16.msra.mxu1 %v3998_v47  ;;  %3558 = vmatprep.subr.bf16.mxu0 %v4049_v8  ;;  %v4128_v47 = vld [vmem:[%s5324_s1 + $0x1f8] sm:$0xff]  }
  0x41   : > { %3448 = vmatprep.subr.bf16.mxu1 %v4005_v48  ;;  %v4129_v48 = vld [vmem:[%s5324_s1 + $0x1b8] sm:$0xff]  }
  0x42   : > { %v4109_v8 = vld [vmem:[%s4401_s24 + $0x134] ss:$36 sps:$4 sm:$0xff]  }
  0x43   : > { %1737 = vmatmul.mubr.bf16.gmra.mrb[12].mxu0 %v4003_v49  ;;  %1833 = vmatmul.mubr.bf16.gmra.mrb[12].mxu1 %v4004_v50  ;;  %v4077_v49 = vld [vmem:[%s4401_s24 + $0x24c] ss:$36 sps:$4 sm:$0xff]   ;;  %v4081_v50 = vld [vmem:[%s4401_s24 + $0x14] ss:$36 sps:$4 sm:$0xff]  }
  0x44   : > { %3449 = vmatpush3.bf16.msra.mxu1 %v4006_v51  ;;  %1744 = vmatprep.mubr.bf16.mxu0 %v4011_v53  ;;  %v4079_v51 = vld [vmem:[%s4401_s24 + $0x10] ss:$36 sps:$4 sm:$0xff]  }
  0x45   : > { %3450 = vmatprep.subr.bf16.mxu1 %v4007_v52  ;;  %1873 = vmatprep.mubr.bf16.mxu1 %v4015_v54  ;;  %v4082_v52 = vld [vmem:[%s4401_s24 + $0x248] ss:$36 sps:$4 sm:$0xff]   ;;  %v4086_v53 = vld [vmem:[%s4401_s24 + $0x294] ss:$36 sps:$4 sm:$0xff]   ;;  %v4088_v54 = vld [vmem:[%s4401_s24 + $0x5c] ss:$36 sps:$4 sm:$0xff]  }
  0x46   : > { %3559 = vmatpush3.bf16.msra.mxu0 %v4051_v10  ;;  %v4111_v10 = vld [vmem:[%s4401_s24 + $0x368] ss:$36 sps:$4 sm:$0xff]  }
  0x47   : > { %3560 = vmatprep.subr.bf16.mxu0 %v4059_v15  ;;  %v4121_v15 = vld [vmem:[%s4401_s24 + $0x178] ss:$36 sps:$4 sm:$0xff]  }
  0x48   : > { %3451 = vmatpush3.bf16.msra.mxu1 %v4009_v57  ;;  %v4090_v57 = vld [vmem:[%s4401_s24 + $0x290] ss:$36 sps:$4 sm:$0xff]  }
  0x49   : > { %3660 = vmatprep.subr.bf16.mxu1 %v4017_v60  ;;  %v4094_v60 = vld [vmem:[%s4401_s24 + $0xa4] ss:$36 sps:$4 sm:$0xff]  }
  0x4a   : > { %3561 = vmatpush3.bf16.msra.mxu0 %v4060_v16  ;;  %v4122_v16 = vld [vmem:[%s4401_s24 + $0x3fc] ss:$36 sps:$4 sm:$0xff]  }
  0x4b   : > { %1745 = vmatmul.mubr.bf16.gmra.mrb[16].mxu0 %v4016_v59  ;;  %1874 = vmatmul.mubr.bf16.vlgmr.msra.gmra.mrb[16].mxu1 %v4013_v58  ;;  %v4091_v58 = vld [vmem:[%s4401_s24 + $0x58] ss:$36 sps:$4 sm:$0xff]  }
  0x4c   : > { %3661 = vmatpush3.bf16.msra.mxu1 %v4018_v61  ;;  %1752 = vmatprep.mubr.bf16.mxu0 %v4019_v62  ;;  %v4092_v59 = vld [vmem:[%s4401_s24 + $0x2dc] ss:$36 sps:$4 sm:$0xff]  }
  0x4d   : > { %1881 = vmatprep.mubr.bf16.mxu1 %v4021_v63  ;;  %3662 = vmatprep.subr.bf16.mxu1 %v4033_v1  ;;  %v4130_v61 = vld [vmem:[%s5324_s1 + $0x218] sm:$0xff]   ;;  %v4143_v62 = vld [vmem:[%s5324_s1 + $0x220] sm:$0xff]  }
  0x4e   : > { %3562 = vmatprep.subr.bf16.mxu0 %v4075_v24  ;;  %v4096_v63 = vld [vmem:[%s4401_s24 + $0x2d8] ss:$36 sps:$4 sm:$0xff]   ;;  %v4101_v1 = vld [vmem:[%s4401_s24 + $0x324] ss:$36 sps:$4 sm:$0xff]  }
  0x4f   : > { %3563 = vmatpush3.bf16.msra.mxu0 %v4076_v25  ;;  %v4137_v24 = vld [vmem:[%s4401_s24 + $0x254] ss:$36 sps:$4 sm:$0xff]   ;;  %v4141_v25 = vld [vmem:[%s4401_s24 + $0x1c] ss:$36 sps:$4 sm:$0xff]  }
  0x50   : > { %3663 = vmatpush3.bf16.msra.mxu1 %v4034_v3  ;;  %3796 = vmatprep.subr.bf16.mxu0 %v4085_v29  ;;  %v4156_v3 = vld [vmem:[%s5324_s1 + $0x228] sm:$0xff]  }
  0x51   : > { %3664 = vmatprep.subr.bf16.mxu1 %v4050_v9  ;;  %v4182_v9 = vld [vmem:[%s5324_s1 + $0x238] sm:$0xff]  }
  0x53   : > { %1753 = vmatmul.mubr.bf16.gmra.mrb[20].mxu0 %v4023_v4  ;;  %1882 = vmatmul.mubr.bf16.gmra.mrb[20].mxu1 %v4024_v5  ;;  %v4105_v4 = vld [vmem:[%s4401_s24 + $0x320] ss:$36 sps:$4 sm:$0xff]   ;;  %v4106_v5 = vld [vmem:[%s4401_s24 + $0xe8] ss:$36 sps:$4 sm:$0xff]  }
  0x54   : > { %1760 = vmatprep.mubr.bf16.mxu0 %v4027_v6  ;;  %1889 = vmatprep.mubr.bf16.mxu1 %v4029_v7  ;;  %v4169_v6 = vld [vmem:[%s5324_s1 + $0x230] sm:$0xff]  }
  0x55   : > { %3665 = vmatpush3.bf16.msra.mxu1 %v4052_v11  ;;  %v4107_v7 = vld [vmem:[%s4401_s24 + $0x36c] ss:$36 sps:$4 sm:$0xff]  }
  0x56   : > { %3666 = vmatprep.subr.bf16.mxu1 %v4067_v18  ;;  %v4112_v11 = vld [vmem:[%s4401_s24 + $0x130] ss:$36 sps:$4 sm:$0xff]   ;;  %v4126_v18 = vld [vmem:[%s4401_s24 + $0x3f8] ss:$36 sps:$4 sm:$0xff]  }
  0x59   : > { %3667 = vmatpush3.bf16.msra.mxu1 %v4068_v19  ;;  %v4127_v19 = vld [vmem:[%s4401_s24 + $0x1c0] ss:$36 sps:$4 sm:$0xff]  }
  0x5a   : > { %3668 = vmatprep.subr.bf16.mxu1 %v4083_v26  ;;  %v4139_v26 = vld [vmem:[%s4401_s24 + $0x18] ss:$36 sps:$4 sm:$0xff]  }
  0x5b   : > { %1761 = vmatmul.mubr.bf16.gmra.mrb[24].mxu0 %v4031_v12  ;;  %1890 = vmatmul.mubr.bf16.gmra.mrb[24].mxu1 %v4032_v13  ;;  %v4116_v12 = vld [vmem:[%s4401_s24 + $0x3b4] ss:$36 sps:$4 sm:$0xff]   ;;  %v4118_v13 = vld [vmem:[%s4401_s24 + $0x17c] ss:$36 sps:$4 sm:$0xff]  }
  0x5c   : > { %1768 = vmatprep.mubr.bf16.mxu0 %v4037_v14  ;;  %1897 = vmatprep.mubr.bf16.mxu1 %v4039_v17  ;;  %v4120_v14 = vld [vmem:[%s4401_s24 + $0x3b0] ss:$36 sps:$4 sm:$0xff]   ;;  %v4124_v17 = vld [vmem:[%s4401_s24 + $0x1c4] ss:$36 sps:$4 sm:$0xff]  }
  0x5d   : > { %3669 = vmatpush3.bf16.msra.mxu1 %v4084_v28  ;;  %v4144_v28 = vld [vmem:[%s4401_s24 + $0x29c] ss:$36 sps:$4 sm:$0xff]  }
  0x5e   : > { %3670 = vmatprep.subr.bf16.mxu1 %v4098_v33  ;;  %v4152_v33 = vld [vmem:[%s4401_s24 + $0xac] ss:$36 sps:$4 sm:$0xff]  }
  0x61   : > { %3671 = vmatpush3.bf16.msra.mxu1 %v4099_v35  ;;  %v4155_v35 = vld [vmem:[%s4401_s24 + $0xa8] ss:$36 sps:$4 sm:$0xff]  }
  0x62   : > { %3672 = vmatprep.subr.bf16.mxu1 %v4113_v41  ;;  %v4165_v41 = vld [vmem:[%s4401_s24 + $0x13c] ss:$36 sps:$4 sm:$0xff]  }
  0x63   : > { %1769 = vmatmul.mubr.bf16.gmra.mrb[28].mxu0 %v4041_v20  ;;  %1898 = vmatmul.mubr.bf16.gmra.mrb[28].mxu1 %v4042_v21  ;;  %v4131_v20 = vld [vmem:[%s4401_s24 + $0x444] ss:$36 sps:$4 sm:$0xff]   ;;  %v4133_v21 = vld [vmem:[%s4401_s24 + $0x20c] ss:$36 sps:$4 sm:$0xff]  }
  0x64   : > { %1776 = vmatprep.mubr.bf16.mxu0 %v4043_v22  ;;  %1905 = vmatprep.mubr.bf16.mxu1 %v4045_v23  ;;  %v4135_v22 = vld [vmem:[%s4401_s24 + $0x440] ss:$36 sps:$4 sm:$0xff]   ;;  %v4136_v23 = vld [vmem:[%s4401_s24 + $0x208] ss:$36 sps:$4 sm:$0xff]  }
  0x65   : > { %3673 = vmatpush3.bf16.msra.mxu1 %v4114_v42  ;;  %v4167_v42 = vld [vmem:[%s4401_s24 + $0x370] ss:$36 sps:$4 sm:$0xff]  }
  0x66   : > { %3674 = vmatprep.subr.bf16.mxu1 %v4128_v47  ;;  %v4175_v47 = vld [vmem:[%s4401_s24 + $0x180] ss:$36 sps:$4 sm:$0xff]  }
  0x69   : > { %3675 = vmatpush3.bf16.msra.mxu1 %v4129_v48  ;;  %v4176_v48 = vld [vmem:[%s4401_s24 + $0x404] ss:$36 sps:$4 sm:$0xff]  }
  0x6b   : > { %1777 = vmatmul.mubr.bf16.gmra.mrb[32].mxu0 %v4047_v27  ;;  %1906 = vmatmul.mubr.bf16.gmra.mrb[32].mxu1 %v4048_v30  ;;  %v4142_v27 = vld [vmem:[%s4401_s24 + $0x250] ss:$36 sps:$4 sm:$0xff]   ;;  %v4148_v30 = vld [vmem:[%s4401_s24 + $0x298] ss:$36 sps:$4 sm:$0xff]  }
  0x6c   : > { %1784 = vmatprep.mubr.bf16.mxu0 %v4053_v31  ;;  %1913 = vmatprep.mubr.bf16.mxu1 %v4055_v32  ;;  %v4149_v31 = vld [vmem:[%s4401_s24 + $0x60] ss:$36 sps:$4 sm:$0xff]  }
  0x6d   : > { %v4150_v32 = vld [vmem:[%s4401_s24 + $0x2e4] ss:$36 sps:$4 sm:$0xff]  }
  0x73   : > { %1785 = vmatmul.mubr.bf16.gmra.mrb[36].mxu0 %v4057_v34  ;;  %1914 = vmatmul.mubr.bf16.gmra.mrb[36].mxu1 %v4058_v36  ;;  %v4154_v34 = vld [vmem:[%s4401_s24 + $0x2e0] ss:$36 sps:$4 sm:$0xff]   ;;  %v4157_v36 = vld [vmem:[%s4401_s24 + $0x32c] ss:$36 sps:$4 sm:$0xff]  }
  0x74   : > { %1792 = vmatprep.mubr.bf16.mxu0 %v4061_v37  ;;  %1921 = vmatprep.mubr.bf16.mxu1 %v4063_v38  ;;  %v4159_v37 = vld [vmem:[%s4401_s24 + $0xf4] ss:$36 sps:$4 sm:$0xff]   ;;  %v4161_v38 = vld [vmem:[%s4401_s24 + $0x328] ss:$36 sps:$4 sm:$0xff]  }
  0x7b   : > { %1793 = vmatmul.mubr.bf16.gmra.mrb[40].mxu0 %v4065_v39  ;;  %1922 = vmatmul.mubr.bf16.gmra.mrb[40].mxu1 %v4066_v40  ;;  %v4162_v39 = vld [vmem:[%s4401_s24 + $0xf0] ss:$36 sps:$4 sm:$0xff]  }
  0x7c   : > { %1800 = vmatprep.mubr.bf16.mxu0 %v4069_v43  ;;  %1929 = vmatprep.mubr.bf16.mxu1 %v4071_v44  ;;  %v4163_v40 = vld [vmem:[%s4401_s24 + $0x374] ss:$36 sps:$4 sm:$0xff]   ;;  %v4170_v44 = vld [vmem:[%s4401_s24 + $0x3bc] ss:$36 sps:$4 sm:$0xff]  }
  0x7d   : > { %v4168_v43 = vld [vmem:[%s4401_s24 + $0x138] ss:$36 sps:$4 sm:$0xff]  }
  0x83   : > { %1801 = vmatmul.mubr.bf16.gmra.mrb[44].mxu0 %v4073_v45  ;;  %1930 = vmatmul.mubr.bf16.gmra.mrb[44].mxu1 %v4074_v46  ;;  %v4172_v45 = vld [vmem:[%s4401_s24 + $0x184] ss:$36 sps:$4 sm:$0xff]   ;;  %v4174_v46 = vld [vmem:[%s4401_s24 + $0x3b8] ss:$36 sps:$4 sm:$0xff]  }
  0x84   : > { %1937 = vmatprep.mubr.bf16.mxu1 %v4077_v49  ;;  %2034 = vmatprep.mubr.bf16.mxu0 %v4081_v50  ;;  %v4178_v49 = vld [vmem:[%s4401_s24 + $0x1cc] ss:$36 sps:$4 sm:$0xff]   ;;  %v4180_v50 = vld [vmem:[%s4401_s24 + $0x400] ss:$36 sps:$4 sm:$0xff]  }
  0x8b   : > { %1938 = vmatmul.mubr.bf16.gmra.mrb[48].mxu1 %v4082_v52  ;;  %2035 = vmatmul.mubr.bf16.vlgmr.msra.gmra.mrb[48].mxu0 %v4079_v51  ;;  %v4181_v51 = vld [vmem:[%s4401_s24 + $0x1c8] ss:$36 sps:$4 sm:$0xff]  }
  0x8c   : > { %3797 = vmatpush3.bf16.msra.mxu0 %v4085_v29  ;;  %1945 = vmatprep.mubr.bf16.mxu1 %v4086_v53  ;;  %v4146_v29 = vld [vmem:[%s4401_s24 + $0x64] ss:$36 sps:$4 sm:$0xff]   ;;  %v4183_v52 = vld [vmem:[%s4401_s24 + $0x44c] ss:$36 sps:$4 sm:$0xff]   ;;  %v4185_v53 = vld [vmem:[%s4401_s24 + $0x214] ss:$36 sps:$4 sm:$0xff]  }
  0x8d   : > { %2042 = vmatprep.mubr.bf16.mxu0 %v4088_v54  ;;  %3798 = vmatprep.subr.bf16.mxu0 %v4100_v55 }
  0x90   : > { %3799 = vmatpush3.bf16.msra.mxu0 %v4100_v55 }
  0x91   : > { %3800 = vmatprep.subr.bf16.mxu0 %v4115_v56 }
  0x93   : > { %1946 = vmatmul.mubr.bf16.gmra.mrb[52].mxu1 %v4090_v57  ;;  %2043 = vmatmul.mubr.bf16.gmra.mrb[52].mxu0 %v4091_v58  ;;  %v4187_v58 = vld [vmem:[%s4401_s24 + $0x448] ss:$36 sps:$4 sm:$0xff]  }
  0x94   : > { %1953 = vmatprep.mubr.bf16.mxu1 %v4092_v59  ;;  %2050 = vmatprep.mubr.bf16.mxu0 %v4094_v60  ;;  %v4188_v59 = vld [vmem:[%s4401_s24 + $0x210] ss:$36 sps:$4 sm:$0xff]  }
  0x95   : > { %3801 = vmatpush3.bf16.msra.mxu0 %v4115_v56 }
  0x96   : > { %3802 = vmatprep.subr.bf16.mxu0 %v4130_v61 }
  0x99   : > { %3803 = vmatpush3.bf16.msra.mxu0 %v4130_v61 }
  0x9a   : > { %3804 = vmatprep.subr.bf16.mxu0 %v4143_v62 }
  0x9b   : > { %1954 = vmatmul.mubr.bf16.gmra.mrb[56].mxu1 %v4096_v63  ;;  %2051 = vmatmul.mubr.bf16.gmra.mrb[56].mxu0 %v4097_v0  ;;  %v4189_v0 = vld [vmem:[%s4401_s24 + $0x25c] ss:$36 sps:$4 sm:$0xff]  }
  0x9c   : > { %1961 = vmatprep.mubr.bf16.mxu1 %v4101_v1  ;;  %2058 = vmatprep.mubr.bf16.mxu0 %v4103_v2  ;;  %v4191_v1 = vld [vmem:[%s4401_s24 + $0x20] ss:$36 sps:$4 sm:$0xff]  }
  0x9d   : > { %3805 = vmatpush3.bf16.msra.mxu0 %v4143_v62 }
  0x9e   : > { %3806 = vmatprep.subr.bf16.mxu0 %v4156_v3 }
  0xa1   : > { %3807 = vmatpush3.bf16.msra.mxu0 %v4156_v3 }
  0xa2   : > { %3808 = vmatprep.subr.bf16.mxu0 %v4169_v6 }
  0xa3   : > { %1962 = vmatmul.mubr.bf16.gmra.mrb[60].mxu1 %v4105_v4  ;;  %2059 = vmatmul.mubr.bf16.gmra.mrb[60].mxu0 %v4106_v5 }
  0xa4   : > { %1969 = vmatprep.mubr.bf16.mxu1 %v4107_v7  ;;  %2066 = vmatprep.mubr.bf16.mxu0 %v4109_v8 }
  0xa5   : > { %3809 = vmatpush3.bf16.msra.mxu0 %v4169_v6 }
  0xa6   : > { %3810 = vmatprep.subr.bf16.mxu0 %v4182_v9 }
  0xa9   : > { %3811 = vmatpush3.bf16.msra.mxu0 %v4182_v9 }
  0xab   : > { %1970 = vmatmul.mubr.bf16.gmra.mrb[64].mxu1 %v4111_v10  ;;  %2067 = vmatmul.mubr.bf16.gmra.mrb[64].mxu0 %v4112_v11  ;;  %v4192_v10 = vld [vmem:[%s4401_s24 + $0x258] ss:$36 sps:$4 sm:$0xff]   ;;  %v4193_v11 = vld [vmem:[%s4401_s24 + $0x68] ss:$36 sps:$4 sm:$0xff]  }
  0xac   : > { %1977 = vmatprep.mubr.bf16.mxu1 %v4116_v12  ;;  %2074 = vmatprep.mubr.bf16.mxu0 %v4118_v13 }
  0xb3   : > { %1978 = vmatmul.mubr.bf16.gmra.mrb[68].mxu1 %v4120_v14  ;;  %2075 = vmatmul.mubr.bf16.gmra.mrb[68].mxu0 %v4121_v15 }
  0xb4   : > { %1985 = vmatprep.mubr.bf16.mxu1 %v4122_v16  ;;  %2082 = vmatprep.mubr.bf16.mxu0 %v4124_v17  ;;  %v4194_v16 = vld [vmem:[%s4401_s24 + $0x2a4] ss:$36 sps:$4 sm:$0xff]   ;;  %v4196_v17 = vld [vmem:[%s4401_s24 + $0xb0] ss:$36 sps:$4 sm:$0xff]  }
  0xbb   : > { %1986 = vmatmul.mubr.bf16.gmra.mrb[72].mxu1 %v4126_v18  ;;  %2083 = vmatmul.mubr.bf16.gmra.mrb[72].mxu0 %v4127_v19 }
  0xbc   : > { %1993 = vmatprep.mubr.bf16.mxu1 %v4131_v20  ;;  %2090 = vmatprep.mubr.bf16.mxu0 %v4133_v21 }
  0xc3   : > { %1994 = vmatmul.mubr.bf16.gmra.mrb[76].mxu1 %v4135_v22  ;;  %2091 = vmatmul.mubr.bf16.gmra.mrb[76].mxu0 %v4136_v23 }
  0xc4   : > { %2098 = vmatprep.mubr.bf16.mxu0 %v4137_v24  ;;  %2195 = vmatprep.mubr.bf16.mxu1 %v4141_v25 }
  0xcb   : > { %2099 = vmatmul.mubr.bf16.gmra.mrb[80].mxu0 %v4142_v27  ;;  %2196 = vmatmul.mubr.bf16.vlgmr.msra.gmra.mrb[80].mxu1 %v4139_v26  ;;  %v4197_v26 = vld [vmem:[%s4401_s24 + $0x2a0] ss:$36 sps:$4 sm:$0xff]   ;;  %v4198_v27 = vld [vmem:[%s4401_s24 + $0xf8] ss:$36 sps:$4 sm:$0xff]  }
  0xcc   : > { %2106 = vmatprep.mubr.bf16.mxu0 %v4144_v28  ;;  %2203 = vmatprep.mubr.bf16.mxu1 %v4146_v29 }
  0xd3   : > { %2107 = vmatmul.mubr.bf16.gmra.mrb[84].mxu0 %v4148_v30  ;;  %2204 = vmatmul.mubr.bf16.gmra.mrb[84].mxu1 %v4149_v31 }
  0xd4   : > { %2114 = vmatprep.mubr.bf16.mxu0 %v4150_v32  ;;  %2211 = vmatprep.mubr.bf16.mxu1 %v4152_v33  ;;  %v4199_v32 = vld [vmem:[%s4401_s24 + $0x2ec] ss:$36 sps:$4 sm:$0xff]   ;;  %v4201_v33 = vld [vmem:[%s4401_s24 + $0x140] ss:$36 sps:$4 sm:$0xff]  }
  0xdb   : > { %2115 = vmatmul.mubr.bf16.gmra.mrb[88].mxu0 %v4154_v34  ;;  %2212 = vmatmul.mubr.bf16.gmra.mrb[88].mxu1 %v4155_v35 }
  0xdc   : > { %2122 = vmatprep.mubr.bf16.mxu0 %v4157_v36  ;;  %2219 = vmatprep.mubr.bf16.mxu1 %v4159_v37 }
  0xe3   : > { %2123 = vmatmul.mubr.bf16.gmra.mrb[92].mxu0 %v4161_v38  ;;  %2220 = vmatmul.mubr.bf16.gmra.mrb[92].mxu1 %v4162_v39 }
  0xe4   : > { %2130 = vmatprep.mubr.bf16.mxu0 %v4163_v40  ;;  %2227 = vmatprep.mubr.bf16.mxu1 %v4165_v41 }
  0xeb   : > { %2131 = vmatmul.mubr.bf16.gmra.mrb[96].mxu0 %v4167_v42  ;;  %2228 = vmatmul.mubr.bf16.gmra.mrb[96].mxu1 %v4168_v43  ;;  %v4202_v42 = vld [vmem:[%s4401_s24 + $0x2e8] ss:$36 sps:$4 sm:$0xff]  }
  0xec   : > { %2138 = vmatprep.mubr.bf16.mxu0 %v4170_v44  ;;  %2235 = vmatprep.mubr.bf16.mxu1 %v4172_v45  ;;  %v4203_v43 = vld [vmem:[%s4401_s24 + $0x188] ss:$36 sps:$4 sm:$0xff]  }
  0xf3   : > { %2139 = vmatmul.mubr.bf16.gmra.mrb[100].mxu0 %v4174_v46  ;;  %2236 = vmatmul.mubr.bf16.gmra.mrb[100].mxu1 %v4175_v47 }
  0xf4   : > { %2146 = vmatprep.mubr.bf16.mxu0 %v4176_v48  ;;  %2243 = vmatprep.mubr.bf16.mxu1 %v4178_v49  ;;  %v4204_v48 = vld [vmem:[%s4401_s24 + $0x334] ss:$36 sps:$4 sm:$0xff]  }
  0xf5   : > { %v4206_v49 = vld [vmem:[%s4401_s24 + $0x1d0] ss:$36 sps:$4 sm:$0xff]  }
  0xfb   : > { %2147 = vmatmul.mubr.bf16.gmra.mrb[104].mxu0 %v4180_v50  ;;  %2244 = vmatmul.mubr.bf16.gmra.mrb[104].mxu1 %v4181_v51 }
  0xfc   : > { %2154 = vmatprep.mubr.bf16.mxu0 %v4183_v52  ;;  %2251 = vmatprep.mubr.bf16.mxu1 %v4185_v53 }
  0xfe   : > { %v3412_v54 = vpop.f32.mrb[0].mxu1  ;;  %v3340_v55 = vpop.f32.mrb[0].mxu0 }
  0xff   : > { %v3413_v56 = vpop.f32.mrb[1].mxu1  ;;  %v3341_v57 = vpop.f32.mrb[1].mxu0 }
 0x100   : > { %v4704_v60 = vadd.f32 %v3413_v56, %v3412_v54  ;;  %v3415_v61 = vpop.f32.mrb[2].mxu1  ;;  %v4706_v62 = vadd.f32 %v3341_v57, %v3340_v55  ;;  %v3343_v63 = vpop.f32.mrb[2].mxu0  ;;  %v4753_v54 = vld [vmem:[%s5325_s2] ss:$0 sm:$0xff] }
 0x101   : > { %v3416_v2 = vpop.f32.mrb[3].mxu1  ;;  %v3344_v3 = vpop.f32.mrb[3].mxu0 }
 0x102   : > { %v4710_v4 = vadd.f32 %v3416_v2, %v3415_v61  ;;  %v4712_v5 = vadd.f32 %v3344_v3, %v3343_v63  ;;  %v4208_v61 = vld [vmem:[%s4401_s24 + $0x218] ss:$36 sps:$4 sm:$0xff]   ;;  %v1715_v63 = vadd.f32 %v4706_v62, %v4753_v54 }
 0x103   : > { %2155 = vmatmul.mubr.bf16.gmra.mrb[108].mxu0 %v4187_v58  ;;  %2252 = vmatmul.mubr.bf16.gmra.mrb[108].mxu1 %v4188_v59  ;;  %v4207_v59 = vld [vmem:[%s4401_s24 + $0x330] ss:$36 sps:$4 sm:$0xff]  }
 0x104   : > { %2259 = vmatprep.mubr.bf16.mxu1 %v4189_v0  ;;  %3812 = vmatprep.mubr.bf16.mxu0 %v4191_v1 }
 0x106   : > { %v3418_v6 = vpop.f32.mrb[4].mxu1  ;;  %v3346_v7 = vpop.f32.mrb[4].mxu0 }
 0x107   : > { %v3419_v8 = vpop.f32.mrb[5].mxu1  ;;  %v3347_v9 = vpop.f32.mrb[5].mxu0 }
 0x108   : > { %v4716_v12 = vadd.f32 %v3419_v8, %v3418_v6  ;;  %v3421_v13 = vpop.f32.mrb[6].mxu1  ;;  %v4718_v14 = vadd.f32 %v3347_v9, %v3346_v7  ;;  %v3349_v15 = vpop.f32.mrb[6].mxu0  ;;  %v4209_v6 = vld [vmem:[%s4401_s24 + $0x37c] ss:$36 sps:$4 sm:$0xff]  }
 0x109   : > { %v3422_v18 = vpop.f32.mrb[7].mxu1  ;;  %v3350_v19 = vpop.f32.mrb[7].mxu0  ;;  %v4211_v7 = vld [vmem:[%s4401_s24 + $0x260] ss:$36 sps:$4 sm:$0xff]  }
 0x10a   : > { %v4722_v20 = vadd.f32 %v3422_v18, %v3421_v13  ;;  %v4724_v21 = vadd.f32 %v3350_v19, %v3349_v15 }
 0x10b   : > { %2260 = vmatmul.mubr.bf16.gmra.mrb[112].mxu1 %v4192_v10  ;;  %3813 = vmatmul.mubr.bf16.vlgmr.msra.gmra.mrb[112].mxu0 %v4193_v11  ;;  %v1718_v10 = vadd.f32 %v4712_v5, %v4753_v54  ;;  %v1723_v5 = vadd.f32 %v4718_v14, %v4753_v54 }
 0x10c   : > { %2267 = vmatprep.mubr.bf16.mxu1 %v4194_v16  ;;  %3816 = vmatprep.mubr.bf16.mxu0 %v4196_v17 }
 0x10e   : > { %v3424_v22 = vpop.f32.mrb[8].mxu1  ;;  %v3352_v23 = vpop.f32.mrb[8].mxu0 }
 0x10f   : > { %v3425_v24 = vpop.f32.mrb[9].mxu1  ;;  %v3353_v25 = vpop.f32.mrb[9].mxu0 }
 0x110   : > { %v4728_v28 = vadd.f32 %v3425_v24, %v3424_v22  ;;  %v3427_v29 = vpop.f32.mrb[10].mxu1  ;;  %v4730_v30 = vadd.f32 %v3353_v25, %v3352_v23  ;;  %v3355_v31 = vpop.f32.mrb[10].mxu0  ;;  %v4212_v22 = vld [vmem:[%s4401_s24 + $0x378] ss:$36 sps:$4 sm:$0xff]   ;;  %v4213_v23 = vld [vmem:[%s4401_s24 + $0x2a8] ss:$36 sps:$4 sm:$0xff]  }
 0x111   : > { %v3428_v34 = vpop.f32.mrb[11].mxu1  ;;  %v3356_v35 = vpop.f32.mrb[11].mxu0 }
 0x112   : > { %v4734_v36 = vadd.f32 %v3428_v34, %v3427_v29  ;;  %v4736_v37 = vadd.f32 %v3356_v35, %v3355_v31  ;;  %v4214_v29 = vld [vmem:[%s4401_s24 + $0x3c4] ss:$36 sps:$4 sm:$0xff]   ;;  %v4216_v31 = vld [vmem:[%s4401_s24 + $0x2f0] ss:$36 sps:$4 sm:$0xff]   ;;  %v1726_v34 = vadd.f32 %v4724_v21, %v4753_v54  ;;  %v1731_v21 = vadd.f32 %v4730_v30, %v4753_v54 }
 0x113   : > { %2268 = vmatmul.mubr.bf16.gmra.mrb[116].mxu1 %v4197_v26  ;;  %3817 = vmatmul.mubr.bf16.gmra.mrb[116].mxu0 %v4198_v27 }
 0x114   : > { %2275 = vmatprep.mubr.bf16.mxu1 %v4199_v32  ;;  %3820 = vmatprep.mubr.bf16.mxu0 %v4201_v33 }
 0x116   : > { %v3430_v38 = vpop.f32.mrb[12].mxu1  ;;  %v3358_v39 = vpop.f32.mrb[12].mxu0 }
 0x117   : > { %v3431_v40 = vpop.f32.mrb[13].mxu1  ;;  %v3359_v41 = vpop.f32.mrb[13].mxu0 }
 0x118   : > { %v4740_v44 = vadd.f32 %v3431_v40, %v3430_v38  ;;  %v3433_v45 = vpop.f32.mrb[14].mxu1  ;;  %v4742_v46 = vadd.f32 %v3359_v41, %v3358_v39  ;;  %v3361_v47 = vpop.f32.mrb[14].mxu0 }
 0x119   : > { %v3434_v50 = vpop.f32.mrb[15].mxu1  ;;  %v3362_v51 = vpop.f32.mrb[15].mxu0 }
 0x11a   : > { %v4746_v52 = vadd.f32 %v3434_v50, %v3433_v45  ;;  %v4748_v53 = vadd.f32 %v3362_v51, %v3361_v47  ;;  %v4217_v45 = vld [vmem:[%s4401_s24 + $0x3c0] ss:$36 sps:$4 sm:$0xff]   ;;  %v4218_v47 = vld [vmem:[%s4401_s24 + $0x338] ss:$36 sps:$4 sm:$0xff]  }
 0x11b   : > { %2276 = vmatmul.mubr.bf16.gmra.mrb[120].mxu1 %v4202_v42  ;;  %3821 = vmatmul.mubr.bf16.gmra.mrb[120].mxu0 %v4203_v43 }
 0x11c   : > { %2283 = vmatprep.mubr.bf16.mxu1 %v4204_v48  ;;  %3824 = vmatprep.mubr.bf16.mxu0 %v4206_v49 }
 0x11e   : > { %v3452_v55 = vpop.f32.mrb[16].mxu1  ;;  %v3364_v56 = vpop.f32.mrb[16].mxu0 }
 0x11f   : > { %v3453_v57 = vpop.f32.mrb[17].mxu1  ;;  %v3365_v58 = vpop.f32.mrb[17].mxu0 }
 0x120   : > { %v3454_v0 = vadd.f32 %v3453_v57, %v3452_v55  ;;  %v3455_v1 = vpop.f32.mrb[18].mxu1  ;;  %v4759_v2 = vadd.f32 %v3365_v58, %v3364_v56  ;;  %v3367_v3 = vpop.f32.mrb[18].mxu0  ;;  %v4219_v55 = vld [vmem:[%s4401_s24 + $0x40c] ss:$36 sps:$4 sm:$0xff]   ;;  %v4221_v56 = vld [vmem:[%s4401_s24 + $0x380] ss:$36 sps:$4 sm:$0xff]  }
 0x121   : > { %v3456_v8 = vpop.f32.mrb[19].mxu1  ;;  %v3368_v9 = vpop.f32.mrb[19].mxu0 }
 0x122   : > { %v4765_v11 = vadd.f32 %v3454_v0, %v1715_v63  ;;  %v3457_v13 = vadd.f32 %v3456_v8, %v3455_v1  ;;  %v4767_v15 = vadd.f32 %v3368_v9, %v3367_v3  ;;  %v4222_v8 = vld [vmem:[%s4401_s24 + $0x408] ss:$36 sps:$4 sm:$0xff]  }
 0x123   : > { %2284 = vmatmul.mubr.bf16.gmra.mrb[124].mxu1 %v4207_v59  ;;  %3825 = vmatmul.mubr.bf16.gmra.mrb[124].mxu0 %v4208_v61  ;;  %v1734_v59 = vadd.f32 %v4736_v37, %v4753_v54  ;;  %v4223_v9 = vld [vmem:[%s4401_s24 + $0x3c8] ss:$36 sps:$4 sm:$0xff]   ;;  %v1739_v37 = vadd.f32 %v4742_v46, %v4753_v54 }
 0x124   : > { %v4769_v62 = vadd.f32 %v3457_v13, %v1718_v10  ;;  %2291 = vmatprep.mubr.bf16.mxu1 %v4209_v6  ;;  %3828 = vmatprep.mubr.bf16.mxu0 %v4211_v7 }
 0x126   : > { %v3458_v16 = vpop.f32.mrb[20].mxu1  ;;  %v3370_v17 = vpop.f32.mrb[20].mxu0 }
 0x127   : > { %v3459_v18 = vpop.f32.mrb[21].mxu1  ;;  %v3371_v19 = vpop.f32.mrb[21].mxu0 }
 0x128   : > { %v3460_v24 = vadd.f32 %v3459_v18, %v3458_v16  ;;  %v3461_v25 = vpop.f32.mrb[22].mxu1  ;;  %v4775_v26 = vadd.f32 %v3371_v19, %v3370_v17  ;;  %v3373_v27 = vpop.f32.mrb[22].mxu0  ;;  %v4224_v18 = vld [vmem:[%s4401_s24 + $0x454] ss:$36 sps:$4 sm:$0xff]  }
 0x129   : > { %v3462_v32 = vpop.f32.mrb[23].mxu1  ;;  %v3374_v33 = vpop.f32.mrb[23].mxu0  ;;  %v4226_v19 = vld [vmem:[%s4401_s24 + $0x410] ss:$36 sps:$4 sm:$0xff]  }
 0x12a   : > { %v4781_v35 = vadd.f32 %v3460_v24, %v1723_v5  ;;  %v3463_v38 = vadd.f32 %v3462_v32, %v3461_v25  ;;  %v4783_v39 = vadd.f32 %v3374_v33, %v3373_v27  ;;  %v1742_v5 = vadd.f32 %v4748_v53, %v4753_v54 }
 0x12b   : > { %2292 = vmatmul.mubr.bf16.gmra.mrb[128].mxu1 %v4212_v22  ;;  %3829 = vmatmul.mubr.bf16.gmra.mrb[128].mxu0 %v4213_v23  ;;  %v1747_v53 = vadd.f32 %v4759_v2, %v4753_v54 }
 0x12c   : > { %v4785_v14 = vadd.f32 %v3463_v38, %v1726_v34  ;;  %2299 = vmatprep.mubr.bf16.mxu1 %v4214_v29  ;;  %3832 = vmatprep.mubr.bf16.mxu0 %v4216_v31  ;;  %v4227_v34 = vld [vmem:[%s4401_s24 + $0x450] ss:$36 sps:$4 sm:$0xff]   ;;  %v4228_v38 = vld [vmem:[%s4401_s24 + $0x458] ss:$36 sps:$4 sm:$0xff]   ;;  %s175_s24 = sand.u32 1, %s4275_s12  }
 0x12d   : > { %s3020_s14 = sshll.u32 %s175_s24, 7 }
 0x12e   : > { %v3464_v40 = vpop.f32.mrb[24].mxu1  ;;  %v3376_v41 = vpop.f32.mrb[24].mxu0  ;;  %s5082_s12 = scalar_lea.vmem [#allocation2], %s3020_s14  }
 0x12f   : > { %v3465_v42 = vpop.f32.mrb[25].mxu1  ;;  %v3377_v43 = vpop.f32.mrb[25].mxu0 }
 0x130   : > { %v3466_v48 = vadd.f32 %v3465_v42, %v3464_v40  ;;  %v3467_v49 = vpop.f32.mrb[26].mxu1  ;;  %v4791_v50 = vadd.f32 %v3377_v43, %v3376_v41  ;;  %v3379_v51 = vpop.f32.mrb[26].mxu0 }
 0x131   : > { %v3468_v57 = vpop.f32.mrb[27].mxu1  ;;  %v3380_v58 = vpop.f32.mrb[27].mxu0 }
 0x132   : > { %v4797_v61 = vadd.f32 %v3466_v48, %v1731_v21  ;;  %v3469_v63 = vadd.f32 %v3468_v57, %v3467_v49  ;;  %v4799_v0 = vadd.f32 %v3380_v58, %v3379_v51  ;;  %v1750_v21 = vadd.f32 %v4767_v15, %v4753_v54 }
 0x133   : > { %2300 = vmatmul.mubr.bf16.gmra.mrb[132].mxu1 %v4217_v45  ;;  %3833 = vmatmul.mubr.bf16.gmra.mrb[132].mxu0 %v4218_v47 }
 0x134   : > { %v4801_v30 = vadd.f32 %v3469_v63, %v1734_v59  ;;  %2307 = vmatprep.mubr.bf16.mxu1 %v4219_v55  ;;  %3836 = vmatprep.mubr.bf16.mxu0 %v4221_v56  ;;  %v1755_v59 = vadd.f32 %v4775_v26, %v4753_v54 }
 0x136   : > { %v3470_v1 = vpop.f32.mrb[28].mxu1  ;;  %v3382_v3 = vpop.f32.mrb[28].mxu0 }
 0x137   : > { %v3471_v6 = vpop.f32.mrb[29].mxu1  ;;  %v3383_v7 = vpop.f32.mrb[29].mxu0 }
 0x138   : > { %v3472_v10 = vadd.f32 %v3471_v6, %v3470_v1  ;;  %v3473_v13 = vpop.f32.mrb[30].mxu1  ;;  %v4807_v16 = vadd.f32 %v3383_v7, %v3382_v3  ;;  %v3385_v17 = vpop.f32.mrb[30].mxu0 }
 0x139   : > { %v3474_v22 = vpop.f32.mrb[31].mxu1  ;;  %v3386_v23 = vpop.f32.mrb[31].mxu0 }
 0x13a   : > { %v4813_v24 = vadd.f32 %v3472_v10, %v1739_v37  ;;  %v3475_v25 = vadd.f32 %v3474_v22, %v3473_v13  ;;  %v4815_v27 = vadd.f32 %v3386_v23, %v3385_v17  ;;  %v1763_v22 = vadd.f32 %v4791_v50, %v4753_v54 }
 0x13b   : > { %2308 = vmatmul.mubr.bf16.gmra.mrb[136].mxu1 %v4222_v8  ;;  %3837 = vmatmul.mubr.bf16.gmra.mrb[136].mxu0 %v4223_v9  ;;  %v1758_v8 = vadd.f32 %v4783_v39, %v4753_v54 }
 0x13c   : > { %v4817_v46 = vadd.f32 %v3475_v25, %v1742_v5  ;;  %2315 = vmatprep.mubr.bf16.mxu1 %v4224_v18  ;;  %3840 = vmatprep.mubr.bf16.mxu0 %v4226_v19 }
 0x13e   : > { %v3476_v29 = vpop.f32.mrb[32].mxu1  ;;  %v3388_v31 = vpop.f32.mrb[32].mxu0 }
 0x13f   : > { %v3477_v32 = vpop.f32.mrb[33].mxu1  ;;  %v3389_v33 = vpop.f32.mrb[33].mxu0 }
 0x140   : > { %v3478_v40 = vadd.f32 %v3477_v32, %v3476_v29  ;;  %v3479_v41 = vpop.f32.mrb[34].mxu1  ;;  %v4823_v42 = vadd.f32 %v3389_v33, %v3388_v31  ;;  %v3391_v43 = vpop.f32.mrb[34].mxu0  ;;  %v1766_v32 = vadd.f32 %v4799_v0, %v4753_v54 }
 0x141   : > { %v3480_v45 = vpop.f32.mrb[35].mxu1  ;;  %v3392_v47 = vpop.f32.mrb[35].mxu0 }
 0x142   : > { %v4827_v48 = vadd.f32 %v3478_v40, %v1747_v53  ;;  %v3481_v49 = vadd.f32 %v3480_v45, %v3479_v41  ;;  %v3393_v51 = vadd.f32 %v3392_v47, %v3391_v43  ;;  %v1771_v45 = vadd.f32 %v4807_v16, %v4753_v54 }
 0x143   : > { %2316 = vmatmul.mubr.bf16.gmra.mrb[140].mxu1 %v4227_v34  ;;  %3841 = vmatmul.mubr.bf16.gmra.mrb[140].mxu0 %v4228_v38 }
 0x144   : > { %v4829_v55 = vadd.f32 %v3481_v49, %v1750_v21 }
 0x146   : > { %v3482_v56 = vpop.f32.mrb[36].mxu1  ;;  %v3394_v2 = vpop.f32.mrb[36].mxu0 }
 0x147   : > { %v3483_v57 = vpop.f32.mrb[37].mxu1  ;;  %v3395_v58 = vpop.f32.mrb[37].mxu0 }
 0x148   : > { %v3484_v63 = vadd.f32 %v3483_v57, %v3482_v56  ;;  %v3485_v1 = vpop.f32.mrb[38].mxu1  ;;  %v4833_v3 = vadd.f32 %v3395_v58, %v3394_v2  ;;  %v3397_v15 = vpop.f32.mrb[38].mxu0  ;;  %v1774_v57 = vadd.f32 %v4815_v27, %v4753_v54  ;;  %v1782_v27 = vadd.f32 %v3393_v51, %v4753_v54 }
 0x149   : > { %v3486_v6 = vpop.f32.mrb[39].mxu1  ;;  %v3398_v7 = vpop.f32.mrb[39].mxu0 }
 0x14a   : > { %v4837_v9 = vadd.f32 %v3484_v63, %v1755_v59  ;;  %v3487_v37 = vadd.f32 %v3486_v6, %v3485_v1  ;;  %v3399_v10 = vadd.f32 %v3398_v7, %v3397_v15  ;;  %v1787_v51 = vadd.f32 %v4833_v3, %v4753_v54 }
 0x14c   : > { %v4839_v13 = vadd.f32 %v3487_v37, %v1758_v8  ;;  %v1779_v8 = vadd.f32 %v4823_v42, %v4753_v54 }
 0x14e   : > { %v3488_v17 = vpop.f32.mrb[40].mxu1  ;;  %v3400_v18 = vpop.f32.mrb[40].mxu0 }
 0x14f   : > { %v3489_v19 = vpop.f32.mrb[41].mxu1  ;;  %v3401_v26 = vpop.f32.mrb[41].mxu0 }
 0x150   : > { %v3490_v23 = vadd.f32 %v3489_v19, %v3488_v17  ;;  %v3491_v5 = vpop.f32.mrb[42].mxu1  ;;  %v4843_v25 = vadd.f32 %v3401_v26, %v3400_v18  ;;  %v3403_v29 = vpop.f32.mrb[42].mxu0 }
 0x151   : > { %v3492_v31 = vpop.f32.mrb[43].mxu1  ;;  %v3404_v39 = vpop.f32.mrb[43].mxu0 }
 0x152   : > { %v4847_v33 = vadd.f32 %v3490_v23, %v1763_v22  ;;  %v3493_v34 = vadd.f32 %v3492_v31, %v3491_v5  ;;  %v4849_v38 = vadd.f32 %v3404_v39, %v3403_v29 }
 0x154   : > { %v4851_v53 = vadd.f32 %v3493_v34, %v1766_v32 }
 0x156   : > { %v3494_v40 = vpop.f32.mrb[44].mxu1  ;;  %v3406_v41 = vpop.f32.mrb[44].mxu0 }
 0x157   : > { %v3495_v50 = vpop.f32.mrb[45].mxu1  ;;  %v3407_v43 = vpop.f32.mrb[45].mxu0 }
 0x158   : > { %v3496_v47 = vadd.f32 %v3495_v50, %v3494_v40  ;;  %v3497_v21 = vpop.f32.mrb[46].mxu1  ;;  %v4855_v49 = vadd.f32 %v3407_v43, %v3406_v41  ;;  %v3409_v56 = vpop.f32.mrb[46].mxu0 }
 0x159   : > { %v3498_v0 = vpop.f32.mrb[47].mxu1  ;;  %v3410_v2 = vpop.f32.mrb[47].mxu0 }
 0x15a   : > { %v4859_v58 = vadd.f32 %v3496_v47, %v1771_v45  ;;  %v3499_v59 = vadd.f32 %v3498_v0, %v3497_v21  ;;  %v4861_v63 = vadd.f32 %v3410_v2, %v3409_v56 }
 0x15c   : > { %v4863_v1 = vadd.f32 %v3499_v59, %v1774_v57 }
 0x15e   : > { %v3500_v15 = vpop.f32.mrb[48].mxu1  ;;  %v3564_v6 = vpop.f32.mrb[48].mxu0 }
 0x15f   : > { %v3501_v16 = vpop.f32.mrb[49].mxu1  ;;  %v3565_v7 = vpop.f32.mrb[49].mxu0 }
 0x160   : > { %v3502_v37 = vadd.f32 %v3501_v16, %v3500_v15  ;;  %v3566_v17 = vadd.f32 %v3565_v7, %v3564_v6  ;;  %v3503_v18 = vpop.f32.mrb[50].mxu1  ;;  %v3567_v19 = vpop.f32.mrb[50].mxu0 }
 0x161   : > { %v3504_v26 = vpop.f32.mrb[51].mxu1  ;;  %v3568_v22 = vpop.f32.mrb[51].mxu0 }
 0x162   : > { %v4868_v23 = vadd.f32 %v3502_v37, %v1779_v8  ;;  %v4871_v5 = vadd.f32 %v3566_v17, %v4765_v11  ;;  %v3505_v29 = vadd.f32 %v3504_v26, %v3503_v18  ;;  %v3569_v31 = vadd.f32 %v3568_v22, %v3567_v19 }
 0x163   : > { %v1790_v11 = vadd.f32 %v3399_v10, %v4753_v54  ;;  %v1795_v10 = vadd.f32 %v4843_v25, %v4753_v54 }
 0x164   : > { %v4873_v39 = vadd.f32 %v3505_v29, %v1782_v27  ;;  %v4876_v32 = vadd.f32 %v3569_v31, %v4769_v62 }
 0x166   : > { %v3506_v42 = vpop.f32.mrb[52].mxu1  ;;  %v3570_v34 = vpop.f32.mrb[52].mxu0 }
 0x167   : > { %v3507_v40 = vpop.f32.mrb[53].mxu1  ;;  %v3571_v41 = vpop.f32.mrb[53].mxu0 }
 0x168   : > { %v3508_v50 = vadd.f32 %v3507_v40, %v3506_v42  ;;  %v3572_v43 = vadd.f32 %v3571_v41, %v3570_v34  ;;  %v3509_v45 = vpop.f32.mrb[54].mxu1  ;;  %v3573_v47 = vpop.f32.mrb[54].mxu0 }
 0x169   : > { %v3510_v21 = vpop.f32.mrb[55].mxu1  ;;  %v3574_v56 = vpop.f32.mrb[55].mxu0 }
 0x16a   : > { %v4881_v0 = vadd.f32 %v3508_v50, %v1787_v51  ;;  %v4884_v62 = vadd.f32 %v3572_v43, %v4781_v35  ;;  %v3511_v2 = vadd.f32 %v3510_v21, %v3509_v45  ;;  %v3575_v57 = vadd.f32 %v3574_v56, %v3573_v47 }
 0x16b   : > { %v1798_v35 = vadd.f32 %v4849_v38, %v4753_v54  ;;  %v1803_v38 = vadd.f32 %v4855_v49, %v4753_v54 }
 0x16c   : > { %v4886_v59 = vadd.f32 %v3511_v2, %v1790_v11  ;;  %v4889_v15 = vadd.f32 %v3575_v57, %v4785_v14 }
 0x16e   : > { %v3512_v3 = vpop.f32.mrb[56].mxu1  ;;  %v3576_v6 = vpop.f32.mrb[56].mxu0 }
 0x16f   : > { %v3513_v16 = vpop.f32.mrb[57].mxu1  ;;  %v3577_v7 = vpop.f32.mrb[57].mxu0 }
 0x170   : > { %v3514_v8 = vadd.f32 %v3513_v16, %v3512_v3  ;;  %v3578_v37 = vadd.f32 %v3577_v7, %v3576_v6  ;;  %v3515_v17 = vpop.f32.mrb[58].mxu1  ;;  %v3579_v18 = vpop.f32.mrb[58].mxu0 }
 0x171   : > { %v3516_v19 = vpop.f32.mrb[59].mxu1  ;;  %v3580_v27 = vpop.f32.mrb[59].mxu0 }
 0x172   : > { %v4895_v26 = vadd.f32 %v3514_v8, %v1795_v10  ;;  %v4898_v14 = vadd.f32 %v3578_v37, %v4797_v61  ;;  %v3517_v22 = vadd.f32 %v3516_v19, %v3515_v17  ;;  %v3581_v29 = vadd.f32 %v3580_v27, %v3579_v18 }
 0x173   : > { %v1806_v61 = vadd.f32 %v4861_v63, %v4753_v54  ;;  %v1811_v63 = vadd.f32 %v4704_v60, %v4753_v54 }
 0x174   : > { %v4900_v31 = vadd.f32 %v3517_v22, %v1798_v35  ;;  %v4903_v25 = vadd.f32 %v3581_v29, %v4801_v30 }
 0x176   : > { %v3518_v42 = vpop.f32.mrb[60].mxu1  ;;  %v3582_v34 = vpop.f32.mrb[60].mxu0 }
 0x177   : > { %v3519_v40 = vpop.f32.mrb[61].mxu1  ;;  %v3583_v41 = vpop.f32.mrb[61].mxu0 }
 0x178   : > { %v3520_v51 = vadd.f32 %v3519_v40, %v3518_v42  ;;  %v3584_v50 = vadd.f32 %v3583_v41, %v3582_v34  ;;  %v3521_v43 = vpop.f32.mrb[62].mxu1  ;;  %v3585_v45 = vpop.f32.mrb[62].mxu0 }
 0x179   : > { %v3522_v47 = vpop.f32.mrb[63].mxu1  ;;  %v3586_v11 = vpop.f32.mrb[63].mxu0 }
 0x17a   : > { %v4909_v21 = vadd.f32 %v3520_v51, %v1803_v38  ;;  %v4912_v30 = vadd.f32 %v3584_v50, %v4813_v24  ;;  %v3523_v56 = vadd.f32 %v3522_v47, %v3521_v43  ;;  %v3587_v2 = vadd.f32 %v3586_v11, %v3585_v45 }
 0x17b   : > { %v1814_v24 = vadd.f32 %v4710_v4, %v4753_v54  ;;  %v1819_v4 = vadd.f32 %v4716_v12, %v4753_v54 }
 0x17c   : > { %v4914_v57 = vadd.f32 %v3523_v56, %v1806_v61  ;;  %v4917_v49 = vadd.f32 %v3587_v2, %v4817_v46 }
 0x17e   : > { %v3524_v3 = vpop.f32.mrb[64].mxu1  ;;  %v3588_v6 = vpop.f32.mrb[64].mxu0 }
 0x17f   : > { %v3525_v16 = vpop.f32.mrb[65].mxu1  ;;  %v3589_v7 = vpop.f32.mrb[65].mxu0 }
 0x180   : > { %v3526_v10 = vadd.f32 %v3525_v16, %v3524_v3  ;;  %v3590_v8 = vadd.f32 %v3589_v7, %v3588_v6  ;;  %v3527_v37 = vpop.f32.mrb[66].mxu1  ;;  %v3591_v17 = vpop.f32.mrb[66].mxu0 }
 0x181   : > { %v3528_v18 = vpop.f32.mrb[67].mxu1  ;;  %v3592_v35 = vpop.f32.mrb[67].mxu0 }
 0x182   : > { %v4923_v19 = vadd.f32 %v3526_v10, %v1811_v63  ;;  %v4926_v46 = vadd.f32 %v3590_v8, %v4827_v48  ;;  %v3529_v27 = vadd.f32 %v3528_v18, %v3527_v37  ;;  %v3593_v22 = vadd.f32 %v3592_v35, %v3591_v17 }
 0x183   : > { %v1822_v48 = vadd.f32 %v4722_v20, %v4753_v54  ;;  %v1827_v20 = vadd.f32 %v4728_v28, %v4753_v54 }
 0x184   : > { %v4928_v29 = vadd.f32 %v3529_v27, %v1814_v24  ;;  %v4931_v60 = vadd.f32 %v3593_v22, %v4829_v55 }
 0x186   : > { %v3530_v42 = vpop.f32.mrb[68].mxu1  ;;  %v3594_v34 = vpop.f32.mrb[68].mxu0 }
 0x187   : > { %v3531_v40 = vpop.f32.mrb[69].mxu1  ;;  %v3595_v41 = vpop.f32.mrb[69].mxu0 }
 0x188   : > { %v3532_v38 = vadd.f32 %v3531_v40, %v3530_v42  ;;  %v3596_v51 = vadd.f32 %v3595_v41, %v3594_v34  ;;  %v3533_v50 = vpop.f32.mrb[70].mxu1  ;;  %v3597_v43 = vpop.f32.mrb[70].mxu0 }
 0x189   : > { %v3534_v45 = vpop.f32.mrb[71].mxu1  ;;  %v3598_v61 = vpop.f32.mrb[71].mxu0 }
 0x18a   : > { %v4937_v47 = vadd.f32 %v3532_v38, %v1819_v4  ;;  %v4940_v55 = vadd.f32 %v3596_v51, %v4837_v9  ;;  %v3535_v11 = vadd.f32 %v3534_v45, %v3533_v50  ;;  %v3599_v56 = vadd.f32 %v3598_v61, %v3597_v43 }
 0x18b   : > { %v1830_v9 = vadd.f32 %v4734_v36, %v4753_v54  ;;  %v1835_v36 = vadd.f32 %v4740_v44, %v4753_v54 }
 0x18c   : > { %v4942_v2 = vadd.f32 %v3535_v11, %v1822_v48  ;;  %v4945_v12 = vadd.f32 %v3599_v56, %v4839_v13 }
 0x18e   : > { %v3536_v3 = vpop.f32.mrb[72].mxu1  ;;  %v3600_v6 = vpop.f32.mrb[72].mxu0 }
 0x18f   : > { %v3537_v16 = vpop.f32.mrb[73].mxu1  ;;  %v3601_v7 = vpop.f32.mrb[73].mxu0 }
 0x190   : > { %v3538_v63 = vadd.f32 %v3537_v16, %v3536_v3  ;;  %v3602_v10 = vadd.f32 %v3601_v7, %v3600_v6  ;;  %v3539_v8 = vpop.f32.mrb[74].mxu1  ;;  %v3603_v37 = vpop.f32.mrb[74].mxu0 }
 0x191   : > { %v3540_v17 = vpop.f32.mrb[75].mxu1  ;;  %v3604_v24 = vpop.f32.mrb[75].mxu0 }
 0x192   : > { %v4951_v18 = vadd.f32 %v3538_v63, %v1827_v20  ;;  %v4954_v13 = vadd.f32 %v3602_v10, %v4847_v33  ;;  %v3541_v35 = vadd.f32 %v3540_v17, %v3539_v8  ;;  %v3605_v27 = vadd.f32 %v3604_v24, %v3603_v37 }
 0x193   : > { %v1838_v33 = vadd.f32 %v4746_v52, %v4753_v54 }
 0x194   : > { %v4956_v22 = vadd.f32 %v3541_v35, %v1830_v9  ;;  %v4959_v28 = vadd.f32 %v3605_v27, %v4851_v53 }
 0x196   : > { %v3542_v42 = vpop.f32.mrb[76].mxu1  ;;  %v3606_v34 = vpop.f32.mrb[76].mxu0 }
 0x197   : > { %v3543_v40 = vpop.f32.mrb[77].mxu1  ;;  %v3607_v41 = vpop.f32.mrb[77].mxu0 }
 0x198   : > { %v3544_v4 = vadd.f32 %v3543_v40, %v3542_v42  ;;  %v3608_v38 = vadd.f32 %v3607_v41, %v3606_v34  ;;  %v3545_v51 = vpop.f32.mrb[78].mxu1  ;;  %v3609_v50 = vpop.f32.mrb[78].mxu0 }
 0x199   : > { %v3546_v43 = vpop.f32.mrb[79].mxu1  ;;  %v3610_v48 = vpop.f32.mrb[79].mxu0 }
 0x19a   : > { %v4965_v45 = vadd.f32 %v3544_v4, %v1835_v36  ;;  %v4968_v53 = vadd.f32 %v3608_v38, %v4859_v58  ;;  %v3547_v61 = vadd.f32 %v3546_v43, %v3545_v51  ;;  %v3611_v11 = vadd.f32 %v3610_v48, %v3609_v50 }
 0x19c   : > { %v4970_v56 = vadd.f32 %v3547_v61, %v1838_v33  ;;  %v4973_v44 = vadd.f32 %v3611_v11, %v4863_v1 }
 0x19e   : > { %v3612_v3 = vpop.f32.mrb[80].mxu0  ;;  %v3676_v6 = vpop.f32.mrb[80].mxu1 }
 0x19f   : > { %v3613_v16 = vpop.f32.mrb[81].mxu0  ;;  %v3677_v7 = vpop.f32.mrb[81].mxu1 }
 0x1a0   : > { %v3614_v20 = vadd.f32 %v3613_v16, %v3612_v3  ;;  %v3678_v52 = vadd.f32 %v3677_v7, %v3676_v6  ;;  %v3615_v54 = vpop.f32.mrb[82].mxu0  ;;  %v3679_v63 = vpop.f32.mrb[82].mxu1 }
 0x1a1   : > { %v3616_v10 = vpop.f32.mrb[83].mxu0  ;;  %v3680_v8 = vpop.f32.mrb[83].mxu1 }
 0x1a2   : > { %v4976_v58 = vadd.f32 %v3614_v20, %v4868_v23  ;;  %v3617_v37 = vadd.f32 %v3616_v10, %v3615_v54  ;;  %v3681_v9 = vadd.f32 %v3680_v8, %v3679_v63  ;;  %v4979_v17 = vadd.f32 %v3678_v52, %v4871_v5 }
 0x1a4   : > { %v4982_v1 = vadd.f32 %v3617_v37, %v4873_v39  ;;  %v4985_v24 = vadd.f32 %v3681_v9, %v4876_v32 }
 0x1a6   : > { %v3618_v35 = vpop.f32.mrb[84].mxu0  ;;  %v3682_v27 = vpop.f32.mrb[84].mxu1 }
 0x1a7   : > { %v3619_v42 = vpop.f32.mrb[85].mxu0  ;;  %v3683_v34 = vpop.f32.mrb[85].mxu1 }
 0x1a8   : > { %v3620_v40 = vadd.f32 %v3619_v42, %v3618_v35  ;;  %v3684_v41 = vadd.f32 %v3683_v34, %v3682_v27  ;;  %v3621_v36 = vpop.f32.mrb[86].mxu0  ;;  %v3685_v23 = vpop.f32.mrb[86].mxu1 }
 0x1a9   : > { %v3622_v4 = vpop.f32.mrb[87].mxu0  ;;  %v3686_v38 = vpop.f32.mrb[87].mxu1 }
 0x1aa   : > { %v4988_v51 = vadd.f32 %v3620_v40, %v4881_v0  ;;  %v3623_v5 = vadd.f32 %v3622_v4, %v3621_v36  ;;  %v3687_v50 = vadd.f32 %v3686_v38, %v3685_v23  ;;  %v4991_v39 = vadd.f32 %v3684_v41, %v4884_v62 }
 0x1ac   : > { %v4994_v32 = vadd.f32 %v3623_v5, %v4886_v59  ;;  %v4997_v33 = vadd.f32 %v3687_v50, %v4889_v15 }
 0x1ae   : > { %v3624_v43 = vpop.f32.mrb[88].mxu0  ;;  %v3688_v48 = vpop.f32.mrb[88].mxu1 }
 0x1af   : > { %v3625_v61 = vpop.f32.mrb[89].mxu0  ;;  %v3689_v11 = vpop.f32.mrb[89].mxu1 }
 0x1b0   : > { %v3626_v3 = vadd.f32 %v3625_v61, %v3624_v43  ;;  %v3690_v6 = vadd.f32 %v3689_v11, %v3688_v48  ;;  %v3627_v16 = vpop.f32.mrb[90].mxu0  ;;  %v3691_v0 = vpop.f32.mrb[90].mxu1 }
 0x1b1   : > { %v3628_v7 = vpop.f32.mrb[91].mxu0  ;;  %v3692_v20 = vpop.f32.mrb[91].mxu1 }
 0x1b2   : > { %v5000_v52 = vadd.f32 %v3626_v3, %v4895_v26  ;;  %v3629_v62 = vadd.f32 %v3628_v7, %v3627_v16  ;;  %v3693_v54 = vadd.f32 %v3692_v20, %v3691_v0  ;;  %v5003_v59 = vadd.f32 %v3690_v6, %v4898_v14 }
 0x1b4   : > { %v5006_v15 = vadd.f32 %v3629_v62, %v4900_v31  ;;  %v5009_v63 = vadd.f32 %v3693_v54, %v4903_v25 }
 0x1b6   : > { %v3630_v10 = vpop.f32.mrb[92].mxu0  ;;  %v3694_v8 = vpop.f32.mrb[92].mxu1 }
 0x1b7   : > { %v3631_v37 = vpop.f32.mrb[93].mxu0  ;;  %v3695_v9 = vpop.f32.mrb[93].mxu1 }
 0x1b8   : > { %v3632_v35 = vadd.f32 %v3631_v37, %v3630_v10  ;;  %v3696_v27 = vadd.f32 %v3695_v9, %v3694_v8  ;;  %v3633_v42 = vpop.f32.mrb[94].mxu0  ;;  %v3697_v26 = vpop.f32.mrb[94].mxu1 }
 0x1b9   : > { %v3634_v34 = vpop.f32.mrb[95].mxu0  ;;  %v3698_v40 = vpop.f32.mrb[95].mxu1 }
 0x1ba   : > { %v5012_v41 = vadd.f32 %v3632_v35, %v4909_v21  ;;  %v3635_v14 = vadd.f32 %v3634_v34, %v3633_v42  ;;  %v3699_v36 = vadd.f32 %v3698_v40, %v3697_v26  ;;  %v5015_v31 = vadd.f32 %v3696_v27, %v4912_v30 }
 0x1bc   : > { %v5018_v25 = vadd.f32 %v3635_v14, %v4914_v57  ;;  %v5021_v23 = vadd.f32 %v3699_v36, %v4917_v49 }
 0x1be   : > { %v3636_v4 = vpop.f32.mrb[96].mxu0  ;;  %v3700_v38 = vpop.f32.mrb[96].mxu1 }
 0x1bf   : > { %v3637_v5 = vpop.f32.mrb[97].mxu0  ;;  %v3701_v50 = vpop.f32.mrb[97].mxu1 }
 0x1c0   : > { %v3638_v43 = vadd.f32 %v3637_v5, %v3636_v4  ;;  %v3702_v48 = vadd.f32 %v3701_v50, %v3700_v38  ;;  %v3639_v61 = vpop.f32.mrb[98].mxu0  ;;  %v3703_v21 = vpop.f32.mrb[98].mxu1 }
 0x1c1   : > { %v3640_v11 = vpop.f32.mrb[99].mxu0  ;;  %v3704_v3 = vpop.f32.mrb[99].mxu1 }
 0x1c2   : > { %v5024_v6 = vadd.f32 %v3638_v43, %v4923_v19  ;;  %v3641_v30 = vadd.f32 %v3640_v11, %v3639_v61  ;;  %v3705_v16 = vadd.f32 %v3704_v3, %v3703_v21  ;;  %v5027_v57 = vadd.f32 %v3702_v48, %v4926_v46 }
 0x1c4   : > { %v5030_v49 = vadd.f32 %v3641_v30, %v4928_v29  ;;  %v5033_v0 = vadd.f32 %v3705_v16, %v4931_v60 }
 0x1c6   : > { %v3642_v7 = vpop.f32.mrb[100].mxu0  ;;  %v3706_v20 = vpop.f32.mrb[100].mxu1 }
 0x1c7   : > { %v3643_v62 = vpop.f32.mrb[101].mxu0  ;;  %v3707_v54 = vpop.f32.mrb[101].mxu1 }
 0x1c8   : > { %v3644_v10 = vadd.f32 %v3643_v62, %v3642_v7  ;;  %v3708_v8 = vadd.f32 %v3707_v54, %v3706_v20  ;;  %v3645_v37 = vpop.f32.mrb[102].mxu0  ;;  %v3709_v19 = vpop.f32.mrb[102].mxu1 }
 0x1c9   : > { %v3646_v9 = vpop.f32.mrb[103].mxu0  ;;  %v3710_v35 = vpop.f32.mrb[103].mxu1 }
 0x1ca   : > { %v5036_v27 = vadd.f32 %v3644_v10, %v4937_v47  ;;  %v3647_v46 = vadd.f32 %v3646_v9, %v3645_v37  ;;  %v3711_v42 = vadd.f32 %v3710_v35, %v3709_v19  ;;  %v5039_v29 = vadd.f32 %v3708_v8, %v4940_v55 }
 0x1cc   : > { %v5042_v60 = vadd.f32 %v3647_v46, %v4942_v2  ;;  %v5045_v26 = vadd.f32 %v3711_v42, %v4945_v12 }
 0x1ce   : > { %v3648_v34 = vpop.f32.mrb[104].mxu0  ;;  %v3712_v40 = vpop.f32.mrb[104].mxu1 }
 0x1cf   : > { %v3649_v14 = vpop.f32.mrb[105].mxu0  ;;  %v3713_v36 = vpop.f32.mrb[105].mxu1 }
 0x1d0   : > { %v3650_v4 = vadd.f32 %v3649_v14, %v3648_v34  ;;  %v3714_v38 = vadd.f32 %v3713_v36, %v3712_v40  ;;  %v3651_v5 = vpop.f32.mrb[106].mxu0  ;;  %v3715_v47 = vpop.f32.mrb[106].mxu1 }
 0x1d1   : > { %v3652_v50 = vpop.f32.mrb[107].mxu0  ;;  %v3716_v43 = vpop.f32.mrb[107].mxu1 }
 0x1d2   : > { %v5048_v48 = vadd.f32 %v3650_v4, %v4951_v18  ;;  %v3653_v55 = vadd.f32 %v3652_v50, %v3651_v5  ;;  %v3717_v61 = vadd.f32 %v3716_v43, %v3715_v47  ;;  %v5051_v2 = vadd.f32 %v3714_v38, %v4954_v13 }
 0x1d4   : > { %v5054_v12 = vadd.f32 %v3653_v55, %v4956_v22  ;;  %v5057_v21 = vadd.f32 %v3717_v61, %v4959_v28 }
 0x1d6   : > { %v3654_v11 = vpop.f32.mrb[108].mxu0  ;;  %v3718_v3 = vpop.f32.mrb[108].mxu1 }
 0x1d7   : > { %v3655_v30 = vpop.f32.mrb[109].mxu0  ;;  %v3719_v16 = vpop.f32.mrb[109].mxu1 }
 0x1d8   : > { %v3656_v7 = vadd.f32 %v3655_v30, %v3654_v11  ;;  %v3720_v20 = vadd.f32 %v3719_v16, %v3718_v3  ;;  %v3657_v18 = vpop.f32.mrb[110].mxu0  ;;  %v3721_v62 = vpop.f32.mrb[110].mxu1 }
 0x1d9   : > { %v3658_v54 = vpop.f32.mrb[111].mxu0  ;;  %v3722_v10 = vpop.f32.mrb[111].mxu1 }
 0x1da   : > { %v5060_v13 = vadd.f32 %v3656_v7, %v4965_v45  ;;  %v3659_v8 = vadd.f32 %v3658_v54, %v3657_v18  ;;  %v3723_v22 = vadd.f32 %v3722_v10, %v3721_v62  ;;  %v5063_v37 = vadd.f32 %v3720_v20, %v4968_v53 }
 0x1dc   : > { %v5066_v28 = vadd.f32 %v3659_v8, %v4970_v56  ;;  %v5070_v19 = vadd.f32 %v3723_v22, %v4973_v44 }
 0x1de   : > { %v3724_v9 = vpop.f32.mrb[112].mxu1  ;;  %v3814_v35 = vpop.f32.mrb[112].mxu0 }
 0x1df   : > { %v2367_v46 = vadd.f32 %v3814_v35, %v4991_v39  ;;  %v3725_v42 = vpop.f32.mrb[113].mxu1  ;;  %v2358_v45 = vpop.f32.mrb[113].mxu0 }
 0x1e0   : > { %v3726_v34 = vadd.f32 %v3725_v42, %v3724_v9  ;;  %v2359_v40 = vadd.f32 %v2358_v45, %v4979_v17  ;;  %v3727_v14 = vpop.f32.mrb[114].mxu1  ;;  %v3815_v53 = vpop.f32.mrb[114].mxu0 }
 0x1e1   : > { %v2487_v36 = vmax.f32 %v2367_v46, 0.0  ;;  %v2370_v56 = vadd.f32 %v3815_v53, %v4997_v33  ;;  %v3728_v4 = vpop.f32.mrb[115].mxu1  ;;  %v2361_v38 = vpop.f32.mrb[115].mxu0 }
 0x1e2   : > { %v2485_v44 = vmax.f32 %v2359_v40, 0.0  ;;  %v3729_v5 = vadd.f32 %v3728_v4, %v3727_v14  ;;  %v2362_v47 = vadd.f32 %v2361_v38, %v4985_v24  ;;  %v5077_v50 = vadd.f32 %v3726_v34, %v4976_v58 }
 0x1e3   : > { %v3291_v39 = vpack.c.bf16 %v2487_v36, %v2487_v36  ;;  %v2488_v43 = vmax.f32 %v2370_v56, 0.0 }
 0x1e4   : > { %v3289_v55 = vpack.c.bf16 %v2485_v44, %v2485_v44  ;;  %v2486_v61 = vmax.f32 %v2362_v47, 0.0  ;;  %v5080_v17 = vadd.f32 %v3729_v5, %v4982_v1 }
 0x1e5   : > { %2648 = vst.msk [vmem:[%s5082_s12 + $0x8] sm:$0xf] %vm2645_vm0, %v3291_v39  ;;  %v3292_v33 = vpack.c.bf16 %v2488_v43, %v2488_v43 }
 0x1e6   : > { %2646 = vst.msk [vmem:[%s5082_s12] sm:$0xf] %vm2645_vm0, %v3289_v55  ;;  %v3290_v58 = vpack.c.bf16 %v2486_v61, %v2486_v61  ;;  %v3730_v24 = vpop.f32.mrb[116].mxu1  ;;  %v3818_v11 = vpop.f32.mrb[116].mxu0 }
 0x1e7   : > { %2649 = vst.msk [vmem:[%s5082_s12 + $0xc] sm:$0xf] %vm2645_vm0, %v3292_v33  ;;  %v2383_v3 = vadd.f32 %v3818_v11, %v5015_v31  ;;  %v3731_v1 = vpop.f32.mrb[117].mxu1  ;;  %v2374_v30 = vpop.f32.mrb[117].mxu0 }
 0x1e8   : > { %2647 = vst.msk [vmem:[%s5082_s12 + $0x4] sm:$0xf] %vm2645_vm0, %v3290_v58  ;;  %v3732_v16 = vadd.f32 %v3731_v1, %v3730_v24  ;;  %v2375_v7 = vadd.f32 %v2374_v30, %v5003_v59  ;;  %v3733_v20 = vpop.f32.mrb[118].mxu1  ;;  %v3819_v18 = vpop.f32.mrb[118].mxu0 }
 0x1e9   : > { %v2491_v62 = vmax.f32 %v2383_v3, 0.0  ;;  %v2386_v54 = vadd.f32 %v3819_v18, %v5021_v23  ;;  %v3734_v10 = vpop.f32.mrb[119].mxu1  ;;  %v2377_v8 = vpop.f32.mrb[119].mxu0 }
 0x1ea   : > { %v2489_v22 = vmax.f32 %v2375_v7, 0.0  ;;  %v3735_v9 = vadd.f32 %v3734_v10, %v3733_v20  ;;  %v2378_v31 = vadd.f32 %v2377_v8, %v5009_v63  ;;  %v5097_v35 = vadd.f32 %v3732_v16, %v4988_v51 }
 0x1eb   : > { %v3295_v46 = vpack.c.bf16 %v2491_v62, %v2491_v62  ;;  %v2492_v59 = vmax.f32 %v2386_v54, 0.0 }
 0x1ec   : > { %v3293_v42 = vpack.c.bf16 %v2489_v22, %v2489_v22  ;;  %v2490_v45 = vmax.f32 %v2378_v31, 0.0  ;;  %v5100_v34 = vadd.f32 %v3735_v9, %v4994_v32 }
 0x1ed   : > { %2652 = vst.msk [vmem:[%s5082_s12 + $0x18] sm:$0xf] %vm2645_vm0, %v3295_v46  ;;  %v3296_v23 = vpack.c.bf16 %v2492_v59, %v2492_v59 }
 0x1ee   : > { %2650 = vst.msk [vmem:[%s5082_s12 + $0x10] sm:$0xf] %vm2645_vm0, %v3293_v42  ;;  %v3294_v40 = vpack.c.bf16 %v2490_v45, %v2490_v45  ;;  %v3736_v14 = vpop.f32.mrb[120].mxu1  ;;  %v3822_v53 = vpop.f32.mrb[120].mxu0 }
 0x1ef   : > { %2653 = vst.msk [vmem:[%s5082_s12 + $0x1c] sm:$0xf] %vm2645_vm0, %v3296_v23  ;;  %v2399_v51 = vadd.f32 %v3822_v53, %v5039_v29  ;;  %v3737_v63 = vpop.f32.mrb[121].mxu1  ;;  %v2390_v36 = vpop.f32.mrb[121].mxu0 }
 0x1f0   : > { %2651 = vst.msk [vmem:[%s5082_s12 + $0x14] sm:$0xf] %vm2645_vm0, %v3294_v40  ;;  %v3738_v56 = vadd.f32 %v3737_v63, %v3736_v14  ;;  %v2391_v32 = vadd.f32 %v2390_v36, %v5027_v57  ;;  %v3739_v4 = vpop.f32.mrb[122].mxu1  ;;  %v3823_v38 = vpop.f32.mrb[122].mxu0 }
 0x1f1   : > { %v2495_v44 = vmax.f32 %v2399_v51, 0.0  ;;  %v2402_v5 = vadd.f32 %v3823_v38, %v5045_v26  ;;  %v3740_v47 = vpop.f32.mrb[123].mxu1  ;;  %v2393_v39 = vpop.f32.mrb[123].mxu0 }
 0x1f2   : > { %v2493_v43 = vmax.f32 %v2391_v32, 0.0  ;;  %v3741_v55 = vadd.f32 %v3740_v47, %v3739_v4  ;;  %v2394_v29 = vadd.f32 %v2393_v39, %v5033_v0  ;;  %v5115_v61 = vadd.f32 %v3738_v56, %v5000_v52 }
 0x1f3   : > { %v3299_v33 = vpack.c.bf16 %v2495_v44, %v2495_v44  ;;  %v2496_v57 = vmax.f32 %v2402_v5, 0.0 }
 0x1f4   : > { %v3297_v58 = vpack.c.bf16 %v2493_v43, %v2493_v43  ;;  %v2494_v24 = vmax.f32 %v2394_v29, 0.0  ;;  %v5118_v11 = vadd.f32 %v3741_v55, %v5006_v15 }
 0x1f5   : > { %2656 = vst.msk [vmem:[%s5082_s12 + $0x28] sm:$0xf] %vm2645_vm0, %v3299_v33  ;;  %v3300_v26 = vpack.c.bf16 %v2496_v57, %v2496_v57 }
 0x1f6   : > { %2654 = vst.msk [vmem:[%s5082_s12 + $0x20] sm:$0xf] %vm2645_vm0, %v3297_v58  ;;  %v3298_v3 = vpack.c.bf16 %v2494_v24, %v2494_v24  ;;  %v3742_v1 = vpop.f32.mrb[124].mxu1  ;;  %v3826_v30 = vpop.f32.mrb[124].mxu0 }
 0x1f7   : > { %2657 = vst.msk [vmem:[%s5082_s12 + $0x2c] sm:$0xf] %vm2645_vm0, %v3300_v26  ;;  %v2415_v52 = vadd.f32 %v3826_v30, %v5063_v37  ;;  %v3743_v0 = vpop.f32.mrb[125].mxu1  ;;  %v2406_v16 = vpop.f32.mrb[125].mxu0 }
 0x1f8   : > { %2655 = vst.msk [vmem:[%s5082_s12 + $0x24] sm:$0xf] %vm2645_vm0, %v3298_v3  ;;  %v3744_v7 = vadd.f32 %v3743_v0, %v3742_v1  ;;  %v2407_v15 = vadd.f32 %v2406_v16, %v5051_v2  ;;  %v3745_v20 = vpop.f32.mrb[126].mxu1  ;;  %v3827_v18 = vpop.f32.mrb[126].mxu0 }
 0x1f9   : > { %v2499_v62 = vmax.f32 %v2415_v52, 0.0  ;;  %v2418_v54 = vadd.f32 %v3827_v18, %v5070_v19  ;;  %v3746_v10 = vpop.f32.mrb[127].mxu1  ;;  %v2409_v8 = vpop.f32.mrb[127].mxu0 }
 0x1fa   : > { %v2497_v22 = vmax.f32 %v2407_v15, 0.0  ;;  %v3747_v9 = vadd.f32 %v3746_v10, %v3745_v20  ;;  %v2410_v37 = vadd.f32 %v2409_v8, %v5057_v21  ;;  %v2286_v31 = vadd.f32 %v3744_v7, %v5012_v41 }
 0x1fb   : > { %v3303_v46 = vpack.c.bf16 %v2499_v62, %v2499_v62  ;;  %v2500_v59 = vmax.f32 %v2418_v54, 0.0 }
 0x1fc   : > { %v3301_v2 = vpack.c.bf16 %v2497_v22, %v2497_v22  ;;  %v2498_v42 = vmax.f32 %v2410_v37, 0.0  ;;  %v2289_v45 = vadd.f32 %v3747_v9, %v5018_v25 }
 0x1fd   : > { %2660 = vst.msk [vmem:[%s5082_s12 + $0x38] sm:$0xf] %vm2645_vm0, %v3303_v46  ;;  %v3304_v23 = vpack.c.bf16 %v2500_v59, %v2500_v59 }
 0x1fe   : > { %2658 = vst.msk [vmem:[%s5082_s12 + $0x30] sm:$0xf] %vm2645_vm0, %v3301_v2  ;;  %v3302_v19 = vpack.c.bf16 %v2498_v42, %v2498_v42  ;;  %v3748_v40 = vpop.f32.mrb[128].mxu1  ;;  %v3830_v14 = vpop.f32.mrb[128].mxu0 }
 0x1ff   : > { %2661 = vst.msk [vmem:[%s5082_s12 + $0x3c] sm:$0xf] %vm2645_vm0, %v3304_v23  ;;  %v2431_v21 = vadd.f32 %v3830_v14, %v5097_v35  ;;  %v3749_v41 = vpop.f32.mrb[129].mxu1  ;;  %v2422_v53 = vpop.f32.mrb[129].mxu0 }
 0x200   : > { %2659 = vst.msk [vmem:[%s5082_s12 + $0x34] sm:$0xf] %vm2645_vm0, %v3302_v19  ;;  %v3750_v51 = vadd.f32 %v3749_v41, %v3748_v40  ;;  %v2423_v63 = vadd.f32 %v2422_v53, %v5077_v50  ;;  %v3751_v25 = vpop.f32.mrb[130].mxu1  ;;  %v3831_v36 = vpop.f32.mrb[130].mxu0 }
 0x201   : > { %v2503_v56 = vmax.f32 %v2431_v21, 0.0  ;;  %v2434_v32 = vadd.f32 %v3831_v36, %v5100_v34  ;;  %v3752_v4 = vpop.f32.mrb[131].mxu1  ;;  %v2425_v38 = vpop.f32.mrb[131].mxu0 }
 0x202   : > { %v2501_v44 = vmax.f32 %v2423_v63, 0.0  ;;  %v3753_v5 = vadd.f32 %v3752_v4, %v3751_v25  ;;  %v2426_v35 = vadd.f32 %v2425_v38, %v5080_v17  ;;  %v2294_v47 = vadd.f32 %v3750_v51, %v5024_v6 }
 0x203   : > { %v3307_v39 = vpack.c.bf16 %v2503_v56, %v2503_v56  ;;  %v2504_v43 = vmax.f32 %v2434_v32, 0.0 }
 0x204   : > { %v3305_v50 = vpack.c.bf16 %v2501_v44, %v2501_v44  ;;  %v2502_v55 = vmax.f32 %v2426_v35, 0.0  ;;  %v2297_v29 = vadd.f32 %v3753_v5, %v5030_v49 }
 0x205   : > { %2664 = vst.msk [vmem:[%s5082_s12 + $0x48] sm:$0xf] %vm2645_vm0, %v3307_v39  ;;  %v3308_v33 = vpack.c.bf16 %v2504_v43, %v2504_v43 }
 0x206   : > { %2662 = vst.msk [vmem:[%s5082_s12 + $0x40] sm:$0xf] %vm2645_vm0, %v3305_v50  ;;  %v3306_v34 = vpack.c.bf16 %v2502_v55, %v2502_v55  ;;  %v3754_v57 = vpop.f32.mrb[132].mxu1  ;;  %v3834_v58 = vpop.f32.mrb[132].mxu0 }
 0x207   : > { %2665 = vst.msk [vmem:[%s5082_s12 + $0x4c] sm:$0xf] %vm2645_vm0, %v3308_v33  ;;  %v2447_v17 = vadd.f32 %v3834_v58, %v2286_v31  ;;  %v3755_v24 = vpop.f32.mrb[133].mxu1  ;;  %v2438_v6 = vpop.f32.mrb[133].mxu0 }
 0x208   : > { %2663 = vst.msk [vmem:[%s5082_s12 + $0x44] sm:$0xf] %vm2645_vm0, %v3306_v34  ;;  %v3756_v26 = vadd.f32 %v3755_v24, %v3754_v57  ;;  %v2439_v3 = vadd.f32 %v2438_v6, %v5115_v61  ;;  %v3757_v49 = vpop.f32.mrb[134].mxu1  ;;  %v3835_v1 = vpop.f32.mrb[134].mxu0 }
 0x209   : > { %v2507_v30 = vmax.f32 %v2447_v17, 0.0  ;;  %v2450_v52 = vadd.f32 %v3835_v1, %v2289_v45  ;;  %v3758_v0 = vpop.f32.mrb[135].mxu1  ;;  %v2441_v16 = vpop.f32.mrb[135].mxu0 }
 0x20a   : > { %v2505_v7 = vmax.f32 %v2439_v3, 0.0  ;;  %v3759_v15 = vadd.f32 %v3758_v0, %v3757_v49  ;;  %v2442_v20 = vadd.f32 %v2441_v16, %v5118_v11  ;;  %v2302_v18 = vadd.f32 %v3756_v26, %v5036_v27 }
 0x20b   : > { %v3311_v62 = vpack.c.bf16 %v2507_v30, %v2507_v30  ;;  %v2508_v54 = vmax.f32 %v2450_v52, 0.0 }
 0x20c   : > { %v3309_v10 = vpack.c.bf16 %v2505_v7, %v2505_v7  ;;  %v2506_v61 = vmax.f32 %v2442_v20, 0.0  ;;  %v2305_v8 = vadd.f32 %v3759_v15, %v5042_v60 }
 0x20d   : > { %2668 = vst.msk [vmem:[%s5082_s12 + $0x58] sm:$0xf] %vm2645_vm0, %v3311_v62  ;;  %v3312_v22 = vpack.c.bf16 %v2508_v54, %v2508_v54 }
 0x20e   : > { %2666 = vst.msk [vmem:[%s5082_s12 + $0x50] sm:$0xf] %vm2645_vm0, %v3309_v10  ;;  %v3310_v9 = vpack.c.bf16 %v2506_v61, %v2506_v61  ;;  %v3760_v37 = vpop.f32.mrb[136].mxu1  ;;  %v3838_v31 = vpop.f32.mrb[136].mxu0 }
 0x20f   : > { %2669 = vst.msk [vmem:[%s5082_s12 + $0x5c] sm:$0xf] %vm2645_vm0, %v3312_v22  ;;  %v2463_v11 = vadd.f32 %v3838_v31, %v2302_v18  ;;  %v3761_v46 = vpop.f32.mrb[137].mxu1  ;;  %v2454_v27 = vpop.f32.mrb[137].mxu0 }
 0x210   : > { %2667 = vst.msk [vmem:[%s5082_s12 + $0x54] sm:$0xf] %vm2645_vm0, %v3310_v9  ;;  %v3762_v59 = vadd.f32 %v3761_v46, %v3760_v37  ;;  %v2455_v2 = vadd.f32 %v2454_v27, %v2294_v47  ;;  %v3763_v42 = vpop.f32.mrb[138].mxu1  ;;  %v3839_v60 = vpop.f32.mrb[138].mxu0 }
 0x211   : > { %v2511_v45 = vmax.f32 %v2463_v11, 0.0  ;;  %v2466_v23 = vadd.f32 %v3839_v60, %v2305_v8  ;;  %v3764_v19 = vpop.f32.mrb[139].mxu1  ;;  %v2457_v40 = vpop.f32.mrb[139].mxu0 }
 0x212   : > { %v2509_v14 = vmax.f32 %v2455_v2, 0.0  ;;  %v3765_v21 = vadd.f32 %v3764_v19, %v3763_v42  ;;  %v2458_v41 = vadd.f32 %v2457_v40, %v2297_v29  ;;  %v2310_v53 = vadd.f32 %v3762_v59, %v5048_v48 }
 0x213   : > { %v3315_v51 = vpack.c.bf16 %v2511_v45, %v2511_v45  ;;  %v2512_v63 = vmax.f32 %v2466_v23, 0.0 }
 0x214   : > { %v3313_v25 = vpack.c.bf16 %v2509_v14, %v2509_v14  ;;  %v2510_v36 = vmax.f32 %v2458_v41, 0.0  ;;  %v2313_v56 = vadd.f32 %v3765_v21, %v5054_v12 }
 0x215   : > { %2672 = vst.msk [vmem:[%s5082_s12 + $0x68] sm:$0xf] %vm2645_vm0, %v3315_v51  ;;  %v3316_v32 = vpack.c.bf16 %v2512_v63, %v2512_v63 }
 0x216   : > { %2670 = vst.msk [vmem:[%s5082_s12 + $0x60] sm:$0xf] %vm2645_vm0, %v3313_v25  ;;  %v3314_v4 = vpack.c.bf16 %v2510_v36, %v2510_v36  ;;  %v3766_v38 = vpop.f32.mrb[140].mxu1  ;;  %v3842_v44 = vpop.f32.mrb[140].mxu0 }
 0x217   : > { %2673 = vst.msk [vmem:[%s5082_s12 + $0x6c] sm:$0xf] %vm2645_vm0, %v3316_v32  ;;  %v3767_v5 = vpop.f32.mrb[141].mxu1  ;;  %v2470_v35 = vpop.f32.mrb[141].mxu0 }
 0x218   : > { %2671 = vst.msk [vmem:[%s5082_s12 + $0x64] sm:$0xf] %vm2645_vm0, %v3314_v4  ;;  %v3768_v48 = vadd.f32 %v3767_v5, %v3766_v38  ;;  %v2471_v47 = vadd.f32 %v2470_v35, %v2310_v53  ;;  %v3769_v39 = vpop.f32.mrb[142].mxu1  ;;  %v3843_v43 = vpop.f32.mrb[142].mxu0 }
 0x219   : > { %v3770_v12 = vpop.f32.mrb[143].mxu1  ;;  %v2473_v50 = vpop.f32.mrb[143].mxu0 }
 0x21a   : > { %v2318_v55 = vadd.f32 %v3768_v48, %v5060_v13  ;;  %v2513_v29 = vmax.f32 %v2471_v47, 0.0  ;;  %v3771_v33 = vadd.f32 %v3770_v12, %v3769_v39  ;;  %v2474_v34 = vadd.f32 %v2473_v50, %v2313_v56 }
 0x21c   : > { %v2479_v57 = vadd.f32 %v3842_v44, %v2318_v55  ;;  %v3317_v58 = vpack.c.bf16 %v2513_v29, %v2513_v29  ;;  %v2321_v17 = vadd.f32 %v3771_v33, %v5066_v28  ;;  %v2514_v24 = vmax.f32 %v2474_v34, 0.0 }
 0x21e   : > { %v2515_v6 = vmax.f32 %v2479_v57, 0.0  ;;  %2674 = vst.msk [vmem:[%s5082_s12 + $0x70] sm:$0xf] %vm2645_vm0, %v3317_v58  ;;  %v2482_v26 = vadd.f32 %v3843_v43, %v2321_v17  ;;  %v3318_v3 = vpack.c.bf16 %v2514_v24, %v2514_v24  ;;  %2684 = sbr.rel (!%p4362_p4) target bundleno = 619 (0x26b), region = 36 }
 0x220   : > { %v3319_v49 = vpack.c.bf16 %v2515_v6, %v2515_v6  ;;  %v2516_v1 = vmax.f32 %v2482_v26, 0.0  ;;  %2675 = vst.msk [vmem:[%s5082_s12 + $0x74] sm:$0xf] %vm2645_vm0, %v3318_v3 }
 0x222   : > { %2676 = vst.msk [vmem:[%s5082_s12 + $0x78] sm:$0xf] %vm2645_vm0, %v3319_v49  ;;  %v3320_v13 = vpack.c.bf16 %v2516_v1, %v2516_v1 }
 0x224   : > { %2677 = vst.msk [vmem:[%s5082_s12 + $0x7c] sm:$0xf] %vm2645_vm0, %v3320_v13 }
 0x225   : > { %s5335_s17 = smov (!%p2687_p8, %s2686_s17), 32 }
 0x226   : > { %s3274_s26 = sshll.u32 %s5335_s17, 6 }
 0x227   : > { %p3277_p9 = scmp.eq.s32.totalorder %s3274_s26, 0 }
 0x228   : > { %s5201_s27 = sshrl.u32 (!%p3277_p9), %s5335_s17, 5 }
 0x229   : > { %2695 = sbr.rel (%p3277_p9) target bundleno = 619 (0x26b), region = 40  ;;  %p3278_p10 = scmp.le.s32.totalorder (!%p3277_p9), %s5201_s27, 0 }
 0x230   : > { %2972 = sbr.rel (%p3278_p10) target bundleno = 598 (0x256), region = 112  ;;  %s5328_s15 = smov (!%p3278_p10), %s5195_s25 }
 0x231   : > { %s5329_s20 = smov (!%p3278_p10), %s5082_s12  ;;  %s5210_s23 = smov (!%p3278_p10), 0  }
 0x232   : > { %s5212_s28 = smov (!%p3278_p10), 0  }
 0x237 LB: >> { %v2711_v28 = vld [vmem:[%s4291_s20] sm:$0xf]  ;;  %v2713_v30 = vld [vmem:[%s4291_s20 + $0x4] sm:$0xf]  ;;  %v2715_v52 = vld [vmem:[%s4291_s20 + $0x8] sm:$0xf]  ;;  %s4299_s28 = sphi %s5212_s28, %s2705_s28   ;;  %s4295_s23 = sphi %s5210_s23, %s5330_s23   ;;  %s4291_s20 = sphi %s5329_s20, %s2780_s20   ;;  %s4287_s15 = sphi %s5328_s15, %s2781_s15  }
 0x238   : >> { %2712 = vst [vmem:[%s4287_s15] sm:$0xf] %v2711_v28  ;;  %2714 = vst [vmem:[%s4287_s15 + $0x4] sm:$0xf] %v2713_v30  ;;  %v2717_v0 = vld [vmem:[%s4291_s20 + $0xc] sm:$0xf]  ;;  %s2775_s29 = sadd.s32 1, %s4295_s23 }
 0x239   : >> { %2716 = vst [vmem:[%s4287_s15 + $0x8] sm:$0xf] %v2715_v52  ;;  %v2719_v16 = vld [vmem:[%s4291_s20 + $0x10] sm:$0xf]  ;;  %v2721_v7 = vld [vmem:[%s4291_s20 + $0x14] sm:$0xf]  ;;  %p2776_p11 = scmp.ge.s32.totalorder %s2775_s29, %s5201_s27 }
 0x23a   : >> { %2718 = vst [vmem:[%s4287_s15 + $0xc] sm:$0xf] %v2717_v0  ;;  %2720 = vst [vmem:[%s4287_s15 + $0x10] sm:$0xf] %v2719_v16  ;;  %v2723_v15 = vld [vmem:[%s4291_s20 + $0x18] sm:$0xf] }
 0x23b   : >> { %2722 = vst [vmem:[%s4287_s15 + $0x14] sm:$0xf] %v2721_v7  ;;  %v2725_v20 = vld [vmem:[%s4291_s20 + $0x1c] sm:$0xf]  ;;  %v2727_v18 = vld [vmem:[%s4291_s20 + $0x20] sm:$0xf] }
 0x23c   : >> { %2724 = vst [vmem:[%s4287_s15 + $0x18] sm:$0xf] %v2723_v15  ;;  %2726 = vst [vmem:[%s4287_s15 + $0x1c] sm:$0xf] %v2725_v20  ;;  %v2729_v62 = vld [vmem:[%s4291_s20 + $0x24] sm:$0xf] }
 0x23d   : >> { %2728 = vst [vmem:[%s4287_s15 + $0x20] sm:$0xf] %v2727_v18  ;;  %v2731_v54 = vld [vmem:[%s4291_s20 + $0x28] sm:$0xf]  ;;  %v2733_v10 = vld [vmem:[%s4291_s20 + $0x2c] sm:$0xf] }
 0x23e   : >> { %2730 = vst [vmem:[%s4287_s15 + $0x24] sm:$0xf] %v2729_v62  ;;  %2732 = vst [vmem:[%s4287_s15 + $0x28] sm:$0xf] %v2731_v54  ;;  %v2735_v61 = vld [vmem:[%s4291_s20 + $0x30] sm:$0xf] }
 0x23f   : >> { %2734 = vst [vmem:[%s4287_s15 + $0x2c] sm:$0xf] %v2733_v10  ;;  %v2737_v8 = vld [vmem:[%s4291_s20 + $0x34] sm:$0xf]  ;;  %v2739_v22 = vld [vmem:[%s4291_s20 + $0x38] sm:$0xf] }
 0x240   : >> { %2736 = vst [vmem:[%s4287_s15 + $0x30] sm:$0xf] %v2735_v61  ;;  %2738 = vst [vmem:[%s4287_s15 + $0x34] sm:$0xf] %v2737_v8  ;;  %v2741_v9 = vld [vmem:[%s4291_s20 + $0x3c] sm:$0xf] }
 0x241   : >> { %2740 = vst [vmem:[%s4287_s15 + $0x38] sm:$0xf] %v2739_v22  ;;  %v2743_v37 = vld [vmem:[%s4291_s20 + $0x40] sm:$0xf]  ;;  %v2745_v31 = vld [vmem:[%s4291_s20 + $0x44] sm:$0xf] }
 0x242   : >> { %2742 = vst [vmem:[%s4287_s15 + $0x3c] sm:$0xf] %v2741_v9  ;;  %2744 = vst [vmem:[%s4287_s15 + $0x40] sm:$0xf] %v2743_v37  ;;  %v2747_v11 = vld [vmem:[%s4291_s20 + $0x48] sm:$0xf] }
 0x243   : >> { %2746 = vst [vmem:[%s4287_s15 + $0x44] sm:$0xf] %v2745_v31  ;;  %v2749_v46 = vld [vmem:[%s4291_s20 + $0x4c] sm:$0xf]  ;;  %v2751_v27 = vld [vmem:[%s4291_s20 + $0x50] sm:$0xf] }
 0x244   : >> { %2748 = vst [vmem:[%s4287_s15 + $0x48] sm:$0xf] %v2747_v11  ;;  %2750 = vst [vmem:[%s4287_s15 + $0x4c] sm:$0xf] %v2749_v46  ;;  %v2753_v59 = vld [vmem:[%s4291_s20 + $0x54] sm:$0xf] }
 0x245   : >> { %2752 = vst [vmem:[%s4287_s15 + $0x50] sm:$0xf] %v2751_v27  ;;  %v2755_v2 = vld [vmem:[%s4291_s20 + $0x58] sm:$0xf]  ;;  %v2757_v42 = vld [vmem:[%s4291_s20 + $0x5c] sm:$0xf] }
 0x246   : >> { %2754 = vst [vmem:[%s4287_s15 + $0x54] sm:$0xf] %v2753_v59  ;;  %2756 = vst [vmem:[%s4287_s15 + $0x58] sm:$0xf] %v2755_v2  ;;  %v2759_v60 = vld [vmem:[%s4291_s20 + $0x60] sm:$0xf] }
 0x247   : >> { %2758 = vst [vmem:[%s4287_s15 + $0x5c] sm:$0xf] %v2757_v42  ;;  %v2761_v45 = vld [vmem:[%s4291_s20 + $0x64] sm:$0xf]  ;;  %v2763_v23 = vld [vmem:[%s4291_s20 + $0x68] sm:$0xf] }
 0x248   : >> { %2760 = vst [vmem:[%s4287_s15 + $0x60] sm:$0xf] %v2759_v60  ;;  %2762 = vst [vmem:[%s4287_s15 + $0x64] sm:$0xf] %v2761_v45  ;;  %v2765_v19 = vld [vmem:[%s4291_s20 + $0x6c] sm:$0xf] }
 0x249   : >> { %2764 = vst [vmem:[%s4287_s15 + $0x68] sm:$0xf] %v2763_v23  ;;  %v2767_v40 = vld [vmem:[%s4291_s20 + $0x70] sm:$0xf]  ;;  %v2769_v14 = vld [vmem:[%s4291_s20 + $0x74] sm:$0xf] }
 0x24a   : >> { %2766 = vst [vmem:[%s4287_s15 + $0x6c] sm:$0xf] %v2765_v19  ;;  %2768 = vst [vmem:[%s4287_s15 + $0x70] sm:$0xf] %v2767_v40  ;;  %v2771_v21 = vld [vmem:[%s4291_s20 + $0x78] sm:$0xf] }
 0x24b   : >> { %2770 = vst [vmem:[%s4287_s15 + $0x74] sm:$0xf] %v2769_v14  ;;  %v2773_v41 = vld [vmem:[%s4291_s20 + $0x7c] sm:$0xf]  ;;  %2772 = vst [vmem:[%s4287_s15 + $0x78] sm:$0xf] %v2771_v21 }
 0x24c   : >> { %2774 = vst [vmem:[%s4287_s15 + $0x7c] sm:$0xf] %v2773_v41  ;;  %s5337_s29 = smov (%p2776_p11, %s2775_s29), 0  ;;  %s2705_s28 = sadd.s32 1, %s4299_s28  }
 0x24d   : >> { %s3279_s30 = sshll.u32 %s5337_s29, 7  ;;  %p2704_p12 = scmp.ge.s32.totalorder %s2705_s28, %s5201_s27 }
 0x24e   : >> { %s2780_s20 = scalar_lea.vmem %s5082_s12, %s3279_s30 [#allocation2]   ;;  %s2781_s15 = scalar_lea.vmem %s5195_s25, %s3279_s30  }
 0x24f   : >> { %s5330_s23 = smov %s5337_s29  ;;  %2707 = sbr.rel (!%p2704_p12) target bundleno = 567 (0x237), region = 118 }
 0x256 PF: > { %s5305_s4 = sand.u32 31, %s5335_s17   ;;  %s3322_s5 = sshll.u32 %s5201_s27, 7 }
 0x257   : > { %s2786_s6 = scalar_lea.vmem %s5082_s12, %s3322_s5 [#allocation2]   ;;  %s2788_s7 = scalar_lea.vmem %s5195_s25, %s3322_s5  }
 0x258   : > { %p3284_p13 = scmp.le.s32.totalorder %s5305_s4, 0 }
 0x259   : > { %s4301_s8 = smov (!%p3284_p13), %s2788_s7   ;;  %s4305_s9 = smov (!%p3284_p13), %s2786_s6  }
 0x25a   : > { %2986 = sbr.rel (%p3284_p13) target bundleno = 619 (0x26b), region = 123  ;;  %s4309_s10 = smov (!%p3284_p13), 0  }
 0x25b   : > { %s4313_s11 = smov (!%p3284_p13), 0  }
 0x261 LB: >> { %v2798_v53 = vld [vmem:[%s4307_s9] sm:$0xf]  ;;  %s2800_s24 = sadd.s32 1, %s4311_s10  ;;  %s2792_s11 = sadd.s32 1, %s4315_s11   ;;  %s4315_s11 = sphi %s4313_s11, %s2792_s11   ;;  %s4311_s10 = sphi %s4309_s10, %s4310_s10   ;;  %s4307_s9 = sphi %s4305_s9, %s2805_s9   ;;  %s4303_s8 = sphi %s4301_s8, %s2806_s8  }
 0x262   : >> { %2799 = vst [vmem:[%s4303_s8] sm:$0xf] %v2798_v53  ;;  %p2801_p0 = scmp.ge.s32.totalorder %s2800_s24, %s5305_s4  ;;  %p2791_p1 = scmp.ge.s32.totalorder %s2792_s11, %s5305_s4 }
 0x264   : >> { %s5339_s24 = smov (%p2801_p0, %s2800_s24), 0  ;;  %2794 = sbr.rel (!%p2791_p1) target bundleno = 609 (0x261), region = 129 }
 0x265   : >> { %s3285_s14 = sshll.u32 %s5339_s24, 2  ;;  %s4310_s10 = smov %s5339_s24  }
 0x266   : >> { %s2805_s9 = scalar_lea.vmem %s2786_s6, %s3285_s14 [#allocation2]   ;;  %s2806_s8 = scalar_lea.vmem %s2788_s7, %s3285_s14  }
 0x26b PF: > { %p10_p2 = scmp.ge.s32.totalorder %s4352_s16, 7   ;;  %s5331_s12 = smov %s4279_s13 }
 0x26c   : > { %s5332_s13 = smov %s4360_s19  ;;  %s5333_s14 = smov %s4352_s16 }
 0x26d   :  { %12 = sbr.rel (!%p10_p2) target bundleno = 2 (0x2), region = 140 }

// kernel: global_discriminator.4
= control target key start
LH: loop header
LB: loop body
LE: loop exit
PB: predicated region body
PF: predicated region fallthrough
CT: control target
= control target key end

     0   :  { %s2892_s12 = smov 0   ;;  %s2894_s13 = smov 0   ;;  %s3485_s0 = inlined_call_operand.vmem [shape: bf16[968,576], index: 0, kind: input, shape index: {}]   ;;  %s3486_s1 = inlined_call_operand.vmem [shape: bf16[576,32], index: 1, kind: input, shape index: {}]   ;;  %s3487_s2 = inlined_call_operand.vmem [shape: f32[1,32], index: 2, kind: input, shape index: {}]   ;;  %s3488_s3 = inlined_call_operand.vmem [shape: bf16[968,32], index: 3, kind: output, shape index: {}]  }
   0x1   :  { %s2896_s14 = smov 0  }
   0x2 LB: > { %s2905_s15 = sadd.s32 4294967295, %s2838_s14   ;;  %s2907_s16 = sadd.s32 1, %s2838_s14   ;;  %s2838_s14 = sphi %s2896_s14, %s3495_s14   ;;  %s2834_s13 = sphi %s2894_s13, %s3494_s13   ;;  %s2830_s12 = sphi %s2892_s12, %s3493_s12  }
   0x3   : > { %s85_s17 = ssub.s32 %s2838_s14, %s2907_s16  ;;  %s88_s18 = sadd.s32 1, %s2834_s13 }
   0x4   : > { %p86_p0 = scmp.eq.s32.totalorder %s85_s17, 0  ;;  %p98_p1 = scmp.ne.s32.totalorder %s2834_s13, %s2830_s12 }
   0x5   : > { %p99_p2 = scmp.eq.s32.totalorder %s2905_s15, 3  ;;  %p2026_p3 = scmp.ge.s32.totalorder %s2838_s14, 1 }
   0x6   : > { %s2915_s19 = scalar_select %p86_p0, %s2834_s13, %s88_s18  }
   0x7   : > { %p2917_p4 = por %p99_p2, %p98_p1  ;;  %p149_p5 = scmp.lt.s32.totalorder %s2838_s14, 5 }
   0x9   : > { %p150_p6 = pnand %p2026_p3, %p149_p5 }
   0xa   : > { %v2636_v0 = vld [vmem:[%s3486_s1 + $0x40] sm:$0xff] (!%p150_p6)   ;;  %s2925_s23 = sshll.u32 (!%p150_p6), %s2905_s15, 5  ;;  %v2638_v2 = vld [vmem:[%s3486_s1 + $0x48] sm:$0xff] (!%p150_p6)   ;;  %v2640_v4 = vld [vmem:[%s3486_s1 + $0x50] sm:$0xff] (!%p150_p6)   ;;  %vm992_vm0 = vcmask (!%p150_p6), 523264   ;;  %s175_s21 = sand.u32 (!%p150_p6), 1, %s2830_s12  }
   0xb   : > { %153 = sbr.rel (%p150_p6) target bundleno = 489 (0x1e9), region = 32  ;;  %v2637_v1 = vld [vmem:[%s3486_s1] sm:$0xff] (!%p150_p6)   ;;  %2247 = vmatprep.subr.bf16.mxu0 (!%p150_p6), %v2636_v0  ;;  %2531 = vmatprep.subr.bf16.mxu1 (!%p150_p6), %v2636_v0  ;;  %p184_p7 = scmp.lt.s32.totalorder (!%p150_p6), %s2925_s23, 120  ;;  %v2639_v3 = vld [vmem:[%s3486_s1 + $0x8] sm:$0xff] (!%p150_p6)   ;;  %v2641_v5 = vld [vmem:[%s3486_s1 + $0x10] sm:$0xff] (!%p150_p6)   ;;  %vm1652_vm1 = vcmask (!%p150_p6), 257024  }
   0xc   : > { %2248 = vmatpush3.bf16.msra.mxu0 (!%p150_p6), %v2637_v1  ;;  %2539 = vmatpush3.bf16.msra.mxu1 (!%p150_p6), %v2637_v1  ;;  %v2642_v6 = vld [vmem:[%s3486_s1 + $0x58] sm:$0xff] (!%p150_p6)   ;;  %v2644_v8 = vld [vmem:[%s3486_s1 + $0x60] sm:$0xff] (!%p150_p6)   ;;  %v2646_v10 = vld [vmem:[%s3486_s1 + $0x68] sm:$0xff] (!%p150_p6)   ;;  %s2027_s22 = sshll.u32 (!%p150_p6), %s175_s21, 7 }
   0xd   : > { %2249 = vmatprep.subr.bf16.mxu0 (!%p150_p6), %v2638_v2  ;;  %2532 = vmatprep.subr.bf16.mxu1 (!%p150_p6), %v2638_v2  ;;  %v2643_v7 = vld [vmem:[%s3486_s1 + $0x18] sm:$0xff] (!%p150_p6)   ;;  %v2645_v9 = vld [vmem:[%s3486_s1 + $0x20] sm:$0xff] (!%p150_p6)   ;;  %v2647_v13 = vld [vmem:[%s3486_s1 + $0x28] sm:$0xff] (!%p150_p6)   ;;  %s3231_s12 = scalar_lea.vmem (!%p150_p6), [#allocation2], %s2027_s22  }
   0xe   : > { %v2648_v14 = vld [vmem:[%s3486_s1 + $0x70] sm:$0xff] (!%p150_p6)   ;;  %v2650_v16 = vld [vmem:[%s3486_s1 + $0x78] sm:$0xff] (!%p150_p6)   ;;  %v2658_v18 = vld [vmem:[%s3486_s1 + $0xc0] sm:$0xff] (!%p150_p6)  }
   0xf   : > { %v2649_v15 = vld [vmem:[%s3486_s1 + $0x30] sm:$0xff] (!%p150_p6)   ;;  %v2651_v17 = vld [vmem:[%s3486_s1 + $0x38] sm:$0xff] (!%p150_p6)   ;;  %v2661_v19 = vld [vmem:[%s3486_s1 + $0x100] sm:$0xff] (!%p150_p6)  }
  0x10   : > { %2250 = vmatpush3.bf16.msra.mxu0 (!%p150_p6), %v2639_v3  ;;  %2540 = vmatpush3.bf16.msra.mxu1 (!%p150_p6), %v2639_v3  ;;  %v2659_v22 = vld [vmem:[%s3486_s1 + $0x80] sm:$0xff] (!%p150_p6)   ;;  %v2660_v23 = vld [vmem:[%s3486_s1 + $0xc8] sm:$0xff] (!%p150_p6)   ;;  %v2669_v28 = vld [vmem:[%s3486_s1 + $0xd0] sm:$0xff] (!%p150_p6)  }
  0x11   : > { %2251 = vmatprep.subr.bf16.mxu0 (!%p150_p6), %v2640_v4  ;;  %2533 = vmatprep.subr.bf16.mxu1 (!%p150_p6), %v2640_v4  ;;  %v2662_v26 = vld [vmem:[%s3486_s1 + $0x88] sm:$0xff] (!%p150_p6)   ;;  %v2670_v30 = vld [vmem:[%s3486_s1 + $0x90] sm:$0xff] (!%p150_p6)   ;;  %v2671_v31 = vld [vmem:[%s3486_s1 + $0xd8] sm:$0xff] (!%p150_p6)  }
  0x12   : > { %s185_s5 = scalar_select %p184_p7, %s2925_s23, 120  ;;  %v2672_v34 = vld [vmem:[%s3486_s1 + $0x98] sm:$0xff]   ;;  %v2692_v35 = vld [vmem:[%s3486_s1 + $0x108] sm:$0xff]   ;;  %v2679_v37 = vld [vmem:[%s3486_s1 + $0xe0] sm:$0xff]  }
  0x13   : > { %v2680_v39 = vld [vmem:[%s3486_s1 + $0xa0] sm:$0xff]   ;;  %v2681_v40 = vld [vmem:[%s3486_s1 + $0xe8] sm:$0xff]   ;;  %v2689_v46 = vld [vmem:[%s3486_s1 + $0xf0] sm:$0xff]   ;;  %s1693_s25 = ssub.s32 (%p2917_p4), 121, %s2925_s23  ;;  %s2244_s26 = sshll.u32 (%p2917_p4), %s2905_s15, 7 }
  0x14   : > { %s2547_s10 = smul.u32 20, %s185_s5  ;;  %2252 = vmatpush3.bf16.msra.mxu0 %v2641_v5  ;;  %2541 = vmatpush3.bf16.msra.mxu1 %v2641_v5  ;;  %v2682_v43 = vld [vmem:[%s3486_s1 + $0xa8] sm:$0xff]   ;;  %v2712_v47 = vld [vmem:[%s3486_s1 + $0x110] sm:$0xff]   ;;  %v2691_v49 = vld [vmem:[%s3486_s1 + $0xf8] sm:$0xff]   ;;  %p1694_p8 = scmp.lt.s32.totalorder (%p2917_p4), %s1693_s25, 32 }
  0x15   : > { %2253 = vmatprep.subr.bf16.mxu0 %v2642_v6  ;;  %2534 = vmatprep.subr.bf16.mxu1 %v2642_v6  ;;  %v2690_v48 = vld [vmem:[%s3486_s1 + $0xb0] sm:$0xff]   ;;  %v2693_v52 = vld [vmem:[%s3486_s1 + $0xb8] sm:$0xff]   ;;  %s3357_s29 = scalar_lea.vmem (%p2917_p4), %s3488_s3, %s2244_s26  }
  0x16   : > { %s2956_s24 = scalar_lea.vmem %s3485_s0, %s2547_s10  ;;  %v2731_v56 = vld [vmem:[%s3486_s1 + $0x118] sm:$0xff]  }
  0x17   : > { %v2654_v11 = vld [vmem:[%s2956_s24 + $0x4] ss:$20 sps:$4 sm:$0xff]   ;;  %v2652_v20 = vld [vmem:[%s2956_s24] ss:$20 sps:$4 sm:$0xff]   ;;  %v2667_v27 = vld [vmem:[%s2956_s24 + $0x28] ss:$20 sps:$4 sm:$0xff]  }
  0x18   : > { %2254 = vmatpush3.bf16.msra.mxu0 %v2643_v7  ;;  %2542 = vmatpush3.bf16.msra.mxu1 %v2643_v7  ;;  %v2657_v12 = vld [vmem:[%s2956_s24 + $0x1e4] ss:$20 sps:$4 sm:$0xff]   ;;  %v2655_v21 = vld [vmem:[%s2956_s24 + $0x1e0] ss:$20 sps:$4 sm:$0xff]   ;;  %v2668_v29 = vld [vmem:[%s2956_s24 + $0x208] ss:$20 sps:$4 sm:$0xff]  }
  0x19   : > { %2255 = vmatprep.subr.bf16.mxu0 %v2644_v8  ;;  %2535 = vmatprep.subr.bf16.mxu1 %v2644_v8  ;;  %v2663_v24 = vld [vmem:[%s2956_s24 + $0x2c] ss:$20 sps:$4 sm:$0xff]   ;;  %v2673_v32 = vld [vmem:[%s2956_s24 + $0x54] ss:$20 sps:$4 sm:$0xff]   ;;  %v2677_v36 = vld [vmem:[%s2956_s24 + $0x50] ss:$20 sps:$4 sm:$0xff]  }
  0x1a   : > { %1073 = vmatprep.mubr.bf16.mxu0 %v2654_v11  ;;  %1169 = vmatprep.mubr.bf16.mxu1 %v2657_v12  ;;  %v2665_v25 = vld [vmem:[%s2956_s24 + $0x20c] ss:$20 sps:$4 sm:$0xff]   ;;  %v2675_v33 = vld [vmem:[%s2956_s24 + $0x234] ss:$20 sps:$4 sm:$0xff]   ;;  %v2678_v38 = vld [vmem:[%s2956_s24 + $0x230] ss:$20 sps:$4 sm:$0xff]  }
  0x1b   : > { %v2683_v41 = vld [vmem:[%s2956_s24 + $0x7c] ss:$20 sps:$4 sm:$0xff]   ;;  %v2687_v44 = vld [vmem:[%s2956_s24 + $0x78] ss:$20 sps:$4 sm:$0xff]   ;;  %v2699_v54 = vld [vmem:[%s2956_s24 + $0xa0] ss:$20 sps:$4 sm:$0xff]  }
  0x1c   : > { %2256 = vmatpush3.bf16.msra.mxu0 %v2645_v9  ;;  %2543 = vmatpush3.bf16.msra.mxu1 %v2645_v9  ;;  %v2685_v42 = vld [vmem:[%s2956_s24 + $0x25c] ss:$20 sps:$4 sm:$0xff]   ;;  %v2688_v45 = vld [vmem:[%s2956_s24 + $0x258] ss:$20 sps:$4 sm:$0xff]   ;;  %v2702_v57 = vld [vmem:[%s2956_s24 + $0x34] ss:$20 sps:$4 sm:$0xff]  }
  0x1d   : > { %2257 = vmatprep.subr.bf16.mxu0 %v2646_v10  ;;  %2536 = vmatprep.subr.bf16.mxu1 %v2646_v10  ;;  %v2694_v50 = vld [vmem:[%s2956_s24 + $0xa4] ss:$20 sps:$4 sm:$0xff]   ;;  %v2698_v51 = vld [vmem:[%s2956_s24 + $0xc] ss:$20 sps:$4 sm:$0xff]   ;;  %v2696_v53 = vld [vmem:[%s2956_s24 + $0x8] ss:$20 sps:$4 sm:$0xff]  }
  0x1e   : > { %v2700_v55 = vld [vmem:[%s2956_s24 + $0xcc] ss:$20 sps:$4 sm:$0xff]   ;;  %v2704_v58 = vld [vmem:[%s2956_s24 + $0xc8] ss:$20 sps:$4 sm:$0xff]   ;;  %v2705_v59 = vld [vmem:[%s2956_s24 + $0x30] ss:$20 sps:$4 sm:$0xff]  }
  0x1f   : > { %v2706_v60 = vld [vmem:[%s2956_s24 + $0xf4] ss:$20 sps:$4 sm:$0xff]   ;;  %v2708_v61 = vld [vmem:[%s2956_s24 + $0x5c] ss:$20 sps:$4 sm:$0xff]   ;;  %v2711_v63 = vld [vmem:[%s2956_s24 + $0x58] ss:$20 sps:$4 sm:$0xff]  }
  0x20   : > { %2258 = vmatpush3.bf16.msra.mxu0 %v2647_v13  ;;  %2544 = vmatpush3.bf16.msra.mxu1 %v2647_v13  ;;  %v2710_v62 = vld [vmem:[%s2956_s24 + $0xf0] ss:$20 sps:$4 sm:$0xff]   ;;  %v2717_v2 = vld [vmem:[%s2956_s24 + $0x118] ss:$20 sps:$4 sm:$0xff]   ;;  %v2718_v3 = vld [vmem:[%s2956_s24 + $0x80] ss:$20 sps:$4 sm:$0xff]  }
  0x21   : > { %2259 = vmatprep.subr.bf16.mxu0 %v2648_v14  ;;  %2537 = vmatprep.subr.bf16.mxu1 %v2648_v14  ;;  %v2713_v0 = vld [vmem:[%s2956_s24 + $0x11c] ss:$20 sps:$4 sm:$0xff]   ;;  %v2715_v1 = vld [vmem:[%s2956_s24 + $0x84] ss:$20 sps:$4 sm:$0xff]   ;;  %v2721_v5 = vld [vmem:[%s2956_s24 + $0xac] ss:$20 sps:$4 sm:$0xff]  }
  0x22   : > { %v2719_v4 = vld [vmem:[%s2956_s24 + $0x144] ss:$20 sps:$4 sm:$0xff]   ;;  %v2723_v6 = vld [vmem:[%s2956_s24 + $0x140] ss:$20 sps:$4 sm:$0xff]   ;;  %v2724_v7 = vld [vmem:[%s2956_s24 + $0xa8] ss:$20 sps:$4 sm:$0xff]  }
  0x23   : > { %v2725_v8 = vld [vmem:[%s2956_s24 + $0x16c] ss:$20 sps:$4 sm:$0xff]   ;;  %v2727_v9 = vld [vmem:[%s2956_s24 + $0xd4] ss:$20 sps:$4 sm:$0xff]   ;;  %v2730_v11 = vld [vmem:[%s2956_s24 + $0xd0] ss:$20 sps:$4 sm:$0xff]  }
  0x24   : > { %2260 = vmatpush3.bf16.msra.mxu0 %v2649_v15  ;;  %2545 = vmatpush3.bf16.msra.mxu1 %v2649_v15  ;;  %v2729_v10 = vld [vmem:[%s2956_s24 + $0x168] ss:$20 sps:$4 sm:$0xff]   ;;  %v2736_v14 = vld [vmem:[%s2956_s24 + $0x190] ss:$20 sps:$4 sm:$0xff]   ;;  %v2737_v15 = vld [vmem:[%s2956_s24 + $0xf8] ss:$20 sps:$4 sm:$0xff]  }
  0x25   : > { %2261 = vmatprep.subr.bf16.mxu0 %v2650_v16  ;;  %2538 = vmatprep.subr.bf16.mxu1 %v2650_v16  ;;  %v2732_v12 = vld [vmem:[%s2956_s24 + $0x194] ss:$20 sps:$4 sm:$0xff]   ;;  %v2734_v13 = vld [vmem:[%s2956_s24 + $0xfc] ss:$20 sps:$4 sm:$0xff]  }
  0x26   : > { %v2738_v16 = vld [vmem:[%s2956_s24 + $0x1bc] ss:$20 sps:$4 sm:$0xff]  }
  0x28   : > { %2262 = vmatpush3.bf16.msra.mxu0 %v2651_v17  ;;  %2546 = vmatpush3.bf16.msra.mxu1 %v2651_v17  ;;  %v2740_v17 = vld [vmem:[%s2956_s24 + $0x124] ss:$20 sps:$4 sm:$0xff]  }
  0x29   : > { %2359 = vmatprep.subr.bf16.mxu1 %v2658_v18  ;;  %2491 = vmatprep.subr.bf16.mxu0 %v2661_v19  ;;  %v2742_v18 = vld [vmem:[%s2956_s24 + $0x1b8] ss:$20 sps:$4 sm:$0xff]  }
  0x2b   : > { %1074 = vmatmul.mubr.bf16.vlgmr.msra.gmra.mrb[0].mxu0 %v2652_v20  ;;  %1170 = vmatmul.mubr.bf16.vlgmr.msra.gmra.mrb[0].mxu1 %v2655_v21  ;;  %v2744_v20 = vld [vmem:[%s2956_s24 + $0x14c] ss:$20 sps:$4 sm:$0xff]   ;;  %v2746_v21 = vld [vmem:[%s2956_s24 + $0x10] ss:$20 sps:$4 sm:$0xff]  }
  0x2c   : > { %2360 = vmatpush3.bf16.msra.mxu1 %v2659_v22  ;;  %2492 = vmatpush3.bf16.msra.mxu0 %v2661_v19  ;;  %v2743_v19 = vld [vmem:[%s2956_s24 + $0x120] ss:$20 sps:$4 sm:$0xff]   ;;  %v2747_v22 = vld [vmem:[%s2956_s24 + $0x148] ss:$20 sps:$4 sm:$0xff]  }
  0x2d   : > { %2361 = vmatprep.subr.bf16.mxu1 %v2660_v23  ;;  %1081 = vmatprep.mubr.bf16.mxu0 %v2663_v24  ;;  %v2748_v23 = vld [vmem:[%s2956_s24 + $0x38] ss:$20 sps:$4 sm:$0xff]   ;;  %v2749_v24 = vld [vmem:[%s2956_s24 + $0x174] ss:$20 sps:$4 sm:$0xff]  }
  0x2e   : > { %1177 = vmatprep.mubr.bf16.mxu1 %v2665_v25  ;;  %2493 = vmatprep.subr.bf16.mxu0 %v2692_v35  ;;  %v2751_v25 = vld [vmem:[%s2956_s24 + $0x60] ss:$20 sps:$4 sm:$0xff]  }
  0x30   : > { %2362 = vmatpush3.bf16.msra.mxu1 %v2662_v26  ;;  %2494 = vmatpush3.bf16.msra.mxu0 %v2692_v35  ;;  %v2752_v26 = vld [vmem:[%s2956_s24 + $0x170] ss:$20 sps:$4 sm:$0xff]   ;;  %v2763_v35 = vld [vmem:[%s2956_s24 + $0x128] ss:$20 sps:$4 sm:$0xff]  }
  0x31   : > { %2363 = vmatprep.subr.bf16.mxu1 %v2669_v28  ;;  %2495 = vmatprep.subr.bf16.mxu0 %v2712_v47  ;;  %v2754_v28 = vld [vmem:[%s2956_s24 + $0x19c] ss:$20 sps:$4 sm:$0xff]  }
  0x33   : > { %1082 = vmatmul.mubr.bf16.gmra.mrb[4].mxu0 %v2667_v27  ;;  %1178 = vmatmul.mubr.bf16.gmra.mrb[4].mxu1 %v2668_v29  ;;  %v2753_v27 = vld [vmem:[%s2956_s24 + $0x88] ss:$20 sps:$4 sm:$0xff]   ;;  %v2756_v29 = vld [vmem:[%s2956_s24 + $0xb0] ss:$20 sps:$4 sm:$0xff]  }
  0x34   : > { %2364 = vmatpush3.bf16.msra.mxu1 %v2670_v30  ;;  %1089 = vmatprep.mubr.bf16.mxu0 %v2673_v32  ;;  %v2757_v30 = vld [vmem:[%s2956_s24 + $0x198] ss:$20 sps:$4 sm:$0xff]  }
  0x35   : > { %2365 = vmatprep.subr.bf16.mxu1 %v2671_v31  ;;  %1185 = vmatprep.mubr.bf16.mxu1 %v2675_v33  ;;  %v2758_v31 = vld [vmem:[%s2956_s24 + $0xd8] ss:$20 sps:$4 sm:$0xff]   ;;  %v2761_v33 = vld [vmem:[%s2956_s24 + $0x100] ss:$20 sps:$4 sm:$0xff]  }
  0x36   : > { %2496 = vmatpush3.bf16.msra.mxu0 %v2712_v47  ;;  %v2759_v32 = vld [vmem:[%s2956_s24 + $0x1c4] ss:$20 sps:$4 sm:$0xff]  }
  0x37   : > { %2497 = vmatprep.subr.bf16.mxu0 %v2731_v56  ;;  %v2778_v47 = vld [vmem:[%s2956_s24 + $0x218] ss:$20 sps:$4 sm:$0xff]  }
  0x38   : > { %2366 = vmatpush3.bf16.msra.mxu1 %v2672_v34  ;;  %v2762_v34 = vld [vmem:[%s2956_s24 + $0x1c0] ss:$20 sps:$4 sm:$0xff]  }
  0x39   : > { %2367 = vmatprep.subr.bf16.mxu1 %v2679_v37  ;;  %v2766_v37 = vld [vmem:[%s2956_s24 + $0x150] ss:$20 sps:$4 sm:$0xff]  }
  0x3a   : > { %2498 = vmatpush3.bf16.msra.mxu0 %v2731_v56 }
  0x3b   : > { %1090 = vmatmul.mubr.bf16.gmra.mrb[8].mxu0 %v2677_v36  ;;  %1186 = vmatmul.mubr.bf16.gmra.mrb[8].mxu1 %v2678_v38  ;;  %v2764_v36 = vld [vmem:[%s2956_s24 + $0x1ec] ss:$20 sps:$4 sm:$0xff]   ;;  %v2767_v38 = vld [vmem:[%s2956_s24 + $0x1e8] ss:$20 sps:$4 sm:$0xff]  }
  0x3c   : > { %2368 = vmatpush3.bf16.msra.mxu1 %v2680_v39  ;;  %1097 = vmatprep.mubr.bf16.mxu0 %v2683_v41  ;;  %v2768_v39 = vld [vmem:[%s2956_s24 + $0x178] ss:$20 sps:$4 sm:$0xff]   ;;  %v2771_v41 = vld [vmem:[%s2956_s24 + $0x1a0] ss:$20 sps:$4 sm:$0xff]  }
  0x3d   : > { %2369 = vmatprep.subr.bf16.mxu1 %v2681_v40  ;;  %1193 = vmatprep.mubr.bf16.mxu1 %v2685_v42  ;;  %v2769_v40 = vld [vmem:[%s2956_s24 + $0x214] ss:$20 sps:$4 sm:$0xff]   ;;  %v2772_v42 = vld [vmem:[%s2956_s24 + $0x210] ss:$20 sps:$4 sm:$0xff]  }
  0x40   : > { %2370 = vmatpush3.bf16.msra.mxu1 %v2682_v43  ;;  %v2773_v43 = vld [vmem:[%s2956_s24 + $0x1c8] ss:$20 sps:$4 sm:$0xff]  }
  0x41   : > { %2371 = vmatprep.subr.bf16.mxu1 %v2689_v46  ;;  %v2777_v46 = vld [vmem:[%s2956_s24 + $0x238] ss:$20 sps:$4 sm:$0xff]  }
  0x43   : > { %1098 = vmatmul.mubr.bf16.gmra.mrb[12].mxu0 %v2687_v44  ;;  %1194 = vmatmul.mubr.bf16.gmra.mrb[12].mxu1 %v2688_v45  ;;  %v2774_v44 = vld [vmem:[%s2956_s24 + $0x23c] ss:$20 sps:$4 sm:$0xff]  }
  0x44   : > { %2372 = vmatpush3.bf16.msra.mxu1 %v2690_v48  ;;  %1105 = vmatprep.mubr.bf16.mxu0 %v2694_v50  ;;  %v2776_v45 = vld [vmem:[%s2956_s24 + $0x1f0] ss:$20 sps:$4 sm:$0xff]   ;;  %v2782_v50 = vld [vmem:[%s2956_s24 + $0x260] ss:$20 sps:$4 sm:$0xff]  }
  0x45   : > { %2373 = vmatprep.subr.bf16.mxu1 %v2691_v49  ;;  %1234 = vmatprep.mubr.bf16.mxu1 %v2698_v51  ;;  %v2779_v48 = vld [vmem:[%s2956_s24 + $0x264] ss:$20 sps:$4 sm:$0xff]   ;;  %v2781_v49 = vld [vmem:[%s2956_s24 + $0x240] ss:$20 sps:$4 sm:$0xff]   ;;  %v2783_v51 = vld [vmem:[%s2956_s24 + $0x268] ss:$20 sps:$4 sm:$0xff]  }
  0x48   : > { %2374 = vmatpush3.bf16.msra.mxu1 %v2693_v52 }
  0x4b   : > { %1106 = vmatmul.mubr.bf16.gmra.mrb[16].mxu0 %v2699_v54  ;;  %1235 = vmatmul.mubr.bf16.vlgmr.msra.gmra.mrb[16].mxu1 %v2696_v53 }
  0x4c   : > { %1113 = vmatprep.mubr.bf16.mxu0 %v2700_v55  ;;  %1242 = vmatprep.mubr.bf16.mxu1 %v2702_v57 }
  0x53   : > { %1114 = vmatmul.mubr.bf16.gmra.mrb[20].mxu0 %v2704_v58  ;;  %1243 = vmatmul.mubr.bf16.gmra.mrb[20].mxu1 %v2705_v59 }
  0x54   : > { %1121 = vmatprep.mubr.bf16.mxu0 %v2706_v60  ;;  %1250 = vmatprep.mubr.bf16.mxu1 %v2708_v61 }
  0x5b   : > { %1122 = vmatmul.mubr.bf16.gmra.mrb[24].mxu0 %v2710_v62  ;;  %1251 = vmatmul.mubr.bf16.gmra.mrb[24].mxu1 %v2711_v63 }
  0x5c   : > { %1129 = vmatprep.mubr.bf16.mxu0 %v2713_v0  ;;  %1258 = vmatprep.mubr.bf16.mxu1 %v2715_v1 }
  0x63   : > { %1130 = vmatmul.mubr.bf16.gmra.mrb[28].mxu0 %v2717_v2  ;;  %1259 = vmatmul.mubr.bf16.gmra.mrb[28].mxu1 %v2718_v3 }
  0x64   : > { %1137 = vmatprep.mubr.bf16.mxu0 %v2719_v4  ;;  %1266 = vmatprep.mubr.bf16.mxu1 %v2721_v5 }
  0x6b   : > { %1138 = vmatmul.mubr.bf16.gmra.mrb[32].mxu0 %v2723_v6  ;;  %1267 = vmatmul.mubr.bf16.gmra.mrb[32].mxu1 %v2724_v7 }
  0x6c   : > { %1145 = vmatprep.mubr.bf16.mxu0 %v2725_v8  ;;  %1274 = vmatprep.mubr.bf16.mxu1 %v2727_v9 }
  0x73   : > { %1146 = vmatmul.mubr.bf16.gmra.mrb[36].mxu0 %v2729_v10  ;;  %1275 = vmatmul.mubr.bf16.gmra.mrb[36].mxu1 %v2730_v11 }
  0x74   : > { %1153 = vmatprep.mubr.bf16.mxu0 %v2732_v12  ;;  %1282 = vmatprep.mubr.bf16.mxu1 %v2734_v13 }
  0x7b   : > { %1154 = vmatmul.mubr.bf16.gmra.mrb[40].mxu0 %v2736_v14  ;;  %1283 = vmatmul.mubr.bf16.gmra.mrb[40].mxu1 %v2737_v15 }
  0x7c   : > { %1161 = vmatprep.mubr.bf16.mxu0 %v2738_v16  ;;  %1290 = vmatprep.mubr.bf16.mxu1 %v2740_v17 }
  0x83   : > { %1162 = vmatmul.mubr.bf16.gmra.mrb[44].mxu0 %v2742_v18  ;;  %1291 = vmatmul.mubr.bf16.gmra.mrb[44].mxu1 %v2743_v19 }
  0x84   : > { %1298 = vmatprep.mubr.bf16.mxu1 %v2744_v20  ;;  %2499 = vmatprep.mubr.msk.bf16.mxu0 %vm992_vm0, %v2746_v21 }
  0x8b   : > { %1299 = vmatmul.mubr.bf16.gmra.mrb[48].mxu1 %v2747_v22  ;;  %2500 = vmatmul.mubr.msk.bf16.vlgmr.msra.gmra.mrb[48].mxu0 %vm992_vm0, %v2748_v23 }
  0x8c   : > { %1306 = vmatprep.mubr.bf16.mxu1 %v2749_v24  ;;  %2503 = vmatprep.mubr.msk.bf16.mxu0 %vm992_vm0, %v2751_v25 }
  0x93   : > { %1307 = vmatmul.mubr.bf16.gmra.mrb[52].mxu1 %v2752_v26  ;;  %2504 = vmatmul.mubr.msk.bf16.gmra.mrb[52].mxu0 %vm992_vm0, %v2753_v27 }
  0x94   : > { %1314 = vmatprep.mubr.bf16.mxu1 %v2754_v28  ;;  %2507 = vmatprep.mubr.msk.bf16.mxu0 %vm992_vm0, %v2756_v29 }
  0x9b   : > { %1315 = vmatmul.mubr.bf16.gmra.mrb[56].mxu1 %v2757_v30  ;;  %2508 = vmatmul.mubr.msk.bf16.gmra.mrb[56].mxu0 %vm992_vm0, %v2758_v31 }
  0x9c   : > { %1322 = vmatprep.mubr.bf16.mxu1 %v2759_v32  ;;  %2511 = vmatprep.mubr.msk.bf16.mxu0 %vm992_vm0, %v2761_v33 }
  0xa3   : > { %1323 = vmatmul.mubr.bf16.gmra.mrb[60].mxu1 %v2762_v34  ;;  %2512 = vmatmul.mubr.msk.bf16.gmra.mrb[60].mxu0 %vm992_vm0, %v2763_v35 }
  0xa4   : > { %1330 = vmatprep.mubr.bf16.mxu1 %v2764_v36  ;;  %2515 = vmatprep.mubr.msk.bf16.mxu0 %vm992_vm0, %v2766_v37 }
  0xab   : > { %1331 = vmatmul.mubr.bf16.gmra.mrb[64].mxu1 %v2767_v38  ;;  %2516 = vmatmul.mubr.msk.bf16.gmra.mrb[64].mxu0 %vm992_vm0, %v2768_v39  ;;  %v3154_v38 = vld [vmem:[%s3487_s2] ss:$0 sm:$0xff] }
  0xac   : > { %1338 = vmatprep.mubr.bf16.mxu1 %v2769_v40  ;;  %2519 = vmatprep.mubr.msk.bf16.mxu0 %vm992_vm0, %v2771_v41 }
  0xb3   : > { %1339 = vmatmul.mubr.bf16.gmra.mrb[68].mxu1 %v2772_v42  ;;  %2520 = vmatmul.mubr.msk.bf16.gmra.mrb[68].mxu0 %vm992_vm0, %v2773_v43 }
  0xb4   : > { %1346 = vmatprep.mubr.bf16.mxu1 %v2774_v44  ;;  %2523 = vmatprep.mubr.msk.bf16.mxu0 %vm992_vm0, %v2776_v45 }
  0xbb   : > { %1347 = vmatmul.mubr.bf16.gmra.mrb[72].mxu1 %v2777_v46  ;;  %2524 = vmatmul.mubr.msk.bf16.gmra.mrb[72].mxu0 %vm992_vm0, %v2778_v47 }
  0xbc   : > { %1354 = vmatprep.mubr.bf16.mxu1 %v2779_v48  ;;  %2527 = vmatprep.mubr.msk.bf16.mxu0 %vm992_vm0, %v2781_v49 }
  0xc3   : > { %1355 = vmatmul.mubr.bf16.gmra.mrb[76].mxu1 %v2782_v50  ;;  %2528 = vmatmul.mubr.msk.bf16.gmra.mrb[76].mxu0 %vm992_vm0, %v2783_v51 }
  0xfe   : > { %v2335_v52 = vpop.f32.mrb[0].mxu1  ;;  %v2263_v53 = vpop.f32.mrb[0].mxu0 }
  0xff   : > { %v2336_v54 = vpop.f32.mrb[1].mxu1  ;;  %v2264_v55 = vpop.f32.mrb[1].mxu0 }
 0x100   : > { %v3135_v56 = vadd.f32 %v2336_v54, %v2335_v52  ;;  %v2338_v57 = vpop.f32.mrb[2].mxu1  ;;  %v2265_v58 = vadd.f32 %v2264_v55, %v2263_v53  ;;  %v2266_v59 = vpop.f32.mrb[2].mxu0 }
 0x101   : > { %v2339_v60 = vpop.f32.mrb[3].mxu1  ;;  %v2267_v61 = vpop.f32.mrb[3].mxu0 }
 0x102   : > { %v3137_v62 = vadd.f32 %v2339_v60, %v2338_v57  ;;  %v2268_v63 = vadd.f32 %v2267_v61, %v2266_v59  ;;  %v1076_v41 = vadd.f32 %v2265_v58, %v3154_v38 }
 0x104   : > { %v1079_v48 = vadd.f32 %v2268_v63, %v3154_v38 }
 0x106   : > { %v2341_v0 = vpop.f32.mrb[4].mxu1  ;;  %v2269_v1 = vpop.f32.mrb[4].mxu0 }
 0x107   : > { %v2342_v2 = vpop.f32.mrb[5].mxu1  ;;  %v2270_v3 = vpop.f32.mrb[5].mxu0 }
 0x108   : > { %v3139_v4 = vadd.f32 %v2342_v2, %v2341_v0  ;;  %v2344_v5 = vpop.f32.mrb[6].mxu1  ;;  %v2271_v6 = vadd.f32 %v2270_v3, %v2269_v1  ;;  %v2272_v7 = vpop.f32.mrb[6].mxu0 }
 0x109   : > { %v2345_v8 = vpop.f32.mrb[7].mxu1  ;;  %v2273_v9 = vpop.f32.mrb[7].mxu0 }
 0x10a   : > { %v3141_v10 = vadd.f32 %v2345_v8, %v2344_v5  ;;  %v2274_v11 = vadd.f32 %v2273_v9, %v2272_v7  ;;  %v1084_v58 = vadd.f32 %v2271_v6, %v3154_v38 }
 0x10c   : > { %v1087_v63 = vadd.f32 %v2274_v11, %v3154_v38 }
 0x10e   : > { %v2347_v12 = vpop.f32.mrb[8].mxu1  ;;  %v2275_v13 = vpop.f32.mrb[8].mxu0 }
 0x10f   : > { %v2348_v14 = vpop.f32.mrb[9].mxu1  ;;  %v2276_v15 = vpop.f32.mrb[9].mxu0 }
 0x110   : > { %v3143_v16 = vadd.f32 %v2348_v14, %v2347_v12  ;;  %v2350_v17 = vpop.f32.mrb[10].mxu1  ;;  %v2277_v18 = vadd.f32 %v2276_v15, %v2275_v13  ;;  %v2278_v19 = vpop.f32.mrb[10].mxu0 }
 0x111   : > { %v2351_v20 = vpop.f32.mrb[11].mxu1  ;;  %v2279_v21 = vpop.f32.mrb[11].mxu0 }
 0x112   : > { %v3145_v22 = vadd.f32 %v2351_v20, %v2350_v17  ;;  %v2280_v23 = vadd.f32 %v2279_v21, %v2278_v19  ;;  %v1092_v6 = vadd.f32 %v2277_v18, %v3154_v38 }
 0x114   : > { %v1095_v11 = vadd.f32 %v2280_v23, %v3154_v38 }
 0x116   : > { %v2353_v24 = vpop.f32.mrb[12].mxu1  ;;  %v2281_v25 = vpop.f32.mrb[12].mxu0 }
 0x117   : > { %v2354_v26 = vpop.f32.mrb[13].mxu1  ;;  %v2282_v27 = vpop.f32.mrb[13].mxu0 }
 0x118   : > { %v3147_v28 = vadd.f32 %v2354_v26, %v2353_v24  ;;  %v2356_v29 = vpop.f32.mrb[14].mxu1  ;;  %v2283_v30 = vadd.f32 %v2282_v27, %v2281_v25  ;;  %v2284_v31 = vpop.f32.mrb[14].mxu0 }
 0x119   : > { %v2357_v32 = vpop.f32.mrb[15].mxu1  ;;  %v2285_v33 = vpop.f32.mrb[15].mxu0 }
 0x11a   : > { %v3149_v34 = vadd.f32 %v2357_v32, %v2356_v29  ;;  %v2286_v35 = vadd.f32 %v2285_v33, %v2284_v31  ;;  %v1100_v18 = vadd.f32 %v2283_v30, %v3154_v38 }
 0x11c   : > { %v1103_v23 = vadd.f32 %v2286_v35, %v3154_v38 }
 0x11e   : > { %v2375_v36 = vpop.f32.mrb[16].mxu1  ;;  %v2287_v37 = vpop.f32.mrb[16].mxu0 }
 0x11f   : > { %v2376_v39 = vpop.f32.mrb[17].mxu1  ;;  %v2288_v40 = vpop.f32.mrb[17].mxu0 }
 0x120   : > { %v2377_v42 = vadd.f32 %v2376_v39, %v2375_v36  ;;  %v2378_v43 = vpop.f32.mrb[18].mxu1  ;;  %v2289_v44 = vadd.f32 %v2288_v40, %v2287_v37  ;;  %v2290_v45 = vpop.f32.mrb[18].mxu0 }
 0x121   : > { %v2379_v46 = vpop.f32.mrb[19].mxu1  ;;  %v2291_v47 = vpop.f32.mrb[19].mxu0 }
 0x122   : > { %v2380_v49 = vadd.f32 %v2379_v46, %v2378_v43  ;;  %v2292_v50 = vadd.f32 %v2291_v47, %v2290_v45  ;;  %v3158_v51 = vadd.f32 %v2377_v42, %v1076_v41  ;;  %v1108_v30 = vadd.f32 %v2289_v44, %v3154_v38 }
 0x124   : > { %v3160_v52 = vadd.f32 %v2380_v49, %v1079_v48  ;;  %v1111_v35 = vadd.f32 %v2292_v50, %v3154_v38 }
 0x126   : > { %v2381_v53 = vpop.f32.mrb[20].mxu1  ;;  %v2293_v54 = vpop.f32.mrb[20].mxu0 }
 0x127   : > { %v2382_v55 = vpop.f32.mrb[21].mxu1  ;;  %v2294_v57 = vpop.f32.mrb[21].mxu0 }
 0x128   : > { %v2383_v59 = vadd.f32 %v2382_v55, %v2381_v53  ;;  %v2384_v60 = vpop.f32.mrb[22].mxu1  ;;  %v2295_v61 = vadd.f32 %v2294_v57, %v2293_v54  ;;  %v2296_v0 = vpop.f32.mrb[22].mxu0 }
 0x129   : > { %v2385_v1 = vpop.f32.mrb[23].mxu1  ;;  %v2297_v2 = vpop.f32.mrb[23].mxu0 }
 0x12a   : > { %v2386_v3 = vadd.f32 %v2385_v1, %v2384_v60  ;;  %v2298_v5 = vadd.f32 %v2297_v2, %v2296_v0  ;;  %v3164_v7 = vadd.f32 %v2383_v59, %v1084_v58 }
 0x12c   : > { %v3166_v8 = vadd.f32 %v2386_v3, %v1087_v63 }
 0x12e   : > { %v2387_v9 = vpop.f32.mrb[24].mxu1  ;;  %v2299_v12 = vpop.f32.mrb[24].mxu0 }
 0x12f   : > { %v2388_v13 = vpop.f32.mrb[25].mxu1  ;;  %v2300_v14 = vpop.f32.mrb[25].mxu0 }
 0x130   : > { %v2389_v15 = vadd.f32 %v2388_v13, %v2387_v9  ;;  %v2390_v17 = vpop.f32.mrb[26].mxu1  ;;  %v2301_v19 = vadd.f32 %v2300_v14, %v2299_v12  ;;  %v2302_v20 = vpop.f32.mrb[26].mxu0 }
 0x131   : > { %v2391_v21 = vpop.f32.mrb[27].mxu1  ;;  %v2303_v24 = vpop.f32.mrb[27].mxu0 }
 0x132   : > { %v2392_v25 = vadd.f32 %v2391_v21, %v2390_v17  ;;  %v2304_v26 = vadd.f32 %v2303_v24, %v2302_v20  ;;  %v3170_v27 = vadd.f32 %v2389_v15, %v1092_v6  ;;  %v1116_v6 = vadd.f32 %v2295_v61, %v3154_v38 }
 0x134   : > { %v3172_v29 = vadd.f32 %v2392_v25, %v1095_v11  ;;  %v1119_v11 = vadd.f32 %v2298_v5, %v3154_v38 }
 0x136   : > { %v2393_v31 = vpop.f32.mrb[28].mxu1  ;;  %v2305_v32 = vpop.f32.mrb[28].mxu0 }
 0x137   : > { %v2394_v33 = vpop.f32.mrb[29].mxu1  ;;  %v2306_v36 = vpop.f32.mrb[29].mxu0 }
 0x138   : > { %v2395_v37 = vadd.f32 %v2394_v33, %v2393_v31  ;;  %v2396_v39 = vpop.f32.mrb[30].mxu1  ;;  %v2307_v40 = vadd.f32 %v2306_v36, %v2305_v32  ;;  %v2308_v41 = vpop.f32.mrb[30].mxu0 }
 0x139   : > { %v2397_v42 = vpop.f32.mrb[31].mxu1  ;;  %v2309_v43 = vpop.f32.mrb[31].mxu0 }
 0x13a   : > { %v2398_v45 = vadd.f32 %v2397_v42, %v2396_v39  ;;  %v2310_v46 = vadd.f32 %v2309_v43, %v2308_v41  ;;  %v3176_v47 = vadd.f32 %v2395_v37, %v1100_v18  ;;  %v1124_v39 = vadd.f32 %v2301_v19, %v3154_v38 }
 0x13c   : > { %v3178_v48 = vadd.f32 %v2398_v45, %v1103_v23 }
 0x13e   : > { %v2399_v49 = vpop.f32.mrb[32].mxu1  ;;  %v2311_v53 = vpop.f32.mrb[32].mxu0 }
 0x13f   : > { %v2400_v54 = vpop.f32.mrb[33].mxu1  ;;  %v2312_v55 = vpop.f32.mrb[33].mxu0 }
 0x140   : > { %v2401_v57 = vadd.f32 %v2400_v54, %v2399_v49  ;;  %v2402_v58 = vpop.f32.mrb[34].mxu1  ;;  %v3181_v59 = vadd.f32 %v2312_v55, %v2311_v53  ;;  %v2314_v60 = vpop.f32.mrb[34].mxu0  ;;  %v1127_v49 = vadd.f32 %v2304_v26, %v3154_v38 }
 0x141   : > { %v2403_v0 = vpop.f32.mrb[35].mxu1  ;;  %v2315_v1 = vpop.f32.mrb[35].mxu0 }
 0x142   : > { %v2404_v2 = vadd.f32 %v2403_v0, %v2402_v58  ;;  %v3184_v63 = vadd.f32 %v2315_v1, %v2314_v60  ;;  %v3186_v3 = vadd.f32 %v2401_v57, %v1108_v30  ;;  %v1132_v0 = vadd.f32 %v2307_v40, %v3154_v38 }
 0x144   : > { %v3188_v9 = vadd.f32 %v2404_v2, %v1111_v35 }
 0x146   : > { %v2405_v12 = vpop.f32.mrb[36].mxu1  ;;  %v2317_v13 = vpop.f32.mrb[36].mxu0 }
 0x147   : > { %v2406_v14 = vpop.f32.mrb[37].mxu1  ;;  %v2318_v44 = vpop.f32.mrb[37].mxu0 }
 0x148   : > { %v2407_v15 = vadd.f32 %v2406_v14, %v2405_v12  ;;  %v2408_v17 = vpop.f32.mrb[38].mxu1  ;;  %v3191_v20 = vadd.f32 %v2318_v44, %v2317_v13  ;;  %v2320_v21 = vpop.f32.mrb[38].mxu0  ;;  %v1135_v14 = vadd.f32 %v2310_v46, %v3154_v38 }
 0x149   : > { %v2409_v24 = vpop.f32.mrb[39].mxu1  ;;  %v2321_v50 = vpop.f32.mrb[39].mxu0 }
 0x14a   : > { %v2410_v25 = vadd.f32 %v2409_v24, %v2408_v17  ;;  %v3194_v31 = vadd.f32 %v2321_v50, %v2320_v21  ;;  %v3196_v32 = vadd.f32 %v2407_v15, %v1116_v6 }
 0x14c   : > { %v3198_v33 = vadd.f32 %v2410_v25, %v1119_v11  ;;  %v1140_v25 = vadd.f32 %v3181_v59, %v3154_v38 }
 0x14e   : > { %v2411_v36 = vpop.f32.mrb[40].mxu1  ;;  %v2323_v18 = vpop.f32.mrb[40].mxu0 }
 0x14f   : > { %v2412_v37 = vpop.f32.mrb[41].mxu1  ;;  %v2324_v61 = vpop.f32.mrb[41].mxu0 }
 0x150   : > { %v2413_v41 = vadd.f32 %v2412_v37, %v2411_v36  ;;  %v2414_v42 = vpop.f32.mrb[42].mxu1  ;;  %v3201_v43 = vadd.f32 %v2324_v61, %v2323_v18  ;;  %v2326_v23 = vpop.f32.mrb[42].mxu0  ;;  %v1143_v61 = vadd.f32 %v3184_v63, %v3154_v38 }
 0x151   : > { %v2415_v45 = vpop.f32.mrb[43].mxu1  ;;  %v2327_v5 = vpop.f32.mrb[43].mxu0 }
 0x152   : > { %v2416_v53 = vadd.f32 %v2415_v45, %v2414_v42  ;;  %v3204_v54 = vadd.f32 %v2327_v5, %v2326_v23  ;;  %v3206_v55 = vadd.f32 %v2413_v41, %v1124_v39 }
 0x154   : > { %v3208_v30 = vadd.f32 %v2416_v53, %v1127_v49 }
 0x156   : > { %v2417_v57 = vpop.f32.mrb[44].mxu1  ;;  %v2329_v58 = vpop.f32.mrb[44].mxu0 }
 0x157   : > { %v2418_v19 = vpop.f32.mrb[45].mxu1  ;;  %v2330_v60 = vpop.f32.mrb[45].mxu0 }
 0x158   : > { %v2419_v1 = vadd.f32 %v2418_v19, %v2417_v57  ;;  %v2420_v35 = vpop.f32.mrb[46].mxu1  ;;  %v3211_v2 = vadd.f32 %v2330_v60, %v2329_v58  ;;  %v2332_v12 = vpop.f32.mrb[46].mxu0  ;;  %v1148_v19 = vadd.f32 %v3191_v20, %v3154_v38 }
 0x159   : > { %v2421_v26 = vpop.f32.mrb[47].mxu1  ;;  %v2333_v13 = vpop.f32.mrb[47].mxu0 }
 0x15a   : > { %v2422_v44 = vadd.f32 %v2421_v26, %v2420_v35  ;;  %v3214_v6 = vadd.f32 %v2333_v13, %v2332_v12  ;;  %v3217_v15 = vadd.f32 %v2419_v1, %v1132_v0  ;;  %v1151_v12 = vadd.f32 %v3194_v31, %v3154_v38 }
 0x15c   : > { %v3219_v17 = vadd.f32 %v2422_v44, %v1135_v14 }
 0x15e   : > { %v2423_v21 = vpop.f32.mrb[48].mxu1  ;;  %v2501_v40 = vpop.f32.mrb[48].mxu0 }
 0x15f   : > { %v1406_v24 = vadd.f32 %v2501_v40, %v3164_v7  ;;  %v2424_v50 = vpop.f32.mrb[49].mxu1  ;;  %v1397_v11 = vpop.f32.mrb[49].mxu0 }
 0x160   : > { %v2425_v46 = vadd.f32 %v2424_v50, %v2423_v21  ;;  %v1398_v36 = vadd.f32 %v1397_v11, %v3158_v51  ;;  %v2426_v18 = vpop.f32.mrb[50].mxu1  ;;  %v2502_v37 = vpop.f32.mrb[50].mxu0 }
 0x161   : > { %v2214_v39 = vpack.c.bf16 %v1406_v24, %v1406_v24  ;;  %v1409_v41 = vadd.f32 %v2502_v37, %v3166_v8  ;;  %v2427_v42 = vpop.f32.mrb[51].mxu1  ;;  %v1400_v23 = vpop.f32.mrb[51].mxu0 }
 0x162   : > { %v2212_v7 = vpack.c.bf16 %v1398_v36, %v1398_v36  ;;  %v2428_v45 = vadd.f32 %v2427_v42, %v2426_v18  ;;  %v1401_v5 = vadd.f32 %v1400_v23, %v3160_v52  ;;  %v3229_v49 = vadd.f32 %v2425_v46, %v1140_v25 }
 0x163   : > { %1655 = vst.msk [vmem:[%s3231_s12 + $0x8] sm:$0xf] %vm1652_vm1, %v2214_v39  ;;  %v2215_v51 = vpack.c.bf16 %v1409_v41, %v1409_v41  ;;  %v1156_v46 = vadd.f32 %v3201_v43, %v3154_v38  ;;  %v1159_v39 = vadd.f32 %v3204_v54, %v3154_v38 }
 0x164   : > { %1653 = vst.msk [vmem:[%s3231_s12] sm:$0xf] %vm1652_vm1, %v2212_v7  ;;  %v2213_v8 = vpack.c.bf16 %v1401_v5, %v1401_v5  ;;  %v3237_v59 = vadd.f32 %v2428_v45, %v1143_v61 }
 0x165   : > { %1656 = vst.msk [vmem:[%s3231_s12 + $0xc] sm:$0xf] %vm1652_vm1, %v2215_v51 }
 0x166   : > { %1654 = vst.msk [vmem:[%s3231_s12 + $0x4] sm:$0xf] %vm1652_vm1, %v2213_v8  ;;  %v2429_v52 = vpop.f32.mrb[52].mxu1  ;;  %v2505_v63 = vpop.f32.mrb[52].mxu0 }
 0x167   : > { %v1422_v53 = vadd.f32 %v2505_v63, %v3176_v47  ;;  %v2430_v57 = vpop.f32.mrb[53].mxu1  ;;  %v1413_v58 = vpop.f32.mrb[53].mxu0 }
 0x168   : > { %v2431_v60 = vadd.f32 %v2430_v57, %v2429_v52  ;;  %v1414_v0 = vadd.f32 %v1413_v58, %v3170_v27  ;;  %v2432_v1 = vpop.f32.mrb[54].mxu1  ;;  %v2506_v35 = vpop.f32.mrb[54].mxu0 }
 0x169   : > { %v2218_v26 = vpack.c.bf16 %v1422_v53, %v1422_v53  ;;  %v1425_v47 = vadd.f32 %v2506_v35, %v3178_v48  ;;  %v2433_v13 = vpop.f32.mrb[55].mxu1  ;;  %v1416_v14 = vpop.f32.mrb[55].mxu0  ;;  %v1164_v53 = vadd.f32 %v3211_v2, %v3154_v38 }
 0x16a   : > { %v2216_v44 = vpack.c.bf16 %v1414_v0, %v1414_v0  ;;  %v2434_v21 = vadd.f32 %v2433_v13, %v2432_v1  ;;  %v1417_v20 = vadd.f32 %v1416_v14, %v3172_v29  ;;  %v1309_v40 = vadd.f32 %v2431_v60, %v1148_v19 }
 0x16b   : > { %1659 = vst.msk [vmem:[%s3231_s12 + $0x18] sm:$0xf] %vm1652_vm1, %v2218_v26  ;;  %v2219_v27 = vpack.c.bf16 %v1425_v47, %v1425_v47  ;;  %v1167_v0 = vadd.f32 %v3214_v6, %v3154_v38 }
 0x16c   : > { %1657 = vst.msk [vmem:[%s3231_s12 + $0x10] sm:$0xf] %vm1652_vm1, %v2216_v44  ;;  %v2217_v24 = vpack.c.bf16 %v1417_v20, %v1417_v20  ;;  %v3255_v50 = vadd.f32 %v2434_v21, %v1151_v12 }
 0x16d   : > { %1660 = vst.msk [vmem:[%s3231_s12 + $0x1c] sm:$0xf] %vm1652_vm1, %v2219_v27 }
 0x16e   : > { %1658 = vst.msk [vmem:[%s3231_s12 + $0x14] sm:$0xf] %vm1652_vm1, %v2217_v24  ;;  %v2435_v48 = vpop.f32.mrb[56].mxu1  ;;  %v2509_v31 = vpop.f32.mrb[56].mxu0 }
 0x16f   : > { %v1438_v11 = vadd.f32 %v2509_v31, %v3196_v32  ;;  %v2436_v25 = vpop.f32.mrb[57].mxu1  ;;  %v1429_v29 = vpop.f32.mrb[57].mxu0 }
 0x170   : > { %v2437_v36 = vadd.f32 %v2436_v25, %v2435_v48  ;;  %v1430_v18 = vadd.f32 %v1429_v29, %v3186_v3  ;;  %v2438_v37 = vpop.f32.mrb[58].mxu1  ;;  %v2510_v61 = vpop.f32.mrb[58].mxu0  ;;  %v1175_v25 = vadd.f32 %v3137_v62, %v3154_v38 }
 0x171   : > { %v2222_v41 = vpack.c.bf16 %v1438_v11, %v1438_v11  ;;  %v1441_v32 = vadd.f32 %v2510_v61, %v3198_v33  ;;  %v2439_v42 = vpop.f32.mrb[59].mxu1  ;;  %v1432_v23 = vpop.f32.mrb[59].mxu0 }
 0x172   : > { %v2220_v7 = vpack.c.bf16 %v1430_v18, %v1430_v18  ;;  %v2440_v45 = vadd.f32 %v2439_v42, %v2438_v37  ;;  %v1433_v43 = vadd.f32 %v1432_v23, %v3188_v9  ;;  %v3269_v5 = vadd.f32 %v2437_v36, %v1156_v46 }
 0x173   : > { %1663 = vst.msk [vmem:[%s3231_s12 + $0x28] sm:$0xf] %vm1652_vm1, %v2222_v41  ;;  %v2223_v3 = vpack.c.bf16 %v1441_v32, %v1441_v32 }
 0x174   : > { %1661 = vst.msk [vmem:[%s3231_s12 + $0x20] sm:$0xf] %vm1652_vm1, %v2220_v7  ;;  %v2221_v51 = vpack.c.bf16 %v1433_v43, %v1433_v43  ;;  %v3275_v8 = vadd.f32 %v2440_v45, %v1159_v39 }
 0x175   : > { %1664 = vst.msk [vmem:[%s3231_s12 + $0x2c] sm:$0xf] %vm1652_vm1, %v2223_v3 }
 0x176   : > { %1662 = vst.msk [vmem:[%s3231_s12 + $0x24] sm:$0xf] %vm1652_vm1, %v2221_v51  ;;  %v2441_v33 = vpop.f32.mrb[60].mxu1  ;;  %v2513_v54 = vpop.f32.mrb[60].mxu0  ;;  %v1183_v51 = vadd.f32 %v3141_v10, %v3154_v38 }
 0x177   : > { %v1454_v52 = vadd.f32 %v2513_v54, %v3217_v15  ;;  %v2442_v63 = vpop.f32.mrb[61].mxu1  ;;  %v1445_v9 = vpop.f32.mrb[61].mxu0 }
 0x178   : > { %v2443_v57 = vadd.f32 %v2442_v63, %v2441_v33  ;;  %v1446_v58 = vadd.f32 %v1445_v9, %v3206_v55  ;;  %v2444_v19 = vpop.f32.mrb[62].mxu1  ;;  %v2514_v60 = vpop.f32.mrb[62].mxu0 }
 0x179   : > { %v2226_v1 = vpack.c.bf16 %v1454_v52, %v1454_v52  ;;  %v1457_v15 = vadd.f32 %v2514_v60, %v3219_v17  ;;  %v2445_v35 = vpop.f32.mrb[63].mxu1  ;;  %v1448_v12 = vpop.f32.mrb[63].mxu0 }
 0x17a   : > { %v2224_v26 = vpack.c.bf16 %v1446_v58, %v1446_v58  ;;  %v2446_v47 = vadd.f32 %v2445_v35, %v2444_v19  ;;  %v1449_v2 = vadd.f32 %v1448_v12, %v3208_v30  ;;  %v1325_v13 = vadd.f32 %v2443_v57, %v1164_v53 }
 0x17b   : > { %1667 = vst.msk [vmem:[%s3231_s12 + $0x38] sm:$0xf] %vm1652_vm1, %v2226_v1  ;;  %v2227_v55 = vpack.c.bf16 %v1457_v15, %v1457_v15  ;;  %v1172_v30 = vadd.f32 %v3135_v56, %v3154_v38 }
 0x17c   : > { %1665 = vst.msk [vmem:[%s3231_s12 + $0x30] sm:$0xf] %vm1652_vm1, %v2224_v26  ;;  %v2225_v14 = vpack.c.bf16 %v1449_v2, %v1449_v2  ;;  %v1328_v44 = vadd.f32 %v2446_v47, %v1167_v0  ;;  %v1191_v2 = vadd.f32 %v3145_v22, %v3154_v38 }
 0x17d   : > { %1668 = vst.msk [vmem:[%s3231_s12 + $0x3c] sm:$0xf] %vm1652_vm1, %v2227_v55 }
 0x17e   : > { %1666 = vst.msk [vmem:[%s3231_s12 + $0x34] sm:$0xf] %vm1652_vm1, %v2225_v14  ;;  %v2447_v6 = vpop.f32.mrb[64].mxu1  ;;  %v2517_v17 = vpop.f32.mrb[64].mxu0 }
 0x17f   : > { %v1470_v21 = vadd.f32 %v2517_v17, %v1309_v40  ;;  %v2448_v20 = vpop.f32.mrb[65].mxu1  ;;  %v1461_v27 = vpop.f32.mrb[65].mxu0 }
 0x180   : > { %v2449_v24 = vadd.f32 %v2448_v20, %v2447_v6  ;;  %v1462_v48 = vadd.f32 %v1461_v27, %v3229_v49  ;;  %v2450_v31 = vpop.f32.mrb[66].mxu1  ;;  %v2518_v11 = vpop.f32.mrb[66].mxu0 }
 0x181   : > { %v2230_v29 = vpack.c.bf16 %v1470_v21, %v1470_v21  ;;  %v1473_v40 = vadd.f32 %v2518_v11, %v3255_v50  ;;  %v2451_v46 = vpop.f32.mrb[67].mxu1  ;;  %v1464_v36 = vpop.f32.mrb[67].mxu0  ;;  %v1196_v11 = vadd.f32 %v3147_v28, %v3154_v38 }
 0x182   : > { %v2228_v18 = vpack.c.bf16 %v1462_v48, %v1462_v48  ;;  %v2452_v37 = vadd.f32 %v2451_v46, %v2450_v31  ;;  %v1465_v56 = vadd.f32 %v1464_v36, %v3237_v59  ;;  %v1333_v61 = vadd.f32 %v2449_v24, %v1172_v30 }
 0x183   : > { %1671 = vst.msk [vmem:[%s3231_s12 + $0x48] sm:$0xf] %vm1652_vm1, %v2230_v29  ;;  %v2231_v49 = vpack.c.bf16 %v1473_v40, %v1473_v40  ;;  %v1180_v59 = vadd.f32 %v3139_v4, %v3154_v38  ;;  %v1199_v36 = vadd.f32 %v3149_v34, %v3154_v38 }
 0x184   : > { %1669 = vst.msk [vmem:[%s3231_s12 + $0x40] sm:$0xf] %vm1652_vm1, %v2228_v18  ;;  %v2229_v39 = vpack.c.bf16 %v1465_v56, %v1465_v56  ;;  %v1336_v41 = vadd.f32 %v2452_v37, %v1175_v25 }
 0x185   : > { %1672 = vst.msk [vmem:[%s3231_s12 + $0x4c] sm:$0xf] %vm1652_vm1, %v2231_v49 }
 0x186   : > { %1670 = vst.msk [vmem:[%s3231_s12 + $0x44] sm:$0xf] %vm1652_vm1, %v2229_v39  ;;  %v2453_v62 = vpop.f32.mrb[68].mxu1  ;;  %v2521_v50 = vpop.f32.mrb[68].mxu0 }
 0x187   : > { %v1486_v32 = vadd.f32 %v2521_v50, %v1325_v13  ;;  %v2454_v42 = vpop.f32.mrb[69].mxu1  ;;  %v1477_v23 = vpop.f32.mrb[69].mxu0 }
 0x188   : > { %v2455_v7 = vadd.f32 %v2454_v42, %v2453_v62  ;;  %v1478_v45 = vadd.f32 %v1477_v23, %v3269_v5  ;;  %v2456_v43 = vpop.f32.mrb[70].mxu1  ;;  %v2522_v3 = vpop.f32.mrb[70].mxu0 }
 0x189   : > { %v2234_v33 = vpack.c.bf16 %v1486_v32, %v1486_v32  ;;  %v1489_v54 = vadd.f32 %v2522_v3, %v1328_v44  ;;  %v2457_v52 = vpop.f32.mrb[71].mxu1  ;;  %v1480_v63 = vpop.f32.mrb[71].mxu0 }
 0x18a   : > { %v2232_v9 = vpack.c.bf16 %v1478_v45, %v1478_v45  ;;  %v2458_v53 = vadd.f32 %v2457_v52, %v2456_v43  ;;  %v1481_v57 = vadd.f32 %v1480_v63, %v3275_v8  ;;  %v1341_v4 = vadd.f32 %v2455_v7, %v1180_v59 }
 0x18b   : > { %1675 = vst.msk [vmem:[%s3231_s12 + $0x58] sm:$0xf] %vm1652_vm1, %v2234_v33  ;;  %v2235_v58 = vpack.c.bf16 %v1489_v54, %v1489_v54  ;;  %v1188_v8 = vadd.f32 %v3143_v16, %v3154_v38 }
 0x18c   : > { %1673 = vst.msk [vmem:[%s3231_s12 + $0x50] sm:$0xf] %vm1652_vm1, %v2232_v9  ;;  %v2233_v5 = vpack.c.bf16 %v1481_v57, %v1481_v57  ;;  %v1344_v19 = vadd.f32 %v2458_v53, %v1183_v51 }
 0x18d   : > { %1676 = vst.msk [vmem:[%s3231_s12 + $0x5c] sm:$0xf] %vm1652_vm1, %v2235_v58 }
 0x18e   : > { %1674 = vst.msk [vmem:[%s3231_s12 + $0x54] sm:$0xf] %vm1652_vm1, %v2233_v5  ;;  %v2459_v10 = vpop.f32.mrb[72].mxu1  ;;  %v2525_v60 = vpop.f32.mrb[72].mxu0 }
 0x18f   : > { %v1502_v0 = vadd.f32 %v2525_v60, %v1341_v4  ;;  %v2460_v1 = vpop.f32.mrb[73].mxu1  ;;  %v1493_v15 = vpop.f32.mrb[73].mxu0 }
 0x190   : > { %v2461_v35 = vadd.f32 %v2460_v1, %v2459_v10  ;;  %v1494_v12 = vadd.f32 %v1493_v15, %v1333_v61  ;;  %v2462_v26 = vpop.f32.mrb[74].mxu1  ;;  %v2526_v47 = vpop.f32.mrb[74].mxu0 }
 0x191   : > { %v2238_v13 = vpack.c.bf16 %v1502_v0, %v1502_v0  ;;  %v1505_v55 = vadd.f32 %v2526_v47, %v1344_v19  ;;  %v2463_v14 = vpop.f32.mrb[75].mxu1  ;;  %v1496_v44 = vpop.f32.mrb[75].mxu0 }
 0x192   : > { %v2236_v6 = vpack.c.bf16 %v1494_v12, %v1494_v12  ;;  %v2464_v17 = vadd.f32 %v2463_v14, %v2462_v26  ;;  %v1497_v21 = vadd.f32 %v1496_v44, %v1336_v41  ;;  %v1349_v20 = vadd.f32 %v2461_v35, %v1188_v8 }
 0x193   : > { %1679 = vst.msk [vmem:[%s3231_s12 + $0x68] sm:$0xf] %vm1652_vm1, %v2238_v13  ;;  %v2239_v16 = vpack.c.bf16 %v1505_v55, %v1505_v55 }
 0x194   : > { %1677 = vst.msk [vmem:[%s3231_s12 + $0x60] sm:$0xf] %vm1652_vm1, %v2236_v6  ;;  %v2237_v27 = vpack.c.bf16 %v1497_v21, %v1497_v21  ;;  %v1352_v30 = vadd.f32 %v2464_v17, %v1191_v2 }
 0x195   : > { %1680 = vst.msk [vmem:[%s3231_s12 + $0x6c] sm:$0xf] %vm1652_vm1, %v2239_v16 }
 0x196   : > { %1678 = vst.msk [vmem:[%s3231_s12 + $0x64] sm:$0xf] %vm1652_vm1, %v2237_v27  ;;  %v2465_v22 = vpop.f32.mrb[76].mxu1  ;;  %v2529_v24 = vpop.f32.mrb[76].mxu0 }
 0x197   : > { %v2466_v48 = vpop.f32.mrb[77].mxu1  ;;  %v1509_v31 = vpop.f32.mrb[77].mxu0 }
 0x198   : > { %v2467_v25 = vadd.f32 %v2466_v48, %v2465_v22  ;;  %v1510_v29 = vadd.f32 %v1509_v31, %v1349_v20  ;;  %v2468_v40 = vpop.f32.mrb[78].mxu1  ;;  %v2530_v46 = vpop.f32.mrb[78].mxu0 }
 0x199   : > { %v2469_v18 = vpop.f32.mrb[79].mxu1  ;;  %v1512_v37 = vpop.f32.mrb[79].mxu0 }
 0x19a   : > { %v1357_v56 = vadd.f32 %v2467_v25, %v1196_v11  ;;  %v2240_v61 = vpack.c.bf16 %v1510_v29, %v1510_v29  ;;  %v2470_v49 = vadd.f32 %v2469_v18, %v2468_v40  ;;  %v1513_v39 = vadd.f32 %v1512_v37, %v1352_v30 }
 0x19c   : > { %v1518_v41 = vadd.f32 %v2529_v24, %v1357_v56  ;;  %1681 = vst.msk [vmem:[%s3231_s12 + $0x70] sm:$0xf] %vm1652_vm1, %v2240_v61  ;;  %v1360_v28 = vadd.f32 %v2470_v49, %v1199_v36  ;;  %v2241_v62 = vpack.c.bf16 %v1513_v39, %v1513_v39  ;;  %1691 = sbr.rel (!%p2917_p4) target bundleno = 489 (0x1e9), region = 36 }
 0x19e   : > { %v2242_v50 = vpack.c.bf16 %v1518_v41, %v1518_v41  ;;  %v1521_v32 = vadd.f32 %v2530_v46, %v1360_v28  ;;  %1682 = vst.msk [vmem:[%s3231_s12 + $0x74] sm:$0xf] %vm1652_vm1, %v2241_v62 }
 0x1a0   : > { %1683 = vst.msk [vmem:[%s3231_s12 + $0x78] sm:$0xf] %vm1652_vm1, %v2242_v50  ;;  %v2243_v42 = vpack.c.bf16 %v1521_v32, %v1521_v32 }
 0x1a2   : > { %1684 = vst.msk [vmem:[%s3231_s12 + $0x7c] sm:$0xf] %vm1652_vm1, %v2243_v42 }
 0x1a3   : > { %s3497_s25 = smov (!%p1694_p8, %s1693_s25), 32 }
 0x1a4   : > { %s2197_s30 = sshll.u32 %s3497_s25, 6 }
 0x1a5   : > { %p2200_p9 = scmp.eq.s32.totalorder %s2197_s30, 0 }
 0x1a6   : > { %s3363_s4 = sshrl.u32 (!%p2200_p9), %s3497_s25, 5 }
 0x1a7   : > { %1702 = sbr.rel (%p2200_p9) target bundleno = 489 (0x1e9), region = 40  ;;  %p2201_p10 = scmp.le.s32.totalorder (!%p2200_p9), %s3363_s4, 0 }
 0x1ae   : > { %1979 = sbr.rel (%p2201_p10) target bundleno = 468 (0x1d4), region = 112  ;;  %s3490_s15 = smov (!%p2201_p10), %s3357_s29 }
 0x1af   : > { %s3491_s20 = smov (!%p2201_p10), %s3231_s12  ;;  %s3372_s23 = smov (!%p2201_p10), 0  }
 0x1b0   : > { %s3374_s5 = smov (!%p2201_p10), 0  }
 0x1b5 LB: >> { %v1718_v34 = vld [vmem:[%s2846_s20] sm:$0xf]  ;;  %v1720_v38 = vld [vmem:[%s2846_s20 + $0x4] sm:$0xf]  ;;  %v1722_v23 = vld [vmem:[%s2846_s20 + $0x8] sm:$0xf]  ;;  %s2854_s5 = sphi %s3374_s5, %s1712_s5   ;;  %s2850_s23 = sphi %s3372_s23, %s3492_s23   ;;  %s2846_s20 = sphi %s3491_s20, %s1787_s20   ;;  %s2842_s15 = sphi %s3490_s15, %s1788_s15  }
 0x1b6   : >> { %1719 = vst [vmem:[%s2842_s15] sm:$0xf] %v1718_v34  ;;  %1721 = vst [vmem:[%s2842_s15 + $0x4] sm:$0xf] %v1720_v38  ;;  %v1724_v59 = vld [vmem:[%s2846_s20 + $0xc] sm:$0xf]  ;;  %s1782_s6 = sadd.s32 1, %s2850_s23 }
 0x1b7   : >> { %1723 = vst [vmem:[%s2842_s15 + $0x8] sm:$0xf] %v1722_v23  ;;  %v1726_v7 = vld [vmem:[%s2846_s20 + $0x10] sm:$0xf]  ;;  %v1728_v45 = vld [vmem:[%s2846_s20 + $0x14] sm:$0xf]  ;;  %p1783_p11 = scmp.ge.s32.totalorder %s1782_s6, %s3363_s4 }
 0x1b8   : >> { %1725 = vst [vmem:[%s2842_s15 + $0xc] sm:$0xf] %v1724_v59  ;;  %1727 = vst [vmem:[%s2842_s15 + $0x10] sm:$0xf] %v1726_v7  ;;  %v1730_v43 = vld [vmem:[%s2846_s20 + $0x18] sm:$0xf] }
 0x1b9   : >> { %1729 = vst [vmem:[%s2842_s15 + $0x14] sm:$0xf] %v1728_v45  ;;  %v1732_v3 = vld [vmem:[%s2846_s20 + $0x1c] sm:$0xf]  ;;  %v1734_v51 = vld [vmem:[%s2846_s20 + $0x20] sm:$0xf] }
 0x1ba   : >> { %1731 = vst [vmem:[%s2842_s15 + $0x18] sm:$0xf] %v1730_v43  ;;  %1733 = vst [vmem:[%s2842_s15 + $0x1c] sm:$0xf] %v1732_v3  ;;  %v1736_v33 = vld [vmem:[%s2846_s20 + $0x24] sm:$0xf] }
 0x1bb   : >> { %1735 = vst [vmem:[%s2842_s15 + $0x20] sm:$0xf] %v1734_v51  ;;  %v1738_v54 = vld [vmem:[%s2846_s20 + $0x28] sm:$0xf]  ;;  %v1740_v52 = vld [vmem:[%s2846_s20 + $0x2c] sm:$0xf] }
 0x1bc   : >> { %1737 = vst [vmem:[%s2842_s15 + $0x24] sm:$0xf] %v1736_v33  ;;  %1739 = vst [vmem:[%s2842_s15 + $0x28] sm:$0xf] %v1738_v54  ;;  %v1742_v63 = vld [vmem:[%s2846_s20 + $0x30] sm:$0xf] }
 0x1bd   : >> { %1741 = vst [vmem:[%s2842_s15 + $0x2c] sm:$0xf] %v1740_v52  ;;  %v1744_v9 = vld [vmem:[%s2846_s20 + $0x34] sm:$0xf]  ;;  %v1746_v53 = vld [vmem:[%s2846_s20 + $0x38] sm:$0xf] }
 0x1be   : >> { %1743 = vst [vmem:[%s2842_s15 + $0x30] sm:$0xf] %v1742_v63  ;;  %1745 = vst [vmem:[%s2842_s15 + $0x34] sm:$0xf] %v1744_v9  ;;  %v1748_v57 = vld [vmem:[%s2846_s20 + $0x3c] sm:$0xf] }
 0x1bf   : >> { %1747 = vst [vmem:[%s2842_s15 + $0x38] sm:$0xf] %v1746_v53  ;;  %v1750_v4 = vld [vmem:[%s2846_s20 + $0x40] sm:$0xf]  ;;  %v1752_v58 = vld [vmem:[%s2846_s20 + $0x44] sm:$0xf] }
 0x1c0   : >> { %1749 = vst [vmem:[%s2842_s15 + $0x3c] sm:$0xf] %v1748_v57  ;;  %1751 = vst [vmem:[%s2842_s15 + $0x40] sm:$0xf] %v1750_v4  ;;  %v1754_v5 = vld [vmem:[%s2846_s20 + $0x48] sm:$0xf] }
 0x1c1   : >> { %1753 = vst [vmem:[%s2842_s15 + $0x44] sm:$0xf] %v1752_v58  ;;  %v1756_v19 = vld [vmem:[%s2846_s20 + $0x4c] sm:$0xf]  ;;  %v1758_v10 = vld [vmem:[%s2846_s20 + $0x50] sm:$0xf] }
 0x1c2   : >> { %1755 = vst [vmem:[%s2842_s15 + $0x48] sm:$0xf] %v1754_v5  ;;  %1757 = vst [vmem:[%s2842_s15 + $0x4c] sm:$0xf] %v1756_v19  ;;  %v1760_v60 = vld [vmem:[%s2846_s20 + $0x54] sm:$0xf] }
 0x1c3   : >> { %1759 = vst [vmem:[%s2842_s15 + $0x50] sm:$0xf] %v1758_v10  ;;  %v1762_v0 = vld [vmem:[%s2846_s20 + $0x58] sm:$0xf]  ;;  %v1764_v1 = vld [vmem:[%s2846_s20 + $0x5c] sm:$0xf] }
 0x1c4   : >> { %1761 = vst [vmem:[%s2842_s15 + $0x54] sm:$0xf] %v1760_v60  ;;  %1763 = vst [vmem:[%s2842_s15 + $0x58] sm:$0xf] %v1762_v0  ;;  %v1766_v15 = vld [vmem:[%s2846_s20 + $0x60] sm:$0xf] }
 0x1c5   : >> { %1765 = vst [vmem:[%s2842_s15 + $0x5c] sm:$0xf] %v1764_v1  ;;  %v1768_v8 = vld [vmem:[%s2846_s20 + $0x64] sm:$0xf]  ;;  %v1770_v35 = vld [vmem:[%s2846_s20 + $0x68] sm:$0xf] }
 0x1c6   : >> { %1767 = vst [vmem:[%s2842_s15 + $0x60] sm:$0xf] %v1766_v15  ;;  %1769 = vst [vmem:[%s2842_s15 + $0x64] sm:$0xf] %v1768_v8  ;;  %v1772_v12 = vld [vmem:[%s2846_s20 + $0x6c] sm:$0xf] }
 0x1c7   : >> { %1771 = vst [vmem:[%s2842_s15 + $0x68] sm:$0xf] %v1770_v35  ;;  %v1774_v26 = vld [vmem:[%s2846_s20 + $0x70] sm:$0xf]  ;;  %v1776_v47 = vld [vmem:[%s2846_s20 + $0x74] sm:$0xf] }
 0x1c8   : >> { %1773 = vst [vmem:[%s2842_s15 + $0x6c] sm:$0xf] %v1772_v12  ;;  %1775 = vst [vmem:[%s2842_s15 + $0x70] sm:$0xf] %v1774_v26  ;;  %v1778_v2 = vld [vmem:[%s2846_s20 + $0x78] sm:$0xf] }
 0x1c9   : >> { %1777 = vst [vmem:[%s2842_s15 + $0x74] sm:$0xf] %v1776_v47  ;;  %v1780_v13 = vld [vmem:[%s2846_s20 + $0x7c] sm:$0xf]  ;;  %1779 = vst [vmem:[%s2842_s15 + $0x78] sm:$0xf] %v1778_v2 }
 0x1ca   : >> { %1781 = vst [vmem:[%s2842_s15 + $0x7c] sm:$0xf] %v1780_v13  ;;  %s3499_s6 = smov (%p1783_p11, %s1782_s6), 0  ;;  %s1712_s5 = sadd.s32 1, %s2854_s5  }
 0x1cb   : >> { %s2202_s7 = sshll.u32 %s3499_s6, 7  ;;  %p1711_p12 = scmp.ge.s32.totalorder %s1712_s5, %s3363_s4 }
 0x1cc   : >> { %s1787_s20 = scalar_lea.vmem %s3231_s12, %s2202_s7 [#allocation2]   ;;  %s1788_s15 = scalar_lea.vmem %s3357_s29, %s2202_s7  }
 0x1cd   : >> { %s3492_s23 = smov %s3499_s6  ;;  %1714 = sbr.rel (!%p1711_p12) target bundleno = 437 (0x1b5), region = 118 }
 0x1d4 PF: > { %s3467_s8 = sand.u32 31, %s3497_s25   ;;  %s2245_s9 = sshll.u32 %s3363_s4, 7 }
 0x1d5   : > { %s1793_s10 = scalar_lea.vmem %s3231_s12, %s2245_s9 [#allocation2]   ;;  %s1795_s11 = scalar_lea.vmem %s3357_s29, %s2245_s9  }
 0x1d6   : > { %p2207_p13 = scmp.le.s32.totalorder %s3467_s8, 0 }
 0x1d7   : > { %s2856_s14 = smov (!%p2207_p13), %s1795_s11   ;;  %s2860_s17 = smov (!%p2207_p13), %s1793_s10  }
 0x1d8   : > { %1993 = sbr.rel (%p2207_p13) target bundleno = 489 (0x1e9), region = 123  ;;  %s2864_s24 = smov (!%p2207_p13), 0  }
 0x1d9   : > { %s2868_s18 = smov (!%p2207_p13), 0  }
 0x1df LB: >> { %v1805_v55 = vld [vmem:[%s2862_s17] sm:$0xf]  ;;  %s1807_s21 = sadd.s32 1, %s2866_s24  ;;  %s1799_s18 = sadd.s32 1, %s2870_s18   ;;  %s2870_s18 = sphi %s2868_s18, %s1799_s18   ;;  %s2866_s24 = sphi %s2864_s24, %s2865_s24   ;;  %s2862_s17 = sphi %s2860_s17, %s1812_s17   ;;  %s2858_s14 = sphi %s2856_s14, %s1813_s14  }
 0x1e0   : >> { %1806 = vst [vmem:[%s2858_s14] sm:$0xf] %v1805_v55  ;;  %p1808_p0 = scmp.ge.s32.totalorder %s1807_s21, %s3467_s8  ;;  %p1798_p1 = scmp.ge.s32.totalorder %s1799_s18, %s3467_s8 }
 0x1e2   : >> { %s3501_s21 = smov (%p1808_p0, %s1807_s21), 0  ;;  %1801 = sbr.rel (!%p1798_p1) target bundleno = 479 (0x1df), region = 129 }
 0x1e3   : >> { %s2208_s22 = sshll.u32 %s3501_s21, 2  ;;  %s2865_s24 = smov %s3501_s21  }
 0x1e4   : >> { %s1812_s17 = scalar_lea.vmem %s1793_s10, %s2208_s22 [#allocation2]   ;;  %s1813_s14 = scalar_lea.vmem %s1795_s11, %s2208_s22  }
 0x1e9 PF: > { %p10_p2 = scmp.ge.s32.totalorder %s2907_s16, 6   ;;  %s3493_s12 = smov %s2834_s13 }
 0x1ea   : > { %s3494_s13 = smov %s2915_s19  ;;  %s3495_s14 = smov %s2907_s16 }
 0x1eb   :  { %12 = sbr.rel (!%p10_p2) target bundleno = 2 (0x2), region = 140 }

// kernel: global_discriminator.5
= control target key start
LH: loop header
LB: loop body
LE: loop exit
PB: predicated region body
PF: predicated region fallthrough
CT: control target
= control target key end

     0   :  { %s11946_s26 = smov 0   ;;  %s13567_s0 = inlined_call_operand.vmem [shape: bf16[2,15872], index: 0, kind: input, shape index: {}]   ;;  %s13568_s1 = inlined_call_operand.vmem [shape: bf16[15872,512], index: 1, kind: input, shape index: {}]   ;;  %s13569_s2 = inlined_call_operand.vmem [shape: f32[1,512], index: 2, kind: input, shape index: {}]   ;;  %s13570_s3 = inlined_call_operand.vmem [shape: bf16[512,512], index: 3, kind: input, shape index: {}]   ;;  %s13571_s4 = inlined_call_operand.vmem [shape: f32[1,512], index: 4, kind: input, shape index: {}]   ;;  %s13572_s5 = inlined_call_operand.vmem [shape: f32[1,512], index: 5, kind: input, shape index: {}]   ;;  %s13573_s6 = inlined_call_operand.<no memory space> [shape: f32[1,1], index: 6, kind: input, shape index: {}]   ;;  %s13574_s7 = inlined_call_operand.vmem [shape: f32[2,1], index: 7, kind: output, shape index: {}]  }
   0x1   :  { %v12_v0 = vstv %s13573_s6 }
   0x2   :  { %13 = vst [vmem:[#allocation3] sm:$0x1] %v12_v0 }
   0x3 LB: > { %s11952_s27 = sadd.s32 4294967295, %s11897_s26   ;;  %p8932_p0 = scmp.ge.s32.totalorder %s11897_s26, 1  ;;  %s11897_s26 = sphi %s11946_s26, %s19_s26  }
   0x4   : > { %p246_p1 = scmp.lt.s32.totalorder %s11897_s26, 5 }
   0x6   : > { %p247_p2 = pnand %p8932_p0, %p246_p1 }
   0x7   : > { %s278_s6 = smul.u32 (!%p247_p2), 31, %s11952_s27  ;;  %p8935_p5 = scmp.ne.s32.totalorder (!%p247_p2), %s11952_s27, 0 }
   0x8   : > { %250 = sbr.rel (%p247_p2) target bundleno = 1692 (0x69c), region = 48 }
   0x9   : > { %s283_s28 = smul.u32 (!%p247_p2), 496, %s11952_s27  ;;  %p279_p3 = scmp.lt.s32.totalorder (!%p247_p2), %s278_s6, 123 }
   0xb   : > { %p284_p4 = scmp.lt.s32.totalorder (!%p247_p2), %s283_s28, 1983 }
   0xf   : > { %s13576_s6 = smov (!%p279_p3, %s278_s6), 123  ;;  %s13578_s28 = smov (!%p284_p4, %s283_s28), 1983 }
  0x10   : > { %s11961_s8 = scalar_lea.vmem %s13567_s0, %s13576_s6  ;;  %s10060_s9 = sshll.u32 %s13578_s28, 4  ;;  %v11899_v1 = vmov (!%p8935_p5), 0.0  }
  0x11   : > { %s11966_s12 = scalar_lea.vmem %s13568_s1, %s10060_s9  ;;  %294 = sbr.rel (%p8935_p5) target bundleno = 24 (0x18), region = 52  ;;  %295 = vst [vmem:[#allocation2] sm:$0xff] (!%p8935_p5), %v11899_v1 }
  0x18 PF: > { %v10205_v2 = vld [vmem:[%s11966_s12 + $0x4] ss:$16 sps:$4 sm:$0xff]   ;;  %v10207_v3 = vld [vmem:[%s11966_s12 + $0xc] ss:$16 sps:$4 sm:$0xff]   ;;  %v10209_v4 = vld [vmem:[%s11966_s12] ss:$16 sps:$4 sm:$0xff]   ;;  %v1301_v40 = vlaneseq }
  0x19   : > { %6483 = vmatprep.subr.bf16.mxu0 %v10205_v2  ;;  %v10210_v5 = vld [vmem:[%s11966_s12 + $0x8] ss:$16 sps:$4 sm:$0xff]   ;;  %7139 = vmatprep.subr.bf16.mxu1 %v10207_v3  ;;  %v10211_v6 = vld [vmem:[%s11966_s12 + $0x24] ss:$16 sps:$4 sm:$0xff]   ;;  %v10213_v7 = vld [vmem:[%s11966_s12 + $0x2c] ss:$16 sps:$4 sm:$0xff]  }
  0x1a   : > { %6484 = vmatpush1.bf16.msra.mxu0 %v10209_v4  ;;  %7140 = vmatpush1.bf16.msra.mxu1 %v10210_v5  ;;  %v10215_v8 = vld [vmem:[%s11966_s12 + $0x20] ss:$16 sps:$4 sm:$0xff]   ;;  %v10216_v9 = vld [vmem:[%s11966_s12 + $0x28] ss:$16 sps:$4 sm:$0xff]   ;;  %v10217_v10 = vld [vmem:[%s11966_s12 + $0x44] ss:$16 sps:$4 sm:$0xff]  }
  0x1b   : > { %6485 = vmatprep.subr.bf16.mxu0 %v10211_v6  ;;  %7141 = vmatprep.subr.bf16.mxu1 %v10213_v7  ;;  %v10219_v11 = vld [vmem:[%s11966_s12 + $0x4c] ss:$16 sps:$4 sm:$0xff]   ;;  %v10221_v12 = vld [vmem:[%s11966_s12 + $0x40] ss:$16 sps:$4 sm:$0xff]   ;;  %v10222_v13 = vld [vmem:[%s11966_s12 + $0x48] ss:$16 sps:$4 sm:$0xff]  }
  0x1c   : > { %v10223_v14 = vld [vmem:[%s11966_s12 + $0x64] ss:$16 sps:$4 sm:$0xff]   ;;  %v10225_v15 = vld [vmem:[%s11966_s12 + $0x6c] ss:$16 sps:$4 sm:$0xff]   ;;  %v10227_v16 = vld [vmem:[%s11966_s12 + $0x60] ss:$16 sps:$4 sm:$0xff]  }
  0x1d   : > { %v10228_v17 = vld [vmem:[%s11966_s12 + $0x68] ss:$16 sps:$4 sm:$0xff]   ;;  %v10229_v18 = vld [vmem:[%s11966_s12 + $0x84] ss:$16 sps:$4 sm:$0xff]   ;;  %v10231_v19 = vld [vmem:[%s11966_s12 + $0x8c] ss:$16 sps:$4 sm:$0xff]  }
  0x1e   : > { %6486 = vmatpush1.bf16.msra.mxu0 %v10215_v8  ;;  %7142 = vmatpush1.bf16.msra.mxu1 %v10216_v9  ;;  %v10233_v20 = vld [vmem:[%s11966_s12 + $0x80] ss:$16 sps:$4 sm:$0xff]   ;;  %v10234_v21 = vld [vmem:[%s11966_s12 + $0x88] ss:$16 sps:$4 sm:$0xff]   ;;  %v10235_v22 = vld [vmem:[%s11966_s12 + $0xa4] ss:$16 sps:$4 sm:$0xff]  }
  0x1f   : > { %6487 = vmatprep.subr.bf16.mxu0 %v10217_v10  ;;  %7143 = vmatprep.subr.bf16.mxu1 %v10219_v11  ;;  %v10237_v23 = vld [vmem:[%s11966_s12 + $0xac] ss:$16 sps:$4 sm:$0xff]   ;;  %v10239_v24 = vld [vmem:[%s11966_s12 + $0xa0] ss:$16 sps:$4 sm:$0xff]   ;;  %v10240_v25 = vld [vmem:[%s11966_s12 + $0xa8] ss:$16 sps:$4 sm:$0xff]  }
  0x20   : > { %v10241_v26 = vld [vmem:[%s11966_s12 + $0xc4] ss:$16 sps:$4 sm:$0xff]   ;;  %v10243_v27 = vld [vmem:[%s11966_s12 + $0xcc] ss:$16 sps:$4 sm:$0xff]   ;;  %v10245_v28 = vld [vmem:[%s11966_s12 + $0xc0] ss:$16 sps:$4 sm:$0xff]  }
  0x21   : > { %v10246_v29 = vld [vmem:[%s11966_s12 + $0xc8] ss:$16 sps:$4 sm:$0xff]   ;;  %v10247_v30 = vld [vmem:[%s11966_s12 + $0xe4] ss:$16 sps:$4 sm:$0xff]   ;;  %v10249_v31 = vld [vmem:[%s11966_s12 + $0xec] ss:$16 sps:$4 sm:$0xff]  }
  0x22   : > { %6488 = vmatpush1.bf16.msra.mxu0 %v10221_v12  ;;  %7144 = vmatpush1.bf16.msra.mxu1 %v10222_v13  ;;  %v10251_v32 = vld [vmem:[%s11966_s12 + $0xe0] ss:$16 sps:$4 sm:$0xff]   ;;  %v10252_v33 = vld [vmem:[%s11966_s12 + $0xe8] ss:$16 sps:$4 sm:$0xff]   ;;  %v10253_v34 = vld [vmem:[%s11966_s12 + $0x104] ss:$16 sps:$4 sm:$0xff]  }
  0x23   : > { %6489 = vmatprep.subr.bf16.mxu0 %v10223_v14  ;;  %7145 = vmatprep.subr.bf16.mxu1 %v10225_v15  ;;  %v10255_v35 = vld [vmem:[%s11966_s12 + $0x10c] ss:$16 sps:$4 sm:$0xff]   ;;  %v10257_v36 = vld [vmem:[%s11966_s12 + $0x100] ss:$16 sps:$4 sm:$0xff]   ;;  %v10258_v37 = vld [vmem:[%s11966_s12 + $0x108] ss:$16 sps:$4 sm:$0xff]  }
  0x24   : > { %v11900_v38 = vmov 1966171168   ;;  %v10259_v41 = vld [vmem:[%s11966_s12 + $0x124] ss:$16 sps:$4 sm:$0xff]   ;;  %v10261_v42 = vld [vmem:[%s11966_s12 + $0x12c] ss:$16 sps:$4 sm:$0xff]  }
  0x25   : > { %v1299_v39 = vunpack.c.l.s4 %v11900_v38  ;;  %v10263_v43 = vld [vmem:[%s11966_s12 + $0x120] ss:$16 sps:$4 sm:$0xff]   ;;  %v12008_v45 = vshrl.u32 %v1301_v40, 7  ;;  %v10264_v46 = vld [vmem:[%s11966_s12 + $0x128] ss:$16 sps:$4 sm:$0xff]   ;;  %p9928_p6 = scmp.ne.s32.totalorder %s11952_s27, 3 }
  0x26   : > { %6490 = vmatpush1.bf16.msra.mxu0 %v10227_v16  ;;  %7146 = vmatpush1.bf16.msra.mxu1 %v10228_v17  ;;  %v10265_v47 = vld [vmem:[%s11966_s12 + $0x144] ss:$16 sps:$4 sm:$0xff]   ;;  %v10267_v48 = vld [vmem:[%s11966_s12 + $0x14c] ss:$16 sps:$4 sm:$0xff]   ;;  %v10269_v49 = vld [vmem:[%s11966_s12 + $0x140] ss:$16 sps:$4 sm:$0xff]  }
  0x27   : > { %6491 = vmatprep.subr.bf16.mxu0 %v10229_v18  ;;  %7147 = vmatprep.subr.bf16.mxu1 %v10231_v19  ;;  %v1300_v44 = vunpack.c.0.s8 %v1299_v39  ;;  %v10270_v50 = vld [vmem:[%s11966_s12 + $0x148] ss:$16 sps:$4 sm:$0xff]   ;;  %v10271_v52 = vld [vmem:[%s11966_s12 + $0x164] ss:$16 sps:$4 sm:$0xff]   ;;  %v10273_v53 = vld [vmem:[%s11966_s12 + $0x16c] ss:$16 sps:$4 sm:$0xff]  }
  0x28   : > { %v12021_v54 = vld [vmem:[%s11961_s8] sm:$0xff]  ;;  %v10276_v57 = vld [vmem:[%s11966_s12 + $0x168] ss:$16 sps:$4 sm:$0xff]   ;;  %v10279_v59 = vld [vmem:[%s11966_s12 + $0x18c] ss:$16 sps:$4 sm:$0xff]   ;;  %vm8872_vm0 = vcmask (!%p9928_p6), 1041408  }
  0x29   : > { %v12016_v51 = vsub.s32 %v1300_v44, %v12008_v45  ;;  %v10275_v55 = vld [vmem:[%s11966_s12 + $0x160] ss:$16 sps:$4 sm:$0xff]   ;;  %v10277_v58 = vld [vmem:[%s11966_s12 + $0x184] ss:$16 sps:$4 sm:$0xff]   ;;  %v10282_v63 = vld [vmem:[%s11966_s12 + $0x188] ss:$16 sps:$4 sm:$0xff]  }
  0x2a   : > { %6492 = vmatpush1.bf16.msra.mxu0 %v10233_v20  ;;  %7148 = vmatpush1.bf16.msra.mxu1 %v10234_v21  ;;  %v10281_v61 = vld [vmem:[%s11966_s12 + $0x180] ss:$16 sps:$4 sm:$0xff]   ;;  %v10283_v0 = vld [vmem:[%s11966_s12 + $0x1a4] ss:$16 sps:$4 sm:$0xff]   ;;  %v10285_v1 = vld [vmem:[%s11966_s12 + $0x1ac] ss:$16 sps:$4 sm:$0xff]  }
  0x2b   : > { %6493 = vmatprep.subr.bf16.mxu0 %v10235_v22  ;;  %7149 = vmatprep.subr.bf16.mxu1 %v10237_v23  ;;  %v1304_v56 = vrot.slane %v12021_v54, %v12016_v51  ;;  %v10287_v2 = vld [vmem:[%s11966_s12 + $0x1a0] ss:$16 sps:$4 sm:$0xff]   ;;  %v10288_v3 = vld [vmem:[%s11966_s12 + $0x1a8] ss:$16 sps:$4 sm:$0xff]   ;;  %v10289_v4 = vld [vmem:[%s11966_s12 + $0x1c4] ss:$16 sps:$4 sm:$0xff]  }
  0x2c   : > { %v10291_v5 = vld [vmem:[%s11966_s12 + $0x1cc] ss:$16 sps:$4 sm:$0xff]   ;;  %v10293_v6 = vld [vmem:[%s11966_s12 + $0x1c0] ss:$16 sps:$4 sm:$0xff]   ;;  %v10294_v7 = vld [vmem:[%s11966_s12 + $0x1c8] ss:$16 sps:$4 sm:$0xff]  }
  0x2d   : > { %v1312_v60 = vcombine.high %v1304_v56, %v1304_v56  ;;  %v10295_v8 = vld [vmem:[%s11966_s12 + $0x1e4] ss:$16 sps:$4 sm:$0xff]   ;;  %v10297_v9 = vld [vmem:[%s11966_s12 + $0x1ec] ss:$16 sps:$4 sm:$0xff]   ;;  %v10299_v10 = vld [vmem:[%s11966_s12 + $0x1e0] ss:$16 sps:$4 sm:$0xff]   ;;  %v12048_v15 = vrot.slane %v1304_v56, %v12016_v51 }
  0x2e   : > { %6494 = vmatpush1.bf16.msra.mxu0 %v10239_v24  ;;  %7150 = vmatpush1.bf16.msra.mxu1 %v10240_v25  ;;  %v10300_v11 = vld [vmem:[%s11966_s12 + $0x1e8] ss:$16 sps:$4 sm:$0xff]   ;;  %v10303_v12 = vld [vmem:[%s11966_s12 + $0x204] ss:$16 sps:$4 sm:$0xff]   ;;  %v10306_v13 = vld [vmem:[%s11966_s12 + $0x20c] ss:$16 sps:$4 sm:$0xff]  }
  0x2f   : > { %6495 = vmatprep.subr.bf16.mxu0 %v10241_v26  ;;  %7151 = vmatprep.subr.bf16.mxu1 %v10243_v27  ;;  %v1334_v62 = vrot.slane %v1312_v60, %v12016_v51  ;;  %v10301_v14 = vld [vmem:[%s11966_s12 + $0x200] ss:$16 sps:$4 sm:$0xff]   ;;  %v10304_v16 = vld [vmem:[%s11966_s12 + $0x208] ss:$16 sps:$4 sm:$0xff]   ;;  %v10309_v17 = vld [vmem:[%s11966_s12 + $0x224] ss:$16 sps:$4 sm:$0xff]  }
  0x30   : > { %v10312_v18 = vld [vmem:[%s11966_s12 + $0x22c] ss:$16 sps:$4 sm:$0xff]   ;;  %v10307_v20 = vld [vmem:[%s11966_s12 + $0x220] ss:$16 sps:$4 sm:$0xff]   ;;  %v10310_v21 = vld [vmem:[%s11966_s12 + $0x228] ss:$16 sps:$4 sm:$0xff]  }
  0x31   : > { %6515 = vmatprep.mubr.bf16.mxu0 %v1334_v62  ;;  %7171 = vmatprep.mubr.bf16.mxu1 %v1334_v62  ;;  %v1344_v19 = vcombine.high %v1334_v62, %v1334_v62  ;;  %v10315_v22 = vld [vmem:[%s11966_s12 + $0x244] ss:$16 sps:$4 sm:$0xff]   ;;  %v10318_v23 = vld [vmem:[%s11966_s12 + $0x24c] ss:$16 sps:$4 sm:$0xff]   ;;  %v10313_v24 = vld [vmem:[%s11966_s12 + $0x240] ss:$16 sps:$4 sm:$0xff]  }
  0x32   : > { %6496 = vmatpush1.bf16.msra.mxu0 %v10245_v28  ;;  %7152 = vmatpush1.bf16.msra.mxu1 %v10246_v29  ;;  %v10316_v25 = vld [vmem:[%s11966_s12 + $0x248] ss:$16 sps:$4 sm:$0xff]   ;;  %v10321_v26 = vld [vmem:[%s11966_s12 + $0x264] ss:$16 sps:$4 sm:$0xff]   ;;  %v10324_v27 = vld [vmem:[%s11966_s12 + $0x26c] ss:$16 sps:$4 sm:$0xff]  }
  0x33   : > { %6497 = vmatprep.subr.bf16.mxu0 %v10247_v30  ;;  %7153 = vmatprep.subr.bf16.mxu1 %v10249_v31  ;;  %v10319_v28 = vld [vmem:[%s11966_s12 + $0x260] ss:$16 sps:$4 sm:$0xff]   ;;  %v10322_v29 = vld [vmem:[%s11966_s12 + $0x268] ss:$16 sps:$4 sm:$0xff]   ;;  %v10327_v30 = vld [vmem:[%s11966_s12 + $0x284] ss:$16 sps:$4 sm:$0xff]  }
  0x34   : > { %v10330_v31 = vld [vmem:[%s11966_s12 + $0x28c] ss:$16 sps:$4 sm:$0xff]   ;;  %v10339_v38 = vld [vmem:[%s11966_s12 + $0x2c4] ss:$16 sps:$4 sm:$0xff]   ;;  %v10337_v40 = vld [vmem:[%s11966_s12 + $0x2c0] ss:$16 sps:$4 sm:$0xff]  }
  0x35   : > { %v10342_v39 = vld [vmem:[%s11966_s12 + $0x2cc] ss:$16 sps:$4 sm:$0xff]   ;;  %v10343_v44 = vld [vmem:[%s11966_s12 + $0x2e0] ss:$16 sps:$4 sm:$0xff]   ;;  %v10358_v56 = vld [vmem:[%s11966_s12 + $0x328] ss:$16 sps:$4 sm:$0xff]  }
  0x36   : > { %6498 = vmatpush1.bf16.msra.mxu0 %v10251_v32  ;;  %7154 = vmatpush1.bf16.msra.mxu1 %v10252_v33  ;;  %v10325_v32 = vld [vmem:[%s11966_s12 + $0x280] ss:$16 sps:$4 sm:$0xff]   ;;  %v10328_v33 = vld [vmem:[%s11966_s12 + $0x288] ss:$16 sps:$4 sm:$0xff]   ;;  %v10372_v62 = vld [vmem:[%s11966_s12 + $0x36c] ss:$16 sps:$4 sm:$0xff]  }
  0x37   : > { %6499 = vmatprep.subr.bf16.mxu0 %v10253_v34  ;;  %7155 = vmatprep.subr.bf16.mxu1 %v10255_v35  ;;  %v10333_v34 = vld [vmem:[%s11966_s12 + $0x2a4] ss:$16 sps:$4 sm:$0xff]   ;;  %v10336_v35 = vld [vmem:[%s11966_s12 + $0x2ac] ss:$16 sps:$4 sm:$0xff]   ;;  %v10364_v60 = vld [vmem:[%s11966_s12 + $0x348] ss:$16 sps:$4 sm:$0xff]  }
  0x38   : > { %vm8890_vm1 = vcmask (!%p9928_p6), 1024  }
  0x3a   : > { %6500 = vmatpush1.bf16.msra.mxu0 %v10257_v36  ;;  %7156 = vmatpush1.bf16.msra.mxu1 %v10258_v37  ;;  %v10331_v36 = vld [vmem:[%s11966_s12 + $0x2a0] ss:$16 sps:$4 sm:$0xff]   ;;  %v10334_v37 = vld [vmem:[%s11966_s12 + $0x2a8] ss:$16 sps:$4 sm:$0xff]  }
  0x3b   : > { %6501 = vmatprep.subr.bf16.mxu0 %v10259_v41  ;;  %7157 = vmatprep.subr.bf16.mxu1 %v10261_v42  ;;  %v10340_v41 = vld [vmem:[%s11966_s12 + $0x2c8] ss:$16 sps:$4 sm:$0xff]   ;;  %v10345_v42 = vld [vmem:[%s11966_s12 + $0x2e4] ss:$16 sps:$4 sm:$0xff]  }
  0x3e   : > { %6502 = vmatpush1.bf16.msra.mxu0 %v10263_v43  ;;  %7158 = vmatpush1.bf16.msra.mxu1 %v10264_v46  ;;  %v10348_v43 = vld [vmem:[%s11966_s12 + $0x2ec] ss:$16 sps:$4 sm:$0xff]   ;;  %v10346_v46 = vld [vmem:[%s11966_s12 + $0x2e8] ss:$16 sps:$4 sm:$0xff]  }
  0x3f   : > { %6503 = vmatprep.subr.bf16.mxu0 %v10265_v47  ;;  %7159 = vmatprep.subr.bf16.mxu1 %v10267_v48  ;;  %v10351_v47 = vld [vmem:[%s11966_s12 + $0x304] ss:$16 sps:$4 sm:$0xff]   ;;  %v10354_v48 = vld [vmem:[%s11966_s12 + $0x30c] ss:$16 sps:$4 sm:$0xff]  }
  0x42   : > { %6504 = vmatpush1.bf16.msra.mxu0 %v10269_v49  ;;  %7160 = vmatpush1.bf16.msra.mxu1 %v10270_v50  ;;  %v10349_v49 = vld [vmem:[%s11966_s12 + $0x300] ss:$16 sps:$4 sm:$0xff]   ;;  %v10352_v50 = vld [vmem:[%s11966_s12 + $0x308] ss:$16 sps:$4 sm:$0xff]  }
  0x43   : > { %6505 = vmatprep.subr.bf16.mxu0 %v10271_v52  ;;  %7161 = vmatprep.subr.bf16.mxu1 %v10273_v53  ;;  %v10357_v52 = vld [vmem:[%s11966_s12 + $0x324] ss:$16 sps:$4 sm:$0xff]   ;;  %v10360_v53 = vld [vmem:[%s11966_s12 + $0x32c] ss:$16 sps:$4 sm:$0xff]  }
  0x46   : > { %6506 = vmatpush1.bf16.msra.mxu0 %v10275_v55  ;;  %7162 = vmatpush1.bf16.msra.mxu1 %v10276_v57  ;;  %v10355_v55 = vld [vmem:[%s11966_s12 + $0x320] ss:$16 sps:$4 sm:$0xff]   ;;  %v10363_v57 = vld [vmem:[%s11966_s12 + $0x344] ss:$16 sps:$4 sm:$0xff]  }
  0x47   : > { %6507 = vmatprep.subr.bf16.mxu0 %v10277_v58  ;;  %7163 = vmatprep.subr.bf16.mxu1 %v10279_v59  ;;  %v10366_v58 = vld [vmem:[%s11966_s12 + $0x34c] ss:$16 sps:$4 sm:$0xff]   ;;  %v10361_v59 = vld [vmem:[%s11966_s12 + $0x340] ss:$16 sps:$4 sm:$0xff]  }
  0x4a   : > { %6508 = vmatpush1.bf16.msra.mxu0 %v10281_v61  ;;  %7164 = vmatpush1.bf16.msra.mxu1 %v10282_v63  ;;  %v10369_v61 = vld [vmem:[%s11966_s12 + $0x364] ss:$16 sps:$4 sm:$0xff]   ;;  %v10367_v63 = vld [vmem:[%s11966_s12 + $0x360] ss:$16 sps:$4 sm:$0xff]  }
  0x4b   : > { %6509 = vmatprep.subr.bf16.mxu0 %v10283_v0  ;;  %7165 = vmatprep.subr.bf16.mxu1 %v10285_v1  ;;  %v10370_v0 = vld [vmem:[%s11966_s12 + $0x368] ss:$16 sps:$4 sm:$0xff]   ;;  %v10375_v1 = vld [vmem:[%s11966_s12 + $0x384] ss:$16 sps:$4 sm:$0xff]  }
  0x4e   : > { %6510 = vmatpush1.bf16.msra.mxu0 %v10287_v2  ;;  %7166 = vmatpush1.bf16.msra.mxu1 %v10288_v3  ;;  %v10378_v2 = vld [vmem:[%s11966_s12 + $0x38c] ss:$16 sps:$4 sm:$0xff]   ;;  %v10373_v3 = vld [vmem:[%s11966_s12 + $0x380] ss:$16 sps:$4 sm:$0xff]  }
  0x4f   : > { %6511 = vmatprep.subr.bf16.mxu0 %v10289_v4  ;;  %7167 = vmatprep.subr.bf16.mxu1 %v10291_v5  ;;  %v10376_v4 = vld [vmem:[%s11966_s12 + $0x388] ss:$16 sps:$4 sm:$0xff]   ;;  %v10381_v5 = vld [vmem:[%s11966_s12 + $0x3a4] ss:$16 sps:$4 sm:$0xff]  }
  0x52   : > { %6512 = vmatpush1.bf16.msra.mxu0 %v10293_v6  ;;  %7168 = vmatpush1.bf16.msra.mxu1 %v10294_v7  ;;  %v10384_v6 = vld [vmem:[%s11966_s12 + $0x3ac] ss:$16 sps:$4 sm:$0xff]   ;;  %v10379_v7 = vld [vmem:[%s11966_s12 + $0x3a0] ss:$16 sps:$4 sm:$0xff]  }
  0x53   : > { %6513 = vmatprep.subr.bf16.mxu0 %v10295_v8  ;;  %7169 = vmatprep.subr.bf16.mxu1 %v10297_v9  ;;  %v10382_v8 = vld [vmem:[%s11966_s12 + $0x3a8] ss:$16 sps:$4 sm:$0xff]   ;;  %v10387_v9 = vld [vmem:[%s11966_s12 + $0x3c4] ss:$16 sps:$4 sm:$0xff]  }
  0x56   : > { %6514 = vmatpush1.bf16.msra.mxu0 %v10299_v10  ;;  %7170 = vmatpush1.bf16.msra.mxu1 %v10300_v11  ;;  %v10390_v10 = vld [vmem:[%s11966_s12 + $0x3cc] ss:$16 sps:$4 sm:$0xff]   ;;  %v1297_v11 = vcombine.high %v12021_v54, %v12021_v54  ;;  %v10394_v54 = vld [vmem:[%s11966_s12 + $0x3e8] ss:$16 sps:$4 sm:$0xff]  }
  0x57   : > { %6524 = vmatprep.subr.bf16.mxu0 %v10303_v12  ;;  %7180 = vmatprep.subr.bf16.mxu1 %v10306_v13  ;;  %v10385_v12 = vld [vmem:[%s11966_s12 + $0x3c0] ss:$16 sps:$4 sm:$0xff]   ;;  %v10388_v13 = vld [vmem:[%s11966_s12 + $0x3c8] ss:$16 sps:$4 sm:$0xff]  }
  0x59   : > { %6516 = vmatmul.mubr.bf16.vlgmr.msra.gmra.mrb[0].mxu0 %v12048_v15  ;;  %7172 = vmatmul.mubr.bf16.vlgmr.msra.gmra.mrb[0].mxu1 %v12048_v15 }
  0x5a   : > { %6525 = vmatpush1.bf16.msra.mxu0 %v10301_v14  ;;  %7181 = vmatpush1.bf16.msra.mxu1 %v10304_v16  ;;  %v10393_v14 = vld [vmem:[%s11966_s12 + $0x3e4] ss:$16 sps:$4 sm:$0xff]   ;;  %v10396_v16 = vld [vmem:[%s11966_s12 + $0x3ec] ss:$16 sps:$4 sm:$0xff]  }
  0x5b   : > { %6526 = vmatprep.subr.bf16.mxu0 %v10309_v17  ;;  %7182 = vmatprep.subr.bf16.mxu1 %v10312_v18  ;;  %v12114_v17 = vrot.slane %v1297_v11, %v12016_v51  ;;  %v10391_v18 = vld [vmem:[%s11966_s12 + $0x3e0] ss:$16 sps:$4 sm:$0xff]   ;;  %v10472_v11 = vld [vmem:[%s11966_s12 + $0x588] ss:$16 sps:$4 sm:$0xff]  }
  0x5c   : > { %6556 = vmatprep.mubr.bf16.mxu0 %v1344_v19  ;;  %7212 = vmatprep.mubr.bf16.mxu1 %v1344_v19  ;;  %v10399_v19 = vld [vmem:[%s11966_s12 + $0x404] ss:$16 sps:$4 sm:$0xff]  }
  0x5e   : > { %6527 = vmatpush1.bf16.msra.mxu0 %v10307_v20  ;;  %7183 = vmatpush1.bf16.msra.mxu1 %v10310_v21  ;;  %v10402_v20 = vld [vmem:[%s11966_s12 + $0x40c] ss:$16 sps:$4 sm:$0xff]   ;;  %v1313_v21 = vcombine.high %v12114_v17, %v12114_v17 }
  0x5f   : > { %6528 = vmatprep.subr.bf16.mxu0 %v10315_v22  ;;  %7184 = vmatprep.subr.bf16.mxu1 %v10318_v23  ;;  %v10397_v22 = vld [vmem:[%s11966_s12 + $0x400] ss:$16 sps:$4 sm:$0xff]   ;;  %v1342_v23 = vcombine.high %v12048_v15, %v12048_v15  ;;  %v10406_v15 = vld [vmem:[%s11966_s12 + $0x428] ss:$16 sps:$4 sm:$0xff]  }
  0x62   : > { %6529 = vmatpush1.bf16.msra.mxu0 %v10313_v24  ;;  %7185 = vmatpush1.bf16.msra.mxu1 %v10316_v25  ;;  %v10400_v24 = vld [vmem:[%s11966_s12 + $0x408] ss:$16 sps:$4 sm:$0xff]   ;;  %v10405_v25 = vld [vmem:[%s11966_s12 + $0x424] ss:$16 sps:$4 sm:$0xff]  }
  0x63   : > { %6530 = vmatprep.subr.bf16.mxu0 %v10321_v26  ;;  %7186 = vmatprep.subr.bf16.mxu1 %v10324_v27  ;;  %v10408_v26 = vld [vmem:[%s11966_s12 + $0x42c] ss:$16 sps:$4 sm:$0xff]   ;;  %v12129_v27 = vrot.slane %v1313_v21, %v12016_v51  ;;  %v10489_v21 = vld [vmem:[%s11966_s12 + $0x5e4] ss:$16 sps:$4 sm:$0xff]  }
  0x66   : > { %6531 = vmatpush1.bf16.msra.mxu0 %v10319_v28  ;;  %7187 = vmatpush1.bf16.msra.mxu1 %v10322_v29  ;;  %v10403_v28 = vld [vmem:[%s11966_s12 + $0x420] ss:$16 sps:$4 sm:$0xff]   ;;  %v10411_v29 = vld [vmem:[%s11966_s12 + $0x444] ss:$16 sps:$4 sm:$0xff]  }
  0x67   : > { %6532 = vmatprep.subr.bf16.mxu0 %v10327_v30  ;;  %7188 = vmatprep.subr.bf16.mxu1 %v10330_v31  ;;  %v10414_v30 = vld [vmem:[%s11966_s12 + $0x44c] ss:$16 sps:$4 sm:$0xff]   ;;  %v10409_v31 = vld [vmem:[%s11966_s12 + $0x440] ss:$16 sps:$4 sm:$0xff]  }
  0x6a   : > { %6533 = vmatpush1.bf16.msra.mxu0 %v10325_v32  ;;  %7189 = vmatpush1.bf16.msra.mxu1 %v10328_v33  ;;  %v10412_v32 = vld [vmem:[%s11966_s12 + $0x448] ss:$16 sps:$4 sm:$0xff]   ;;  %v10417_v33 = vld [vmem:[%s11966_s12 + $0x464] ss:$16 sps:$4 sm:$0xff]  }
  0x6b   : > { %6534 = vmatprep.subr.bf16.mxu0 %v10333_v34  ;;  %7190 = vmatprep.subr.bf16.mxu1 %v10336_v35  ;;  %v10420_v34 = vld [vmem:[%s11966_s12 + $0x46c] ss:$16 sps:$4 sm:$0xff]   ;;  %v10415_v35 = vld [vmem:[%s11966_s12 + $0x460] ss:$16 sps:$4 sm:$0xff]  }
  0x6e   : > { %6535 = vmatpush1.bf16.msra.mxu0 %v10331_v36  ;;  %7191 = vmatpush1.bf16.msra.mxu1 %v10334_v37  ;;  %v10418_v36 = vld [vmem:[%s11966_s12 + $0x468] ss:$16 sps:$4 sm:$0xff]   ;;  %v10423_v37 = vld [vmem:[%s11966_s12 + $0x484] ss:$16 sps:$4 sm:$0xff]  }
  0x6f   : > { %6536 = vmatprep.subr.bf16.mxu0 %v10339_v38  ;;  %7192 = vmatprep.subr.bf16.mxu1 %v10342_v39  ;;  %v10426_v38 = vld [vmem:[%s11966_s12 + $0x48c] ss:$16 sps:$4 sm:$0xff]   ;;  %v10421_v39 = vld [vmem:[%s11966_s12 + $0x480] ss:$16 sps:$4 sm:$0xff]  }
  0x72   : > { %6537 = vmatpush1.bf16.msra.mxu0 %v10337_v40  ;;  %7193 = vmatpush1.bf16.msra.mxu1 %v10340_v41  ;;  %v10424_v40 = vld [vmem:[%s11966_s12 + $0x488] ss:$16 sps:$4 sm:$0xff]   ;;  %v10429_v41 = vld [vmem:[%s11966_s12 + $0x4a4] ss:$16 sps:$4 sm:$0xff]  }
  0x73   : > { %6538 = vmatprep.subr.bf16.mxu0 %v10345_v42  ;;  %7194 = vmatprep.subr.bf16.mxu1 %v10348_v43  ;;  %v10432_v42 = vld [vmem:[%s11966_s12 + $0x4ac] ss:$16 sps:$4 sm:$0xff]   ;;  %v10427_v43 = vld [vmem:[%s11966_s12 + $0x4a0] ss:$16 sps:$4 sm:$0xff]  }
  0x76   : > { %6539 = vmatpush1.bf16.msra.mxu0 %v10343_v44  ;;  %7195 = vmatpush1.bf16.msra.mxu1 %v10346_v46  ;;  %v10430_v44 = vld [vmem:[%s11966_s12 + $0x4a8] ss:$16 sps:$4 sm:$0xff]   ;;  %v10435_v46 = vld [vmem:[%s11966_s12 + $0x4c4] ss:$16 sps:$4 sm:$0xff]  }
  0x77   : > { %6540 = vmatprep.subr.bf16.mxu0 %v10351_v47  ;;  %7196 = vmatprep.subr.bf16.mxu1 %v10354_v48  ;;  %v10438_v47 = vld [vmem:[%s11966_s12 + $0x4cc] ss:$16 sps:$4 sm:$0xff]   ;;  %v10433_v48 = vld [vmem:[%s11966_s12 + $0x4c0] ss:$16 sps:$4 sm:$0xff]  }
  0x7a   : > { %6541 = vmatpush1.bf16.msra.mxu0 %v10349_v49  ;;  %7197 = vmatpush1.bf16.msra.mxu1 %v10352_v50  ;;  %v10436_v49 = vld [vmem:[%s11966_s12 + $0x4c8] ss:$16 sps:$4 sm:$0xff]   ;;  %v10441_v50 = vld [vmem:[%s11966_s12 + $0x4e4] ss:$16 sps:$4 sm:$0xff]  }
  0x7b   : > { %6542 = vmatprep.subr.bf16.mxu0 %v10357_v52  ;;  %7198 = vmatprep.subr.bf16.mxu1 %v10360_v53  ;;  %v10444_v52 = vld [vmem:[%s11966_s12 + $0x4ec] ss:$16 sps:$4 sm:$0xff]   ;;  %v10439_v53 = vld [vmem:[%s11966_s12 + $0x4e0] ss:$16 sps:$4 sm:$0xff]  }
  0x7e   : > { %6543 = vmatpush1.bf16.msra.mxu0 %v10355_v55  ;;  %7199 = vmatpush1.bf16.msra.mxu1 %v10358_v56  ;;  %v10442_v55 = vld [vmem:[%s11966_s12 + $0x4e8] ss:$16 sps:$4 sm:$0xff]   ;;  %v10447_v56 = vld [vmem:[%s11966_s12 + $0x504] ss:$16 sps:$4 sm:$0xff]  }
  0x7f   : > { %6544 = vmatprep.subr.bf16.mxu0 %v10363_v57  ;;  %7200 = vmatprep.subr.bf16.mxu1 %v10366_v58  ;;  %v10450_v57 = vld [vmem:[%s11966_s12 + $0x50c] ss:$16 sps:$4 sm:$0xff]   ;;  %v10445_v58 = vld [vmem:[%s11966_s12 + $0x500] ss:$16 sps:$4 sm:$0xff]  }
  0x82   : > { %6545 = vmatpush1.bf16.msra.mxu0 %v10361_v59  ;;  %7201 = vmatpush1.bf16.msra.mxu1 %v10364_v60  ;;  %v10448_v59 = vld [vmem:[%s11966_s12 + $0x508] ss:$16 sps:$4 sm:$0xff]   ;;  %v10453_v60 = vld [vmem:[%s11966_s12 + $0x524] ss:$16 sps:$4 sm:$0xff]  }
  0x83   : > { %6546 = vmatprep.subr.bf16.mxu0 %v10369_v61  ;;  %7202 = vmatprep.subr.bf16.mxu1 %v10372_v62  ;;  %v10456_v61 = vld [vmem:[%s11966_s12 + $0x52c] ss:$16 sps:$4 sm:$0xff]   ;;  %v10451_v62 = vld [vmem:[%s11966_s12 + $0x520] ss:$16 sps:$4 sm:$0xff]  }
  0x86   : > { %6547 = vmatpush1.bf16.msra.mxu0 %v10367_v63  ;;  %7203 = vmatpush1.bf16.msra.mxu1 %v10370_v0  ;;  %v10454_v63 = vld [vmem:[%s11966_s12 + $0x528] ss:$16 sps:$4 sm:$0xff]   ;;  %v10459_v0 = vld [vmem:[%s11966_s12 + $0x544] ss:$16 sps:$4 sm:$0xff]  }
  0x87   : > { %6548 = vmatprep.subr.bf16.mxu0 %v10375_v1  ;;  %7204 = vmatprep.subr.bf16.mxu1 %v10378_v2  ;;  %v10462_v1 = vld [vmem:[%s11966_s12 + $0x54c] ss:$16 sps:$4 sm:$0xff]   ;;  %v10457_v2 = vld [vmem:[%s11966_s12 + $0x540] ss:$16 sps:$4 sm:$0xff]  }
  0x8a   : > { %6549 = vmatpush1.bf16.msra.mxu0 %v10373_v3  ;;  %7205 = vmatpush1.bf16.msra.mxu1 %v10376_v4  ;;  %v10460_v3 = vld [vmem:[%s11966_s12 + $0x548] ss:$16 sps:$4 sm:$0xff]   ;;  %v10465_v4 = vld [vmem:[%s11966_s12 + $0x564] ss:$16 sps:$4 sm:$0xff]  }
  0x8b   : > { %6550 = vmatprep.subr.bf16.mxu0 %v10381_v5  ;;  %7206 = vmatprep.subr.bf16.mxu1 %v10384_v6  ;;  %v10468_v5 = vld [vmem:[%s11966_s12 + $0x56c] ss:$16 sps:$4 sm:$0xff]   ;;  %v10463_v6 = vld [vmem:[%s11966_s12 + $0x560] ss:$16 sps:$4 sm:$0xff]  }
  0x8e   : > { %6551 = vmatpush1.bf16.msra.mxu0 %v10379_v7  ;;  %7207 = vmatpush1.bf16.msra.mxu1 %v10382_v8  ;;  %v10466_v7 = vld [vmem:[%s11966_s12 + $0x568] ss:$16 sps:$4 sm:$0xff]   ;;  %v10471_v8 = vld [vmem:[%s11966_s12 + $0x584] ss:$16 sps:$4 sm:$0xff]  }
  0x8f   : > { %6552 = vmatprep.subr.bf16.mxu0 %v10387_v9  ;;  %7208 = vmatprep.subr.bf16.mxu1 %v10390_v10  ;;  %v10474_v9 = vld [vmem:[%s11966_s12 + $0x58c] ss:$16 sps:$4 sm:$0xff]   ;;  %v10469_v10 = vld [vmem:[%s11966_s12 + $0x580] ss:$16 sps:$4 sm:$0xff]  }
  0x92   : > { %6553 = vmatpush1.bf16.msra.mxu0 %v10385_v12  ;;  %7209 = vmatpush1.bf16.msra.mxu1 %v10388_v13  ;;  %v10477_v12 = vld [vmem:[%s11966_s12 + $0x5a4] ss:$16 sps:$4 sm:$0xff]   ;;  %v10480_v13 = vld [vmem:[%s11966_s12 + $0x5ac] ss:$16 sps:$4 sm:$0xff]  }
  0x93   : > { %6554 = vmatprep.subr.bf16.mxu0 %v10393_v14  ;;  %7210 = vmatprep.subr.bf16.mxu1 %v10396_v16  ;;  %v10475_v14 = vld [vmem:[%s11966_s12 + $0x5a0] ss:$16 sps:$4 sm:$0xff]   ;;  %v10478_v16 = vld [vmem:[%s11966_s12 + $0x5a8] ss:$16 sps:$4 sm:$0xff]  }
  0x96   : > { %6555 = vmatpush1.bf16.msra.mxu0 %v10391_v18  ;;  %7211 = vmatpush1.bf16.msra.mxu1 %v10394_v54  ;;  %v10483_v18 = vld [vmem:[%s11966_s12 + $0x5c4] ss:$16 sps:$4 sm:$0xff]   ;;  %v10486_v54 = vld [vmem:[%s11966_s12 + $0x5cc] ss:$16 sps:$4 sm:$0xff]  }
  0x97   : > { %6565 = vmatprep.subr.bf16.mxu0 %v10399_v19  ;;  %7221 = vmatprep.subr.bf16.mxu1 %v10402_v20  ;;  %v10481_v19 = vld [vmem:[%s11966_s12 + $0x5c0] ss:$16 sps:$4 sm:$0xff]   ;;  %v10484_v20 = vld [vmem:[%s11966_s12 + $0x5c8] ss:$16 sps:$4 sm:$0xff]  }
  0x99   : > { %6557 = vmatmul.mubr.bf16.vlgmr.msra.gmra.mrb[0].mxu0 %v1342_v23  ;;  %7213 = vmatmul.mubr.bf16.vlgmr.msra.gmra.mrb[0].mxu1 %v1342_v23  ;;  %v10487_v23 = vld [vmem:[%s11966_s12 + $0x5e0] ss:$16 sps:$4 sm:$0xff]  }
  0x9a   : > { %6566 = vmatpush1.bf16.msra.mxu0 %v10397_v22  ;;  %7222 = vmatpush1.bf16.msra.mxu1 %v10400_v24  ;;  %v10492_v22 = vld [vmem:[%s11966_s12 + $0x5ec] ss:$16 sps:$4 sm:$0xff]   ;;  %v10490_v24 = vld [vmem:[%s11966_s12 + $0x5e8] ss:$16 sps:$4 sm:$0xff]  }
  0x9b   : > { %6567 = vmatprep.subr.bf16.mxu0 %v10405_v25  ;;  %7223 = vmatprep.subr.bf16.mxu1 %v10408_v26  ;;  %v10496_v25 = vld [vmem:[%s11966_s12 + $0x604] ss:$16 sps:$4 sm:$0xff]   ;;  %v10499_v26 = vld [vmem:[%s11966_s12 + $0x60c] ss:$16 sps:$4 sm:$0xff]  }
  0x9c   : > { %6597 = vmatprep.mubr.bf16.mxu0 %v12129_v27  ;;  %7253 = vmatprep.mubr.bf16.mxu1 %v12129_v27 }
  0x9e   : > { %6568 = vmatpush1.bf16.msra.mxu0 %v10403_v28  ;;  %7224 = vmatpush1.bf16.msra.mxu1 %v10406_v15  ;;  %v10494_v28 = vld [vmem:[%s11966_s12 + $0x600] ss:$16 sps:$4 sm:$0xff]   ;;  %v12196_v15 = vrot.slane %v12114_v17, %v12016_v51 }
  0x9f   : > { %6569 = vmatprep.subr.bf16.mxu0 %v10411_v29  ;;  %7225 = vmatprep.subr.bf16.mxu1 %v10414_v30  ;;  %v10497_v29 = vld [vmem:[%s11966_s12 + $0x608] ss:$16 sps:$4 sm:$0xff]   ;;  %v10502_v30 = vld [vmem:[%s11966_s12 + $0x624] ss:$16 sps:$4 sm:$0xff]   ;;  %v10500_v17 = vld [vmem:[%s11966_s12 + $0x620] ss:$16 sps:$4 sm:$0xff]  }
  0xa2   : > { %6570 = vmatpush1.bf16.msra.mxu0 %v10409_v31  ;;  %7226 = vmatpush1.bf16.msra.mxu1 %v10412_v32  ;;  %v10505_v31 = vld [vmem:[%s11966_s12 + $0x62c] ss:$16 sps:$4 sm:$0xff]   ;;  %v1345_v32 = vcombine.high %v12129_v27, %v12129_v27  ;;  %v10506_v27 = vld [vmem:[%s11966_s12 + $0x640] ss:$16 sps:$4 sm:$0xff]  }
  0xa3   : > { %6571 = vmatprep.subr.bf16.mxu0 %v10417_v33  ;;  %7227 = vmatprep.subr.bf16.mxu1 %v10420_v34  ;;  %v10503_v33 = vld [vmem:[%s11966_s12 + $0x628] ss:$16 sps:$4 sm:$0xff]   ;;  %v10508_v34 = vld [vmem:[%s11966_s12 + $0x644] ss:$16 sps:$4 sm:$0xff]  }
  0xa6   : > { %6572 = vmatpush1.bf16.msra.mxu0 %v10415_v35  ;;  %7228 = vmatpush1.bf16.msra.mxu1 %v10418_v36  ;;  %v10511_v35 = vld [vmem:[%s11966_s12 + $0x64c] ss:$16 sps:$4 sm:$0xff]   ;;  %v10509_v36 = vld [vmem:[%s11966_s12 + $0x648] ss:$16 sps:$4 sm:$0xff]  }
  0xa7   : > { %6573 = vmatprep.subr.bf16.mxu0 %v10423_v37  ;;  %7229 = vmatprep.subr.bf16.mxu1 %v10426_v38  ;;  %v10514_v37 = vld [vmem:[%s11966_s12 + $0x664] ss:$16 sps:$4 sm:$0xff]   ;;  %v10517_v38 = vld [vmem:[%s11966_s12 + $0x66c] ss:$16 sps:$4 sm:$0xff]  }
  0xaa   : > { %6574 = vmatpush1.bf16.msra.mxu0 %v10421_v39  ;;  %7230 = vmatpush1.bf16.msra.mxu1 %v10424_v40  ;;  %v10512_v39 = vld [vmem:[%s11966_s12 + $0x660] ss:$16 sps:$4 sm:$0xff]   ;;  %v10515_v40 = vld [vmem:[%s11966_s12 + $0x668] ss:$16 sps:$4 sm:$0xff]  }
  0xab   : > { %6575 = vmatprep.subr.bf16.mxu0 %v10429_v41  ;;  %7231 = vmatprep.subr.bf16.mxu1 %v10432_v42  ;;  %v10520_v41 = vld [vmem:[%s11966_s12 + $0x684] ss:$16 sps:$4 sm:$0xff]   ;;  %v10523_v42 = vld [vmem:[%s11966_s12 + $0x68c] ss:$16 sps:$4 sm:$0xff]  }
  0xae   : > { %6576 = vmatpush1.bf16.msra.mxu0 %v10427_v43  ;;  %7232 = vmatpush1.bf16.msra.mxu1 %v10430_v44  ;;  %v10518_v43 = vld [vmem:[%s11966_s12 + $0x680] ss:$16 sps:$4 sm:$0xff]   ;;  %v10521_v44 = vld [vmem:[%s11966_s12 + $0x688] ss:$16 sps:$4 sm:$0xff]  }
  0xaf   : > { %6577 = vmatprep.subr.bf16.mxu0 %v10435_v46  ;;  %7233 = vmatprep.subr.bf16.mxu1 %v10438_v47  ;;  %v10526_v46 = vld [vmem:[%s11966_s12 + $0x6a4] ss:$16 sps:$4 sm:$0xff]   ;;  %v10529_v47 = vld [vmem:[%s11966_s12 + $0x6ac] ss:$16 sps:$4 sm:$0xff]  }
  0xb2   : > { %6578 = vmatpush1.bf16.msra.mxu0 %v10433_v48  ;;  %7234 = vmatpush1.bf16.msra.mxu1 %v10436_v49  ;;  %v10524_v48 = vld [vmem:[%s11966_s12 + $0x6a0] ss:$16 sps:$4 sm:$0xff]   ;;  %v10527_v49 = vld [vmem:[%s11966_s12 + $0x6a8] ss:$16 sps:$4 sm:$0xff]  }
  0xb3   : > { %6579 = vmatprep.subr.bf16.mxu0 %v10441_v50  ;;  %7235 = vmatprep.subr.bf16.mxu1 %v10444_v52  ;;  %v10532_v50 = vld [vmem:[%s11966_s12 + $0x6c4] ss:$16 sps:$4 sm:$0xff]   ;;  %v10535_v52 = vld [vmem:[%s11966_s12 + $0x6cc] ss:$16 sps:$4 sm:$0xff]  }
  0xb6   : > { %6580 = vmatpush1.bf16.msra.mxu0 %v10439_v53  ;;  %7236 = vmatpush1.bf16.msra.mxu1 %v10442_v55  ;;  %v10530_v53 = vld [vmem:[%s11966_s12 + $0x6c0] ss:$16 sps:$4 sm:$0xff]   ;;  %v10533_v55 = vld [vmem:[%s11966_s12 + $0x6c8] ss:$16 sps:$4 sm:$0xff]  }
  0xb7   : > { %6581 = vmatprep.subr.bf16.mxu0 %v10447_v56  ;;  %7237 = vmatprep.subr.bf16.mxu1 %v10450_v57  ;;  %v10538_v56 = vld [vmem:[%s11966_s12 + $0x6e4] ss:$16 sps:$4 sm:$0xff]   ;;  %v10541_v57 = vld [vmem:[%s11966_s12 + $0x6ec] ss:$16 sps:$4 sm:$0xff]  }
  0xba   : > { %6582 = vmatpush1.bf16.msra.mxu0 %v10445_v58  ;;  %7238 = vmatpush1.bf16.msra.mxu1 %v10448_v59  ;;  %v10536_v58 = vld [vmem:[%s11966_s12 + $0x6e0] ss:$16 sps:$4 sm:$0xff]   ;;  %v10539_v59 = vld [vmem:[%s11966_s12 + $0x6e8] ss:$16 sps:$4 sm:$0xff]  }
  0xbb   : > { %6583 = vmatprep.subr.bf16.mxu0 %v10453_v60  ;;  %7239 = vmatprep.subr.bf16.mxu1 %v10456_v61  ;;  %v10544_v60 = vld [vmem:[%s11966_s12 + $0x704] ss:$16 sps:$4 sm:$0xff]   ;;  %v10547_v61 = vld [vmem:[%s11966_s12 + $0x70c] ss:$16 sps:$4 sm:$0xff]  }
  0xbe   : > { %6584 = vmatpush1.bf16.msra.mxu0 %v10451_v62  ;;  %7240 = vmatpush1.bf16.msra.mxu1 %v10454_v63  ;;  %v10542_v62 = vld [vmem:[%s11966_s12 + $0x700] ss:$16 sps:$4 sm:$0xff]   ;;  %v10545_v63 = vld [vmem:[%s11966_s12 + $0x708] ss:$16 sps:$4 sm:$0xff]  }
  0xbf   : > { %6585 = vmatprep.subr.bf16.mxu0 %v10459_v0  ;;  %7241 = vmatprep.subr.bf16.mxu1 %v10462_v1  ;;  %v10550_v0 = vld [vmem:[%s11966_s12 + $0x724] ss:$16 sps:$4 sm:$0xff]   ;;  %v10553_v1 = vld [vmem:[%s11966_s12 + $0x72c] ss:$16 sps:$4 sm:$0xff]  }
  0xc2   : > { %6586 = vmatpush1.bf16.msra.mxu0 %v10457_v2  ;;  %7242 = vmatpush1.bf16.msra.mxu1 %v10460_v3  ;;  %v10548_v2 = vld [vmem:[%s11966_s12 + $0x720] ss:$16 sps:$4 sm:$0xff]   ;;  %v10551_v3 = vld [vmem:[%s11966_s12 + $0x728] ss:$16 sps:$4 sm:$0xff]  }
  0xc3   : > { %6587 = vmatprep.subr.bf16.mxu0 %v10465_v4  ;;  %7243 = vmatprep.subr.bf16.mxu1 %v10468_v5  ;;  %v10556_v4 = vld [vmem:[%s11966_s12 + $0x744] ss:$16 sps:$4 sm:$0xff]   ;;  %v10559_v5 = vld [vmem:[%s11966_s12 + $0x74c] ss:$16 sps:$4 sm:$0xff]  }
  0xc6   : > { %6588 = vmatpush1.bf16.msra.mxu0 %v10463_v6  ;;  %7244 = vmatpush1.bf16.msra.mxu1 %v10466_v7  ;;  %v10554_v6 = vld [vmem:[%s11966_s12 + $0x740] ss:$16 sps:$4 sm:$0xff]   ;;  %v10557_v7 = vld [vmem:[%s11966_s12 + $0x748] ss:$16 sps:$4 sm:$0xff]  }
  0xc7   : > { %6589 = vmatprep.subr.bf16.mxu0 %v10471_v8  ;;  %7245 = vmatprep.subr.bf16.mxu1 %v10474_v9  ;;  %v10562_v8 = vld [vmem:[%s11966_s12 + $0x764] ss:$16 sps:$4 sm:$0xff]   ;;  %v10565_v9 = vld [vmem:[%s11966_s12 + $0x76c] ss:$16 sps:$4 sm:$0xff]  }
  0xca   : > { %6590 = vmatpush1.bf16.msra.mxu0 %v10469_v10  ;;  %7246 = vmatpush1.bf16.msra.mxu1 %v10472_v11  ;;  %v10560_v10 = vld [vmem:[%s11966_s12 + $0x760] ss:$16 sps:$4 sm:$0xff]   ;;  %v10563_v11 = vld [vmem:[%s11966_s12 + $0x768] ss:$16 sps:$4 sm:$0xff]  }
  0xcb   : > { %6591 = vmatprep.subr.bf16.mxu0 %v10477_v12  ;;  %7247 = vmatprep.subr.bf16.mxu1 %v10480_v13  ;;  %v10568_v12 = vld [vmem:[%s11966_s12 + $0x784] ss:$16 sps:$4 sm:$0xff]   ;;  %v10571_v13 = vld [vmem:[%s11966_s12 + $0x78c] ss:$16 sps:$4 sm:$0xff]  }
  0xce   : > { %6592 = vmatpush1.bf16.msra.mxu0 %v10475_v14  ;;  %7248 = vmatpush1.bf16.msra.mxu1 %v10478_v16  ;;  %v10566_v14 = vld [vmem:[%s11966_s12 + $0x780] ss:$16 sps:$4 sm:$0xff]   ;;  %v10569_v16 = vld [vmem:[%s11966_s12 + $0x788] ss:$16 sps:$4 sm:$0xff]  }
  0xcf   : > { %6593 = vmatprep.subr.bf16.mxu0 %v10483_v18  ;;  %7249 = vmatprep.subr.bf16.mxu1 %v10486_v54  ;;  %v10574_v18 = vld [vmem:[%s11966_s12 + $0x7a4] ss:$16 sps:$4 sm:$0xff]   ;;  %v10577_v54 = vld [vmem:[%s11966_s12 + $0x7ac] ss:$16 sps:$4 sm:$0xff]  }
  0xd2   : > { %6594 = vmatpush1.bf16.msra.mxu0 %v10481_v19  ;;  %7250 = vmatpush1.bf16.msra.mxu1 %v10484_v20  ;;  %v10572_v19 = vld [vmem:[%s11966_s12 + $0x7a0] ss:$16 sps:$4 sm:$0xff]   ;;  %v10575_v20 = vld [vmem:[%s11966_s12 + $0x7a8] ss:$16 sps:$4 sm:$0xff]  }
  0xd3   : > { %6595 = vmatprep.subr.bf16.mxu0 %v10489_v21  ;;  %7251 = vmatprep.subr.bf16.mxu1 %v10492_v22  ;;  %v10580_v21 = vld [vmem:[%s11966_s12 + $0x7c4] ss:$16 sps:$4 sm:$0xff]   ;;  %v10583_v22 = vld [vmem:[%s11966_s12 + $0x7cc] ss:$16 sps:$4 sm:$0xff]  }
  0xd6   : > { %6596 = vmatpush1.bf16.msra.mxu0 %v10487_v23  ;;  %7252 = vmatpush1.bf16.msra.mxu1 %v10490_v24  ;;  %v12258_v23 = vld.sshfl [vmem:[%s11961_s8 + $0x8] sm:$0xff pattern:$0x75316420]  ;;  %v10578_v24 = vld [vmem:[%s11966_s12 + $0x7c0] ss:$16 sps:$4 sm:$0xff]  }
  0xd7   : > { %6606 = vmatprep.subr.bf16.mxu0 %v10496_v25  ;;  %7262 = vmatprep.subr.bf16.mxu1 %v10499_v26  ;;  %v10581_v25 = vld [vmem:[%s11966_s12 + $0x7c8] ss:$16 sps:$4 sm:$0xff]   ;;  %v10586_v26 = vld [vmem:[%s11966_s12 + $0x7e4] ss:$16 sps:$4 sm:$0xff]  }
  0xd9   : > { %6598 = vmatmul.mubr.bf16.vlgmr.msra.gmra.mrb[0].mxu0 %v12196_v15  ;;  %7254 = vmatmul.mubr.bf16.vlgmr.msra.gmra.mrb[0].mxu1 %v12196_v15 }
  0xda   : > { %6607 = vmatpush1.bf16.msra.mxu0 %v10494_v28  ;;  %7263 = vmatpush1.bf16.msra.mxu1 %v10497_v29  ;;  %v10589_v28 = vld [vmem:[%s11966_s12 + $0x7ec] ss:$16 sps:$4 sm:$0xff]   ;;  %v10584_v29 = vld [vmem:[%s11966_s12 + $0x7e0] ss:$16 sps:$4 sm:$0xff]  }
  0xdb   : > { %6608 = vmatprep.subr.bf16.mxu0 %v10502_v30  ;;  %7264 = vmatprep.subr.bf16.mxu1 %v10505_v31  ;;  %v10587_v30 = vld [vmem:[%s11966_s12 + $0x7e8] ss:$16 sps:$4 sm:$0xff]   ;;  %v10592_v31 = vld [vmem:[%s11966_s12 + $0x804] ss:$16 sps:$4 sm:$0xff]  }
  0xdc   : > { %6638 = vmatprep.mubr.bf16.mxu0 %v1345_v32  ;;  %7294 = vmatprep.mubr.bf16.mxu1 %v1345_v32  ;;  %v10595_v32 = vld [vmem:[%s11966_s12 + $0x80c] ss:$16 sps:$4 sm:$0xff]  }
  0xde   : > { %6609 = vmatpush1.bf16.msra.mxu0 %v10500_v17  ;;  %7265 = vmatpush1.bf16.msra.mxu1 %v10503_v33  ;;  %v1361_v17 = vcombine.high %v12258_v23, %v12258_v23  ;;  %v1343_v33 = vcombine.high %v12196_v15, %v12196_v15  ;;  %v10596_v15 = vld [vmem:[%s11966_s12 + $0x820] ss:$16 sps:$4 sm:$0xff]  }
  0xdf   : > { %6610 = vmatprep.subr.bf16.mxu0 %v10508_v34  ;;  %7266 = vmatprep.subr.bf16.mxu1 %v10511_v35  ;;  %v10590_v34 = vld [vmem:[%s11966_s12 + $0x800] ss:$16 sps:$4 sm:$0xff]   ;;  %v10593_v35 = vld [vmem:[%s11966_s12 + $0x808] ss:$16 sps:$4 sm:$0xff]  }
  0xe2   : > { %6611 = vmatpush1.bf16.msra.mxu0 %v10506_v27  ;;  %7267 = vmatpush1.bf16.msra.mxu1 %v10509_v36  ;;  %v10598_v27 = vld [vmem:[%s11966_s12 + $0x824] ss:$16 sps:$4 sm:$0xff]   ;;  %v10601_v36 = vld [vmem:[%s11966_s12 + $0x82c] ss:$16 sps:$4 sm:$0xff]  }
  0xe3   : > { %6612 = vmatprep.subr.bf16.mxu0 %v10514_v37  ;;  %7268 = vmatprep.subr.bf16.mxu1 %v10517_v38  ;;  %v12277_v37 = vrot.slane %v1361_v17, %v12016_v51  ;;  %v10599_v38 = vld [vmem:[%s11966_s12 + $0x828] ss:$16 sps:$4 sm:$0xff]   ;;  %v10682_v17 = vld [vmem:[%s11966_s12 + $0x9e4] ss:$16 sps:$4 sm:$0xff]  }
  0xe6   : > { %6613 = vmatpush1.bf16.msra.mxu0 %v10512_v39  ;;  %7269 = vmatpush1.bf16.msra.mxu1 %v10515_v40  ;;  %v10604_v39 = vld [vmem:[%s11966_s12 + $0x844] ss:$16 sps:$4 sm:$0xff]   ;;  %v10607_v40 = vld [vmem:[%s11966_s12 + $0x84c] ss:$16 sps:$4 sm:$0xff]  }
  0xe7   : > { %6614 = vmatprep.subr.bf16.mxu0 %v10520_v41  ;;  %7270 = vmatprep.subr.bf16.mxu1 %v10523_v42  ;;  %v10602_v41 = vld [vmem:[%s11966_s12 + $0x840] ss:$16 sps:$4 sm:$0xff]   ;;  %v10605_v42 = vld [vmem:[%s11966_s12 + $0x848] ss:$16 sps:$4 sm:$0xff]  }
  0xea   : > { %6615 = vmatpush1.bf16.msra.mxu0 %v10518_v43  ;;  %7271 = vmatpush1.bf16.msra.mxu1 %v10521_v44  ;;  %v10610_v43 = vld [vmem:[%s11966_s12 + $0x864] ss:$16 sps:$4 sm:$0xff]   ;;  %v10613_v44 = vld [vmem:[%s11966_s12 + $0x86c] ss:$16 sps:$4 sm:$0xff]  }
  0xeb   : > { %6616 = vmatprep.subr.bf16.mxu0 %v10526_v46  ;;  %7272 = vmatprep.subr.bf16.mxu1 %v10529_v47  ;;  %v10608_v46 = vld [vmem:[%s11966_s12 + $0x860] ss:$16 sps:$4 sm:$0xff]   ;;  %v10611_v47 = vld [vmem:[%s11966_s12 + $0x868] ss:$16 sps:$4 sm:$0xff]  }
  0xee   : > { %6617 = vmatpush1.bf16.msra.mxu0 %v10524_v48  ;;  %7273 = vmatpush1.bf16.msra.mxu1 %v10527_v49  ;;  %v10616_v48 = vld [vmem:[%s11966_s12 + $0x884] ss:$16 sps:$4 sm:$0xff]   ;;  %v10619_v49 = vld [vmem:[%s11966_s12 + $0x88c] ss:$16 sps:$4 sm:$0xff]  }
  0xef   : > { %6618 = vmatprep.subr.bf16.mxu0 %v10532_v50  ;;  %7274 = vmatprep.subr.bf16.mxu1 %v10535_v52  ;;  %v10614_v50 = vld [vmem:[%s11966_s12 + $0x880] ss:$16 sps:$4 sm:$0xff]   ;;  %v10617_v52 = vld [vmem:[%s11966_s12 + $0x888] ss:$16 sps:$4 sm:$0xff]  }
  0xf2   : > { %6619 = vmatpush1.bf16.msra.mxu0 %v10530_v53  ;;  %7275 = vmatpush1.bf16.msra.mxu1 %v10533_v55  ;;  %v10622_v53 = vld [vmem:[%s11966_s12 + $0x8a4] ss:$16 sps:$4 sm:$0xff]   ;;  %v10625_v55 = vld [vmem:[%s11966_s12 + $0x8ac] ss:$16 sps:$4 sm:$0xff]  }
  0xf3   : > { %6620 = vmatprep.subr.bf16.mxu0 %v10538_v56  ;;  %7276 = vmatprep.subr.bf16.mxu1 %v10541_v57  ;;  %v10620_v56 = vld [vmem:[%s11966_s12 + $0x8a0] ss:$16 sps:$4 sm:$0xff]   ;;  %v10623_v57 = vld [vmem:[%s11966_s12 + $0x8a8] ss:$16 sps:$4 sm:$0xff]  }
  0xf6   : > { %6621 = vmatpush1.bf16.msra.mxu0 %v10536_v58  ;;  %7277 = vmatpush1.bf16.msra.mxu1 %v10539_v59  ;;  %v10628_v58 = vld [vmem:[%s11966_s12 + $0x8c4] ss:$16 sps:$4 sm:$0xff]   ;;  %v10631_v59 = vld [vmem:[%s11966_s12 + $0x8cc] ss:$16 sps:$4 sm:$0xff]  }
  0xf7   : > { %6622 = vmatprep.subr.bf16.mxu0 %v10544_v60  ;;  %7278 = vmatprep.subr.bf16.mxu1 %v10547_v61  ;;  %v10626_v60 = vld [vmem:[%s11966_s12 + $0x8c0] ss:$16 sps:$4 sm:$0xff]   ;;  %v10629_v61 = vld [vmem:[%s11966_s12 + $0x8c8] ss:$16 sps:$4 sm:$0xff]  }
  0xfa   : > { %6623 = vmatpush1.bf16.msra.mxu0 %v10542_v62  ;;  %7279 = vmatpush1.bf16.msra.mxu1 %v10545_v63  ;;  %v10634_v62 = vld [vmem:[%s11966_s12 + $0x8e4] ss:$16 sps:$4 sm:$0xff]   ;;  %v10637_v63 = vld [vmem:[%s11966_s12 + $0x8ec] ss:$16 sps:$4 sm:$0xff]  }
  0xfb   : > { %6624 = vmatprep.subr.bf16.mxu0 %v10550_v0  ;;  %7280 = vmatprep.subr.bf16.mxu1 %v10553_v1  ;;  %v10632_v0 = vld [vmem:[%s11966_s12 + $0x8e0] ss:$16 sps:$4 sm:$0xff]   ;;  %v10635_v1 = vld [vmem:[%s11966_s12 + $0x8e8] ss:$16 sps:$4 sm:$0xff]  }
  0xfe   : > { %6625 = vmatpush1.bf16.msra.mxu0 %v10548_v2  ;;  %7281 = vmatpush1.bf16.msra.mxu1 %v10551_v3  ;;  %v10640_v2 = vld [vmem:[%s11966_s12 + $0x904] ss:$16 sps:$4 sm:$0xff]   ;;  %v10643_v3 = vld [vmem:[%s11966_s12 + $0x90c] ss:$16 sps:$4 sm:$0xff]  }
  0xff   : > { %6626 = vmatprep.subr.bf16.mxu0 %v10556_v4  ;;  %7282 = vmatprep.subr.bf16.mxu1 %v10559_v5  ;;  %v10638_v4 = vld [vmem:[%s11966_s12 + $0x900] ss:$16 sps:$4 sm:$0xff]   ;;  %v10641_v5 = vld [vmem:[%s11966_s12 + $0x908] ss:$16 sps:$4 sm:$0xff]  }
 0x102   : > { %6627 = vmatpush1.bf16.msra.mxu0 %v10554_v6  ;;  %7283 = vmatpush1.bf16.msra.mxu1 %v10557_v7  ;;  %v10646_v6 = vld [vmem:[%s11966_s12 + $0x924] ss:$16 sps:$4 sm:$0xff]   ;;  %v10649_v7 = vld [vmem:[%s11966_s12 + $0x92c] ss:$16 sps:$4 sm:$0xff]  }
 0x103   : > { %6628 = vmatprep.subr.bf16.mxu0 %v10562_v8  ;;  %7284 = vmatprep.subr.bf16.mxu1 %v10565_v9  ;;  %v10644_v8 = vld [vmem:[%s11966_s12 + $0x920] ss:$16 sps:$4 sm:$0xff]   ;;  %v10647_v9 = vld [vmem:[%s11966_s12 + $0x928] ss:$16 sps:$4 sm:$0xff]  }
 0x106   : > { %6629 = vmatpush1.bf16.msra.mxu0 %v10560_v10  ;;  %7285 = vmatpush1.bf16.msra.mxu1 %v10563_v11  ;;  %v10652_v10 = vld [vmem:[%s11966_s12 + $0x944] ss:$16 sps:$4 sm:$0xff]   ;;  %v10655_v11 = vld [vmem:[%s11966_s12 + $0x94c] ss:$16 sps:$4 sm:$0xff]  }
 0x107   : > { %6630 = vmatprep.subr.bf16.mxu0 %v10568_v12  ;;  %7286 = vmatprep.subr.bf16.mxu1 %v10571_v13  ;;  %v10650_v12 = vld [vmem:[%s11966_s12 + $0x940] ss:$16 sps:$4 sm:$0xff]   ;;  %v10653_v13 = vld [vmem:[%s11966_s12 + $0x948] ss:$16 sps:$4 sm:$0xff]  }
 0x10a   : > { %6631 = vmatpush1.bf16.msra.mxu0 %v10566_v14  ;;  %7287 = vmatpush1.bf16.msra.mxu1 %v10569_v16  ;;  %v10658_v14 = vld [vmem:[%s11966_s12 + $0x964] ss:$16 sps:$4 sm:$0xff]   ;;  %v10661_v16 = vld [vmem:[%s11966_s12 + $0x96c] ss:$16 sps:$4 sm:$0xff]  }
 0x10b   : > { %6632 = vmatprep.subr.bf16.mxu0 %v10574_v18  ;;  %7288 = vmatprep.subr.bf16.mxu1 %v10577_v54  ;;  %v10656_v18 = vld [vmem:[%s11966_s12 + $0x960] ss:$16 sps:$4 sm:$0xff]   ;;  %v10659_v54 = vld [vmem:[%s11966_s12 + $0x968] ss:$16 sps:$4 sm:$0xff]  }
 0x10e   : > { %6633 = vmatpush1.bf16.msra.mxu0 %v10572_v19  ;;  %7289 = vmatpush1.bf16.msra.mxu1 %v10575_v20  ;;  %v10664_v19 = vld [vmem:[%s11966_s12 + $0x984] ss:$16 sps:$4 sm:$0xff]   ;;  %v10667_v20 = vld [vmem:[%s11966_s12 + $0x98c] ss:$16 sps:$4 sm:$0xff]  }
 0x10f   : > { %6634 = vmatprep.subr.bf16.mxu0 %v10580_v21  ;;  %7290 = vmatprep.subr.bf16.mxu1 %v10583_v22  ;;  %v10662_v21 = vld [vmem:[%s11966_s12 + $0x980] ss:$16 sps:$4 sm:$0xff]   ;;  %v10665_v22 = vld [vmem:[%s11966_s12 + $0x988] ss:$16 sps:$4 sm:$0xff]  }
 0x112   : > { %6635 = vmatpush1.bf16.msra.mxu0 %v10578_v24  ;;  %7291 = vmatpush1.bf16.msra.mxu1 %v10581_v25  ;;  %v10670_v24 = vld [vmem:[%s11966_s12 + $0x9a4] ss:$16 sps:$4 sm:$0xff]   ;;  %v10673_v25 = vld [vmem:[%s11966_s12 + $0x9ac] ss:$16 sps:$4 sm:$0xff]  }
 0x113   : > { %6636 = vmatprep.subr.bf16.mxu0 %v10586_v26  ;;  %7292 = vmatprep.subr.bf16.mxu1 %v10589_v28  ;;  %v10668_v26 = vld [vmem:[%s11966_s12 + $0x9a0] ss:$16 sps:$4 sm:$0xff]   ;;  %v10671_v28 = vld [vmem:[%s11966_s12 + $0x9a8] ss:$16 sps:$4 sm:$0xff]  }
 0x116   : > { %6637 = vmatpush1.bf16.msra.mxu0 %v10584_v29  ;;  %7293 = vmatpush1.bf16.msra.mxu1 %v10587_v30  ;;  %v10676_v29 = vld [vmem:[%s11966_s12 + $0x9c4] ss:$16 sps:$4 sm:$0xff]   ;;  %v10679_v30 = vld [vmem:[%s11966_s12 + $0x9cc] ss:$16 sps:$4 sm:$0xff]  }
 0x117   : > { %6647 = vmatprep.subr.bf16.mxu0 %v10592_v31  ;;  %7303 = vmatprep.subr.bf16.mxu1 %v10595_v32  ;;  %v10674_v31 = vld [vmem:[%s11966_s12 + $0x9c0] ss:$16 sps:$4 sm:$0xff]   ;;  %v10677_v32 = vld [vmem:[%s11966_s12 + $0x9c8] ss:$16 sps:$4 sm:$0xff]  }
 0x119   : > { %6639 = vmatmul.mubr.bf16.vlgmr.msra.gmra.mrb[0].mxu0 %v1343_v33  ;;  %7295 = vmatmul.mubr.bf16.vlgmr.msra.gmra.mrb[0].mxu1 %v1343_v33  ;;  %v10685_v33 = vld [vmem:[%s11966_s12 + $0x9ec] ss:$16 sps:$4 sm:$0xff]  }
 0x11a   : > { %6648 = vmatpush1.bf16.msra.mxu0 %v10590_v34  ;;  %7304 = vmatpush1.bf16.msra.mxu1 %v10593_v35  ;;  %v10680_v34 = vld [vmem:[%s11966_s12 + $0x9e0] ss:$16 sps:$4 sm:$0xff]   ;;  %v10683_v35 = vld [vmem:[%s11966_s12 + $0x9e8] ss:$16 sps:$4 sm:$0xff]  }
 0x11b   : > { %6649 = vmatprep.subr.bf16.mxu0 %v10598_v27  ;;  %7305 = vmatprep.subr.bf16.mxu1 %v10601_v36  ;;  %v10688_v27 = vld [vmem:[%s11966_s12 + $0xa04] ss:$16 sps:$4 sm:$0xff]   ;;  %v10691_v36 = vld [vmem:[%s11966_s12 + $0xa0c] ss:$16 sps:$4 sm:$0xff]  }
 0x11c   : > { %6679 = vmatprep.mubr.bf16.mxu0 %v12277_v37  ;;  %7335 = vmatprep.mubr.bf16.mxu1 %v12277_v37 }
 0x11e   : > { %6650 = vmatpush1.bf16.msra.mxu0 %v10596_v15  ;;  %7306 = vmatpush1.bf16.msra.mxu1 %v10599_v38  ;;  %v12343_v15 = vrot.slane %v12258_v23, %v12016_v51  ;;  %v10686_v38 = vld [vmem:[%s11966_s12 + $0xa00] ss:$16 sps:$4 sm:$0xff]  }
 0x11f   : > { %6651 = vmatprep.subr.bf16.mxu0 %v10604_v39  ;;  %7307 = vmatprep.subr.bf16.mxu1 %v10607_v40  ;;  %v10689_v39 = vld [vmem:[%s11966_s12 + $0xa08] ss:$16 sps:$4 sm:$0xff]   ;;  %v10694_v40 = vld [vmem:[%s11966_s12 + $0xa24] ss:$16 sps:$4 sm:$0xff]   ;;  %v10692_v23 = vld [vmem:[%s11966_s12 + $0xa20] ss:$16 sps:$4 sm:$0xff]  }
 0x122   : > { %6652 = vmatpush1.bf16.msra.mxu0 %v10602_v41  ;;  %7308 = vmatpush1.bf16.msra.mxu1 %v10605_v42  ;;  %v10697_v41 = vld [vmem:[%s11966_s12 + $0xa2c] ss:$16 sps:$4 sm:$0xff]   ;;  %v1393_v42 = vcombine.high %v12277_v37, %v12277_v37  ;;  %v10698_v37 = vld [vmem:[%s11966_s12 + $0xa40] ss:$16 sps:$4 sm:$0xff]  }
 0x123   : > { %6653 = vmatprep.subr.bf16.mxu0 %v10610_v43  ;;  %7309 = vmatprep.subr.bf16.mxu1 %v10613_v44  ;;  %v10695_v43 = vld [vmem:[%s11966_s12 + $0xa28] ss:$16 sps:$4 sm:$0xff]   ;;  %v10700_v44 = vld [vmem:[%s11966_s12 + $0xa44] ss:$16 sps:$4 sm:$0xff]  }
 0x126   : > { %6654 = vmatpush1.bf16.msra.mxu0 %v10608_v46  ;;  %7310 = vmatpush1.bf16.msra.mxu1 %v10611_v47  ;;  %v10703_v46 = vld [vmem:[%s11966_s12 + $0xa4c] ss:$16 sps:$4 sm:$0xff]   ;;  %v10701_v47 = vld [vmem:[%s11966_s12 + $0xa48] ss:$16 sps:$4 sm:$0xff]  }
 0x127   : > { %6655 = vmatprep.subr.bf16.mxu0 %v10616_v48  ;;  %7311 = vmatprep.subr.bf16.mxu1 %v10619_v49  ;;  %v10706_v48 = vld [vmem:[%s11966_s12 + $0xa64] ss:$16 sps:$4 sm:$0xff]   ;;  %v10709_v49 = vld [vmem:[%s11966_s12 + $0xa6c] ss:$16 sps:$4 sm:$0xff]  }
 0x12a   : > { %6656 = vmatpush1.bf16.msra.mxu0 %v10614_v50  ;;  %7312 = vmatpush1.bf16.msra.mxu1 %v10617_v52  ;;  %v10704_v50 = vld [vmem:[%s11966_s12 + $0xa60] ss:$16 sps:$4 sm:$0xff]   ;;  %v10707_v52 = vld [vmem:[%s11966_s12 + $0xa68] ss:$16 sps:$4 sm:$0xff]  }
 0x12b   : > { %6657 = vmatprep.subr.bf16.mxu0 %v10622_v53  ;;  %7313 = vmatprep.subr.bf16.mxu1 %v10625_v55  ;;  %v10712_v53 = vld [vmem:[%s11966_s12 + $0xa84] ss:$16 sps:$4 sm:$0xff]   ;;  %v10715_v55 = vld [vmem:[%s11966_s12 + $0xa8c] ss:$16 sps:$4 sm:$0xff]  }
 0x12e   : > { %6658 = vmatpush1.bf16.msra.mxu0 %v10620_v56  ;;  %7314 = vmatpush1.bf16.msra.mxu1 %v10623_v57  ;;  %v10710_v56 = vld [vmem:[%s11966_s12 + $0xa80] ss:$16 sps:$4 sm:$0xff]   ;;  %v10713_v57 = vld [vmem:[%s11966_s12 + $0xa88] ss:$16 sps:$4 sm:$0xff]  }
 0x12f   : > { %6659 = vmatprep.subr.bf16.mxu0 %v10628_v58  ;;  %7315 = vmatprep.subr.bf16.mxu1 %v10631_v59  ;;  %v10718_v58 = vld [vmem:[%s11966_s12 + $0xaa4] ss:$16 sps:$4 sm:$0xff]   ;;  %v10721_v59 = vld [vmem:[%s11966_s12 + $0xaac] ss:$16 sps:$4 sm:$0xff]  }
 0x132   : > { %6660 = vmatpush1.bf16.msra.mxu0 %v10626_v60  ;;  %7316 = vmatpush1.bf16.msra.mxu1 %v10629_v61  ;;  %v10716_v60 = vld [vmem:[%s11966_s12 + $0xaa0] ss:$16 sps:$4 sm:$0xff]   ;;  %v10719_v61 = vld [vmem:[%s11966_s12 + $0xaa8] ss:$16 sps:$4 sm:$0xff]  }
 0x133   : > { %6661 = vmatprep.subr.bf16.mxu0 %v10634_v62  ;;  %7317 = vmatprep.subr.bf16.mxu1 %v10637_v63  ;;  %v10724_v62 = vld [vmem:[%s11966_s12 + $0xac4] ss:$16 sps:$4 sm:$0xff]   ;;  %v10727_v63 = vld [vmem:[%s11966_s12 + $0xacc] ss:$16 sps:$4 sm:$0xff]  }
 0x136   : > { %6662 = vmatpush1.bf16.msra.mxu0 %v10632_v0  ;;  %7318 = vmatpush1.bf16.msra.mxu1 %v10635_v1  ;;  %v10722_v0 = vld [vmem:[%s11966_s12 + $0xac0] ss:$16 sps:$4 sm:$0xff]   ;;  %v10725_v1 = vld [vmem:[%s11966_s12 + $0xac8] ss:$16 sps:$4 sm:$0xff]  }
 0x137   : > { %6663 = vmatprep.subr.bf16.mxu0 %v10640_v2  ;;  %7319 = vmatprep.subr.bf16.mxu1 %v10643_v3  ;;  %v10730_v2 = vld [vmem:[%s11966_s12 + $0xae4] ss:$16 sps:$4 sm:$0xff]   ;;  %v10733_v3 = vld [vmem:[%s11966_s12 + $0xaec] ss:$16 sps:$4 sm:$0xff]  }
 0x13a   : > { %6664 = vmatpush1.bf16.msra.mxu0 %v10638_v4  ;;  %7320 = vmatpush1.bf16.msra.mxu1 %v10641_v5  ;;  %v10728_v4 = vld [vmem:[%s11966_s12 + $0xae0] ss:$16 sps:$4 sm:$0xff]   ;;  %v10731_v5 = vld [vmem:[%s11966_s12 + $0xae8] ss:$16 sps:$4 sm:$0xff]  }
 0x13b   : > { %6665 = vmatprep.subr.bf16.mxu0 %v10646_v6  ;;  %7321 = vmatprep.subr.bf16.mxu1 %v10649_v7  ;;  %v10736_v6 = vld [vmem:[%s11966_s12 + $0xb04] ss:$16 sps:$4 sm:$0xff]   ;;  %v10739_v7 = vld [vmem:[%s11966_s12 + $0xb0c] ss:$16 sps:$4 sm:$0xff]  }
 0x13e   : > { %6666 = vmatpush1.bf16.msra.mxu0 %v10644_v8  ;;  %7322 = vmatpush1.bf16.msra.mxu1 %v10647_v9  ;;  %v10734_v8 = vld [vmem:[%s11966_s12 + $0xb00] ss:$16 sps:$4 sm:$0xff]   ;;  %v10737_v9 = vld [vmem:[%s11966_s12 + $0xb08] ss:$16 sps:$4 sm:$0xff]  }
 0x13f   : > { %6667 = vmatprep.subr.bf16.mxu0 %v10652_v10  ;;  %7323 = vmatprep.subr.bf16.mxu1 %v10655_v11  ;;  %v10742_v10 = vld [vmem:[%s11966_s12 + $0xb24] ss:$16 sps:$4 sm:$0xff]   ;;  %v10745_v11 = vld [vmem:[%s11966_s12 + $0xb2c] ss:$16 sps:$4 sm:$0xff]  }
 0x142   : > { %6668 = vmatpush1.bf16.msra.mxu0 %v10650_v12  ;;  %7324 = vmatpush1.bf16.msra.mxu1 %v10653_v13  ;;  %v10740_v12 = vld [vmem:[%s11966_s12 + $0xb20] ss:$16 sps:$4 sm:$0xff]   ;;  %v10743_v13 = vld [vmem:[%s11966_s12 + $0xb28] ss:$16 sps:$4 sm:$0xff]  }
 0x143   : > { %6669 = vmatprep.subr.bf16.mxu0 %v10658_v14  ;;  %7325 = vmatprep.subr.bf16.mxu1 %v10661_v16  ;;  %v10748_v14 = vld [vmem:[%s11966_s12 + $0xb44] ss:$16 sps:$4 sm:$0xff]   ;;  %v10751_v16 = vld [vmem:[%s11966_s12 + $0xb4c] ss:$16 sps:$4 sm:$0xff]  }
 0x146   : > { %6670 = vmatpush1.bf16.msra.mxu0 %v10656_v18  ;;  %7326 = vmatpush1.bf16.msra.mxu1 %v10659_v54  ;;  %v10746_v18 = vld [vmem:[%s11966_s12 + $0xb40] ss:$16 sps:$4 sm:$0xff]   ;;  %v10749_v54 = vld [vmem:[%s11966_s12 + $0xb48] ss:$16 sps:$4 sm:$0xff]  }
 0x147   : > { %6671 = vmatprep.subr.bf16.mxu0 %v10664_v19  ;;  %7327 = vmatprep.subr.bf16.mxu1 %v10667_v20  ;;  %v10754_v19 = vld [vmem:[%s11966_s12 + $0xb64] ss:$16 sps:$4 sm:$0xff]   ;;  %v10757_v20 = vld [vmem:[%s11966_s12 + $0xb6c] ss:$16 sps:$4 sm:$0xff]  }
 0x14a   : > { %6672 = vmatpush1.bf16.msra.mxu0 %v10662_v21  ;;  %7328 = vmatpush1.bf16.msra.mxu1 %v10665_v22  ;;  %v10752_v21 = vld [vmem:[%s11966_s12 + $0xb60] ss:$16 sps:$4 sm:$0xff]   ;;  %v10755_v22 = vld [vmem:[%s11966_s12 + $0xb68] ss:$16 sps:$4 sm:$0xff]  }
 0x14b   : > { %6673 = vmatprep.subr.bf16.mxu0 %v10670_v24  ;;  %7329 = vmatprep.subr.bf16.mxu1 %v10673_v25  ;;  %v10760_v24 = vld [vmem:[%s11966_s12 + $0xb84] ss:$16 sps:$4 sm:$0xff]   ;;  %v10763_v25 = vld [vmem:[%s11966_s12 + $0xb8c] ss:$16 sps:$4 sm:$0xff]  }
 0x14e   : > { %6674 = vmatpush1.bf16.msra.mxu0 %v10668_v26  ;;  %7330 = vmatpush1.bf16.msra.mxu1 %v10671_v28  ;;  %v10758_v26 = vld [vmem:[%s11966_s12 + $0xb80] ss:$16 sps:$4 sm:$0xff]   ;;  %v10761_v28 = vld [vmem:[%s11966_s12 + $0xb88] ss:$16 sps:$4 sm:$0xff]  }
 0x14f   : > { %6675 = vmatprep.subr.bf16.mxu0 %v10676_v29  ;;  %7331 = vmatprep.subr.bf16.mxu1 %v10679_v30  ;;  %v10766_v29 = vld [vmem:[%s11966_s12 + $0xba4] ss:$16 sps:$4 sm:$0xff]   ;;  %v10769_v30 = vld [vmem:[%s11966_s12 + $0xbac] ss:$16 sps:$4 sm:$0xff]  }
 0x152   : > { %6676 = vmatpush1.bf16.msra.mxu0 %v10674_v31  ;;  %7332 = vmatpush1.bf16.msra.mxu1 %v10677_v32  ;;  %v10764_v31 = vld [vmem:[%s11966_s12 + $0xba0] ss:$16 sps:$4 sm:$0xff]   ;;  %v10767_v32 = vld [vmem:[%s11966_s12 + $0xba8] ss:$16 sps:$4 sm:$0xff]  }
 0x153   : > { %6677 = vmatprep.subr.bf16.mxu0 %v10682_v17  ;;  %7333 = vmatprep.subr.bf16.mxu1 %v10685_v33  ;;  %v10772_v17 = vld [vmem:[%s11966_s12 + $0xbc4] ss:$16 sps:$4 sm:$0xff]   ;;  %v10775_v33 = vld [vmem:[%s11966_s12 + $0xbcc] ss:$16 sps:$4 sm:$0xff]  }
 0x156   : > { %6678 = vmatpush1.bf16.msra.mxu0 %v10680_v34  ;;  %7334 = vmatpush1.bf16.msra.mxu1 %v10683_v35  ;;  %v11697_v34 = vld [vmem:[%s11961_s8 + $0x8] sm:$0xff] }
 0x157   : > { %6688 = vmatprep.subr.bf16.mxu0 %v10688_v27  ;;  %7344 = vmatprep.subr.bf16.mxu1 %v10691_v36  ;;  %v1346_v35 = vcombine.high %v11697_v34, %v11697_v34  ;;  %v10770_v27 = vld [vmem:[%s11966_s12 + $0xbc0] ss:$16 sps:$4 sm:$0xff]   ;;  %v10773_v36 = vld [vmem:[%s11966_s12 + $0xbc8] ss:$16 sps:$4 sm:$0xff]  }
 0x158   : > { %v10854_v34 = vld [vmem:[%s11966_s12 + $0xd80] ss:$16 sps:$4 sm:$0xff]  }
 0x159   : > { %6680 = vmatmul.mubr.bf16.vlgmr.msra.gmra.mrb[0].mxu0 %v12343_v15  ;;  %7336 = vmatmul.mubr.bf16.vlgmr.msra.gmra.mrb[0].mxu1 %v12343_v15 }
 0x15a   : > { %6689 = vmatpush1.bf16.msra.mxu0 %v10686_v38  ;;  %7345 = vmatpush1.bf16.msra.mxu1 %v10689_v39  ;;  %v10778_v38 = vld [vmem:[%s11966_s12 + $0xbe4] ss:$16 sps:$4 sm:$0xff]   ;;  %v10781_v39 = vld [vmem:[%s11966_s12 + $0xbec] ss:$16 sps:$4 sm:$0xff]  }
 0x15b   : > { %6690 = vmatprep.subr.bf16.mxu0 %v10694_v40  ;;  %7346 = vmatprep.subr.bf16.mxu1 %v10697_v41  ;;  %v12411_v40 = vrot.slane %v1346_v35, %v12016_v51  ;;  %v10776_v41 = vld [vmem:[%s11966_s12 + $0xbe0] ss:$16 sps:$4 sm:$0xff]   ;;  %v10857_v35 = vld [vmem:[%s11966_s12 + $0xd88] ss:$16 sps:$4 sm:$0xff]  }
 0x15c   : > { %6720 = vmatprep.mubr.bf16.mxu0 %v1393_v42  ;;  %7376 = vmatprep.mubr.bf16.mxu1 %v1393_v42  ;;  %v10779_v42 = vld [vmem:[%s11966_s12 + $0xbe8] ss:$16 sps:$4 sm:$0xff]  }
 0x15e   : > { %6691 = vmatpush1.bf16.msra.mxu0 %v10692_v23  ;;  %7347 = vmatpush1.bf16.msra.mxu1 %v10695_v43  ;;  %v10784_v23 = vld [vmem:[%s11966_s12 + $0xc04] ss:$16 sps:$4 sm:$0xff]   ;;  %v10787_v43 = vld [vmem:[%s11966_s12 + $0xc0c] ss:$16 sps:$4 sm:$0xff]  }
 0x15f   : > { %6692 = vmatprep.subr.bf16.mxu0 %v10700_v44  ;;  %7348 = vmatprep.subr.bf16.mxu1 %v10703_v46  ;;  %v1362_v44 = vcombine.high %v12411_v40, %v12411_v40  ;;  %v1391_v46 = vcombine.high %v12343_v15, %v12343_v15  ;;  %v10788_v15 = vld [vmem:[%s11966_s12 + $0xc20] ss:$16 sps:$4 sm:$0xff]  }
 0x162   : > { %6693 = vmatpush1.bf16.msra.mxu0 %v10698_v37  ;;  %7349 = vmatpush1.bf16.msra.mxu1 %v10701_v47  ;;  %v10782_v37 = vld [vmem:[%s11966_s12 + $0xc00] ss:$16 sps:$4 sm:$0xff]   ;;  %v10785_v47 = vld [vmem:[%s11966_s12 + $0xc08] ss:$16 sps:$4 sm:$0xff]  }
 0x163   : > { %6694 = vmatprep.subr.bf16.mxu0 %v10706_v48  ;;  %7350 = vmatprep.subr.bf16.mxu1 %v10709_v49  ;;  %v10790_v48 = vld [vmem:[%s11966_s12 + $0xc24] ss:$16 sps:$4 sm:$0xff]   ;;  %v10793_v49 = vld [vmem:[%s11966_s12 + $0xc2c] ss:$16 sps:$4 sm:$0xff]  }
 0x166   : > { %6695 = vmatpush1.bf16.msra.mxu0 %v10704_v50  ;;  %7351 = vmatpush1.bf16.msra.mxu1 %v10707_v52  ;;  %v12426_v50 = vrot.slane %v1362_v44, %v12016_v51  ;;  %v10791_v52 = vld [vmem:[%s11966_s12 + $0xc28] ss:$16 sps:$4 sm:$0xff]   ;;  %v10874_v44 = vld [vmem:[%s11966_s12 + $0xde4] ss:$16 sps:$4 sm:$0xff]  }
 0x167   : > { %6696 = vmatprep.subr.bf16.mxu0 %v10712_v53  ;;  %7352 = vmatprep.subr.bf16.mxu1 %v10715_v55  ;;  %v10796_v53 = vld [vmem:[%s11966_s12 + $0xc44] ss:$16 sps:$4 sm:$0xff]   ;;  %v10799_v55 = vld [vmem:[%s11966_s12 + $0xc4c] ss:$16 sps:$4 sm:$0xff]  }
 0x16a   : > { %6697 = vmatpush1.bf16.msra.mxu0 %v10710_v56  ;;  %7353 = vmatpush1.bf16.msra.mxu1 %v10713_v57  ;;  %v10794_v56 = vld [vmem:[%s11966_s12 + $0xc40] ss:$16 sps:$4 sm:$0xff]   ;;  %v10797_v57 = vld [vmem:[%s11966_s12 + $0xc48] ss:$16 sps:$4 sm:$0xff]  }
 0x16b   : > { %6698 = vmatprep.subr.bf16.mxu0 %v10718_v58  ;;  %7354 = vmatprep.subr.bf16.mxu1 %v10721_v59  ;;  %v10802_v58 = vld [vmem:[%s11966_s12 + $0xc64] ss:$16 sps:$4 sm:$0xff]   ;;  %v10805_v59 = vld [vmem:[%s11966_s12 + $0xc6c] ss:$16 sps:$4 sm:$0xff]  }
 0x16e   : > { %6699 = vmatpush1.bf16.msra.mxu0 %v10716_v60  ;;  %7355 = vmatpush1.bf16.msra.mxu1 %v10719_v61  ;;  %v10800_v60 = vld [vmem:[%s11966_s12 + $0xc60] ss:$16 sps:$4 sm:$0xff]   ;;  %v10803_v61 = vld [vmem:[%s11966_s12 + $0xc68] ss:$16 sps:$4 sm:$0xff]  }
 0x16f   : > { %6700 = vmatprep.subr.bf16.mxu0 %v10724_v62  ;;  %7356 = vmatprep.subr.bf16.mxu1 %v10727_v63  ;;  %v10808_v62 = vld [vmem:[%s11966_s12 + $0xc84] ss:$16 sps:$4 sm:$0xff]   ;;  %v10811_v63 = vld [vmem:[%s11966_s12 + $0xc8c] ss:$16 sps:$4 sm:$0xff]  }
 0x172   : > { %6701 = vmatpush1.bf16.msra.mxu0 %v10722_v0  ;;  %7357 = vmatpush1.bf16.msra.mxu1 %v10725_v1  ;;  %v10806_v0 = vld [vmem:[%s11966_s12 + $0xc80] ss:$16 sps:$4 sm:$0xff]   ;;  %v10809_v1 = vld [vmem:[%s11966_s12 + $0xc88] ss:$16 sps:$4 sm:$0xff]  }
 0x173   : > { %6702 = vmatprep.subr.bf16.mxu0 %v10730_v2  ;;  %7358 = vmatprep.subr.bf16.mxu1 %v10733_v3  ;;  %v10814_v2 = vld [vmem:[%s11966_s12 + $0xca4] ss:$16 sps:$4 sm:$0xff]   ;;  %v10817_v3 = vld [vmem:[%s11966_s12 + $0xcac] ss:$16 sps:$4 sm:$0xff]  }
 0x176   : > { %6703 = vmatpush1.bf16.msra.mxu0 %v10728_v4  ;;  %7359 = vmatpush1.bf16.msra.mxu1 %v10731_v5  ;;  %v10812_v4 = vld [vmem:[%s11966_s12 + $0xca0] ss:$16 sps:$4 sm:$0xff]   ;;  %v10815_v5 = vld [vmem:[%s11966_s12 + $0xca8] ss:$16 sps:$4 sm:$0xff]  }
 0x177   : > { %6704 = vmatprep.subr.bf16.mxu0 %v10736_v6  ;;  %7360 = vmatprep.subr.bf16.mxu1 %v10739_v7  ;;  %v10820_v6 = vld [vmem:[%s11966_s12 + $0xcc4] ss:$16 sps:$4 sm:$0xff]   ;;  %v10823_v7 = vld [vmem:[%s11966_s12 + $0xccc] ss:$16 sps:$4 sm:$0xff]  }
 0x17a   : > { %6705 = vmatpush1.bf16.msra.mxu0 %v10734_v8  ;;  %7361 = vmatpush1.bf16.msra.mxu1 %v10737_v9  ;;  %v10818_v8 = vld [vmem:[%s11966_s12 + $0xcc0] ss:$16 sps:$4 sm:$0xff]   ;;  %v10821_v9 = vld [vmem:[%s11966_s12 + $0xcc8] ss:$16 sps:$4 sm:$0xff]  }
 0x17b   : > { %6706 = vmatprep.subr.bf16.mxu0 %v10742_v10  ;;  %7362 = vmatprep.subr.bf16.mxu1 %v10745_v11  ;;  %v10826_v10 = vld [vmem:[%s11966_s12 + $0xce4] ss:$16 sps:$4 sm:$0xff]   ;;  %v10829_v11 = vld [vmem:[%s11966_s12 + $0xcec] ss:$16 sps:$4 sm:$0xff]  }
 0x17e   : > { %6707 = vmatpush1.bf16.msra.mxu0 %v10740_v12  ;;  %7363 = vmatpush1.bf16.msra.mxu1 %v10743_v13  ;;  %v10824_v12 = vld [vmem:[%s11966_s12 + $0xce0] ss:$16 sps:$4 sm:$0xff]   ;;  %v10827_v13 = vld [vmem:[%s11966_s12 + $0xce8] ss:$16 sps:$4 sm:$0xff]  }
 0x17f   : > { %6708 = vmatprep.subr.bf16.mxu0 %v10748_v14  ;;  %7364 = vmatprep.subr.bf16.mxu1 %v10751_v16  ;;  %v10832_v14 = vld [vmem:[%s11966_s12 + $0xd04] ss:$16 sps:$4 sm:$0xff]   ;;  %v10835_v16 = vld [vmem:[%s11966_s12 + $0xd0c] ss:$16 sps:$4 sm:$0xff]  }
 0x182   : > { %6709 = vmatpush1.bf16.msra.mxu0 %v10746_v18  ;;  %7365 = vmatpush1.bf16.msra.mxu1 %v10749_v54  ;;  %v10830_v18 = vld [vmem:[%s11966_s12 + $0xd00] ss:$16 sps:$4 sm:$0xff]   ;;  %v10833_v54 = vld [vmem:[%s11966_s12 + $0xd08] ss:$16 sps:$4 sm:$0xff]  }
 0x183   : > { %6710 = vmatprep.subr.bf16.mxu0 %v10754_v19  ;;  %7366 = vmatprep.subr.bf16.mxu1 %v10757_v20  ;;  %v10838_v19 = vld [vmem:[%s11966_s12 + $0xd24] ss:$16 sps:$4 sm:$0xff]   ;;  %v10841_v20 = vld [vmem:[%s11966_s12 + $0xd2c] ss:$16 sps:$4 sm:$0xff]  }
 0x186   : > { %6711 = vmatpush1.bf16.msra.mxu0 %v10752_v21  ;;  %7367 = vmatpush1.bf16.msra.mxu1 %v10755_v22  ;;  %v10836_v21 = vld [vmem:[%s11966_s12 + $0xd20] ss:$16 sps:$4 sm:$0xff]   ;;  %v10839_v22 = vld [vmem:[%s11966_s12 + $0xd28] ss:$16 sps:$4 sm:$0xff]  }
 0x187   : > { %6712 = vmatprep.subr.bf16.mxu0 %v10760_v24  ;;  %7368 = vmatprep.subr.bf16.mxu1 %v10763_v25  ;;  %v10844_v24 = vld [vmem:[%s11966_s12 + $0xd44] ss:$16 sps:$4 sm:$0xff]   ;;  %v10847_v25 = vld [vmem:[%s11966_s12 + $0xd4c] ss:$16 sps:$4 sm:$0xff]  }
 0x18a   : > { %6713 = vmatpush1.bf16.msra.mxu0 %v10758_v26  ;;  %7369 = vmatpush1.bf16.msra.mxu1 %v10761_v28  ;;  %v10842_v26 = vld [vmem:[%s11966_s12 + $0xd40] ss:$16 sps:$4 sm:$0xff]   ;;  %v10845_v28 = vld [vmem:[%s11966_s12 + $0xd48] ss:$16 sps:$4 sm:$0xff]  }
 0x18b   : > { %6714 = vmatprep.subr.bf16.mxu0 %v10766_v29  ;;  %7370 = vmatprep.subr.bf16.mxu1 %v10769_v30  ;;  %v10850_v29 = vld [vmem:[%s11966_s12 + $0xd64] ss:$16 sps:$4 sm:$0xff]   ;;  %v10853_v30 = vld [vmem:[%s11966_s12 + $0xd6c] ss:$16 sps:$4 sm:$0xff]  }
 0x18e   : > { %6715 = vmatpush1.bf16.msra.mxu0 %v10764_v31  ;;  %7371 = vmatpush1.bf16.msra.mxu1 %v10767_v32  ;;  %v10848_v31 = vld [vmem:[%s11966_s12 + $0xd60] ss:$16 sps:$4 sm:$0xff]   ;;  %v10851_v32 = vld [vmem:[%s11966_s12 + $0xd68] ss:$16 sps:$4 sm:$0xff]  }
 0x18f   : > { %6716 = vmatprep.subr.bf16.mxu0 %v10772_v17  ;;  %7372 = vmatprep.subr.bf16.mxu1 %v10775_v33  ;;  %v10856_v17 = vld [vmem:[%s11966_s12 + $0xd84] ss:$16 sps:$4 sm:$0xff]   ;;  %v10859_v33 = vld [vmem:[%s11966_s12 + $0xd8c] ss:$16 sps:$4 sm:$0xff]  }
 0x192   : > { %6717 = vmatpush1.bf16.msra.mxu0 %v10770_v27  ;;  %7373 = vmatpush1.bf16.msra.mxu1 %v10773_v36  ;;  %v10862_v27 = vld [vmem:[%s11966_s12 + $0xda4] ss:$16 sps:$4 sm:$0xff]   ;;  %v10865_v36 = vld [vmem:[%s11966_s12 + $0xdac] ss:$16 sps:$4 sm:$0xff]  }
 0x193   : > { %6718 = vmatprep.subr.bf16.mxu0 %v10778_v38  ;;  %7374 = vmatprep.subr.bf16.mxu1 %v10781_v39  ;;  %v10860_v38 = vld [vmem:[%s11966_s12 + $0xda0] ss:$16 sps:$4 sm:$0xff]   ;;  %v10863_v39 = vld [vmem:[%s11966_s12 + $0xda8] ss:$16 sps:$4 sm:$0xff]  }
 0x196   : > { %6719 = vmatpush1.bf16.msra.mxu0 %v10776_v41  ;;  %7375 = vmatpush1.bf16.msra.mxu1 %v10779_v42  ;;  %v10868_v41 = vld [vmem:[%s11966_s12 + $0xdc4] ss:$16 sps:$4 sm:$0xff]   ;;  %v10871_v42 = vld [vmem:[%s11966_s12 + $0xdcc] ss:$16 sps:$4 sm:$0xff]  }
 0x197   : > { %6729 = vmatprep.subr.bf16.mxu0 %v10784_v23  ;;  %7385 = vmatprep.subr.bf16.mxu1 %v10787_v43  ;;  %v10866_v23 = vld [vmem:[%s11966_s12 + $0xdc0] ss:$16 sps:$4 sm:$0xff]   ;;  %v10869_v43 = vld [vmem:[%s11966_s12 + $0xdc8] ss:$16 sps:$4 sm:$0xff]  }
 0x199   : > { %6721 = vmatmul.mubr.bf16.vlgmr.msra.gmra.mrb[0].mxu0 %v1391_v46  ;;  %7377 = vmatmul.mubr.bf16.vlgmr.msra.gmra.mrb[0].mxu1 %v1391_v46  ;;  %v10877_v46 = vld [vmem:[%s11966_s12 + $0xdec] ss:$16 sps:$4 sm:$0xff]  }
 0x19a   : > { %6730 = vmatpush1.bf16.msra.mxu0 %v10782_v37  ;;  %7386 = vmatpush1.bf16.msra.mxu1 %v10785_v47  ;;  %v10872_v37 = vld [vmem:[%s11966_s12 + $0xde0] ss:$16 sps:$4 sm:$0xff]   ;;  %v10875_v47 = vld [vmem:[%s11966_s12 + $0xde8] ss:$16 sps:$4 sm:$0xff]  }
 0x19b   : > { %6731 = vmatprep.subr.bf16.mxu0 %v10790_v48  ;;  %7387 = vmatprep.subr.bf16.mxu1 %v10793_v49  ;;  %v10881_v48 = vld [vmem:[%s11966_s12 + $0xe04] ss:$16 sps:$4 sm:$0xff]   ;;  %v10884_v49 = vld [vmem:[%s11966_s12 + $0xe0c] ss:$16 sps:$4 sm:$0xff]  }
 0x19c   : > { %6761 = vmatprep.mubr.bf16.mxu0 %v12426_v50  ;;  %7417 = vmatprep.mubr.bf16.mxu1 %v12426_v50 }
 0x19e   : > { %6732 = vmatpush1.bf16.msra.mxu0 %v10788_v15  ;;  %7388 = vmatpush1.bf16.msra.mxu1 %v10791_v52  ;;  %v12492_v15 = vrot.slane %v12411_v40, %v12016_v51  ;;  %v10879_v52 = vld [vmem:[%s11966_s12 + $0xe00] ss:$16 sps:$4 sm:$0xff]  }
 0x19f   : > { %6733 = vmatprep.subr.bf16.mxu0 %v10796_v53  ;;  %7389 = vmatprep.subr.bf16.mxu1 %v10799_v55  ;;  %v10882_v53 = vld [vmem:[%s11966_s12 + $0xe08] ss:$16 sps:$4 sm:$0xff]   ;;  %v10887_v55 = vld [vmem:[%s11966_s12 + $0xe24] ss:$16 sps:$4 sm:$0xff]   ;;  %v10885_v40 = vld [vmem:[%s11966_s12 + $0xe20] ss:$16 sps:$4 sm:$0xff]  }
 0x1a2   : > { %6734 = vmatpush1.bf16.msra.mxu0 %v10794_v56  ;;  %7390 = vmatpush1.bf16.msra.mxu1 %v10797_v57  ;;  %v10890_v56 = vld [vmem:[%s11966_s12 + $0xe2c] ss:$16 sps:$4 sm:$0xff]   ;;  %v1394_v57 = vcombine.high %v12426_v50, %v12426_v50  ;;  %v10891_v50 = vld [vmem:[%s11966_s12 + $0xe40] ss:$16 sps:$4 sm:$0xff]  }
 0x1a3   : > { %6735 = vmatprep.subr.bf16.mxu0 %v10802_v58  ;;  %7391 = vmatprep.subr.bf16.mxu1 %v10805_v59  ;;  %v10888_v58 = vld [vmem:[%s11966_s12 + $0xe28] ss:$16 sps:$4 sm:$0xff]   ;;  %v10893_v59 = vld [vmem:[%s11966_s12 + $0xe44] ss:$16 sps:$4 sm:$0xff]  }
 0x1a6   : > { %6736 = vmatpush1.bf16.msra.mxu0 %v10800_v60  ;;  %7392 = vmatpush1.bf16.msra.mxu1 %v10803_v61  ;;  %v10896_v60 = vld [vmem:[%s11966_s12 + $0xe4c] ss:$16 sps:$4 sm:$0xff]   ;;  %v10894_v61 = vld [vmem:[%s11966_s12 + $0xe48] ss:$16 sps:$4 sm:$0xff]  }
 0x1a7   : > { %6737 = vmatprep.subr.bf16.mxu0 %v10808_v62  ;;  %7393 = vmatprep.subr.bf16.mxu1 %v10811_v63  ;;  %v10899_v62 = vld [vmem:[%s11966_s12 + $0xe64] ss:$16 sps:$4 sm:$0xff]   ;;  %v10902_v63 = vld [vmem:[%s11966_s12 + $0xe6c] ss:$16 sps:$4 sm:$0xff]  }
 0x1aa   : > { %6738 = vmatpush1.bf16.msra.mxu0 %v10806_v0  ;;  %7394 = vmatpush1.bf16.msra.mxu1 %v10809_v1  ;;  %v10897_v0 = vld [vmem:[%s11966_s12 + $0xe60] ss:$16 sps:$4 sm:$0xff]   ;;  %v10900_v1 = vld [vmem:[%s11966_s12 + $0xe68] ss:$16 sps:$4 sm:$0xff]  }
 0x1ab   : > { %6739 = vmatprep.subr.bf16.mxu0 %v10814_v2  ;;  %7395 = vmatprep.subr.bf16.mxu1 %v10817_v3  ;;  %v10905_v2 = vld [vmem:[%s11966_s12 + $0xe84] ss:$16 sps:$4 sm:$0xff]   ;;  %v10908_v3 = vld [vmem:[%s11966_s12 + $0xe8c] ss:$16 sps:$4 sm:$0xff]  }
 0x1ae   : > { %6740 = vmatpush1.bf16.msra.mxu0 %v10812_v4  ;;  %7396 = vmatpush1.bf16.msra.mxu1 %v10815_v5  ;;  %v10903_v4 = vld [vmem:[%s11966_s12 + $0xe80] ss:$16 sps:$4 sm:$0xff]   ;;  %v10906_v5 = vld [vmem:[%s11966_s12 + $0xe88] ss:$16 sps:$4 sm:$0xff]  }
 0x1af   : > { %6741 = vmatprep.subr.bf16.mxu0 %v10820_v6  ;;  %7397 = vmatprep.subr.bf16.mxu1 %v10823_v7  ;;  %v10911_v6 = vld [vmem:[%s11966_s12 + $0xea4] ss:$16 sps:$4 sm:$0xff]   ;;  %v10914_v7 = vld [vmem:[%s11966_s12 + $0xeac] ss:$16 sps:$4 sm:$0xff]  }
 0x1b2   : > { %6742 = vmatpush1.bf16.msra.mxu0 %v10818_v8  ;;  %7398 = vmatpush1.bf16.msra.mxu1 %v10821_v9  ;;  %v10909_v8 = vld [vmem:[%s11966_s12 + $0xea0] ss:$16 sps:$4 sm:$0xff]   ;;  %v10912_v9 = vld [vmem:[%s11966_s12 + $0xea8] ss:$16 sps:$4 sm:$0xff]  }
 0x1b3   : > { %6743 = vmatprep.subr.bf16.mxu0 %v10826_v10  ;;  %7399 = vmatprep.subr.bf16.mxu1 %v10829_v11  ;;  %v10917_v10 = vld [vmem:[%s11966_s12 + $0xec4] ss:$16 sps:$4 sm:$0xff]   ;;  %v10920_v11 = vld [vmem:[%s11966_s12 + $0xecc] ss:$16 sps:$4 sm:$0xff]  }
 0x1b6   : > { %6744 = vmatpush1.bf16.msra.mxu0 %v10824_v12  ;;  %7400 = vmatpush1.bf16.msra.mxu1 %v10827_v13  ;;  %v10915_v12 = vld [vmem:[%s11966_s12 + $0xec0] ss:$16 sps:$4 sm:$0xff]   ;;  %v10918_v13 = vld [vmem:[%s11966_s12 + $0xec8] ss:$16 sps:$4 sm:$0xff]  }
 0x1b7   : > { %6745 = vmatprep.subr.bf16.mxu0 %v10832_v14  ;;  %7401 = vmatprep.subr.bf16.mxu1 %v10835_v16  ;;  %v10923_v14 = vld [vmem:[%s11966_s12 + $0xee4] ss:$16 sps:$4 sm:$0xff]   ;;  %v10926_v16 = vld [vmem:[%s11966_s12 + $0xeec] ss:$16 sps:$4 sm:$0xff]  }
 0x1ba   : > { %6746 = vmatpush1.bf16.msra.mxu0 %v10830_v18  ;;  %7402 = vmatpush1.bf16.msra.mxu1 %v10833_v54  ;;  %v10921_v18 = vld [vmem:[%s11966_s12 + $0xee0] ss:$16 sps:$4 sm:$0xff]   ;;  %v10924_v54 = vld [vmem:[%s11966_s12 + $0xee8] ss:$16 sps:$4 sm:$0xff]  }
 0x1bb   : > { %6747 = vmatprep.subr.bf16.mxu0 %v10838_v19  ;;  %7403 = vmatprep.subr.bf16.mxu1 %v10841_v20  ;;  %v10929_v19 = vld [vmem:[%s11966_s12 + $0xf04] ss:$16 sps:$4 sm:$0xff]   ;;  %v10932_v20 = vld [vmem:[%s11966_s12 + $0xf0c] ss:$16 sps:$4 sm:$0xff]  }
 0x1be   : > { %6748 = vmatpush1.bf16.msra.mxu0 %v10836_v21  ;;  %7404 = vmatpush1.bf16.msra.mxu1 %v10839_v22  ;;  %v10927_v21 = vld [vmem:[%s11966_s12 + $0xf00] ss:$16 sps:$4 sm:$0xff]   ;;  %v10930_v22 = vld [vmem:[%s11966_s12 + $0xf08] ss:$16 sps:$4 sm:$0xff]  }
 0x1bf   : > { %6749 = vmatprep.subr.bf16.mxu0 %v10844_v24  ;;  %7405 = vmatprep.subr.bf16.mxu1 %v10847_v25  ;;  %v10935_v24 = vld [vmem:[%s11966_s12 + $0xf24] ss:$16 sps:$4 sm:$0xff]   ;;  %v10938_v25 = vld [vmem:[%s11966_s12 + $0xf2c] ss:$16 sps:$4 sm:$0xff]  }
 0x1c2   : > { %6750 = vmatpush1.bf16.msra.mxu0 %v10842_v26  ;;  %7406 = vmatpush1.bf16.msra.mxu1 %v10845_v28  ;;  %v10933_v26 = vld [vmem:[%s11966_s12 + $0xf20] ss:$16 sps:$4 sm:$0xff]   ;;  %v10936_v28 = vld [vmem:[%s11966_s12 + $0xf28] ss:$16 sps:$4 sm:$0xff]  }
 0x1c3   : > { %6751 = vmatprep.subr.bf16.mxu0 %v10850_v29  ;;  %7407 = vmatprep.subr.bf16.mxu1 %v10853_v30  ;;  %v10941_v29 = vld [vmem:[%s11966_s12 + $0xf44] ss:$16 sps:$4 sm:$0xff]   ;;  %v10944_v30 = vld [vmem:[%s11966_s12 + $0xf4c] ss:$16 sps:$4 sm:$0xff]  }
 0x1c6   : > { %6752 = vmatpush1.bf16.msra.mxu0 %v10848_v31  ;;  %7408 = vmatpush1.bf16.msra.mxu1 %v10851_v32  ;;  %v10939_v31 = vld [vmem:[%s11966_s12 + $0xf40] ss:$16 sps:$4 sm:$0xff]   ;;  %v10942_v32 = vld [vmem:[%s11966_s12 + $0xf48] ss:$16 sps:$4 sm:$0xff]  }
 0x1c7   : > { %6753 = vmatprep.subr.bf16.mxu0 %v10856_v17  ;;  %7409 = vmatprep.subr.bf16.mxu1 %v10859_v33  ;;  %v10947_v17 = vld [vmem:[%s11966_s12 + $0xf64] ss:$16 sps:$4 sm:$0xff]   ;;  %v10950_v33 = vld [vmem:[%s11966_s12 + $0xf6c] ss:$16 sps:$4 sm:$0xff]  }
 0x1ca   : > { %6754 = vmatpush1.bf16.msra.mxu0 %v10854_v34  ;;  %7410 = vmatpush1.bf16.msra.mxu1 %v10857_v35  ;;  %v10945_v34 = vld [vmem:[%s11966_s12 + $0xf60] ss:$16 sps:$4 sm:$0xff]   ;;  %v10948_v35 = vld [vmem:[%s11966_s12 + $0xf68] ss:$16 sps:$4 sm:$0xff]  }
 0x1cb   : > { %6755 = vmatprep.subr.bf16.mxu0 %v10862_v27  ;;  %7411 = vmatprep.subr.bf16.mxu1 %v10865_v36  ;;  %v10953_v27 = vld [vmem:[%s11966_s12 + $0xf84] ss:$16 sps:$4 sm:$0xff]   ;;  %v10956_v36 = vld [vmem:[%s11966_s12 + $0xf8c] ss:$16 sps:$4 sm:$0xff]  }
 0x1ce   : > { %6756 = vmatpush1.bf16.msra.mxu0 %v10860_v38  ;;  %7412 = vmatpush1.bf16.msra.mxu1 %v10863_v39  ;;  %v10951_v38 = vld [vmem:[%s11966_s12 + $0xf80] ss:$16 sps:$4 sm:$0xff]   ;;  %v10954_v39 = vld [vmem:[%s11966_s12 + $0xf88] ss:$16 sps:$4 sm:$0xff]  }
 0x1cf   : > { %6757 = vmatprep.subr.bf16.mxu0 %v10868_v41  ;;  %7413 = vmatprep.subr.bf16.mxu1 %v10871_v42  ;;  %v10959_v41 = vld [vmem:[%s11966_s12 + $0xfa4] ss:$16 sps:$4 sm:$0xff]   ;;  %v10962_v42 = vld [vmem:[%s11966_s12 + $0xfac] ss:$16 sps:$4 sm:$0xff]  }
 0x1d2   : > { %6758 = vmatpush1.bf16.msra.mxu0 %v10866_v23  ;;  %7414 = vmatpush1.bf16.msra.mxu1 %v10869_v43  ;;  %v10957_v23 = vld [vmem:[%s11966_s12 + $0xfa0] ss:$16 sps:$4 sm:$0xff]   ;;  %v10960_v43 = vld [vmem:[%s11966_s12 + $0xfa8] ss:$16 sps:$4 sm:$0xff]  }
 0x1d3   : > { %6759 = vmatprep.subr.bf16.mxu0 %v10874_v44  ;;  %7415 = vmatprep.subr.bf16.mxu1 %v10877_v46  ;;  %v10965_v44 = vld [vmem:[%s11966_s12 + $0xfc4] ss:$16 sps:$4 sm:$0xff]   ;;  %v10968_v46 = vld [vmem:[%s11966_s12 + $0xfcc] ss:$16 sps:$4 sm:$0xff]  }
 0x1d6   : > { %6760 = vmatpush1.bf16.msra.mxu0 %v10872_v37  ;;  %7416 = vmatpush1.bf16.msra.mxu1 %v10875_v47  ;;  %v12555_v37 = vld [vmem:[%s11961_s8 + $0x10] sm:$0xff] }
 0x1d7   : > { %6770 = vmatprep.subr.bf16.mxu0 %v10881_v48  ;;  %7426 = vmatprep.subr.bf16.mxu1 %v10884_v49  ;;  %v10963_v47 = vld [vmem:[%s11966_s12 + $0xfc0] ss:$16 sps:$4 sm:$0xff]   ;;  %v10966_v48 = vld [vmem:[%s11966_s12 + $0xfc8] ss:$16 sps:$4 sm:$0xff]   ;;  %v10971_v49 = vld [vmem:[%s11966_s12 + $0xfe4] ss:$16 sps:$4 sm:$0xff]  }
 0x1d9   : > { %6762 = vmatmul.mubr.bf16.vlgmr.msra.gmra.mrb[0].mxu0 %v12492_v15  ;;  %7418 = vmatmul.mubr.bf16.vlgmr.msra.gmra.mrb[0].mxu1 %v12492_v15 }
 0x1da   : > { %6771 = vmatpush1.bf16.msra.mxu0 %v10879_v52  ;;  %7427 = vmatpush1.bf16.msra.mxu1 %v10882_v53  ;;  %v10974_v52 = vld [vmem:[%s11966_s12 + $0xfec] ss:$16 sps:$4 sm:$0xff]   ;;  %v12563_v53 = vrot.slane %v12555_v37, %v12016_v51 }
 0x1db   : > { %6772 = vmatprep.subr.bf16.mxu0 %v10887_v55  ;;  %7428 = vmatprep.subr.bf16.mxu1 %v10890_v56  ;;  %v10969_v55 = vld [vmem:[%s11966_s12 + $0xfe0] ss:$16 sps:$4 sm:$0xff]   ;;  %v10972_v56 = vld [vmem:[%s11966_s12 + $0xfe8] ss:$16 sps:$4 sm:$0xff]  }
 0x1dc   : > { %6802 = vmatprep.mubr.bf16.mxu0 %v1394_v57  ;;  %7458 = vmatprep.mubr.bf16.mxu1 %v1394_v57  ;;  %v10977_v57 = vld [vmem:[%s11966_s12 + $0x1004] ss:$16 sps:$4 sm:$0xff]  }
 0x1de   : > { %6773 = vmatpush1.bf16.msra.mxu0 %v10885_v40  ;;  %7429 = vmatpush1.bf16.msra.mxu1 %v10888_v58  ;;  %v10980_v40 = vld [vmem:[%s11966_s12 + $0x100c] ss:$16 sps:$4 sm:$0xff]   ;;  %v1410_v58 = vcombine.high %v12563_v53, %v12563_v53 }
 0x1df   : > { %6774 = vmatprep.subr.bf16.mxu0 %v10893_v59  ;;  %7430 = vmatprep.subr.bf16.mxu1 %v10896_v60  ;;  %v1392_v59 = vcombine.high %v12492_v15, %v12492_v15  ;;  %v10975_v60 = vld [vmem:[%s11966_s12 + $0x1000] ss:$16 sps:$4 sm:$0xff]  }
 0x1e0   : > { %v10981_v15 = vld [vmem:[%s11966_s12 + $0x1020] ss:$16 sps:$4 sm:$0xff]  }
 0x1e2   : > { %6775 = vmatpush1.bf16.msra.mxu0 %v10891_v50  ;;  %7431 = vmatpush1.bf16.msra.mxu1 %v10894_v61  ;;  %v10978_v50 = vld [vmem:[%s11966_s12 + $0x1008] ss:$16 sps:$4 sm:$0xff]   ;;  %v10983_v61 = vld [vmem:[%s11966_s12 + $0x1024] ss:$16 sps:$4 sm:$0xff]  }
 0x1e3   : > { %6776 = vmatprep.subr.bf16.mxu0 %v10899_v62  ;;  %7432 = vmatprep.subr.bf16.mxu1 %v10902_v63  ;;  %v10986_v62 = vld [vmem:[%s11966_s12 + $0x102c] ss:$16 sps:$4 sm:$0xff]   ;;  %v12578_v63 = vrot.slane %v1410_v58, %v12016_v51  ;;  %v11062_v58 = vld [vmem:[%s11966_s12 + $0x11c8] ss:$16 sps:$4 sm:$0xff]  }
 0x1e6   : > { %6777 = vmatpush1.bf16.msra.mxu0 %v10897_v0  ;;  %7433 = vmatpush1.bf16.msra.mxu1 %v10900_v1  ;;  %v10984_v0 = vld [vmem:[%s11966_s12 + $0x1028] ss:$16 sps:$4 sm:$0xff]   ;;  %v10989_v1 = vld [vmem:[%s11966_s12 + $0x1044] ss:$16 sps:$4 sm:$0xff]  }
 0x1e7   : > { %6778 = vmatprep.subr.bf16.mxu0 %v10905_v2  ;;  %7434 = vmatprep.subr.bf16.mxu1 %v10908_v3  ;;  %v10992_v2 = vld [vmem:[%s11966_s12 + $0x104c] ss:$16 sps:$4 sm:$0xff]   ;;  %v10987_v3 = vld [vmem:[%s11966_s12 + $0x1040] ss:$16 sps:$4 sm:$0xff]  }
 0x1ea   : > { %6779 = vmatpush1.bf16.msra.mxu0 %v10903_v4  ;;  %7435 = vmatpush1.bf16.msra.mxu1 %v10906_v5  ;;  %v10990_v4 = vld [vmem:[%s11966_s12 + $0x1048] ss:$16 sps:$4 sm:$0xff]   ;;  %v10995_v5 = vld [vmem:[%s11966_s12 + $0x1064] ss:$16 sps:$4 sm:$0xff]  }
 0x1eb   : > { %6780 = vmatprep.subr.bf16.mxu0 %v10911_v6  ;;  %7436 = vmatprep.subr.bf16.mxu1 %v10914_v7  ;;  %v10998_v6 = vld [vmem:[%s11966_s12 + $0x106c] ss:$16 sps:$4 sm:$0xff]   ;;  %v10993_v7 = vld [vmem:[%s11966_s12 + $0x1060] ss:$16 sps:$4 sm:$0xff]  }
 0x1ee   : > { %6781 = vmatpush1.bf16.msra.mxu0 %v10909_v8  ;;  %7437 = vmatpush1.bf16.msra.mxu1 %v10912_v9  ;;  %v10996_v8 = vld [vmem:[%s11966_s12 + $0x1068] ss:$16 sps:$4 sm:$0xff]   ;;  %v11001_v9 = vld [vmem:[%s11966_s12 + $0x1084] ss:$16 sps:$4 sm:$0xff]  }
 0x1ef   : > { %6782 = vmatprep.subr.bf16.mxu0 %v10917_v10  ;;  %7438 = vmatprep.subr.bf16.mxu1 %v10920_v11  ;;  %v11004_v10 = vld [vmem:[%s11966_s12 + $0x108c] ss:$16 sps:$4 sm:$0xff]   ;;  %v10999_v11 = vld [vmem:[%s11966_s12 + $0x1080] ss:$16 sps:$4 sm:$0xff]  }
 0x1f2   : > { %6783 = vmatpush1.bf16.msra.mxu0 %v10915_v12  ;;  %7439 = vmatpush1.bf16.msra.mxu1 %v10918_v13  ;;  %v11002_v12 = vld [vmem:[%s11966_s12 + $0x1088] ss:$16 sps:$4 sm:$0xff]   ;;  %v11007_v13 = vld [vmem:[%s11966_s12 + $0x10a4] ss:$16 sps:$4 sm:$0xff]  }
 0x1f3   : > { %6784 = vmatprep.subr.bf16.mxu0 %v10923_v14  ;;  %7440 = vmatprep.subr.bf16.mxu1 %v10926_v16  ;;  %v11010_v14 = vld [vmem:[%s11966_s12 + $0x10ac] ss:$16 sps:$4 sm:$0xff]   ;;  %v11005_v16 = vld [vmem:[%s11966_s12 + $0x10a0] ss:$16 sps:$4 sm:$0xff]  }
 0x1f6   : > { %6785 = vmatpush1.bf16.msra.mxu0 %v10921_v18  ;;  %7441 = vmatpush1.bf16.msra.mxu1 %v10924_v54  ;;  %v11008_v18 = vld [vmem:[%s11966_s12 + $0x10a8] ss:$16 sps:$4 sm:$0xff]   ;;  %v11013_v54 = vld [vmem:[%s11966_s12 + $0x10c4] ss:$16 sps:$4 sm:$0xff]  }
 0x1f7   : > { %6786 = vmatprep.subr.bf16.mxu0 %v10929_v19  ;;  %7442 = vmatprep.subr.bf16.mxu1 %v10932_v20  ;;  %v11016_v19 = vld [vmem:[%s11966_s12 + $0x10cc] ss:$16 sps:$4 sm:$0xff]   ;;  %v11011_v20 = vld [vmem:[%s11966_s12 + $0x10c0] ss:$16 sps:$4 sm:$0xff]  }
 0x1fa   : > { %6787 = vmatpush1.bf16.msra.mxu0 %v10927_v21  ;;  %7443 = vmatpush1.bf16.msra.mxu1 %v10930_v22  ;;  %v11014_v21 = vld [vmem:[%s11966_s12 + $0x10c8] ss:$16 sps:$4 sm:$0xff]   ;;  %v11019_v22 = vld [vmem:[%s11966_s12 + $0x10e4] ss:$16 sps:$4 sm:$0xff]  }
 0x1fb   : > { %6788 = vmatprep.subr.bf16.mxu0 %v10935_v24  ;;  %7444 = vmatprep.subr.bf16.mxu1 %v10938_v25  ;;  %v11022_v24 = vld [vmem:[%s11966_s12 + $0x10ec] ss:$16 sps:$4 sm:$0xff]   ;;  %v11017_v25 = vld [vmem:[%s11966_s12 + $0x10e0] ss:$16 sps:$4 sm:$0xff]  }
 0x1fe   : > { %6789 = vmatpush1.bf16.msra.mxu0 %v10933_v26  ;;  %7445 = vmatpush1.bf16.msra.mxu1 %v10936_v28  ;;  %v11020_v26 = vld [vmem:[%s11966_s12 + $0x10e8] ss:$16 sps:$4 sm:$0xff]   ;;  %v11025_v28 = vld [vmem:[%s11966_s12 + $0x1104] ss:$16 sps:$4 sm:$0xff]  }
 0x1ff   : > { %6790 = vmatprep.subr.bf16.mxu0 %v10941_v29  ;;  %7446 = vmatprep.subr.bf16.mxu1 %v10944_v30  ;;  %v11028_v29 = vld [vmem:[%s11966_s12 + $0x110c] ss:$16 sps:$4 sm:$0xff]   ;;  %v11023_v30 = vld [vmem:[%s11966_s12 + $0x1100] ss:$16 sps:$4 sm:$0xff]  }
 0x202   : > { %6791 = vmatpush1.bf16.msra.mxu0 %v10939_v31  ;;  %7447 = vmatpush1.bf16.msra.mxu1 %v10942_v32  ;;  %v11026_v31 = vld [vmem:[%s11966_s12 + $0x1108] ss:$16 sps:$4 sm:$0xff]   ;;  %v11031_v32 = vld [vmem:[%s11966_s12 + $0x1124] ss:$16 sps:$4 sm:$0xff]  }
 0x203   : > { %6792 = vmatprep.subr.bf16.mxu0 %v10947_v17  ;;  %7448 = vmatprep.subr.bf16.mxu1 %v10950_v33  ;;  %v11034_v17 = vld [vmem:[%s11966_s12 + $0x112c] ss:$16 sps:$4 sm:$0xff]   ;;  %v11029_v33 = vld [vmem:[%s11966_s12 + $0x1120] ss:$16 sps:$4 sm:$0xff]  }
 0x206   : > { %6793 = vmatpush1.bf16.msra.mxu0 %v10945_v34  ;;  %7449 = vmatpush1.bf16.msra.mxu1 %v10948_v35  ;;  %v11032_v34 = vld [vmem:[%s11966_s12 + $0x1128] ss:$16 sps:$4 sm:$0xff]   ;;  %v11037_v35 = vld [vmem:[%s11966_s12 + $0x1144] ss:$16 sps:$4 sm:$0xff]  }
 0x207   : > { %6794 = vmatprep.subr.bf16.mxu0 %v10953_v27  ;;  %7450 = vmatprep.subr.bf16.mxu1 %v10956_v36  ;;  %v11040_v27 = vld [vmem:[%s11966_s12 + $0x114c] ss:$16 sps:$4 sm:$0xff]   ;;  %v11035_v36 = vld [vmem:[%s11966_s12 + $0x1140] ss:$16 sps:$4 sm:$0xff]  }
 0x20a   : > { %6795 = vmatpush1.bf16.msra.mxu0 %v10951_v38  ;;  %7451 = vmatpush1.bf16.msra.mxu1 %v10954_v39  ;;  %v11038_v38 = vld [vmem:[%s11966_s12 + $0x1148] ss:$16 sps:$4 sm:$0xff]   ;;  %v11043_v39 = vld [vmem:[%s11966_s12 + $0x1164] ss:$16 sps:$4 sm:$0xff]  }
 0x20b   : > { %6796 = vmatprep.subr.bf16.mxu0 %v10959_v41  ;;  %7452 = vmatprep.subr.bf16.mxu1 %v10962_v42  ;;  %v11046_v41 = vld [vmem:[%s11966_s12 + $0x116c] ss:$16 sps:$4 sm:$0xff]   ;;  %v11041_v42 = vld [vmem:[%s11966_s12 + $0x1160] ss:$16 sps:$4 sm:$0xff]  }
 0x20e   : > { %6797 = vmatpush1.bf16.msra.mxu0 %v10957_v23  ;;  %7453 = vmatpush1.bf16.msra.mxu1 %v10960_v43  ;;  %v11044_v23 = vld [vmem:[%s11966_s12 + $0x1168] ss:$16 sps:$4 sm:$0xff]   ;;  %v11049_v43 = vld [vmem:[%s11966_s12 + $0x1184] ss:$16 sps:$4 sm:$0xff]  }
 0x20f   : > { %6798 = vmatprep.subr.bf16.mxu0 %v10965_v44  ;;  %7454 = vmatprep.subr.bf16.mxu1 %v10968_v46  ;;  %v11052_v44 = vld [vmem:[%s11966_s12 + $0x118c] ss:$16 sps:$4 sm:$0xff]   ;;  %v11047_v46 = vld [vmem:[%s11966_s12 + $0x1180] ss:$16 sps:$4 sm:$0xff]  }
 0x212   : > { %6799 = vmatpush1.bf16.msra.mxu0 %v10963_v47  ;;  %7455 = vmatpush1.bf16.msra.mxu1 %v10966_v48  ;;  %v11050_v47 = vld [vmem:[%s11966_s12 + $0x1188] ss:$16 sps:$4 sm:$0xff]   ;;  %v11055_v48 = vld [vmem:[%s11966_s12 + $0x11a4] ss:$16 sps:$4 sm:$0xff]  }
 0x213   : > { %6800 = vmatprep.subr.bf16.mxu0 %v10971_v49  ;;  %7456 = vmatprep.subr.bf16.mxu1 %v10974_v52  ;;  %v11058_v49 = vld [vmem:[%s11966_s12 + $0x11ac] ss:$16 sps:$4 sm:$0xff]   ;;  %v11053_v52 = vld [vmem:[%s11966_s12 + $0x11a0] ss:$16 sps:$4 sm:$0xff]  }
 0x216   : > { %6801 = vmatpush1.bf16.msra.mxu0 %v10969_v55  ;;  %7457 = vmatpush1.bf16.msra.mxu1 %v10972_v56  ;;  %v11056_v55 = vld [vmem:[%s11966_s12 + $0x11a8] ss:$16 sps:$4 sm:$0xff]   ;;  %v11061_v56 = vld [vmem:[%s11966_s12 + $0x11c4] ss:$16 sps:$4 sm:$0xff]  }
 0x217   : > { %6811 = vmatprep.subr.bf16.mxu0 %v10977_v57  ;;  %7467 = vmatprep.subr.bf16.mxu1 %v10980_v40  ;;  %v11064_v57 = vld [vmem:[%s11966_s12 + $0x11cc] ss:$16 sps:$4 sm:$0xff]   ;;  %v11059_v40 = vld [vmem:[%s11966_s12 + $0x11c0] ss:$16 sps:$4 sm:$0xff]  }
 0x219   : > { %6803 = vmatmul.mubr.bf16.vlgmr.msra.gmra.mrb[0].mxu0 %v1392_v59  ;;  %7459 = vmatmul.mubr.bf16.vlgmr.msra.gmra.mrb[0].mxu1 %v1392_v59  ;;  %v11067_v59 = vld [vmem:[%s11966_s12 + $0x11e4] ss:$16 sps:$4 sm:$0xff]  }
 0x21a   : > { %6812 = vmatpush1.bf16.msra.mxu0 %v10975_v60  ;;  %7468 = vmatpush1.bf16.msra.mxu1 %v10978_v50  ;;  %v11070_v60 = vld [vmem:[%s11966_s12 + $0x11ec] ss:$16 sps:$4 sm:$0xff]   ;;  %v11065_v50 = vld [vmem:[%s11966_s12 + $0x11e0] ss:$16 sps:$4 sm:$0xff]  }
 0x21b   : > { %6813 = vmatprep.subr.bf16.mxu0 %v10983_v61  ;;  %7469 = vmatprep.subr.bf16.mxu1 %v10986_v62  ;;  %v11068_v61 = vld [vmem:[%s11966_s12 + $0x11e8] ss:$16 sps:$4 sm:$0xff]   ;;  %v11073_v62 = vld [vmem:[%s11966_s12 + $0x1204] ss:$16 sps:$4 sm:$0xff]  }
 0x21c   : > { %6843 = vmatprep.mubr.bf16.mxu0 %v12578_v63  ;;  %7499 = vmatprep.mubr.bf16.mxu1 %v12578_v63 }
 0x21e   : > { %6814 = vmatpush1.bf16.msra.mxu0 %v10981_v15  ;;  %7470 = vmatpush1.bf16.msra.mxu1 %v10984_v0  ;;  %v11076_v15 = vld [vmem:[%s11966_s12 + $0x120c] ss:$16 sps:$4 sm:$0xff]   ;;  %v12644_v0 = vrot.slane %v12563_v53, %v12016_v51  ;;  %v11077_v53 = vld [vmem:[%s11966_s12 + $0x1220] ss:$16 sps:$4 sm:$0xff]  }
 0x21f   : > { %6815 = vmatprep.subr.bf16.mxu0 %v10989_v1  ;;  %7471 = vmatprep.subr.bf16.mxu1 %v10992_v2  ;;  %v11071_v1 = vld [vmem:[%s11966_s12 + $0x1200] ss:$16 sps:$4 sm:$0xff]   ;;  %v11074_v2 = vld [vmem:[%s11966_s12 + $0x1208] ss:$16 sps:$4 sm:$0xff]  }
 0x222   : > { %6816 = vmatpush1.bf16.msra.mxu0 %v10987_v3  ;;  %7472 = vmatpush1.bf16.msra.mxu1 %v10990_v4  ;;  %v11079_v3 = vld [vmem:[%s11966_s12 + $0x1224] ss:$16 sps:$4 sm:$0xff]   ;;  %v11082_v4 = vld [vmem:[%s11966_s12 + $0x122c] ss:$16 sps:$4 sm:$0xff]  }
 0x223   : > { %6817 = vmatprep.subr.bf16.mxu0 %v10995_v5  ;;  %7473 = vmatprep.subr.bf16.mxu1 %v10998_v6  ;;  %v1442_v5 = vcombine.high %v12578_v63, %v12578_v63  ;;  %v11080_v6 = vld [vmem:[%s11966_s12 + $0x1228] ss:$16 sps:$4 sm:$0xff]   ;;  %v11083_v63 = vld [vmem:[%s11966_s12 + $0x1240] ss:$16 sps:$4 sm:$0xff]  }
 0x226   : > { %6818 = vmatpush1.bf16.msra.mxu0 %v10993_v7  ;;  %7474 = vmatpush1.bf16.msra.mxu1 %v10996_v8  ;;  %v11085_v7 = vld [vmem:[%s11966_s12 + $0x1244] ss:$16 sps:$4 sm:$0xff]   ;;  %v11088_v8 = vld [vmem:[%s11966_s12 + $0x124c] ss:$16 sps:$4 sm:$0xff]  }
 0x227   : > { %6819 = vmatprep.subr.bf16.mxu0 %v11001_v9  ;;  %7475 = vmatprep.subr.bf16.mxu1 %v11004_v10  ;;  %v11086_v9 = vld [vmem:[%s11966_s12 + $0x1248] ss:$16 sps:$4 sm:$0xff]   ;;  %v11091_v10 = vld [vmem:[%s11966_s12 + $0x1264] ss:$16 sps:$4 sm:$0xff]  }
 0x22a   : > { %6820 = vmatpush1.bf16.msra.mxu0 %v10999_v11  ;;  %7476 = vmatpush1.bf16.msra.mxu1 %v11002_v12  ;;  %v11094_v11 = vld [vmem:[%s11966_s12 + $0x126c] ss:$16 sps:$4 sm:$0xff]   ;;  %v11089_v12 = vld [vmem:[%s11966_s12 + $0x1260] ss:$16 sps:$4 sm:$0xff]  }
 0x22b   : > { %6821 = vmatprep.subr.bf16.mxu0 %v11007_v13  ;;  %7477 = vmatprep.subr.bf16.mxu1 %v11010_v14  ;;  %v11092_v13 = vld [vmem:[%s11966_s12 + $0x1268] ss:$16 sps:$4 sm:$0xff]   ;;  %v11097_v14 = vld [vmem:[%s11966_s12 + $0x1284] ss:$16 sps:$4 sm:$0xff]  }
 0x22e   : > { %6822 = vmatpush1.bf16.msra.mxu0 %v11005_v16  ;;  %7478 = vmatpush1.bf16.msra.mxu1 %v11008_v18  ;;  %v11100_v16 = vld [vmem:[%s11966_s12 + $0x128c] ss:$16 sps:$4 sm:$0xff]   ;;  %v11095_v18 = vld [vmem:[%s11966_s12 + $0x1280] ss:$16 sps:$4 sm:$0xff]  }
 0x22f   : > { %6823 = vmatprep.subr.bf16.mxu0 %v11013_v54  ;;  %7479 = vmatprep.subr.bf16.mxu1 %v11016_v19  ;;  %v11098_v54 = vld [vmem:[%s11966_s12 + $0x1288] ss:$16 sps:$4 sm:$0xff]   ;;  %v11103_v19 = vld [vmem:[%s11966_s12 + $0x12a4] ss:$16 sps:$4 sm:$0xff]  }
 0x232   : > { %6824 = vmatpush1.bf16.msra.mxu0 %v11011_v20  ;;  %7480 = vmatpush1.bf16.msra.mxu1 %v11014_v21  ;;  %v11106_v20 = vld [vmem:[%s11966_s12 + $0x12ac] ss:$16 sps:$4 sm:$0xff]   ;;  %v11101_v21 = vld [vmem:[%s11966_s12 + $0x12a0] ss:$16 sps:$4 sm:$0xff]  }
 0x233   : > { %6825 = vmatprep.subr.bf16.mxu0 %v11019_v22  ;;  %7481 = vmatprep.subr.bf16.mxu1 %v11022_v24  ;;  %v11104_v22 = vld [vmem:[%s11966_s12 + $0x12a8] ss:$16 sps:$4 sm:$0xff]   ;;  %v11109_v24 = vld [vmem:[%s11966_s12 + $0x12c4] ss:$16 sps:$4 sm:$0xff]  }
 0x236   : > { %6826 = vmatpush1.bf16.msra.mxu0 %v11017_v25  ;;  %7482 = vmatpush1.bf16.msra.mxu1 %v11020_v26  ;;  %v11112_v25 = vld [vmem:[%s11966_s12 + $0x12cc] ss:$16 sps:$4 sm:$0xff]   ;;  %v11107_v26 = vld [vmem:[%s11966_s12 + $0x12c0] ss:$16 sps:$4 sm:$0xff]  }
 0x237   : > { %6827 = vmatprep.subr.bf16.mxu0 %v11025_v28  ;;  %7483 = vmatprep.subr.bf16.mxu1 %v11028_v29  ;;  %v11110_v28 = vld [vmem:[%s11966_s12 + $0x12c8] ss:$16 sps:$4 sm:$0xff]   ;;  %v11115_v29 = vld [vmem:[%s11966_s12 + $0x12e4] ss:$16 sps:$4 sm:$0xff]  }
 0x23a   : > { %6828 = vmatpush1.bf16.msra.mxu0 %v11023_v30  ;;  %7484 = vmatpush1.bf16.msra.mxu1 %v11026_v31  ;;  %v11118_v30 = vld [vmem:[%s11966_s12 + $0x12ec] ss:$16 sps:$4 sm:$0xff]   ;;  %v11113_v31 = vld [vmem:[%s11966_s12 + $0x12e0] ss:$16 sps:$4 sm:$0xff]  }
 0x23b   : > { %6829 = vmatprep.subr.bf16.mxu0 %v11031_v32  ;;  %7485 = vmatprep.subr.bf16.mxu1 %v11034_v17  ;;  %v11116_v32 = vld [vmem:[%s11966_s12 + $0x12e8] ss:$16 sps:$4 sm:$0xff]   ;;  %v11121_v17 = vld [vmem:[%s11966_s12 + $0x1304] ss:$16 sps:$4 sm:$0xff]  }
 0x23e   : > { %6830 = vmatpush1.bf16.msra.mxu0 %v11029_v33  ;;  %7486 = vmatpush1.bf16.msra.mxu1 %v11032_v34  ;;  %v11124_v33 = vld [vmem:[%s11966_s12 + $0x130c] ss:$16 sps:$4 sm:$0xff]   ;;  %v11119_v34 = vld [vmem:[%s11966_s12 + $0x1300] ss:$16 sps:$4 sm:$0xff]  }
 0x23f   : > { %6831 = vmatprep.subr.bf16.mxu0 %v11037_v35  ;;  %7487 = vmatprep.subr.bf16.mxu1 %v11040_v27  ;;  %v11122_v35 = vld [vmem:[%s11966_s12 + $0x1308] ss:$16 sps:$4 sm:$0xff]   ;;  %v11127_v27 = vld [vmem:[%s11966_s12 + $0x1324] ss:$16 sps:$4 sm:$0xff]  }
 0x242   : > { %6832 = vmatpush1.bf16.msra.mxu0 %v11035_v36  ;;  %7488 = vmatpush1.bf16.msra.mxu1 %v11038_v38  ;;  %v11130_v36 = vld [vmem:[%s11966_s12 + $0x132c] ss:$16 sps:$4 sm:$0xff]   ;;  %v11125_v38 = vld [vmem:[%s11966_s12 + $0x1320] ss:$16 sps:$4 sm:$0xff]  }
 0x243   : > { %6833 = vmatprep.subr.bf16.mxu0 %v11043_v39  ;;  %7489 = vmatprep.subr.bf16.mxu1 %v11046_v41  ;;  %v11128_v39 = vld [vmem:[%s11966_s12 + $0x1328] ss:$16 sps:$4 sm:$0xff]   ;;  %v11133_v41 = vld [vmem:[%s11966_s12 + $0x1344] ss:$16 sps:$4 sm:$0xff]  }
 0x246   : > { %6834 = vmatpush1.bf16.msra.mxu0 %v11041_v42  ;;  %7490 = vmatpush1.bf16.msra.mxu1 %v11044_v23  ;;  %v11136_v42 = vld [vmem:[%s11966_s12 + $0x134c] ss:$16 sps:$4 sm:$0xff]   ;;  %v11131_v23 = vld [vmem:[%s11966_s12 + $0x1340] ss:$16 sps:$4 sm:$0xff]  }
 0x247   : > { %6835 = vmatprep.subr.bf16.mxu0 %v11049_v43  ;;  %7491 = vmatprep.subr.bf16.mxu1 %v11052_v44  ;;  %v11134_v43 = vld [vmem:[%s11966_s12 + $0x1348] ss:$16 sps:$4 sm:$0xff]   ;;  %v11139_v44 = vld [vmem:[%s11966_s12 + $0x1364] ss:$16 sps:$4 sm:$0xff]  }
 0x24a   : > { %6836 = vmatpush1.bf16.msra.mxu0 %v11047_v46  ;;  %7492 = vmatpush1.bf16.msra.mxu1 %v11050_v47  ;;  %v11142_v46 = vld [vmem:[%s11966_s12 + $0x136c] ss:$16 sps:$4 sm:$0xff]   ;;  %v11137_v47 = vld [vmem:[%s11966_s12 + $0x1360] ss:$16 sps:$4 sm:$0xff]  }
 0x24b   : > { %6837 = vmatprep.subr.bf16.mxu0 %v11055_v48  ;;  %7493 = vmatprep.subr.bf16.mxu1 %v11058_v49  ;;  %v11140_v48 = vld [vmem:[%s11966_s12 + $0x1368] ss:$16 sps:$4 sm:$0xff]   ;;  %v11145_v49 = vld [vmem:[%s11966_s12 + $0x1384] ss:$16 sps:$4 sm:$0xff]  }
 0x24e   : > { %6838 = vmatpush1.bf16.msra.mxu0 %v11053_v52  ;;  %7494 = vmatpush1.bf16.msra.mxu1 %v11056_v55  ;;  %v11148_v52 = vld [vmem:[%s11966_s12 + $0x138c] ss:$16 sps:$4 sm:$0xff]   ;;  %v11143_v55 = vld [vmem:[%s11966_s12 + $0x1380] ss:$16 sps:$4 sm:$0xff]  }
 0x24f   : > { %6839 = vmatprep.subr.bf16.mxu0 %v11061_v56  ;;  %7495 = vmatprep.subr.bf16.mxu1 %v11064_v57  ;;  %v11146_v56 = vld [vmem:[%s11966_s12 + $0x1388] ss:$16 sps:$4 sm:$0xff]   ;;  %v11151_v57 = vld [vmem:[%s11966_s12 + $0x13a4] ss:$16 sps:$4 sm:$0xff]  }
 0x252   : > { %6840 = vmatpush1.bf16.msra.mxu0 %v11059_v40  ;;  %7496 = vmatpush1.bf16.msra.mxu1 %v11062_v58  ;;  %v11154_v40 = vld [vmem:[%s11966_s12 + $0x13ac] ss:$16 sps:$4 sm:$0xff]   ;;  %v11149_v58 = vld [vmem:[%s11966_s12 + $0x13a0] ss:$16 sps:$4 sm:$0xff]  }
 0x253   : > { %6841 = vmatprep.subr.bf16.mxu0 %v11067_v59  ;;  %7497 = vmatprep.subr.bf16.mxu1 %v11070_v60  ;;  %v11152_v59 = vld [vmem:[%s11966_s12 + $0x13a8] ss:$16 sps:$4 sm:$0xff]   ;;  %v11157_v60 = vld [vmem:[%s11966_s12 + $0x13c4] ss:$16 sps:$4 sm:$0xff]  }
 0x256   : > { %6842 = vmatpush1.bf16.msra.mxu0 %v11065_v50  ;;  %7498 = vmatpush1.bf16.msra.mxu1 %v11068_v61  ;;  %v11160_v50 = vld [vmem:[%s11966_s12 + $0x13cc] ss:$16 sps:$4 sm:$0xff]   ;;  %v1395_v61 = vcombine.high %v12555_v37, %v12555_v37  ;;  %v11161_v37 = vld [vmem:[%s11966_s12 + $0x13e0] ss:$16 sps:$4 sm:$0xff]  }
 0x257   : > { %6852 = vmatprep.subr.bf16.mxu0 %v11073_v62  ;;  %7508 = vmatprep.subr.bf16.mxu1 %v11076_v15  ;;  %v11155_v62 = vld [vmem:[%s11966_s12 + $0x13c0] ss:$16 sps:$4 sm:$0xff]   ;;  %v11158_v15 = vld [vmem:[%s11966_s12 + $0x13c8] ss:$16 sps:$4 sm:$0xff]  }
 0x259   : > { %6844 = vmatmul.mubr.bf16.vlgmr.msra.gmra.mrb[0].mxu0 %v12644_v0  ;;  %7500 = vmatmul.mubr.bf16.vlgmr.msra.gmra.mrb[0].mxu1 %v12644_v0 }
 0x25a   : > { %6853 = vmatpush1.bf16.msra.mxu0 %v11071_v1  ;;  %7509 = vmatpush1.bf16.msra.mxu1 %v11074_v2  ;;  %v11163_v1 = vld [vmem:[%s11966_s12 + $0x13e4] ss:$16 sps:$4 sm:$0xff]   ;;  %v11166_v2 = vld [vmem:[%s11966_s12 + $0x13ec] ss:$16 sps:$4 sm:$0xff]  }
 0x25b   : > { %6854 = vmatprep.subr.bf16.mxu0 %v11079_v3  ;;  %7510 = vmatprep.subr.bf16.mxu1 %v11082_v4  ;;  %v12713_v3 = vrot.slane %v1395_v61, %v12016_v51  ;;  %v11164_v4 = vld [vmem:[%s11966_s12 + $0x13e8] ss:$16 sps:$4 sm:$0xff]  }
 0x25c   : > { %6884 = vmatprep.mubr.bf16.mxu0 %v1442_v5  ;;  %7540 = vmatprep.mubr.bf16.mxu1 %v1442_v5  ;;  %v11169_v5 = vld [vmem:[%s11966_s12 + $0x1404] ss:$16 sps:$4 sm:$0xff]   ;;  %v11242_v61 = vld [vmem:[%s11966_s12 + $0x1588] ss:$16 sps:$4 sm:$0xff]  }
 0x25e   : > { %6855 = vmatpush1.bf16.msra.mxu0 %v11077_v53  ;;  %7511 = vmatpush1.bf16.msra.mxu1 %v11080_v6  ;;  %v11172_v53 = vld [vmem:[%s11966_s12 + $0x140c] ss:$16 sps:$4 sm:$0xff]   ;;  %v1411_v6 = vcombine.high %v12713_v3, %v12713_v3 }
 0x25f   : > { %6856 = vmatprep.subr.bf16.mxu0 %v11085_v7  ;;  %7512 = vmatprep.subr.bf16.mxu1 %v11088_v8  ;;  %v1440_v7 = vcombine.high %v12644_v0, %v12644_v0  ;;  %v11167_v8 = vld [vmem:[%s11966_s12 + $0x1400] ss:$16 sps:$4 sm:$0xff]  }
 0x260   : > { %v11173_v0 = vld [vmem:[%s11966_s12 + $0x1420] ss:$16 sps:$4 sm:$0xff]  }
 0x262   : > { %6857 = vmatpush1.bf16.msra.mxu0 %v11083_v63  ;;  %7513 = vmatpush1.bf16.msra.mxu1 %v11086_v9  ;;  %v11170_v63 = vld [vmem:[%s11966_s12 + $0x1408] ss:$16 sps:$4 sm:$0xff]   ;;  %v11175_v9 = vld [vmem:[%s11966_s12 + $0x1424] ss:$16 sps:$4 sm:$0xff]  }
 0x263   : > { %6858 = vmatprep.subr.bf16.mxu0 %v11091_v10  ;;  %7514 = vmatprep.subr.bf16.mxu1 %v11094_v11  ;;  %v11178_v10 = vld [vmem:[%s11966_s12 + $0x142c] ss:$16 sps:$4 sm:$0xff]   ;;  %v12728_v11 = vrot.slane %v1411_v6, %v12016_v51  ;;  %v11259_v6 = vld [vmem:[%s11966_s12 + $0x15e4] ss:$16 sps:$4 sm:$0xff]  }
 0x266   : > { %6859 = vmatpush1.bf16.msra.mxu0 %v11089_v12  ;;  %7515 = vmatpush1.bf16.msra.mxu1 %v11092_v13  ;;  %v11176_v12 = vld [vmem:[%s11966_s12 + $0x1428] ss:$16 sps:$4 sm:$0xff]   ;;  %v11181_v13 = vld [vmem:[%s11966_s12 + $0x1444] ss:$16 sps:$4 sm:$0xff]  }
 0x267   : > { %6860 = vmatprep.subr.bf16.mxu0 %v11097_v14  ;;  %7516 = vmatprep.subr.bf16.mxu1 %v11100_v16  ;;  %v11184_v14 = vld [vmem:[%s11966_s12 + $0x144c] ss:$16 sps:$4 sm:$0xff]   ;;  %v11179_v16 = vld [vmem:[%s11966_s12 + $0x1440] ss:$16 sps:$4 sm:$0xff]  }
 0x26a   : > { %6861 = vmatpush1.bf16.msra.mxu0 %v11095_v18  ;;  %7517 = vmatpush1.bf16.msra.mxu1 %v11098_v54  ;;  %v11182_v18 = vld [vmem:[%s11966_s12 + $0x1448] ss:$16 sps:$4 sm:$0xff]   ;;  %v11187_v54 = vld [vmem:[%s11966_s12 + $0x1464] ss:$16 sps:$4 sm:$0xff]  }
 0x26b   : > { %6862 = vmatprep.subr.bf16.mxu0 %v11103_v19  ;;  %7518 = vmatprep.subr.bf16.mxu1 %v11106_v20  ;;  %v11190_v19 = vld [vmem:[%s11966_s12 + $0x146c] ss:$16 sps:$4 sm:$0xff]   ;;  %v11185_v20 = vld [vmem:[%s11966_s12 + $0x1460] ss:$16 sps:$4 sm:$0xff]  }
 0x26e   : > { %6863 = vmatpush1.bf16.msra.mxu0 %v11101_v21  ;;  %7519 = vmatpush1.bf16.msra.mxu1 %v11104_v22  ;;  %v11188_v21 = vld [vmem:[%s11966_s12 + $0x1468] ss:$16 sps:$4 sm:$0xff]   ;;  %v11193_v22 = vld [vmem:[%s11966_s12 + $0x1484] ss:$16 sps:$4 sm:$0xff]  }
 0x26f   : > { %6864 = vmatprep.subr.bf16.mxu0 %v11109_v24  ;;  %7520 = vmatprep.subr.bf16.mxu1 %v11112_v25  ;;  %v11196_v24 = vld [vmem:[%s11966_s12 + $0x148c] ss:$16 sps:$4 sm:$0xff]   ;;  %v11191_v25 = vld [vmem:[%s11966_s12 + $0x1480] ss:$16 sps:$4 sm:$0xff]  }
 0x272   : > { %6865 = vmatpush1.bf16.msra.mxu0 %v11107_v26  ;;  %7521 = vmatpush1.bf16.msra.mxu1 %v11110_v28  ;;  %v11194_v26 = vld [vmem:[%s11966_s12 + $0x1488] ss:$16 sps:$4 sm:$0xff]   ;;  %v11199_v28 = vld [vmem:[%s11966_s12 + $0x14a4] ss:$16 sps:$4 sm:$0xff]  }
 0x273   : > { %6866 = vmatprep.subr.bf16.mxu0 %v11115_v29  ;;  %7522 = vmatprep.subr.bf16.mxu1 %v11118_v30  ;;  %v11202_v29 = vld [vmem:[%s11966_s12 + $0x14ac] ss:$16 sps:$4 sm:$0xff]   ;;  %v11197_v30 = vld [vmem:[%s11966_s12 + $0x14a0] ss:$16 sps:$4 sm:$0xff]  }
 0x276   : > { %6867 = vmatpush1.bf16.msra.mxu0 %v11113_v31  ;;  %7523 = vmatpush1.bf16.msra.mxu1 %v11116_v32  ;;  %v11200_v31 = vld [vmem:[%s11966_s12 + $0x14a8] ss:$16 sps:$4 sm:$0xff]   ;;  %v11205_v32 = vld [vmem:[%s11966_s12 + $0x14c4] ss:$16 sps:$4 sm:$0xff]  }
 0x277   : > { %6868 = vmatprep.subr.bf16.mxu0 %v11121_v17  ;;  %7524 = vmatprep.subr.bf16.mxu1 %v11124_v33  ;;  %v11208_v17 = vld [vmem:[%s11966_s12 + $0x14cc] ss:$16 sps:$4 sm:$0xff]   ;;  %v11203_v33 = vld [vmem:[%s11966_s12 + $0x14c0] ss:$16 sps:$4 sm:$0xff]  }
 0x27a   : > { %6869 = vmatpush1.bf16.msra.mxu0 %v11119_v34  ;;  %7525 = vmatpush1.bf16.msra.mxu1 %v11122_v35  ;;  %v11206_v34 = vld [vmem:[%s11966_s12 + $0x14c8] ss:$16 sps:$4 sm:$0xff]   ;;  %v11211_v35 = vld [vmem:[%s11966_s12 + $0x14e4] ss:$16 sps:$4 sm:$0xff]  }
 0x27b   : > { %6870 = vmatprep.subr.bf16.mxu0 %v11127_v27  ;;  %7526 = vmatprep.subr.bf16.mxu1 %v11130_v36  ;;  %v11214_v27 = vld [vmem:[%s11966_s12 + $0x14ec] ss:$16 sps:$4 sm:$0xff]   ;;  %v11209_v36 = vld [vmem:[%s11966_s12 + $0x14e0] ss:$16 sps:$4 sm:$0xff]  }
 0x27e   : > { %6871 = vmatpush1.bf16.msra.mxu0 %v11125_v38  ;;  %7527 = vmatpush1.bf16.msra.mxu1 %v11128_v39  ;;  %v11212_v38 = vld [vmem:[%s11966_s12 + $0x14e8] ss:$16 sps:$4 sm:$0xff]   ;;  %v11217_v39 = vld [vmem:[%s11966_s12 + $0x1504] ss:$16 sps:$4 sm:$0xff]  }
 0x27f   : > { %6872 = vmatprep.subr.bf16.mxu0 %v11133_v41  ;;  %7528 = vmatprep.subr.bf16.mxu1 %v11136_v42  ;;  %v11220_v41 = vld [vmem:[%s11966_s12 + $0x150c] ss:$16 sps:$4 sm:$0xff]   ;;  %v11215_v42 = vld [vmem:[%s11966_s12 + $0x1500] ss:$16 sps:$4 sm:$0xff]  }
 0x282   : > { %6873 = vmatpush1.bf16.msra.mxu0 %v11131_v23  ;;  %7529 = vmatpush1.bf16.msra.mxu1 %v11134_v43  ;;  %v11218_v23 = vld [vmem:[%s11966_s12 + $0x1508] ss:$16 sps:$4 sm:$0xff]   ;;  %v11223_v43 = vld [vmem:[%s11966_s12 + $0x1524] ss:$16 sps:$4 sm:$0xff]  }
 0x283   : > { %6874 = vmatprep.subr.bf16.mxu0 %v11139_v44  ;;  %7530 = vmatprep.subr.bf16.mxu1 %v11142_v46  ;;  %v11226_v44 = vld [vmem:[%s11966_s12 + $0x152c] ss:$16 sps:$4 sm:$0xff]   ;;  %v11221_v46 = vld [vmem:[%s11966_s12 + $0x1520] ss:$16 sps:$4 sm:$0xff]  }
 0x286   : > { %6875 = vmatpush1.bf16.msra.mxu0 %v11137_v47  ;;  %7531 = vmatpush1.bf16.msra.mxu1 %v11140_v48  ;;  %v11224_v47 = vld [vmem:[%s11966_s12 + $0x1528] ss:$16 sps:$4 sm:$0xff]   ;;  %v11229_v48 = vld [vmem:[%s11966_s12 + $0x1544] ss:$16 sps:$4 sm:$0xff]  }
 0x287   : > { %6876 = vmatprep.subr.bf16.mxu0 %v11145_v49  ;;  %7532 = vmatprep.subr.bf16.mxu1 %v11148_v52  ;;  %v11232_v49 = vld [vmem:[%s11966_s12 + $0x154c] ss:$16 sps:$4 sm:$0xff]   ;;  %v11227_v52 = vld [vmem:[%s11966_s12 + $0x1540] ss:$16 sps:$4 sm:$0xff]  }
 0x28a   : > { %6877 = vmatpush1.bf16.msra.mxu0 %v11143_v55  ;;  %7533 = vmatpush1.bf16.msra.mxu1 %v11146_v56  ;;  %v11230_v55 = vld [vmem:[%s11966_s12 + $0x1548] ss:$16 sps:$4 sm:$0xff]   ;;  %v11235_v56 = vld [vmem:[%s11966_s12 + $0x1564] ss:$16 sps:$4 sm:$0xff]  }
 0x28b   : > { %6878 = vmatprep.subr.bf16.mxu0 %v11151_v57  ;;  %7534 = vmatprep.subr.bf16.mxu1 %v11154_v40  ;;  %v11238_v57 = vld [vmem:[%s11966_s12 + $0x156c] ss:$16 sps:$4 sm:$0xff]   ;;  %v11233_v40 = vld [vmem:[%s11966_s12 + $0x1560] ss:$16 sps:$4 sm:$0xff]  }
 0x28e   : > { %6879 = vmatpush1.bf16.msra.mxu0 %v11149_v58  ;;  %7535 = vmatpush1.bf16.msra.mxu1 %v11152_v59  ;;  %v11236_v58 = vld [vmem:[%s11966_s12 + $0x1568] ss:$16 sps:$4 sm:$0xff]   ;;  %v11241_v59 = vld [vmem:[%s11966_s12 + $0x1584] ss:$16 sps:$4 sm:$0xff]  }
 0x28f   : > { %6880 = vmatprep.subr.bf16.mxu0 %v11157_v60  ;;  %7536 = vmatprep.subr.bf16.mxu1 %v11160_v50  ;;  %v11244_v60 = vld [vmem:[%s11966_s12 + $0x158c] ss:$16 sps:$4 sm:$0xff]   ;;  %v11239_v50 = vld [vmem:[%s11966_s12 + $0x1580] ss:$16 sps:$4 sm:$0xff]  }
 0x292   : > { %6881 = vmatpush1.bf16.msra.mxu0 %v11155_v62  ;;  %7537 = vmatpush1.bf16.msra.mxu1 %v11158_v15  ;;  %v11247_v62 = vld [vmem:[%s11966_s12 + $0x15a4] ss:$16 sps:$4 sm:$0xff]   ;;  %v11250_v15 = vld [vmem:[%s11966_s12 + $0x15ac] ss:$16 sps:$4 sm:$0xff]  }
 0x293   : > { %6882 = vmatprep.subr.bf16.mxu0 %v11163_v1  ;;  %7538 = vmatprep.subr.bf16.mxu1 %v11166_v2  ;;  %v11245_v1 = vld [vmem:[%s11966_s12 + $0x15a0] ss:$16 sps:$4 sm:$0xff]   ;;  %v11248_v2 = vld [vmem:[%s11966_s12 + $0x15a8] ss:$16 sps:$4 sm:$0xff]  }
 0x296   : > { %6883 = vmatpush1.bf16.msra.mxu0 %v11161_v37  ;;  %7539 = vmatpush1.bf16.msra.mxu1 %v11164_v4  ;;  %v11253_v37 = vld [vmem:[%s11966_s12 + $0x15c4] ss:$16 sps:$4 sm:$0xff]   ;;  %v11256_v4 = vld [vmem:[%s11966_s12 + $0x15cc] ss:$16 sps:$4 sm:$0xff]  }
 0x297   : > { %6893 = vmatprep.subr.bf16.mxu0 %v11169_v5  ;;  %7549 = vmatprep.subr.bf16.mxu1 %v11172_v53  ;;  %v11251_v5 = vld [vmem:[%s11966_s12 + $0x15c0] ss:$16 sps:$4 sm:$0xff]   ;;  %v11254_v53 = vld [vmem:[%s11966_s12 + $0x15c8] ss:$16 sps:$4 sm:$0xff]  }
 0x299   : > { %6885 = vmatmul.mubr.bf16.vlgmr.msra.gmra.mrb[0].mxu0 %v1440_v7  ;;  %7541 = vmatmul.mubr.bf16.vlgmr.msra.gmra.mrb[0].mxu1 %v1440_v7  ;;  %v11262_v7 = vld [vmem:[%s11966_s12 + $0x15ec] ss:$16 sps:$4 sm:$0xff]  }
 0x29a   : > { %6894 = vmatpush1.bf16.msra.mxu0 %v11167_v8  ;;  %7550 = vmatpush1.bf16.msra.mxu1 %v11170_v63  ;;  %v11257_v8 = vld [vmem:[%s11966_s12 + $0x15e0] ss:$16 sps:$4 sm:$0xff]   ;;  %v11260_v63 = vld [vmem:[%s11966_s12 + $0x15e8] ss:$16 sps:$4 sm:$0xff]  }
 0x29b   : > { %6895 = vmatprep.subr.bf16.mxu0 %v11175_v9  ;;  %7551 = vmatprep.subr.bf16.mxu1 %v11178_v10  ;;  %v11266_v9 = vld [vmem:[%s11966_s12 + $0x1604] ss:$16 sps:$4 sm:$0xff]   ;;  %v11269_v10 = vld [vmem:[%s11966_s12 + $0x160c] ss:$16 sps:$4 sm:$0xff]  }
 0x29c   : > { %6925 = vmatprep.mubr.bf16.mxu0 %v12728_v11  ;;  %7581 = vmatprep.mubr.bf16.mxu1 %v12728_v11 }
 0x29e   : > { %6896 = vmatpush1.bf16.msra.mxu0 %v11173_v0  ;;  %7552 = vmatpush1.bf16.msra.mxu1 %v11176_v12  ;;  %v12794_v0 = vrot.slane %v12713_v3, %v12016_v51  ;;  %v11264_v12 = vld [vmem:[%s11966_s12 + $0x1600] ss:$16 sps:$4 sm:$0xff]  }
 0x29f   : > { %6897 = vmatprep.subr.bf16.mxu0 %v11181_v13  ;;  %7553 = vmatprep.subr.bf16.mxu1 %v11184_v14  ;;  %v11267_v13 = vld [vmem:[%s11966_s12 + $0x1608] ss:$16 sps:$4 sm:$0xff]   ;;  %v11272_v14 = vld [vmem:[%s11966_s12 + $0x1624] ss:$16 sps:$4 sm:$0xff]   ;;  %v11270_v3 = vld [vmem:[%s11966_s12 + $0x1620] ss:$16 sps:$4 sm:$0xff]  }
 0x2a2   : > { %6898 = vmatpush1.bf16.msra.mxu0 %v11179_v16  ;;  %7554 = vmatpush1.bf16.msra.mxu1 %v11182_v18  ;;  %v11275_v16 = vld [vmem:[%s11966_s12 + $0x162c] ss:$16 sps:$4 sm:$0xff]   ;;  %v1443_v18 = vcombine.high %v12728_v11, %v12728_v11  ;;  %v11276_v11 = vld [vmem:[%s11966_s12 + $0x1640] ss:$16 sps:$4 sm:$0xff]  }
 0x2a3   : > { %6899 = vmatprep.subr.bf16.mxu0 %v11187_v54  ;;  %7555 = vmatprep.subr.bf16.mxu1 %v11190_v19  ;;  %v11273_v54 = vld [vmem:[%s11966_s12 + $0x1628] ss:$16 sps:$4 sm:$0xff]   ;;  %v11278_v19 = vld [vmem:[%s11966_s12 + $0x1644] ss:$16 sps:$4 sm:$0xff]  }
 0x2a6   : > { %6900 = vmatpush1.bf16.msra.mxu0 %v11185_v20  ;;  %7556 = vmatpush1.bf16.msra.mxu1 %v11188_v21  ;;  %v11281_v20 = vld [vmem:[%s11966_s12 + $0x164c] ss:$16 sps:$4 sm:$0xff]   ;;  %v11279_v21 = vld [vmem:[%s11966_s12 + $0x1648] ss:$16 sps:$4 sm:$0xff]  }
 0x2a7   : > { %6901 = vmatprep.subr.bf16.mxu0 %v11193_v22  ;;  %7557 = vmatprep.subr.bf16.mxu1 %v11196_v24  ;;  %v11284_v22 = vld [vmem:[%s11966_s12 + $0x1664] ss:$16 sps:$4 sm:$0xff]   ;;  %v11287_v24 = vld [vmem:[%s11966_s12 + $0x166c] ss:$16 sps:$4 sm:$0xff]  }
 0x2aa   : > { %6902 = vmatpush1.bf16.msra.mxu0 %v11191_v25  ;;  %7558 = vmatpush1.bf16.msra.mxu1 %v11194_v26  ;;  %v11282_v25 = vld [vmem:[%s11966_s12 + $0x1660] ss:$16 sps:$4 sm:$0xff]   ;;  %v11285_v26 = vld [vmem:[%s11966_s12 + $0x1668] ss:$16 sps:$4 sm:$0xff]  }
 0x2ab   : > { %6903 = vmatprep.subr.bf16.mxu0 %v11199_v28  ;;  %7559 = vmatprep.subr.bf16.mxu1 %v11202_v29  ;;  %v11290_v28 = vld [vmem:[%s11966_s12 + $0x1684] ss:$16 sps:$4 sm:$0xff]   ;;  %v11293_v29 = vld [vmem:[%s11966_s12 + $0x168c] ss:$16 sps:$4 sm:$0xff]  }
 0x2ae   : > { %6904 = vmatpush1.bf16.msra.mxu0 %v11197_v30  ;;  %7560 = vmatpush1.bf16.msra.mxu1 %v11200_v31  ;;  %v11288_v30 = vld [vmem:[%s11966_s12 + $0x1680] ss:$16 sps:$4 sm:$0xff]   ;;  %v11291_v31 = vld [vmem:[%s11966_s12 + $0x1688] ss:$16 sps:$4 sm:$0xff]  }
 0x2af   : > { %6905 = vmatprep.subr.bf16.mxu0 %v11205_v32  ;;  %7561 = vmatprep.subr.bf16.mxu1 %v11208_v17  ;;  %v11296_v32 = vld [vmem:[%s11966_s12 + $0x16a4] ss:$16 sps:$4 sm:$0xff]   ;;  %v11299_v17 = vld [vmem:[%s11966_s12 + $0x16ac] ss:$16 sps:$4 sm:$0xff]  }
 0x2b2   : > { %6906 = vmatpush1.bf16.msra.mxu0 %v11203_v33  ;;  %7562 = vmatpush1.bf16.msra.mxu1 %v11206_v34  ;;  %v11294_v33 = vld [vmem:[%s11966_s12 + $0x16a0] ss:$16 sps:$4 sm:$0xff]   ;;  %v11297_v34 = vld [vmem:[%s11966_s12 + $0x16a8] ss:$16 sps:$4 sm:$0xff]  }
 0x2b3   : > { %6907 = vmatprep.subr.bf16.mxu0 %v11211_v35  ;;  %7563 = vmatprep.subr.bf16.mxu1 %v11214_v27  ;;  %v11302_v35 = vld [vmem:[%s11966_s12 + $0x16c4] ss:$16 sps:$4 sm:$0xff]   ;;  %v11305_v27 = vld [vmem:[%s11966_s12 + $0x16cc] ss:$16 sps:$4 sm:$0xff]  }
 0x2b6   : > { %6908 = vmatpush1.bf16.msra.mxu0 %v11209_v36  ;;  %7564 = vmatpush1.bf16.msra.mxu1 %v11212_v38  ;;  %v11300_v36 = vld [vmem:[%s11966_s12 + $0x16c0] ss:$16 sps:$4 sm:$0xff]   ;;  %v11303_v38 = vld [vmem:[%s11966_s12 + $0x16c8] ss:$16 sps:$4 sm:$0xff]  }
 0x2b7   : > { %6909 = vmatprep.subr.bf16.mxu0 %v11217_v39  ;;  %7565 = vmatprep.subr.bf16.mxu1 %v11220_v41  ;;  %v11308_v39 = vld [vmem:[%s11966_s12 + $0x16e4] ss:$16 sps:$4 sm:$0xff]   ;;  %v11311_v41 = vld [vmem:[%s11966_s12 + $0x16ec] ss:$16 sps:$4 sm:$0xff]  }
 0x2ba   : > { %6910 = vmatpush1.bf16.msra.mxu0 %v11215_v42  ;;  %7566 = vmatpush1.bf16.msra.mxu1 %v11218_v23  ;;  %v11306_v42 = vld [vmem:[%s11966_s12 + $0x16e0] ss:$16 sps:$4 sm:$0xff]   ;;  %v11309_v23 = vld [vmem:[%s11966_s12 + $0x16e8] ss:$16 sps:$4 sm:$0xff]  }
 0x2bb   : > { %6911 = vmatprep.subr.bf16.mxu0 %v11223_v43  ;;  %7567 = vmatprep.subr.bf16.mxu1 %v11226_v44  ;;  %v11314_v43 = vld [vmem:[%s11966_s12 + $0x1704] ss:$16 sps:$4 sm:$0xff]   ;;  %v11317_v44 = vld [vmem:[%s11966_s12 + $0x170c] ss:$16 sps:$4 sm:$0xff]  }
 0x2be   : > { %6912 = vmatpush1.bf16.msra.mxu0 %v11221_v46  ;;  %7568 = vmatpush1.bf16.msra.mxu1 %v11224_v47  ;;  %v11312_v46 = vld [vmem:[%s11966_s12 + $0x1700] ss:$16 sps:$4 sm:$0xff]   ;;  %v11315_v47 = vld [vmem:[%s11966_s12 + $0x1708] ss:$16 sps:$4 sm:$0xff]  }
 0x2bf   : > { %6913 = vmatprep.subr.bf16.mxu0 %v11229_v48  ;;  %7569 = vmatprep.subr.bf16.mxu1 %v11232_v49  ;;  %v11320_v48 = vld [vmem:[%s11966_s12 + $0x1724] ss:$16 sps:$4 sm:$0xff]   ;;  %v11323_v49 = vld [vmem:[%s11966_s12 + $0x172c] ss:$16 sps:$4 sm:$0xff]  }
 0x2c2   : > { %6914 = vmatpush1.bf16.msra.mxu0 %v11227_v52  ;;  %7570 = vmatpush1.bf16.msra.mxu1 %v11230_v55  ;;  %v11318_v52 = vld [vmem:[%s11966_s12 + $0x1720] ss:$16 sps:$4 sm:$0xff]   ;;  %v11321_v55 = vld [vmem:[%s11966_s12 + $0x1728] ss:$16 sps:$4 sm:$0xff]  }
 0x2c3   : > { %6915 = vmatprep.subr.bf16.mxu0 %v11235_v56  ;;  %7571 = vmatprep.subr.bf16.mxu1 %v11238_v57  ;;  %v11326_v56 = vld [vmem:[%s11966_s12 + $0x1744] ss:$16 sps:$4 sm:$0xff]   ;;  %v11329_v57 = vld [vmem:[%s11966_s12 + $0x174c] ss:$16 sps:$4 sm:$0xff]  }
 0x2c6   : > { %6916 = vmatpush1.bf16.msra.mxu0 %v11233_v40  ;;  %7572 = vmatpush1.bf16.msra.mxu1 %v11236_v58  ;;  %v11324_v40 = vld [vmem:[%s11966_s12 + $0x1740] ss:$16 sps:$4 sm:$0xff]   ;;  %v11327_v58 = vld [vmem:[%s11966_s12 + $0x1748] ss:$16 sps:$4 sm:$0xff]  }
 0x2c7   : > { %6917 = vmatprep.subr.bf16.mxu0 %v11241_v59  ;;  %7573 = vmatprep.subr.bf16.mxu1 %v11244_v60  ;;  %v11332_v59 = vld [vmem:[%s11966_s12 + $0x1764] ss:$16 sps:$4 sm:$0xff]   ;;  %v11335_v60 = vld [vmem:[%s11966_s12 + $0x176c] ss:$16 sps:$4 sm:$0xff]  }
 0x2ca   : > { %6918 = vmatpush1.bf16.msra.mxu0 %v11239_v50  ;;  %7574 = vmatpush1.bf16.msra.mxu1 %v11242_v61  ;;  %v11330_v50 = vld [vmem:[%s11966_s12 + $0x1760] ss:$16 sps:$4 sm:$0xff]   ;;  %v11333_v61 = vld [vmem:[%s11966_s12 + $0x1768] ss:$16 sps:$4 sm:$0xff]  }
 0x2cb   : > { %6919 = vmatprep.subr.bf16.mxu0 %v11247_v62  ;;  %7575 = vmatprep.subr.bf16.mxu1 %v11250_v15  ;;  %v11338_v62 = vld [vmem:[%s11966_s12 + $0x1784] ss:$16 sps:$4 sm:$0xff]   ;;  %v11341_v15 = vld [vmem:[%s11966_s12 + $0x178c] ss:$16 sps:$4 sm:$0xff]  }
 0x2ce   : > { %6920 = vmatpush1.bf16.msra.mxu0 %v11245_v1  ;;  %7576 = vmatpush1.bf16.msra.mxu1 %v11248_v2  ;;  %v11336_v1 = vld [vmem:[%s11966_s12 + $0x1780] ss:$16 sps:$4 sm:$0xff]   ;;  %v11339_v2 = vld [vmem:[%s11966_s12 + $0x1788] ss:$16 sps:$4 sm:$0xff]  }
 0x2cf   : > { %6921 = vmatprep.subr.bf16.mxu0 %v11253_v37  ;;  %7577 = vmatprep.subr.bf16.mxu1 %v11256_v4  ;;  %v11344_v37 = vld [vmem:[%s11966_s12 + $0x17a4] ss:$16 sps:$4 sm:$0xff]   ;;  %v11347_v4 = vld [vmem:[%s11966_s12 + $0x17ac] ss:$16 sps:$4 sm:$0xff]  }
 0x2d2   : > { %6922 = vmatpush1.bf16.msra.mxu0 %v11251_v5  ;;  %7578 = vmatpush1.bf16.msra.mxu1 %v11254_v53  ;;  %v11342_v5 = vld [vmem:[%s11966_s12 + $0x17a0] ss:$16 sps:$4 sm:$0xff]   ;;  %v11345_v53 = vld [vmem:[%s11966_s12 + $0x17a8] ss:$16 sps:$4 sm:$0xff]  }
 0x2d3   : > { %6923 = vmatprep.subr.bf16.mxu0 %v11259_v6  ;;  %7579 = vmatprep.subr.bf16.mxu1 %v11262_v7  ;;  %v11350_v6 = vld [vmem:[%s11966_s12 + $0x17c4] ss:$16 sps:$4 sm:$0xff]   ;;  %v11353_v7 = vld [vmem:[%s11966_s12 + $0x17cc] ss:$16 sps:$4 sm:$0xff]  }
 0x2d6   : > { %6924 = vmatpush1.bf16.msra.mxu0 %v11257_v8  ;;  %7580 = vmatpush1.bf16.msra.mxu1 %v11260_v63  ;;  %v12857_v8 = vld [vmem:[%s11961_s8 + $0x18] sm:$0x7f]  ;;  %v11348_v63 = vld [vmem:[%s11966_s12 + $0x17c0] ss:$16 sps:$4 sm:$0xff]  }
 0x2d7   : > { %6934 = vmatprep.subr.bf16.mxu0 %v11266_v9  ;;  %7590 = vmatprep.subr.bf16.mxu1 %v11269_v10  ;;  %v11351_v9 = vld [vmem:[%s11966_s12 + $0x17c8] ss:$16 sps:$4 sm:$0xff]   ;;  %v11356_v10 = vld [vmem:[%s11966_s12 + $0x17e4] ss:$16 sps:$4 sm:$0xff]  }
 0x2d9   : > { %6926 = vmatmul.mubr.bf16.vlgmr.msra.gmra.mrb[0].mxu0 %v12794_v0  ;;  %7582 = vmatmul.mubr.bf16.vlgmr.msra.gmra.mrb[0].mxu1 %v12794_v0 }
 0x2da   : > { %6935 = vmatpush1.bf16.msra.mxu0 %v11264_v12  ;;  %7591 = vmatpush1.bf16.msra.mxu1 %v11267_v13  ;;  %v11359_v12 = vld [vmem:[%s11966_s12 + $0x17ec] ss:$16 sps:$4 sm:$0xff]   ;;  %v12865_v13 = vrot.slane %v12857_v8, %v12016_v51 }
 0x2db   : > { %6936 = vmatprep.subr.bf16.mxu0 %v11272_v14  ;;  %7592 = vmatprep.subr.bf16.mxu1 %v11275_v16  ;;  %v11354_v14 = vld [vmem:[%s11966_s12 + $0x17e0] ss:$16 sps:$4 sm:$0xff]   ;;  %v11357_v16 = vld [vmem:[%s11966_s12 + $0x17e8] ss:$16 sps:$4 sm:$0xff]  }
 0x2dc   : > { %6966 = vmatprep.mubr.bf16.mxu0 %v1443_v18  ;;  %7622 = vmatprep.mubr.bf16.mxu1 %v1443_v18  ;;  %v11362_v18 = vld [vmem:[%s11966_s12 + $0x1804] ss:$16 sps:$4 sm:$0xff]  }
 0x2de   : > { %6937 = vmatpush1.bf16.msra.mxu0 %v11270_v3  ;;  %7593 = vmatpush1.bf16.msra.mxu1 %v11273_v54  ;;  %v11365_v3 = vld [vmem:[%s11966_s12 + $0x180c] ss:$16 sps:$4 sm:$0xff]   ;;  %v1459_v54 = vcombine.high %v12865_v13, %v12865_v13 }
 0x2df   : > { %6938 = vmatprep.subr.bf16.mxu0 %v11278_v19  ;;  %7594 = vmatprep.subr.bf16.mxu1 %v11281_v20  ;;  %v1441_v19 = vcombine.high %v12794_v0, %v12794_v0  ;;  %v11360_v20 = vld [vmem:[%s11966_s12 + $0x1800] ss:$16 sps:$4 sm:$0xff]  }
 0x2e0   : > { %v11366_v0 = vld [vmem:[%s11966_s12 + $0x1820] ss:$16 sps:$4 sm:$0xff]  }
 0x2e2   : > { %6939 = vmatpush1.bf16.msra.mxu0 %v11276_v11  ;;  %7595 = vmatpush1.bf16.msra.mxu1 %v11279_v21  ;;  %v11363_v11 = vld [vmem:[%s11966_s12 + $0x1808] ss:$16 sps:$4 sm:$0xff]   ;;  %v11368_v21 = vld [vmem:[%s11966_s12 + $0x1824] ss:$16 sps:$4 sm:$0xff]  }
 0x2e3   : > { %6940 = vmatprep.subr.bf16.mxu0 %v11284_v22  ;;  %7596 = vmatprep.subr.bf16.mxu1 %v11287_v24  ;;  %v11371_v22 = vld [vmem:[%s11966_s12 + $0x182c] ss:$16 sps:$4 sm:$0xff]   ;;  %v12880_v24 = vrot.slane %v1459_v54, %v12016_v51  ;;  %v11447_v54 = vld [vmem:[%s11966_s12 + $0x19c8] ss:$16 sps:$4 sm:$0xff]  }
 0x2e6   : > { %6941 = vmatpush1.bf16.msra.mxu0 %v11282_v25  ;;  %7597 = vmatpush1.bf16.msra.mxu1 %v11285_v26  ;;  %v11369_v25 = vld [vmem:[%s11966_s12 + $0x1828] ss:$16 sps:$4 sm:$0xff]   ;;  %v11374_v26 = vld [vmem:[%s11966_s12 + $0x1844] ss:$16 sps:$4 sm:$0xff]  }
 0x2e7   : > { %6942 = vmatprep.subr.bf16.mxu0 %v11290_v28  ;;  %7598 = vmatprep.subr.bf16.mxu1 %v11293_v29  ;;  %v11377_v28 = vld [vmem:[%s11966_s12 + $0x184c] ss:$16 sps:$4 sm:$0xff]   ;;  %v11372_v29 = vld [vmem:[%s11966_s12 + $0x1840] ss:$16 sps:$4 sm:$0xff]  }
 0x2ea   : > { %6943 = vmatpush1.bf16.msra.mxu0 %v11288_v30  ;;  %7599 = vmatpush1.bf16.msra.mxu1 %v11291_v31  ;;  %v11375_v30 = vld [vmem:[%s11966_s12 + $0x1848] ss:$16 sps:$4 sm:$0xff]   ;;  %v11380_v31 = vld [vmem:[%s11966_s12 + $0x1864] ss:$16 sps:$4 sm:$0xff]  }
 0x2eb   : > { %6944 = vmatprep.subr.bf16.mxu0 %v11296_v32  ;;  %7600 = vmatprep.subr.bf16.mxu1 %v11299_v17  ;;  %v11383_v32 = vld [vmem:[%s11966_s12 + $0x186c] ss:$16 sps:$4 sm:$0xff]   ;;  %v11378_v17 = vld [vmem:[%s11966_s12 + $0x1860] ss:$16 sps:$4 sm:$0xff]  }
 0x2ee   : > { %6945 = vmatpush1.bf16.msra.mxu0 %v11294_v33  ;;  %7601 = vmatpush1.bf16.msra.mxu1 %v11297_v34  ;;  %v11381_v33 = vld [vmem:[%s11966_s12 + $0x1868] ss:$16 sps:$4 sm:$0xff]   ;;  %v11386_v34 = vld [vmem:[%s11966_s12 + $0x1884] ss:$16 sps:$4 sm:$0xff]  }
 0x2ef   : > { %6946 = vmatprep.subr.bf16.mxu0 %v11302_v35  ;;  %7602 = vmatprep.subr.bf16.mxu1 %v11305_v27  ;;  %v11389_v35 = vld [vmem:[%s11966_s12 + $0x188c] ss:$16 sps:$4 sm:$0xff]   ;;  %v11384_v27 = vld [vmem:[%s11966_s12 + $0x1880] ss:$16 sps:$4 sm:$0xff]  }
 0x2f2   : > { %6947 = vmatpush1.bf16.msra.mxu0 %v11300_v36  ;;  %7603 = vmatpush1.bf16.msra.mxu1 %v11303_v38  ;;  %v11387_v36 = vld [vmem:[%s11966_s12 + $0x1888] ss:$16 sps:$4 sm:$0xff]   ;;  %v11392_v38 = vld [vmem:[%s11966_s12 + $0x18a4] ss:$16 sps:$4 sm:$0xff]  }
 0x2f3   : > { %6948 = vmatprep.subr.bf16.mxu0 %v11308_v39  ;;  %7604 = vmatprep.subr.bf16.mxu1 %v11311_v41  ;;  %v11395_v39 = vld [vmem:[%s11966_s12 + $0x18ac] ss:$16 sps:$4 sm:$0xff]   ;;  %v11390_v41 = vld [vmem:[%s11966_s12 + $0x18a0] ss:$16 sps:$4 sm:$0xff]  }
 0x2f6   : > { %6949 = vmatpush1.bf16.msra.mxu0 %v11306_v42  ;;  %7605 = vmatpush1.bf16.msra.mxu1 %v11309_v23  ;;  %v11393_v42 = vld [vmem:[%s11966_s12 + $0x18a8] ss:$16 sps:$4 sm:$0xff]   ;;  %v11398_v23 = vld [vmem:[%s11966_s12 + $0x18c4] ss:$16 sps:$4 sm:$0xff]  }
 0x2f7   : > { %6950 = vmatprep.subr.bf16.mxu0 %v11314_v43  ;;  %7606 = vmatprep.subr.bf16.mxu1 %v11317_v44  ;;  %v11401_v43 = vld [vmem:[%s11966_s12 + $0x18cc] ss:$16 sps:$4 sm:$0xff]   ;;  %v11396_v44 = vld [vmem:[%s11966_s12 + $0x18c0] ss:$16 sps:$4 sm:$0xff]  }
 0x2fa   : > { %6951 = vmatpush1.bf16.msra.mxu0 %v11312_v46  ;;  %7607 = vmatpush1.bf16.msra.mxu1 %v11315_v47  ;;  %v11399_v46 = vld [vmem:[%s11966_s12 + $0x18c8] ss:$16 sps:$4 sm:$0xff]   ;;  %v11404_v47 = vld [vmem:[%s11966_s12 + $0x18e4] ss:$16 sps:$4 sm:$0xff]  }
 0x2fb   : > { %6952 = vmatprep.subr.bf16.mxu0 %v11320_v48  ;;  %7608 = vmatprep.subr.bf16.mxu1 %v11323_v49  ;;  %v11407_v48 = vld [vmem:[%s11966_s12 + $0x18ec] ss:$16 sps:$4 sm:$0xff]   ;;  %v11402_v49 = vld [vmem:[%s11966_s12 + $0x18e0] ss:$16 sps:$4 sm:$0xff]  }
 0x2fe   : > { %6953 = vmatpush1.bf16.msra.mxu0 %v11318_v52  ;;  %7609 = vmatpush1.bf16.msra.mxu1 %v11321_v55  ;;  %v11405_v52 = vld [vmem:[%s11966_s12 + $0x18e8] ss:$16 sps:$4 sm:$0xff]   ;;  %v11410_v55 = vld [vmem:[%s11966_s12 + $0x1904] ss:$16 sps:$4 sm:$0xff]  }
 0x2ff   : > { %6954 = vmatprep.subr.bf16.mxu0 %v11326_v56  ;;  %7610 = vmatprep.subr.bf16.mxu1 %v11329_v57  ;;  %v11413_v56 = vld [vmem:[%s11966_s12 + $0x190c] ss:$16 sps:$4 sm:$0xff]   ;;  %v11408_v57 = vld [vmem:[%s11966_s12 + $0x1900] ss:$16 sps:$4 sm:$0xff]  }
 0x302   : > { %6955 = vmatpush1.bf16.msra.mxu0 %v11324_v40  ;;  %7611 = vmatpush1.bf16.msra.mxu1 %v11327_v58  ;;  %v11411_v40 = vld [vmem:[%s11966_s12 + $0x1908] ss:$16 sps:$4 sm:$0xff]   ;;  %v11416_v58 = vld [vmem:[%s11966_s12 + $0x1924] ss:$16 sps:$4 sm:$0xff]  }
 0x303   : > { %6956 = vmatprep.subr.bf16.mxu0 %v11332_v59  ;;  %7612 = vmatprep.subr.bf16.mxu1 %v11335_v60  ;;  %v11419_v59 = vld [vmem:[%s11966_s12 + $0x192c] ss:$16 sps:$4 sm:$0xff]   ;;  %v11414_v60 = vld [vmem:[%s11966_s12 + $0x1920] ss:$16 sps:$4 sm:$0xff]  }
 0x306   : > { %6957 = vmatpush1.bf16.msra.mxu0 %v11330_v50  ;;  %7613 = vmatpush1.bf16.msra.mxu1 %v11333_v61  ;;  %v11417_v50 = vld [vmem:[%s11966_s12 + $0x1928] ss:$16 sps:$4 sm:$0xff]   ;;  %v11422_v61 = vld [vmem:[%s11966_s12 + $0x1944] ss:$16 sps:$4 sm:$0xff]  }
 0x307   : > { %6958 = vmatprep.subr.bf16.mxu0 %v11338_v62  ;;  %7614 = vmatprep.subr.bf16.mxu1 %v11341_v15  ;;  %v11425_v62 = vld [vmem:[%s11966_s12 + $0x194c] ss:$16 sps:$4 sm:$0xff]   ;;  %v11420_v15 = vld [vmem:[%s11966_s12 + $0x1940] ss:$16 sps:$4 sm:$0xff]  }
 0x30a   : > { %6959 = vmatpush1.bf16.msra.mxu0 %v11336_v1  ;;  %7615 = vmatpush1.bf16.msra.mxu1 %v11339_v2  ;;  %v11423_v1 = vld [vmem:[%s11966_s12 + $0x1948] ss:$16 sps:$4 sm:$0xff]   ;;  %v11428_v2 = vld [vmem:[%s11966_s12 + $0x1964] ss:$16 sps:$4 sm:$0xff]  }
 0x30b   : > { %6960 = vmatprep.subr.bf16.mxu0 %v11344_v37  ;;  %7616 = vmatprep.subr.bf16.mxu1 %v11347_v4  ;;  %v11431_v37 = vld [vmem:[%s11966_s12 + $0x196c] ss:$16 sps:$4 sm:$0xff]   ;;  %v11426_v4 = vld [vmem:[%s11966_s12 + $0x1960] ss:$16 sps:$4 sm:$0xff]  }
 0x30e   : > { %6961 = vmatpush1.bf16.msra.mxu0 %v11342_v5  ;;  %7617 = vmatpush1.bf16.msra.mxu1 %v11345_v53  ;;  %v11429_v5 = vld [vmem:[%s11966_s12 + $0x1968] ss:$16 sps:$4 sm:$0xff]   ;;  %v11434_v53 = vld [vmem:[%s11966_s12 + $0x1984] ss:$16 sps:$4 sm:$0xff]  }
 0x30f   : > { %6962 = vmatprep.subr.bf16.mxu0 %v11350_v6  ;;  %7618 = vmatprep.subr.bf16.mxu1 %v11353_v7  ;;  %v11437_v6 = vld [vmem:[%s11966_s12 + $0x198c] ss:$16 sps:$4 sm:$0xff]   ;;  %v11432_v7 = vld [vmem:[%s11966_s12 + $0x1980] ss:$16 sps:$4 sm:$0xff]  }
 0x312   : > { %6963 = vmatpush1.bf16.msra.mxu0 %v11348_v63  ;;  %7619 = vmatpush1.bf16.msra.mxu1 %v11351_v9  ;;  %v11435_v63 = vld [vmem:[%s11966_s12 + $0x1988] ss:$16 sps:$4 sm:$0xff]   ;;  %v11440_v9 = vld [vmem:[%s11966_s12 + $0x19a4] ss:$16 sps:$4 sm:$0xff]  }
 0x313   : > { %6964 = vmatprep.subr.bf16.mxu0 %v11356_v10  ;;  %7620 = vmatprep.subr.bf16.mxu1 %v11359_v12  ;;  %v11443_v10 = vld [vmem:[%s11966_s12 + $0x19ac] ss:$16 sps:$4 sm:$0xff]   ;;  %v11438_v12 = vld [vmem:[%s11966_s12 + $0x19a0] ss:$16 sps:$4 sm:$0xff]  }
 0x316   : > { %6965 = vmatpush1.bf16.msra.mxu0 %v11354_v14  ;;  %7621 = vmatpush1.bf16.msra.mxu1 %v11357_v16  ;;  %v11441_v14 = vld [vmem:[%s11966_s12 + $0x19a8] ss:$16 sps:$4 sm:$0xff]   ;;  %v11446_v16 = vld [vmem:[%s11966_s12 + $0x19c4] ss:$16 sps:$4 sm:$0xff]  }
 0x317   : > { %6975 = vmatprep.subr.bf16.mxu0 %v11362_v18  ;;  %7631 = vmatprep.subr.bf16.mxu1 %v11365_v3  ;;  %v11449_v18 = vld [vmem:[%s11966_s12 + $0x19cc] ss:$16 sps:$4 sm:$0xff]   ;;  %v11444_v3 = vld [vmem:[%s11966_s12 + $0x19c0] ss:$16 sps:$4 sm:$0xff]  }
 0x319   : > { %6967 = vmatmul.mubr.bf16.vlgmr.msra.gmra.mrb[0].mxu0 %v1441_v19  ;;  %7623 = vmatmul.mubr.bf16.vlgmr.msra.gmra.mrb[0].mxu1 %v1441_v19  ;;  %v11452_v19 = vld [vmem:[%s11966_s12 + $0x19e4] ss:$16 sps:$4 sm:$0xff]  }
 0x31a   : > { %6976 = vmatpush1.bf16.msra.mxu0 %v11360_v20  ;;  %7632 = vmatpush1.bf16.msra.mxu1 %v11363_v11  ;;  %v11455_v20 = vld [vmem:[%s11966_s12 + $0x19ec] ss:$16 sps:$4 sm:$0xff]   ;;  %v11450_v11 = vld [vmem:[%s11966_s12 + $0x19e0] ss:$16 sps:$4 sm:$0xff]  }
 0x31b   : > { %6977 = vmatprep.subr.bf16.mxu0 %v11368_v21  ;;  %7633 = vmatprep.subr.bf16.mxu1 %v11371_v22  ;;  %v11453_v21 = vld [vmem:[%s11966_s12 + $0x19e8] ss:$16 sps:$4 sm:$0xff]   ;;  %v11458_v22 = vld [vmem:[%s11966_s12 + $0x1a04] ss:$16 sps:$4 sm:$0xff]  }
 0x31c   : > { %7007 = vmatprep.mubr.bf16.mxu0 %v12880_v24  ;;  %7663 = vmatprep.mubr.bf16.mxu1 %v12880_v24 }
 0x31e   : > { %6978 = vmatpush1.bf16.msra.mxu0 %v11366_v0  ;;  %7634 = vmatpush1.bf16.msra.mxu1 %v11369_v25  ;;  %v11461_v0 = vld [vmem:[%s11966_s12 + $0x1a0c] ss:$16 sps:$4 sm:$0xff]   ;;  %v12946_v25 = vrot.slane %v12865_v13, %v12016_v51  ;;  %v11462_v13 = vld [vmem:[%s11966_s12 + $0x1a20] ss:$16 sps:$4 sm:$0xff]  }
 0x31f   : > { %6979 = vmatprep.subr.bf16.mxu0 %v11374_v26  ;;  %7635 = vmatprep.subr.bf16.mxu1 %v11377_v28  ;;  %v11456_v26 = vld [vmem:[%s11966_s12 + $0x1a00] ss:$16 sps:$4 sm:$0xff]   ;;  %v11459_v28 = vld [vmem:[%s11966_s12 + $0x1a08] ss:$16 sps:$4 sm:$0xff]  }
 0x322   : > { %6980 = vmatpush1.bf16.msra.mxu0 %v11372_v29  ;;  %7636 = vmatpush1.bf16.msra.mxu1 %v11375_v30  ;;  %v11464_v29 = vld [vmem:[%s11966_s12 + $0x1a24] ss:$16 sps:$4 sm:$0xff]   ;;  %v11467_v30 = vld [vmem:[%s11966_s12 + $0x1a2c] ss:$16 sps:$4 sm:$0xff]  }
 0x323   : > { %6981 = vmatprep.subr.bf16.mxu0 %v11380_v31  ;;  %7637 = vmatprep.subr.bf16.mxu1 %v11383_v32  ;;  %v1491_v31 = vcombine.high %v12880_v24, %v12880_v24  ;;  %v11465_v32 = vld [vmem:[%s11966_s12 + $0x1a28] ss:$16 sps:$4 sm:$0xff]   ;;  %v11468_v24 = vld [vmem:[%s11966_s12 + $0x1a40] ss:$16 sps:$4 sm:$0xff]  }
 0x326   : > { %6982 = vmatpush1.bf16.msra.mxu0 %v11378_v17  ;;  %7638 = vmatpush1.bf16.msra.mxu1 %v11381_v33  ;;  %v11470_v17 = vld [vmem:[%s11966_s12 + $0x1a44] ss:$16 sps:$4 sm:$0xff]   ;;  %v11473_v33 = vld [vmem:[%s11966_s12 + $0x1a4c] ss:$16 sps:$4 sm:$0xff]  }
 0x327   : > { %6983 = vmatprep.subr.bf16.mxu0 %v11386_v34  ;;  %7639 = vmatprep.subr.bf16.mxu1 %v11389_v35  ;;  %v11471_v34 = vld [vmem:[%s11966_s12 + $0x1a48] ss:$16 sps:$4 sm:$0xff]   ;;  %v11476_v35 = vld [vmem:[%s11966_s12 + $0x1a64] ss:$16 sps:$4 sm:$0xff]  }
 0x32a   : > { %6984 = vmatpush1.bf16.msra.mxu0 %v11384_v27  ;;  %7640 = vmatpush1.bf16.msra.mxu1 %v11387_v36  ;;  %v11479_v27 = vld [vmem:[%s11966_s12 + $0x1a6c] ss:$16 sps:$4 sm:$0xff]   ;;  %v11474_v36 = vld [vmem:[%s11966_s12 + $0x1a60] ss:$16 sps:$4 sm:$0xff]  }
 0x32b   : > { %6985 = vmatprep.subr.bf16.mxu0 %v11392_v38  ;;  %7641 = vmatprep.subr.bf16.mxu1 %v11395_v39  ;;  %v11477_v38 = vld [vmem:[%s11966_s12 + $0x1a68] ss:$16 sps:$4 sm:$0xff]   ;;  %v11482_v39 = vld [vmem:[%s11966_s12 + $0x1a84] ss:$16 sps:$4 sm:$0xff]  }
 0x32e   : > { %6986 = vmatpush1.bf16.msra.mxu0 %v11390_v41  ;;  %7642 = vmatpush1.bf16.msra.mxu1 %v11393_v42  ;;  %v11485_v41 = vld [vmem:[%s11966_s12 + $0x1a8c] ss:$16 sps:$4 sm:$0xff]   ;;  %v11480_v42 = vld [vmem:[%s11966_s12 + $0x1a80] ss:$16 sps:$4 sm:$0xff]  }
 0x32f   : > { %6987 = vmatprep.subr.bf16.mxu0 %v11398_v23  ;;  %7643 = vmatprep.subr.bf16.mxu1 %v11401_v43  ;;  %v11483_v23 = vld [vmem:[%s11966_s12 + $0x1a88] ss:$16 sps:$4 sm:$0xff]   ;;  %v11488_v43 = vld [vmem:[%s11966_s12 + $0x1aa4] ss:$16 sps:$4 sm:$0xff]  }
 0x332   : > { %6988 = vmatpush1.bf16.msra.mxu0 %v11396_v44  ;;  %7644 = vmatpush1.bf16.msra.mxu1 %v11399_v46  ;;  %v11491_v44 = vld [vmem:[%s11966_s12 + $0x1aac] ss:$16 sps:$4 sm:$0xff]   ;;  %v11486_v46 = vld [vmem:[%s11966_s12 + $0x1aa0] ss:$16 sps:$4 sm:$0xff]  }
 0x333   : > { %6989 = vmatprep.subr.bf16.mxu0 %v11404_v47  ;;  %7645 = vmatprep.subr.bf16.mxu1 %v11407_v48  ;;  %v11489_v47 = vld [vmem:[%s11966_s12 + $0x1aa8] ss:$16 sps:$4 sm:$0xff]   ;;  %v11494_v48 = vld [vmem:[%s11966_s12 + $0x1ac4] ss:$16 sps:$4 sm:$0xff]  }
 0x336   : > { %6990 = vmatpush1.bf16.msra.mxu0 %v11402_v49  ;;  %7646 = vmatpush1.bf16.msra.mxu1 %v11405_v52  ;;  %v11497_v49 = vld [vmem:[%s11966_s12 + $0x1acc] ss:$16 sps:$4 sm:$0xff]   ;;  %v11492_v52 = vld [vmem:[%s11966_s12 + $0x1ac0] ss:$16 sps:$4 sm:$0xff]  }
 0x337   : > { %6991 = vmatprep.subr.bf16.mxu0 %v11410_v55  ;;  %7647 = vmatprep.subr.bf16.mxu1 %v11413_v56  ;;  %v11495_v55 = vld [vmem:[%s11966_s12 + $0x1ac8] ss:$16 sps:$4 sm:$0xff]   ;;  %v11500_v56 = vld [vmem:[%s11966_s12 + $0x1ae4] ss:$16 sps:$4 sm:$0xff]  }
 0x33a   : > { %6992 = vmatpush1.bf16.msra.mxu0 %v11408_v57  ;;  %7648 = vmatpush1.bf16.msra.mxu1 %v11411_v40  ;;  %v11503_v57 = vld [vmem:[%s11966_s12 + $0x1aec] ss:$16 sps:$4 sm:$0xff]   ;;  %v11498_v40 = vld [vmem:[%s11966_s12 + $0x1ae0] ss:$16 sps:$4 sm:$0xff]  }
 0x33b   : > { %6993 = vmatprep.subr.bf16.mxu0 %v11416_v58  ;;  %7649 = vmatprep.subr.bf16.mxu1 %v11419_v59  ;;  %v11501_v58 = vld [vmem:[%s11966_s12 + $0x1ae8] ss:$16 sps:$4 sm:$0xff]   ;;  %v11506_v59 = vld [vmem:[%s11966_s12 + $0x1b04] ss:$16 sps:$4 sm:$0xff]  }
 0x33e   : > { %6994 = vmatpush1.bf16.msra.mxu0 %v11414_v60  ;;  %7650 = vmatpush1.bf16.msra.mxu1 %v11417_v50  ;;  %v11509_v60 = vld [vmem:[%s11966_s12 + $0x1b0c] ss:$16 sps:$4 sm:$0xff]   ;;  %v11504_v50 = vld [vmem:[%s11966_s12 + $0x1b00] ss:$16 sps:$4 sm:$0xff]  }
 0x33f   : > { %6995 = vmatprep.subr.bf16.mxu0 %v11422_v61  ;;  %7651 = vmatprep.subr.bf16.mxu1 %v11425_v62  ;;  %v11507_v61 = vld [vmem:[%s11966_s12 + $0x1b08] ss:$16 sps:$4 sm:$0xff]   ;;  %v11512_v62 = vld [vmem:[%s11966_s12 + $0x1b24] ss:$16 sps:$4 sm:$0xff]  }
 0x342   : > { %6996 = vmatpush1.bf16.msra.mxu0 %v11420_v15  ;;  %7652 = vmatpush1.bf16.msra.mxu1 %v11423_v1  ;;  %v11515_v15 = vld [vmem:[%s11966_s12 + $0x1b2c] ss:$16 sps:$4 sm:$0xff]   ;;  %v11510_v1 = vld [vmem:[%s11966_s12 + $0x1b20] ss:$16 sps:$4 sm:$0xff]  }
 0x343   : > { %6997 = vmatprep.subr.bf16.mxu0 %v11428_v2  ;;  %7653 = vmatprep.subr.bf16.mxu1 %v11431_v37  ;;  %v11513_v2 = vld [vmem:[%s11966_s12 + $0x1b28] ss:$16 sps:$4 sm:$0xff]   ;;  %v11518_v37 = vld [vmem:[%s11966_s12 + $0x1b44] ss:$16 sps:$4 sm:$0xff]  }
 0x346   : > { %6998 = vmatpush1.bf16.msra.mxu0 %v11426_v4  ;;  %7654 = vmatpush1.bf16.msra.mxu1 %v11429_v5  ;;  %v11521_v4 = vld [vmem:[%s11966_s12 + $0x1b4c] ss:$16 sps:$4 sm:$0xff]   ;;  %v11516_v5 = vld [vmem:[%s11966_s12 + $0x1b40] ss:$16 sps:$4 sm:$0xff]  }
 0x347   : > { %6999 = vmatprep.subr.bf16.mxu0 %v11434_v53  ;;  %7655 = vmatprep.subr.bf16.mxu1 %v11437_v6  ;;  %v11519_v53 = vld [vmem:[%s11966_s12 + $0x1b48] ss:$16 sps:$4 sm:$0xff]   ;;  %v11524_v6 = vld [vmem:[%s11966_s12 + $0x1b64] ss:$16 sps:$4 sm:$0xff]  }
 0x34a   : > { %7000 = vmatpush1.bf16.msra.mxu0 %v11432_v7  ;;  %7656 = vmatpush1.bf16.msra.mxu1 %v11435_v63  ;;  %v11527_v7 = vld [vmem:[%s11966_s12 + $0x1b6c] ss:$16 sps:$4 sm:$0xff]   ;;  %v11522_v63 = vld [vmem:[%s11966_s12 + $0x1b60] ss:$16 sps:$4 sm:$0xff]  }
 0x34b   : > { %7001 = vmatprep.subr.bf16.mxu0 %v11440_v9  ;;  %7657 = vmatprep.subr.bf16.mxu1 %v11443_v10  ;;  %v11525_v9 = vld [vmem:[%s11966_s12 + $0x1b68] ss:$16 sps:$4 sm:$0xff]   ;;  %v11530_v10 = vld [vmem:[%s11966_s12 + $0x1b84] ss:$16 sps:$4 sm:$0xff]  }
 0x34e   : > { %7002 = vmatpush1.bf16.msra.mxu0 %v11438_v12  ;;  %7658 = vmatpush1.bf16.msra.mxu1 %v11441_v14  ;;  %v11533_v12 = vld [vmem:[%s11966_s12 + $0x1b8c] ss:$16 sps:$4 sm:$0xff]   ;;  %v11528_v14 = vld [vmem:[%s11966_s12 + $0x1b80] ss:$16 sps:$4 sm:$0xff]  }
 0x34f   : > { %7003 = vmatprep.subr.bf16.mxu0 %v11446_v16  ;;  %7659 = vmatprep.subr.bf16.mxu1 %v11449_v18  ;;  %v11531_v16 = vld [vmem:[%s11966_s12 + $0x1b88] ss:$16 sps:$4 sm:$0xff]   ;;  %v11536_v18 = vld [vmem:[%s11966_s12 + $0x1ba4] ss:$16 sps:$4 sm:$0xff]  }
 0x352   : > { %7004 = vmatpush1.bf16.msra.mxu0 %v11444_v3  ;;  %7660 = vmatpush1.bf16.msra.mxu1 %v11447_v54  ;;  %v11539_v3 = vld [vmem:[%s11966_s12 + $0x1bac] ss:$16 sps:$4 sm:$0xff]   ;;  %v11534_v54 = vld [vmem:[%s11966_s12 + $0x1ba0] ss:$16 sps:$4 sm:$0xff]  }
 0x353   : > { %7005 = vmatprep.subr.bf16.mxu0 %v11452_v19  ;;  %7661 = vmatprep.subr.bf16.mxu1 %v11455_v20  ;;  %v11537_v19 = vld [vmem:[%s11966_s12 + $0x1ba8] ss:$16 sps:$4 sm:$0xff]   ;;  %v11542_v20 = vld [vmem:[%s11966_s12 + $0x1bc4] ss:$16 sps:$4 sm:$0xff]  }
 0x356   : > { %7006 = vmatpush1.bf16.msra.mxu0 %v11450_v11  ;;  %7662 = vmatpush1.bf16.msra.mxu1 %v11453_v21  ;;  %v11545_v11 = vld [vmem:[%s11966_s12 + $0x1bcc] ss:$16 sps:$4 sm:$0xff]   ;;  %v1444_v21 = vcombine.high %v12857_v8, %v12857_v8  ;;  %v11546_v8 = vld [vmem:[%s11966_s12 + $0x1be0] ss:$16 sps:$4 sm:$0xff]  }
 0x357   : > { %7016 = vmatprep.subr.bf16.mxu0 %v11458_v22  ;;  %7672 = vmatprep.subr.bf16.mxu1 %v11461_v0  ;;  %v11540_v22 = vld [vmem:[%s11966_s12 + $0x1bc0] ss:$16 sps:$4 sm:$0xff]   ;;  %v11543_v0 = vld [vmem:[%s11966_s12 + $0x1bc8] ss:$16 sps:$4 sm:$0xff]  }
 0x359   : > { %7008 = vmatmul.mubr.bf16.vlgmr.msra.gmra.mrb[0].mxu0 %v12946_v25  ;;  %7664 = vmatmul.mubr.bf16.vlgmr.msra.gmra.mrb[0].mxu1 %v12946_v25 }
 0x35a   : > { %7017 = vmatpush1.bf16.msra.mxu0 %v11456_v26  ;;  %7673 = vmatpush1.bf16.msra.mxu1 %v11459_v28  ;;  %v11548_v26 = vld [vmem:[%s11966_s12 + $0x1be4] ss:$16 sps:$4 sm:$0xff]   ;;  %v11551_v28 = vld [vmem:[%s11966_s12 + $0x1bec] ss:$16 sps:$4 sm:$0xff]  }
 0x35b   : > { %7018 = vmatprep.subr.bf16.mxu0 %v11464_v29  ;;  %7674 = vmatprep.subr.bf16.mxu1 %v11467_v30  ;;  %v13015_v29 = vrot.slane %v1444_v21, %v12016_v51  ;;  %v11549_v30 = vld [vmem:[%s11966_s12 + $0x1be8] ss:$16 sps:$4 sm:$0xff]  }
 0x35c   : > { %7048 = vmatprep.mubr.bf16.mxu0 %v1491_v31  ;;  %7704 = vmatprep.mubr.bf16.mxu1 %v1491_v31  ;;  %v11554_v31 = vld [vmem:[%s11966_s12 + $0x1c04] ss:$16 sps:$4 sm:$0xff]   ;;  %v11627_v21 = vld [vmem:[%s11966_s12 + $0x1d88] ss:$16 sps:$4 sm:$0xff]  }
 0x35e   : > { %7019 = vmatpush1.bf16.msra.mxu0 %v11462_v13  ;;  %7675 = vmatpush1.bf16.msra.mxu1 %v11465_v32  ;;  %v11557_v13 = vld [vmem:[%s11966_s12 + $0x1c0c] ss:$16 sps:$4 sm:$0xff]   ;;  %v1460_v32 = vcombine.high %v13015_v29, %v13015_v29 }
 0x35f   : > { %7020 = vmatprep.subr.bf16.mxu0 %v11470_v17  ;;  %7676 = vmatprep.subr.bf16.mxu1 %v11473_v33  ;;  %v1489_v17 = vcombine.high %v12946_v25, %v12946_v25  ;;  %v11552_v33 = vld [vmem:[%s11966_s12 + $0x1c00] ss:$16 sps:$4 sm:$0xff]  }
 0x360   : > { %v11558_v25 = vld [vmem:[%s11966_s12 + $0x1c20] ss:$16 sps:$4 sm:$0xff]  }
 0x362   : > { %7021 = vmatpush1.bf16.msra.mxu0 %v11468_v24  ;;  %7677 = vmatpush1.bf16.msra.mxu1 %v11471_v34  ;;  %v11555_v24 = vld [vmem:[%s11966_s12 + $0x1c08] ss:$16 sps:$4 sm:$0xff]   ;;  %v11560_v34 = vld [vmem:[%s11966_s12 + $0x1c24] ss:$16 sps:$4 sm:$0xff]  }
 0x363   : > { %7022 = vmatprep.subr.bf16.mxu0 %v11476_v35  ;;  %7678 = vmatprep.subr.bf16.mxu1 %v11479_v27  ;;  %v11563_v35 = vld [vmem:[%s11966_s12 + $0x1c2c] ss:$16 sps:$4 sm:$0xff]   ;;  %v1488_v27 = vrot.slane %v1460_v32, %v12016_v51  ;;  %v11644_v32 = vld [vmem:[%s11966_s12 + $0x1de4] ss:$16 sps:$4 sm:$0xff]  }
 0x366   : > { %7023 = vmatpush1.bf16.msra.mxu0 %v11474_v36  ;;  %7679 = vmatpush1.bf16.msra.mxu1 %v11477_v38  ;;  %v11561_v36 = vld [vmem:[%s11966_s12 + $0x1c28] ss:$16 sps:$4 sm:$0xff]   ;;  %v11566_v38 = vld [vmem:[%s11966_s12 + $0x1c44] ss:$16 sps:$4 sm:$0xff]  }
 0x367   : > { %7024 = vmatprep.subr.bf16.mxu0 %v11482_v39  ;;  %7680 = vmatprep.subr.bf16.mxu1 %v11485_v41  ;;  %v11569_v39 = vld [vmem:[%s11966_s12 + $0x1c4c] ss:$16 sps:$4 sm:$0xff]   ;;  %v11564_v41 = vld [vmem:[%s11966_s12 + $0x1c40] ss:$16 sps:$4 sm:$0xff]  }
 0x36a   : > { %7025 = vmatpush1.bf16.msra.mxu0 %v11480_v42  ;;  %7681 = vmatpush1.bf16.msra.mxu1 %v11483_v23  ;;  %v11567_v42 = vld [vmem:[%s11966_s12 + $0x1c48] ss:$16 sps:$4 sm:$0xff]   ;;  %v11572_v23 = vld [vmem:[%s11966_s12 + $0x1c64] ss:$16 sps:$4 sm:$0xff]  }
 0x36b   : > { %7026 = vmatprep.subr.bf16.mxu0 %v11488_v43  ;;  %7682 = vmatprep.subr.bf16.mxu1 %v11491_v44  ;;  %v11575_v43 = vld [vmem:[%s11966_s12 + $0x1c6c] ss:$16 sps:$4 sm:$0xff]   ;;  %v11570_v44 = vld [vmem:[%s11966_s12 + $0x1c60] ss:$16 sps:$4 sm:$0xff]  }
 0x36e   : > { %7027 = vmatpush1.bf16.msra.mxu0 %v11486_v46  ;;  %7683 = vmatpush1.bf16.msra.mxu1 %v11489_v47  ;;  %v11573_v46 = vld [vmem:[%s11966_s12 + $0x1c68] ss:$16 sps:$4 sm:$0xff]   ;;  %v11578_v47 = vld [vmem:[%s11966_s12 + $0x1c84] ss:$16 sps:$4 sm:$0xff]  }
 0x36f   : > { %7028 = vmatprep.subr.bf16.mxu0 %v11494_v48  ;;  %7684 = vmatprep.subr.bf16.mxu1 %v11497_v49  ;;  %v11581_v48 = vld [vmem:[%s11966_s12 + $0x1c8c] ss:$16 sps:$4 sm:$0xff]   ;;  %v11576_v49 = vld [vmem:[%s11966_s12 + $0x1c80] ss:$16 sps:$4 sm:$0xff]  }
 0x372   : > { %7029 = vmatpush1.bf16.msra.mxu0 %v11492_v52  ;;  %7685 = vmatpush1.bf16.msra.mxu1 %v11495_v55  ;;  %v11579_v52 = vld [vmem:[%s11966_s12 + $0x1c88] ss:$16 sps:$4 sm:$0xff]   ;;  %v11584_v55 = vld [vmem:[%s11966_s12 + $0x1ca4] ss:$16 sps:$4 sm:$0xff]  }
 0x373   : > { %7030 = vmatprep.subr.bf16.mxu0 %v11500_v56  ;;  %7686 = vmatprep.subr.bf16.mxu1 %v11503_v57  ;;  %v11587_v56 = vld [vmem:[%s11966_s12 + $0x1cac] ss:$16 sps:$4 sm:$0xff]   ;;  %v11582_v57 = vld [vmem:[%s11966_s12 + $0x1ca0] ss:$16 sps:$4 sm:$0xff]  }
 0x376   : > { %7031 = vmatpush1.bf16.msra.mxu0 %v11498_v40  ;;  %7687 = vmatpush1.bf16.msra.mxu1 %v11501_v58  ;;  %v11585_v40 = vld [vmem:[%s11966_s12 + $0x1ca8] ss:$16 sps:$4 sm:$0xff]   ;;  %v11590_v58 = vld [vmem:[%s11966_s12 + $0x1cc4] ss:$16 sps:$4 sm:$0xff]  }
 0x377   : > { %7032 = vmatprep.subr.bf16.mxu0 %v11506_v59  ;;  %7688 = vmatprep.subr.bf16.mxu1 %v11509_v60  ;;  %v11593_v59 = vld [vmem:[%s11966_s12 + $0x1ccc] ss:$16 sps:$4 sm:$0xff]   ;;  %v11588_v60 = vld [vmem:[%s11966_s12 + $0x1cc0] ss:$16 sps:$4 sm:$0xff]  }
 0x37a   : > { %7033 = vmatpush1.bf16.msra.mxu0 %v11504_v50  ;;  %7689 = vmatpush1.bf16.msra.mxu1 %v11507_v61  ;;  %v11591_v50 = vld [vmem:[%s11966_s12 + $0x1cc8] ss:$16 sps:$4 sm:$0xff]   ;;  %v11596_v61 = vld [vmem:[%s11966_s12 + $0x1ce4] ss:$16 sps:$4 sm:$0xff]  }
 0x37b   : > { %7034 = vmatprep.subr.bf16.mxu0 %v11512_v62  ;;  %7690 = vmatprep.subr.bf16.mxu1 %v11515_v15  ;;  %v11599_v62 = vld [vmem:[%s11966_s12 + $0x1cec] ss:$16 sps:$4 sm:$0xff]   ;;  %v11594_v15 = vld [vmem:[%s11966_s12 + $0x1ce0] ss:$16 sps:$4 sm:$0xff]  }
 0x37e   : > { %7035 = vmatpush1.bf16.msra.mxu0 %v11510_v1  ;;  %7691 = vmatpush1.bf16.msra.mxu1 %v11513_v2  ;;  %v11597_v1 = vld [vmem:[%s11966_s12 + $0x1ce8] ss:$16 sps:$4 sm:$0xff]   ;;  %v11602_v2 = vld [vmem:[%s11966_s12 + $0x1d04] ss:$16 sps:$4 sm:$0xff]  }
 0x37f   : > { %7036 = vmatprep.subr.bf16.mxu0 %v11518_v37  ;;  %7692 = vmatprep.subr.bf16.mxu1 %v11521_v4  ;;  %v11605_v37 = vld [vmem:[%s11966_s12 + $0x1d0c] ss:$16 sps:$4 sm:$0xff]   ;;  %v11600_v4 = vld [vmem:[%s11966_s12 + $0x1d00] ss:$16 sps:$4 sm:$0xff]  }
 0x382   : > { %7037 = vmatpush1.bf16.msra.mxu0 %v11516_v5  ;;  %7693 = vmatpush1.bf16.msra.mxu1 %v11519_v53  ;;  %v11603_v5 = vld [vmem:[%s11966_s12 + $0x1d08] ss:$16 sps:$4 sm:$0xff]   ;;  %v11608_v53 = vld [vmem:[%s11966_s12 + $0x1d24] ss:$16 sps:$4 sm:$0xff]  }
 0x383   : > { %7038 = vmatprep.subr.bf16.mxu0 %v11524_v6  ;;  %7694 = vmatprep.subr.bf16.mxu1 %v11527_v7  ;;  %v11611_v6 = vld [vmem:[%s11966_s12 + $0x1d2c] ss:$16 sps:$4 sm:$0xff]   ;;  %v11606_v7 = vld [vmem:[%s11966_s12 + $0x1d20] ss:$16 sps:$4 sm:$0xff]  }
 0x386   : > { %7039 = vmatpush1.bf16.msra.mxu0 %v11522_v63  ;;  %7695 = vmatpush1.bf16.msra.mxu1 %v11525_v9  ;;  %v11609_v63 = vld [vmem:[%s11966_s12 + $0x1d28] ss:$16 sps:$4 sm:$0xff]   ;;  %v11614_v9 = vld [vmem:[%s11966_s12 + $0x1d44] ss:$16 sps:$4 sm:$0xff]  }
 0x387   : > { %7040 = vmatprep.subr.bf16.mxu0 %v11530_v10  ;;  %7696 = vmatprep.subr.bf16.mxu1 %v11533_v12  ;;  %v11617_v10 = vld [vmem:[%s11966_s12 + $0x1d4c] ss:$16 sps:$4 sm:$0xff]   ;;  %v11612_v12 = vld [vmem:[%s11966_s12 + $0x1d40] ss:$16 sps:$4 sm:$0xff]  }
 0x38a   : > { %7041 = vmatpush1.bf16.msra.mxu0 %v11528_v14  ;;  %7697 = vmatpush1.bf16.msra.mxu1 %v11531_v16  ;;  %v11615_v14 = vld [vmem:[%s11966_s12 + $0x1d48] ss:$16 sps:$4 sm:$0xff]   ;;  %v11620_v16 = vld [vmem:[%s11966_s12 + $0x1d64] ss:$16 sps:$4 sm:$0xff]  }
 0x38b   : > { %7042 = vmatprep.subr.bf16.mxu0 %v11536_v18  ;;  %7698 = vmatprep.subr.bf16.mxu1 %v11539_v3  ;;  %v11623_v18 = vld [vmem:[%s11966_s12 + $0x1d6c] ss:$16 sps:$4 sm:$0xff]   ;;  %v11618_v3 = vld [vmem:[%s11966_s12 + $0x1d60] ss:$16 sps:$4 sm:$0xff]  }
 0x38e   : > { %7043 = vmatpush1.bf16.msra.mxu0 %v11534_v54  ;;  %7699 = vmatpush1.bf16.msra.mxu1 %v11537_v19  ;;  %v11621_v54 = vld [vmem:[%s11966_s12 + $0x1d68] ss:$16 sps:$4 sm:$0xff]   ;;  %v11626_v19 = vld [vmem:[%s11966_s12 + $0x1d84] ss:$16 sps:$4 sm:$0xff]  }
 0x38f   : > { %7044 = vmatprep.subr.bf16.mxu0 %v11542_v20  ;;  %7700 = vmatprep.subr.bf16.mxu1 %v11545_v11  ;;  %v11629_v20 = vld [vmem:[%s11966_s12 + $0x1d8c] ss:$16 sps:$4 sm:$0xff]   ;;  %v11624_v11 = vld [vmem:[%s11966_s12 + $0x1d80] ss:$16 sps:$4 sm:$0xff]  }
 0x392   : > { %7045 = vmatpush1.bf16.msra.mxu0 %v11540_v22  ;;  %7701 = vmatpush1.bf16.msra.mxu1 %v11543_v0  ;;  %v11632_v22 = vld [vmem:[%s11966_s12 + $0x1da4] ss:$16 sps:$4 sm:$0xff]   ;;  %v11635_v0 = vld [vmem:[%s11966_s12 + $0x1dac] ss:$16 sps:$4 sm:$0xff]  }
 0x393   : > { %7046 = vmatprep.subr.bf16.mxu0 %v11548_v26  ;;  %7702 = vmatprep.subr.bf16.mxu1 %v11551_v28  ;;  %v11630_v26 = vld [vmem:[%s11966_s12 + $0x1da0] ss:$16 sps:$4 sm:$0xff]   ;;  %v11633_v28 = vld [vmem:[%s11966_s12 + $0x1da8] ss:$16 sps:$4 sm:$0xff]  }
 0x396   : > { %7047 = vmatpush1.bf16.msra.mxu0 %v11546_v8  ;;  %7703 = vmatpush1.bf16.msra.mxu1 %v11549_v30  ;;  %v11638_v8 = vld [vmem:[%s11966_s12 + $0x1dc4] ss:$16 sps:$4 sm:$0xff]   ;;  %v11641_v30 = vld [vmem:[%s11966_s12 + $0x1dcc] ss:$16 sps:$4 sm:$0xff]  }
 0x397   : > { %7057 = vmatprep.subr.bf16.mxu0 %v11554_v31  ;;  %7713 = vmatprep.subr.bf16.mxu1 %v11557_v13  ;;  %v11636_v31 = vld [vmem:[%s11966_s12 + $0x1dc0] ss:$16 sps:$4 sm:$0xff]   ;;  %v11639_v13 = vld [vmem:[%s11966_s12 + $0x1dc8] ss:$16 sps:$4 sm:$0xff]  }
 0x399   : > { %7049 = vmatmul.mubr.bf16.vlgmr.msra.gmra.mrb[0].mxu0 %v1489_v17  ;;  %7705 = vmatmul.mubr.bf16.vlgmr.msra.gmra.mrb[0].mxu1 %v1489_v17  ;;  %v11647_v17 = vld [vmem:[%s11966_s12 + $0x1dec] ss:$16 sps:$4 sm:$0xff]  }
 0x39a   : > { %7058 = vmatpush1.bf16.msra.mxu0 %v11552_v33  ;;  %7714 = vmatpush1.bf16.msra.mxu1 %v11555_v24  ;;  %v11642_v33 = vld [vmem:[%s11966_s12 + $0x1de0] ss:$16 sps:$4 sm:$0xff]   ;;  %v11645_v24 = vld [vmem:[%s11966_s12 + $0x1de8] ss:$16 sps:$4 sm:$0xff]  }
 0x39b   : > { %7059 = vmatprep.subr.bf16.mxu0 %v11560_v34  ;;  %7715 = vmatprep.subr.bf16.mxu1 %v11563_v35  ;;  %v11651_v34 = vld [vmem:[%s11966_s12 + $0x1e04] ss:$16 sps:$4 sm:$0xff]   ;;  %v11654_v35 = vld [vmem:[%s11966_s12 + $0x1e0c] ss:$16 sps:$4 sm:$0xff]  }
 0x39c   : > { %7089 = vmatprep.mubr.bf16.mxu0 %v1488_v27  ;;  %7745 = vmatprep.mubr.bf16.mxu1 %v1488_v27  ;;  %v13092_v27 = vrot.slane %v13015_v29, %v12016_v51  ;;  %v11655_v51 = vld [vmem:[%s11966_s12 + $0x1e20] ss:$16 sps:$4 sm:$0xff]   ;;  %v11658_v29 = vld [vmem:[%s11966_s12 + $0x1e28] ss:$16 sps:$4 sm:$0xff]  }
 0x39e   : > { %7060 = vmatpush1.bf16.msra.mxu0 %v11558_v25  ;;  %7716 = vmatpush1.bf16.msra.mxu1 %v11561_v36  ;;  %v11649_v25 = vld [vmem:[%s11966_s12 + $0x1e00] ss:$16 sps:$4 sm:$0xff]   ;;  %v11652_v36 = vld [vmem:[%s11966_s12 + $0x1e08] ss:$16 sps:$4 sm:$0xff]  }
 0x39f   : > { %7061 = vmatprep.subr.bf16.mxu0 %v11566_v38  ;;  %7717 = vmatprep.subr.bf16.mxu1 %v11569_v39  ;;  %v11657_v38 = vld [vmem:[%s11966_s12 + $0x1e24] ss:$16 sps:$4 sm:$0xff]   ;;  %v11660_v39 = vld [vmem:[%s11966_s12 + $0x1e2c] ss:$16 sps:$4 sm:$0xff]  }
 0x3a2   : > { %7062 = vmatpush1.bf16.msra.mxu0 %v11564_v41  ;;  %7718 = vmatpush1.bf16.msra.mxu1 %v11567_v42  ;;  %v11663_v41 = vld [vmem:[%s11966_s12 + $0x1e44] ss:$16 sps:$4 sm:$0xff]   ;;  %v11666_v42 = vld [vmem:[%s11966_s12 + $0x1e4c] ss:$16 sps:$4 sm:$0xff]  }
 0x3a3   : > { %7063 = vmatprep.subr.bf16.mxu0 %v11572_v23  ;;  %7719 = vmatprep.subr.bf16.mxu1 %v11575_v43  ;;  %v11901_v23 = vmov 0   ;;  %v11661_v43 = vld [vmem:[%s11966_s12 + $0x1e40] ss:$16 sps:$4 sm:$0xff]  }
 0x3a6   : > { %7064 = vmatpush1.bf16.msra.mxu0 %v11570_v44  ;;  %7720 = vmatpush1.bf16.msra.mxu1 %v11573_v46  ;;  %v11664_v44 = vld [vmem:[%s11966_s12 + $0x1e48] ss:$16 sps:$4 sm:$0xff]   ;;  %v11669_v46 = vld [vmem:[%s11966_s12 + $0x1e64] ss:$16 sps:$4 sm:$0xff]  }
 0x3a7   : > { %7065 = vmatprep.subr.bf16.mxu0 %v11578_v47  ;;  %7721 = vmatprep.subr.bf16.mxu1 %v11581_v48  ;;  %v11672_v47 = vld [vmem:[%s11966_s12 + $0x1e6c] ss:$16 sps:$4 sm:$0xff]   ;;  %v11667_v48 = vld [vmem:[%s11966_s12 + $0x1e60] ss:$16 sps:$4 sm:$0xff]  }
 0x3aa   : > { %7066 = vmatpush1.bf16.msra.mxu0 %v11576_v49  ;;  %7722 = vmatpush1.bf16.msra.mxu1 %v11579_v52  ;;  %v11670_v49 = vld [vmem:[%s11966_s12 + $0x1e68] ss:$16 sps:$4 sm:$0xff]   ;;  %v11675_v52 = vld [vmem:[%s11966_s12 + $0x1e84] ss:$16 sps:$4 sm:$0xff]  }
 0x3ab   : > { %7067 = vmatprep.subr.bf16.mxu0 %v11584_v55  ;;  %7723 = vmatprep.subr.bf16.mxu1 %v11587_v56  ;;  %v11678_v55 = vld [vmem:[%s11966_s12 + $0x1e8c] ss:$16 sps:$4 sm:$0xff]   ;;  %v11673_v56 = vld [vmem:[%s11966_s12 + $0x1e80] ss:$16 sps:$4 sm:$0xff]  }
 0x3ae   : > { %7068 = vmatpush1.bf16.msra.mxu0 %v11582_v57  ;;  %7724 = vmatpush1.bf16.msra.mxu1 %v11585_v40  ;;  %v11676_v57 = vld [vmem:[%s11966_s12 + $0x1e88] ss:$16 sps:$4 sm:$0xff]   ;;  %v11681_v40 = vld [vmem:[%s11966_s12 + $0x1ea4] ss:$16 sps:$4 sm:$0xff]  }
 0x3af   : > { %7069 = vmatprep.subr.bf16.mxu0 %v11590_v58  ;;  %7725 = vmatprep.subr.bf16.mxu1 %v11593_v59  ;;  %v11684_v58 = vld [vmem:[%s11966_s12 + $0x1eac] ss:$16 sps:$4 sm:$0xff]   ;;  %v11679_v59 = vld [vmem:[%s11966_s12 + $0x1ea0] ss:$16 sps:$4 sm:$0xff]  }
 0x3b2   : > { %7070 = vmatpush1.bf16.msra.mxu0 %v11588_v60  ;;  %7726 = vmatpush1.bf16.msra.mxu1 %v11591_v50  ;;  %v11682_v60 = vld [vmem:[%s11966_s12 + $0x1ea8] ss:$16 sps:$4 sm:$0xff]   ;;  %v11687_v50 = vld [vmem:[%s11966_s12 + $0x1ec4] ss:$16 sps:$4 sm:$0xff]  }
 0x3b3   : > { %7071 = vmatprep.subr.bf16.mxu0 %v11596_v61  ;;  %7727 = vmatprep.subr.bf16.mxu1 %v11599_v62  ;;  %v11690_v61 = vld [vmem:[%s11966_s12 + $0x1ecc] ss:$16 sps:$4 sm:$0xff]   ;;  %v11685_v62 = vld [vmem:[%s11966_s12 + $0x1ec0] ss:$16 sps:$4 sm:$0xff]  }
 0x3b6   : > { %7072 = vmatpush1.bf16.msra.mxu0 %v11594_v15  ;;  %7728 = vmatpush1.bf16.msra.mxu1 %v11597_v1  ;;  %v11688_v15 = vld [vmem:[%s11966_s12 + $0x1ec8] ss:$16 sps:$4 sm:$0xff]   ;;  %v11693_v1 = vld [vmem:[%s11966_s12 + $0x1ee4] ss:$16 sps:$4 sm:$0xff]  }
 0x3b7   : > { %7073 = vmatprep.subr.bf16.mxu0 %v11602_v2  ;;  %7729 = vmatprep.subr.bf16.mxu1 %v11605_v37  ;;  %v11696_v2 = vld [vmem:[%s11966_s12 + $0x1eec] ss:$16 sps:$4 sm:$0xff]   ;;  %v11691_v37 = vld [vmem:[%s11966_s12 + $0x1ee0] ss:$16 sps:$4 sm:$0xff]  }
 0x3ba   : > { %7074 = vmatpush1.bf16.msra.mxu0 %v11600_v4  ;;  %7730 = vmatpush1.bf16.msra.mxu1 %v11603_v5  ;;  %v11694_v4 = vld [vmem:[%s11966_s12 + $0x1ee8] ss:$16 sps:$4 sm:$0xff]   ;;  %v1490_v5 = vcombine.high %v13092_v27, %v13092_v27 }
 0x3bb   : > { %7075 = vmatprep.subr.bf16.mxu0 %v11608_v53  ;;  %7731 = vmatprep.subr.bf16.mxu1 %v11611_v6  ;;  %v11902_v53 = vmov 1983009808  }
 0x3bc   : > { %v7802_v6 = vunpack.c.l.s4 %v11902_v53  ;;  %v13267_v53 = vsub.s32 (!%p9928_p6), 0, %v12008_v45 }
 0x3be   : > { %7076 = vmatpush1.bf16.msra.mxu0 %v11606_v7  ;;  %7732 = vmatpush1.bf16.msra.mxu1 %v11609_v63  ;;  %v7803_v7 = vunpack.c.0.s8 %v7802_v6  ;;  %v11764_v6 = vld [vmem:[%s13570_s3 + $0x164] ss:$16 sps:$4 sm:$0xff] (!%p9928_p6)  }
 0x3bf   : > { %7077 = vmatprep.subr.bf16.mxu0 %v11614_v9  ;;  %7733 = vmatprep.subr.bf16.mxu1 %v11617_v10 }
 0x3c0   : > { %v13129_v10 = vsub.s32 %v7803_v7, %v12008_v45  ;;  %v13273_v7 = vsub.s32 (!%p9928_p6), 1, %v12008_v45 }
 0x3c2   : > { %7078 = vmatpush1.bf16.msra.mxu0 %v11612_v12  ;;  %7734 = vmatpush1.bf16.msra.mxu1 %v11615_v14 }
 0x3c3   : > { %7079 = vmatprep.subr.bf16.mxu0 %v11620_v16  ;;  %7735 = vmatprep.subr.bf16.mxu1 %v11623_v18 }
 0x3c6   : > { %7080 = vmatpush1.bf16.msra.mxu0 %v11618_v3  ;;  %7736 = vmatpush1.bf16.msra.mxu1 %v11621_v54 }
 0x3c7   : > { %7081 = vmatprep.subr.bf16.mxu0 %v11626_v19  ;;  %7737 = vmatprep.subr.bf16.mxu1 %v11629_v20 }
 0x3ca   : > { %7082 = vmatpush1.bf16.msra.mxu0 %v11624_v11  ;;  %7738 = vmatpush1.bf16.msra.mxu1 %v11627_v21 }
 0x3cb   : > { %7083 = vmatprep.subr.bf16.mxu0 %v11632_v22  ;;  %7739 = vmatprep.subr.bf16.mxu1 %v11635_v0  ;;  %v296_v22 = vld [vmem:[#allocation2] sm:$0xff] }
 0x3ce   : > { %7084 = vmatpush1.bf16.msra.mxu0 %v11630_v26  ;;  %7740 = vmatpush1.bf16.msra.mxu1 %v11633_v28  ;;  %v11698_v28 = vld [vmem:[%s13570_s3 + $0x4] ss:$16 sps:$4 sm:$0xff] (!%p9928_p6)  }
 0x3cf   : > { %7085 = vmatprep.subr.bf16.mxu0 %v11638_v8  ;;  %7741 = vmatprep.subr.bf16.mxu1 %v11641_v30  ;;  %v11700_v8 = vld [vmem:[%s13570_s3 + $0xc] ss:$16 sps:$4 sm:$0xff] (!%p9928_p6)   ;;  %v11702_v30 = vld [vmem:[%s13570_s3] ss:$16 sps:$4 sm:$0xff] (!%p9928_p6)  }
 0x3d2   : > { %7086 = vmatpush1.bf16.msra.mxu0 %v11636_v31  ;;  %7742 = vmatpush1.bf16.msra.mxu1 %v11639_v13  ;;  %v11703_v31 = vld [vmem:[%s13570_s3 + $0x8] ss:$16 sps:$4 sm:$0xff] (!%p9928_p6)   ;;  %v11704_v13 = vld [vmem:[%s13570_s3 + $0x24] ss:$16 sps:$4 sm:$0xff] (!%p9928_p6)  }
 0x3d3   : > { %7087 = vmatprep.subr.bf16.mxu0 %v11644_v32  ;;  %7743 = vmatprep.subr.bf16.mxu1 %v11647_v17  ;;  %v11706_v32 = vld [vmem:[%s13570_s3 + $0x2c] ss:$16 sps:$4 sm:$0xff] (!%p9928_p6)   ;;  %v11708_v17 = vld [vmem:[%s13570_s3 + $0x20] ss:$16 sps:$4 sm:$0xff] (!%p9928_p6)  }
 0x3d6   : > { %7088 = vmatpush1.bf16.msra.mxu0 %v11642_v33  ;;  %7744 = vmatpush1.bf16.msra.mxu1 %v11645_v24  ;;  %v11709_v33 = vld [vmem:[%s13570_s3 + $0x28] ss:$16 sps:$4 sm:$0xff] (!%p9928_p6)   ;;  %v11710_v24 = vld [vmem:[%s13570_s3 + $0x44] ss:$16 sps:$4 sm:$0xff] (!%p9928_p6)  }
 0x3d7   : > { %7098 = vmatprep.subr.bf16.mxu0 %v11651_v34  ;;  %7754 = vmatprep.subr.bf16.mxu1 %v11654_v35  ;;  %v11712_v34 = vld [vmem:[%s13570_s3 + $0x4c] ss:$16 sps:$4 sm:$0xff] (!%p9928_p6)   ;;  %v11714_v35 = vld [vmem:[%s13570_s3 + $0x40] ss:$16 sps:$4 sm:$0xff] (!%p9928_p6)  }
 0x3d9   : > { %7090 = vmatmul.mubr.bf16.vlgmr.msra.gmra.mrb[0].mxu0 %v13092_v27  ;;  %7746 = vmatmul.mubr.bf16.vlgmr.msra.gmra.mrb[0].mxu1 %v13092_v27  ;;  %v11715_v27 = vld [vmem:[%s13570_s3 + $0x48] ss:$16 sps:$4 sm:$0xff] (!%p9928_p6)  }
 0x3da   : > { %7099 = vmatpush1.bf16.msra.mxu0 %v11649_v25  ;;  %7755 = vmatpush1.bf16.msra.mxu1 %v11652_v36  ;;  %v11716_v25 = vld [vmem:[%s13570_s3 + $0x64] ss:$16 sps:$4 sm:$0xff] (!%p9928_p6)   ;;  %v11718_v36 = vld [vmem:[%s13570_s3 + $0x6c] ss:$16 sps:$4 sm:$0xff] (!%p9928_p6)  }
 0x3db   : > { %7100 = vmatprep.subr.bf16.mxu0 %v11657_v38  ;;  %7756 = vmatprep.subr.bf16.mxu1 %v11660_v39  ;;  %v11720_v38 = vld [vmem:[%s13570_s3 + $0x60] ss:$16 sps:$4 sm:$0xff] (!%p9928_p6)   ;;  %v11721_v39 = vld [vmem:[%s13570_s3 + $0x68] ss:$16 sps:$4 sm:$0xff] (!%p9928_p6)  }
 0x3dc   : > { %7130 = vmatprep.mubr.bf16.mxu0 %v11901_v23  ;;  %7786 = vmatprep.mubr.bf16.mxu1 %v11901_v23  ;;  %v11728_v23 = vld [vmem:[%s13570_s3 + $0xa4] ss:$16 sps:$4 sm:$0xff] (!%p9928_p6)  }
 0x3de   : > { %7101 = vmatpush1.bf16.msra.mxu0 %v11655_v51  ;;  %7757 = vmatpush1.bf16.msra.mxu1 %v11658_v29  ;;  %v11722_v51 = vld [vmem:[%s13570_s3 + $0x84] ss:$16 sps:$4 sm:$0xff] (!%p9928_p6)   ;;  %v11724_v29 = vld [vmem:[%s13570_s3 + $0x8c] ss:$16 sps:$4 sm:$0xff] (!%p9928_p6)  }
 0x3df   : > { %7102 = vmatprep.subr.bf16.mxu0 %v11663_v41  ;;  %7758 = vmatprep.subr.bf16.mxu1 %v11666_v42  ;;  %v11726_v41 = vld [vmem:[%s13570_s3 + $0x80] ss:$16 sps:$4 sm:$0xff] (!%p9928_p6)   ;;  %v11727_v42 = vld [vmem:[%s13570_s3 + $0x88] ss:$16 sps:$4 sm:$0xff] (!%p9928_p6)  }
 0x3e2   : > { %7103 = vmatpush1.bf16.msra.mxu0 %v11661_v43  ;;  %7759 = vmatpush1.bf16.msra.mxu1 %v11664_v44  ;;  %v11730_v43 = vld [vmem:[%s13570_s3 + $0xac] ss:$16 sps:$4 sm:$0xff] (!%p9928_p6)   ;;  %v11732_v44 = vld [vmem:[%s13570_s3 + $0xa0] ss:$16 sps:$4 sm:$0xff] (!%p9928_p6)  }
 0x3e3   : > { %7104 = vmatprep.subr.bf16.mxu0 %v11669_v46  ;;  %7760 = vmatprep.subr.bf16.mxu1 %v11672_v47  ;;  %v11733_v46 = vld [vmem:[%s13570_s3 + $0xa8] ss:$16 sps:$4 sm:$0xff] (!%p9928_p6)   ;;  %v11734_v47 = vld [vmem:[%s13570_s3 + $0xc4] ss:$16 sps:$4 sm:$0xff] (!%p9928_p6)  }
 0x3e6   : > { %7105 = vmatpush1.bf16.msra.mxu0 %v11667_v48  ;;  %7761 = vmatpush1.bf16.msra.mxu1 %v11670_v49  ;;  %v11736_v48 = vld [vmem:[%s13570_s3 + $0xcc] ss:$16 sps:$4 sm:$0xff] (!%p9928_p6)   ;;  %v11738_v49 = vld [vmem:[%s13570_s3 + $0xc0] ss:$16 sps:$4 sm:$0xff] (!%p9928_p6)  }
 0x3e7   : > { %7106 = vmatprep.subr.bf16.mxu0 %v11675_v52  ;;  %7762 = vmatprep.subr.bf16.mxu1 %v11678_v55  ;;  %v11739_v52 = vld [vmem:[%s13570_s3 + $0xc8] ss:$16 sps:$4 sm:$0xff] (!%p9928_p6)   ;;  %v11740_v55 = vld [vmem:[%s13570_s3 + $0xe4] ss:$16 sps:$4 sm:$0xff] (!%p9928_p6)  }
 0x3ea   : > { %7107 = vmatpush1.bf16.msra.mxu0 %v11673_v56  ;;  %7763 = vmatpush1.bf16.msra.mxu1 %v11676_v57  ;;  %v11742_v56 = vld [vmem:[%s13570_s3 + $0xec] ss:$16 sps:$4 sm:$0xff] (!%p9928_p6)   ;;  %v11744_v57 = vld [vmem:[%s13570_s3 + $0xe0] ss:$16 sps:$4 sm:$0xff] (!%p9928_p6)  }
 0x3eb   : > { %7108 = vmatprep.subr.bf16.mxu0 %v11681_v40  ;;  %7764 = vmatprep.subr.bf16.mxu1 %v11684_v58  ;;  %v11745_v40 = vld [vmem:[%s13570_s3 + $0xe8] ss:$16 sps:$4 sm:$0xff] (!%p9928_p6)   ;;  %v11746_v58 = vld [vmem:[%s13570_s3 + $0x104] ss:$16 sps:$4 sm:$0xff] (!%p9928_p6)  }
 0x3ee   : > { %7109 = vmatpush1.bf16.msra.mxu0 %v11679_v59  ;;  %7765 = vmatpush1.bf16.msra.mxu1 %v11682_v60  ;;  %v11748_v59 = vld [vmem:[%s13570_s3 + $0x10c] ss:$16 sps:$4 sm:$0xff] (!%p9928_p6)   ;;  %v11750_v60 = vld [vmem:[%s13570_s3 + $0x100] ss:$16 sps:$4 sm:$0xff] (!%p9928_p6)  }
 0x3ef   : > { %7110 = vmatprep.subr.bf16.mxu0 %v11687_v50  ;;  %7766 = vmatprep.subr.bf16.mxu1 %v11690_v61  ;;  %v11751_v50 = vld [vmem:[%s13570_s3 + $0x108] ss:$16 sps:$4 sm:$0xff] (!%p9928_p6)   ;;  %v11752_v61 = vld [vmem:[%s13570_s3 + $0x124] ss:$16 sps:$4 sm:$0xff] (!%p9928_p6)  }
 0x3f2   : > { %7111 = vmatpush1.bf16.msra.mxu0 %v11685_v62  ;;  %7767 = vmatpush1.bf16.msra.mxu1 %v11688_v15  ;;  %v11754_v62 = vld [vmem:[%s13570_s3 + $0x12c] ss:$16 sps:$4 sm:$0xff] (!%p9928_p6)   ;;  %v11756_v15 = vld [vmem:[%s13570_s3 + $0x120] ss:$16 sps:$4 sm:$0xff] (!%p9928_p6)  }
 0x3f3   : > { %7112 = vmatprep.subr.bf16.mxu0 %v11693_v1  ;;  %7768 = vmatprep.subr.bf16.mxu1 %v11696_v2  ;;  %v11757_v1 = vld [vmem:[%s13570_s3 + $0x128] ss:$16 sps:$4 sm:$0xff] (!%p9928_p6)   ;;  %v11758_v2 = vld [vmem:[%s13570_s3 + $0x144] ss:$16 sps:$4 sm:$0xff] (!%p9928_p6)  }
 0x3f6   : > { %7113 = vmatpush1.bf16.msra.mxu0 %v11691_v37  ;;  %7769 = vmatpush1.bf16.msra.mxu1 %v11694_v4  ;;  %v11760_v37 = vld [vmem:[%s13570_s3 + $0x14c] ss:$16 sps:$4 sm:$0xff] (!%p9928_p6)   ;;  %v11762_v4 = vld [vmem:[%s13570_s3 + $0x140] ss:$16 sps:$4 sm:$0xff] (!%p9928_p6)  }
 0x3f7   : > { %8678 = vmatprep.subr.bf16.mxu0 (!%p9928_p6), %v11698_v28  ;;  %8760 = vmatprep.subr.bf16.mxu1 (!%p9928_p6), %v11700_v8  ;;  %v11776_v8 = vld [vmem:[%s13570_s3 + $0x1a4] ss:$16 sps:$4 sm:$0xff] (!%p9928_p6)  }
 0x3f9   : > { %7131 = vmatmul.mubr.bf16.vlgmr.msra.gmra.mrb[0].mxu0 %v1490_v5  ;;  %7787 = vmatmul.mubr.bf16.vlgmr.msra.gmra.mrb[0].mxu1 %v1490_v5  ;;  %v11763_v5 = vld [vmem:[%s13570_s3 + $0x148] ss:$16 sps:$4 sm:$0xff] (!%p9928_p6)  }
 0x3fa   : > { %8679 = vmatpush1.bf16.msra.mxu0 (!%p9928_p6), %v11702_v30  ;;  %8761 = vmatpush1.bf16.msra.mxu1 (!%p9928_p6), %v11703_v31  ;;  %v11778_v30 = vld [vmem:[%s13570_s3 + $0x1ac] ss:$16 sps:$4 sm:$0xff] (!%p9928_p6)  }
 0x3fb   : > { %8680 = vmatprep.subr.bf16.mxu0 (!%p9928_p6), %v11704_v13  ;;  %8762 = vmatprep.subr.bf16.mxu1 (!%p9928_p6), %v11706_v32 }
 0x3fe   : > { %8681 = vmatpush1.bf16.msra.mxu0 (!%p9928_p6), %v11708_v17  ;;  %8763 = vmatpush1.bf16.msra.mxu1 (!%p9928_p6), %v11709_v33  ;;  %v11780_v17 = vld [vmem:[%s13570_s3 + $0x1a0] ss:$16 sps:$4 sm:$0xff] (!%p9928_p6)   ;;  %v11781_v33 = vld [vmem:[%s13570_s3 + $0x1a8] ss:$16 sps:$4 sm:$0xff] (!%p9928_p6)  }
 0x3ff   : > { %8682 = vmatprep.subr.bf16.mxu0 (!%p9928_p6), %v11710_v24  ;;  %8764 = vmatprep.subr.bf16.mxu1 (!%p9928_p6), %v11712_v34  ;;  %v11782_v24 = vld [vmem:[%s13570_s3 + $0x1c4] ss:$16 sps:$4 sm:$0xff] (!%p9928_p6)   ;;  %v11784_v34 = vld [vmem:[%s13570_s3 + $0x1cc] ss:$16 sps:$4 sm:$0xff] (!%p9928_p6)  }
 0x402   : > { %8683 = vmatpush1.bf16.msra.mxu0 (!%p9928_p6), %v11714_v35  ;;  %8765 = vmatpush1.bf16.msra.mxu1 (!%p9928_p6), %v11715_v27 }
 0x403   : > { %8684 = vmatprep.subr.bf16.mxu0 (!%p9928_p6), %v11716_v25  ;;  %8766 = vmatprep.subr.bf16.mxu1 (!%p9928_p6), %v11718_v36  ;;  %v11786_v25 = vld [vmem:[%s13570_s3 + $0x1c0] ss:$16 sps:$4 sm:$0xff] (!%p9928_p6)   ;;  %v11787_v36 = vld [vmem:[%s13570_s3 + $0x1c8] ss:$16 sps:$4 sm:$0xff] (!%p9928_p6)  }
 0x406   : > { %8685 = vmatpush1.bf16.msra.mxu0 (!%p9928_p6), %v11720_v38  ;;  %8767 = vmatpush1.bf16.msra.mxu1 (!%p9928_p6), %v11721_v39  ;;  %v11788_v38 = vld [vmem:[%s13570_s3 + $0x1e4] ss:$16 sps:$4 sm:$0xff] (!%p9928_p6)   ;;  %v11790_v39 = vld [vmem:[%s13570_s3 + $0x1ec] ss:$16 sps:$4 sm:$0xff] (!%p9928_p6)  }
 0x407   : > { %8686 = vmatprep.subr.bf16.mxu0 (!%p9928_p6), %v11722_v51  ;;  %8768 = vmatprep.subr.bf16.mxu1 (!%p9928_p6), %v11724_v29 }
 0x40a   : > { %8687 = vmatpush1.bf16.msra.mxu0 (!%p9928_p6), %v11726_v41  ;;  %8769 = vmatpush1.bf16.msra.mxu1 (!%p9928_p6), %v11727_v42 }
 0x40b   : > { %8688 = vmatprep.subr.bf16.mxu0 (!%p9928_p6), %v11728_v23  ;;  %8770 = vmatprep.subr.bf16.mxu1 (!%p9928_p6), %v11730_v43  ;;  %v11792_v23 = vld [vmem:[%s13570_s3 + $0x1e0] ss:$16 sps:$4 sm:$0xff] (!%p9928_p6)   ;;  %v11793_v43 = vld [vmem:[%s13570_s3 + $0x1e8] ss:$16 sps:$4 sm:$0xff] (!%p9928_p6)  }
 0x40e   : > { %8689 = vmatpush1.bf16.msra.mxu0 (!%p9928_p6), %v11732_v44  ;;  %8771 = vmatpush1.bf16.msra.mxu1 (!%p9928_p6), %v11733_v46  ;;  %v11796_v46 = vld [vmem:[%s13570_s3 + $0x204] ss:$16 sps:$4 sm:$0xff] (!%p9928_p6)  }
 0x40f   : > { %8690 = vmatprep.subr.bf16.mxu0 (!%p9928_p6), %v11734_v47  ;;  %8772 = vmatprep.subr.bf16.mxu1 (!%p9928_p6), %v11736_v48 }
 0x412   : > { %8691 = vmatpush1.bf16.msra.mxu0 (!%p9928_p6), %v11738_v49  ;;  %8773 = vmatpush1.bf16.msra.mxu1 (!%p9928_p6), %v11739_v52  ;;  %v11794_v49 = vld [vmem:[%s13570_s3 + $0x200] ss:$16 sps:$4 sm:$0xff] (!%p9928_p6)   ;;  %v11797_v52 = vld [vmem:[%s13570_s3 + $0x208] ss:$16 sps:$4 sm:$0xff] (!%p9928_p6)  }
 0x413   : > { %8692 = vmatprep.subr.bf16.mxu0 (!%p9928_p6), %v11740_v55  ;;  %8774 = vmatprep.subr.bf16.mxu1 (!%p9928_p6), %v11742_v56  ;;  %v11802_v55 = vld [vmem:[%s13570_s3 + $0x224] ss:$16 sps:$4 sm:$0xff] (!%p9928_p6)   ;;  %v11805_v56 = vld [vmem:[%s13570_s3 + $0x22c] ss:$16 sps:$4 sm:$0xff] (!%p9928_p6)  }
 0x416   : > { %8693 = vmatpush1.bf16.msra.mxu0 (!%p9928_p6), %v11744_v57  ;;  %8775 = vmatpush1.bf16.msra.mxu1 (!%p9928_p6), %v11745_v40  ;;  %v11800_v40 = vld [vmem:[%s13570_s3 + $0x220] ss:$16 sps:$4 sm:$0xff] (!%p9928_p6)  }
 0x417   : > { %8694 = vmatprep.subr.bf16.mxu0 (!%p9928_p6), %v11746_v58  ;;  %8776 = vmatprep.subr.bf16.mxu1 (!%p9928_p6), %v11748_v59  ;;  %v11803_v58 = vld [vmem:[%s13570_s3 + $0x228] ss:$16 sps:$4 sm:$0xff] (!%p9928_p6)   ;;  %v11808_v59 = vld [vmem:[%s13570_s3 + $0x244] ss:$16 sps:$4 sm:$0xff] (!%p9928_p6)  }
 0x41a   : > { %8695 = vmatpush1.bf16.msra.mxu0 (!%p9928_p6), %v11750_v60  ;;  %8777 = vmatpush1.bf16.msra.mxu1 (!%p9928_p6), %v11751_v50  ;;  %v11811_v60 = vld [vmem:[%s13570_s3 + $0x24c] ss:$16 sps:$4 sm:$0xff] (!%p9928_p6)   ;;  %v11806_v50 = vld [vmem:[%s13570_s3 + $0x240] ss:$16 sps:$4 sm:$0xff] (!%p9928_p6)  }
 0x41b   : > { %8696 = vmatprep.subr.bf16.mxu0 (!%p9928_p6), %v11752_v61  ;;  %8778 = vmatprep.subr.bf16.mxu1 (!%p9928_p6), %v11754_v62  ;;  %v11809_v61 = vld [vmem:[%s13570_s3 + $0x248] ss:$16 sps:$4 sm:$0xff] (!%p9928_p6)   ;;  %v11814_v62 = vld [vmem:[%s13570_s3 + $0x264] ss:$16 sps:$4 sm:$0xff] (!%p9928_p6)  }
 0x41e   : > { %8697 = vmatpush1.bf16.msra.mxu0 (!%p9928_p6), %v11756_v15  ;;  %8779 = vmatpush1.bf16.msra.mxu1 (!%p9928_p6), %v11757_v1  ;;  %v11817_v15 = vld [vmem:[%s13570_s3 + $0x26c] ss:$16 sps:$4 sm:$0xff] (!%p9928_p6)   ;;  %v11812_v1 = vld [vmem:[%s13570_s3 + $0x260] ss:$16 sps:$4 sm:$0xff] (!%p9928_p6)  }
 0x41f   : > { %8698 = vmatprep.subr.bf16.mxu0 (!%p9928_p6), %v11758_v2  ;;  %8780 = vmatprep.subr.bf16.mxu1 (!%p9928_p6), %v11760_v37  ;;  %v11815_v2 = vld [vmem:[%s13570_s3 + $0x268] ss:$16 sps:$4 sm:$0xff] (!%p9928_p6)   ;;  %v11820_v37 = vld [vmem:[%s13570_s3 + $0x284] ss:$16 sps:$4 sm:$0xff] (!%p9928_p6)  }
 0x422   : > { %8699 = vmatpush1.bf16.msra.mxu0 (!%p9928_p6), %v11762_v4  ;;  %8781 = vmatpush1.bf16.msra.mxu1 (!%p9928_p6), %v11763_v5  ;;  %v11823_v4 = vld [vmem:[%s13570_s3 + $0x28c] ss:$16 sps:$4 sm:$0xff] (!%p9928_p6)   ;;  %v11818_v5 = vld [vmem:[%s13570_s3 + $0x280] ss:$16 sps:$4 sm:$0xff] (!%p9928_p6)  }
 0x423   : > { %8700 = vmatprep.subr.bf16.mxu0 (!%p9928_p6), %v11764_v6  ;;  %v11821_v6 = vld [vmem:[%s13570_s3 + $0x288] ss:$16 sps:$4 sm:$0xff] (!%p9928_p6)  }
 0x4cc   : > { %v7132_v63 = vpop.f32.mrb[0].mxu0  ;;  %v7788_v9 = vpop.f32.mrb[0].mxu1 }
 0x4cd   : > { %v7134_v12 = vpop.f32.mrb[1].mxu0  ;;  %v7790_v14 = vpop.f32.mrb[1].mxu1 }
 0x4ce   : > { %v7799_v16 = vcombine.low %v7132_v63, %v7134_v12  ;;  %v7800_v18 = vcombine.low %v7788_v9, %v7790_v14  ;;  %v7136_v3 = vpop.f32.mrb[2].mxu0  ;;  %v7792_v54 = vpop.f32.mrb[2].mxu1  ;;  %v13276_v63 = vsub.s32 (!%p9928_p6), 2, %v12008_v45  ;;  %v11766_v9 = vld [vmem:[%s13570_s3 + $0x16c] ss:$16 sps:$4 sm:$0xff] (!%p9928_p6)   ;;  %v13282_v12 = vsub.s32 (!%p9928_p6), 3, %v12008_v45 }
 0x4cf   : > { %v7137_v19 = vpop.f32.mrb[3].mxu0  ;;  %v7793_v20 = vpop.f32.mrb[3].mxu1  ;;  %v7824_v14 = vld [vmem:[%s13569_s2] sm:$0xf] (!%p9928_p6)  ;;  %8782 = vmatprep.subr.bf16.mxu1 (!%p9928_p6), %v11766_v9  ;;  %v11826_v9 = vld [vmem:[%s13570_s3 + $0x2a4] ss:$16 sps:$4 sm:$0xff] (!%p9928_p6)  }
 0x4d0   : > { %v7807_v11 = vrot.slane %v7799_v16, %v13129_v10  ;;  %v7814_v21 = vrot.slane %v7800_v18, %v13129_v10  ;;  %7822 = sbr.rel (%p9928_p6) target bundleno = 1692 (0x69c), region = 56  ;;  %v11768_v16 = vld [vmem:[%s13570_s3 + $0x160] ss:$16 sps:$4 sm:$0xff] (!%p9928_p6)   ;;  %v11769_v18 = vld [vmem:[%s13570_s3 + $0x168] ss:$16 sps:$4 sm:$0xff] (!%p9928_p6)   ;;  %v7829_v3 = vrot.slane (!%p9928_p6), %v7824_v14, %v13267_v53  ;;  %v7833_v54 = vrot.slane (!%p9928_p6), %v7824_v14, %v13273_v7 }
 0x4d1   : > { %v7837_v45 = vrot.slane (!%p9928_p6), %v7824_v14, %v13276_v63  ;;  %v11770_v19 = vld [vmem:[%s13570_s3 + $0x184] ss:$16 sps:$4 sm:$0xff] (!%p9928_p6)   ;;  %v11772_v20 = vld [vmem:[%s13570_s3 + $0x18c] ss:$16 sps:$4 sm:$0xff] (!%p9928_p6)   ;;  %8701 = vmatpush1.bf16.msra.mxu0 (!%p9928_p6), %v11768_v16  ;;  %8783 = vmatpush1.bf16.msra.mxu1 (!%p9928_p6), %v11769_v18  ;;  %v11824_v16 = vld [vmem:[%s13570_s3 + $0x2a0] ss:$16 sps:$4 sm:$0xff] (!%p9928_p6)  }
 0x4d2   : > { %v7815_v0 = vcombine.low %v7807_v11, %v7814_v21  ;;  %v7841_v11 = vrot.slane (!%p9928_p6), %v7824_v14, %v13282_v12  ;;  %v7842_v21 = vcombine.low (!%p9928_p6), %v7829_v3, %v7833_v54  ;;  %8702 = vmatprep.subr.bf16.mxu0 (!%p9928_p6), %v11770_v19  ;;  %8784 = vmatprep.subr.bf16.mxu1 (!%p9928_p6), %v11772_v20  ;;  %v11829_v14 = vld [vmem:[%s13570_s3 + $0x2ac] ss:$16 sps:$4 sm:$0xff] (!%p9928_p6)   ;;  %v11827_v18 = vld [vmem:[%s13570_s3 + $0x2a8] ss:$16 sps:$4 sm:$0xff] (!%p9928_p6)   ;;  %v11832_v3 = vld [vmem:[%s13570_s3 + $0x2c4] ss:$16 sps:$4 sm:$0xff] (!%p9928_p6)  }
 0x4d3   : > { %v11835_v54 = vld [vmem:[%s13570_s3 + $0x2cc] ss:$16 sps:$4 sm:$0xff] (!%p9928_p6)   ;;  %v11833_v19 = vld [vmem:[%s13570_s3 + $0x2c8] ss:$16 sps:$4 sm:$0xff] (!%p9928_p6)   ;;  %v11838_v20 = vld [vmem:[%s13570_s3 + $0x2e4] ss:$16 sps:$4 sm:$0xff] (!%p9928_p6)  }
 0x4d4   : > { %v7817_v26 = vadd.f32 %v7815_v0, %v296_v22  ;;  %v7843_v22 = vcombine.low (!%p9928_p6), %v7837_v45, %v7841_v11  ;;  %v11774_v0 = vld [vmem:[%s13570_s3 + $0x180] ss:$16 sps:$4 sm:$0xff] (!%p9928_p6)   ;;  %v7850_v28 = vrot.slane (!%p9928_p6), %v7842_v21, %v13129_v10  ;;  %v11841_v11 = vld [vmem:[%s13570_s3 + $0x2ec] ss:$16 sps:$4 sm:$0xff] (!%p9928_p6)  }
 0x4d5   : > { %8703 = vmatpush1.bf16.msra.mxu0 (!%p9928_p6), %v11774_v0  ;;  %v11830_v45 = vld [vmem:[%s13570_s3 + $0x2c0] ss:$16 sps:$4 sm:$0xff] (!%p9928_p6)   ;;  %v11844_v0 = vld [vmem:[%s13570_s3 + $0x304] ss:$16 sps:$4 sm:$0xff] (!%p9928_p6)  }
 0x4d6   : > { %7818 = vst [vmem:[#allocation2] sm:$0xff] %v7817_v26  ;;  %v11775_v26 = vld [vmem:[%s13570_s3 + $0x188] ss:$16 sps:$4 sm:$0xff] (!%p9928_p6)   ;;  %v7857_v31 = vrot.slane (!%p9928_p6), %v7843_v22, %v13129_v10  ;;  %8704 = vmatprep.subr.bf16.mxu0 (!%p9928_p6), %v11776_v8  ;;  %v11836_v21 = vld [vmem:[%s13570_s3 + $0x2e0] ss:$16 sps:$4 sm:$0xff] (!%p9928_p6)  }
 0x4d7   : > { %8785 = vmatpush1.bf16.msra.mxu1 %v11775_v26  ;;  %v11839_v22 = vld [vmem:[%s13570_s3 + $0x2e8] ss:$16 sps:$4 sm:$0xff]   ;;  %v11847_v26 = vld [vmem:[%s13570_s3 + $0x30c] ss:$16 sps:$4 sm:$0xff]  }
 0x4d8   : > { %v7858_v32 = vcombine.low %v7850_v28, %v7857_v31  ;;  %8786 = vmatprep.subr.bf16.mxu1 %v11778_v30  ;;  %v11842_v28 = vld [vmem:[%s13570_s3 + $0x300] ss:$16 sps:$4 sm:$0xff]   ;;  %v11845_v8 = vld [vmem:[%s13570_s3 + $0x308] ss:$16 sps:$4 sm:$0xff]   ;;  %v11850_v30 = vld [vmem:[%s13570_s3 + $0x324] ss:$16 sps:$4 sm:$0xff]  }
 0x4d9   : > { %8705 = vmatpush1.bf16.msra.mxu0 %v11780_v17  ;;  %v11853_v31 = vld [vmem:[%s13570_s3 + $0x32c] ss:$16 sps:$4 sm:$0xff]   ;;  %v11856_v17 = vld [vmem:[%s13570_s3 + $0x344] ss:$16 sps:$4 sm:$0xff]  }
 0x4da   : > { %8706 = vmatprep.subr.bf16.mxu0 %v11782_v24  ;;  %v11854_v24 = vld [vmem:[%s13570_s3 + $0x340] ss:$16 sps:$4 sm:$0xff]  }
 0x4db   : > { %8787 = vmatpush1.bf16.msra.mxu1 %v11781_v33  ;;  %v11859_v33 = vld [vmem:[%s13570_s3 + $0x34c] ss:$16 sps:$4 sm:$0xff]  }
 0x4dc   : > { %8788 = vmatprep.subr.bf16.mxu1 %v11784_v34  ;;  %v11857_v34 = vld [vmem:[%s13570_s3 + $0x348] ss:$16 sps:$4 sm:$0xff]  }
 0x4dd   : > { %v7823_v13 = vld [vmem:[#allocation2] sm:$0xff]  ;;  %8707 = vmatpush1.bf16.msra.mxu0 %v11786_v25 }
 0x4de   : > { %v7860_v35 = vadd.f32 %v7858_v32, %v7823_v13  ;;  %8708 = vmatprep.subr.bf16.mxu0 %v11788_v38  ;;  %v11848_v13 = vld [vmem:[%s13570_s3 + $0x320] ss:$16 sps:$4 sm:$0xff]   ;;  %v11851_v32 = vld [vmem:[%s13570_s3 + $0x328] ss:$16 sps:$4 sm:$0xff]   ;;  %v11868_v38 = vld [vmem:[%s13570_s3 + $0x384] ss:$16 sps:$4 sm:$0xff]  }
 0x4df   : > { %8789 = vmatpush1.bf16.msra.mxu1 %v11787_v36  ;;  %v11860_v25 = vld [vmem:[%s13570_s3 + $0x360] ss:$16 sps:$4 sm:$0xff]   ;;  %v11863_v36 = vld [vmem:[%s13570_s3 + $0x368] ss:$16 sps:$4 sm:$0xff]  }
 0x4e0   : > { %v7861_v27 = vmax.f32 %v7860_v35, 0.0  ;;  %8790 = vmatprep.subr.bf16.mxu1 %v11790_v39  ;;  %v11862_v35 = vld [vmem:[%s13570_s3 + $0x364] ss:$16 sps:$4 sm:$0xff]   ;;  %v11871_v39 = vld [vmem:[%s13570_s3 + $0x38c] ss:$16 sps:$4 sm:$0xff]  }
 0x4e1   : > { %8709 = vmatpush1.bf16.msra.mxu0 %v11792_v23  ;;  %v11877_v23 = vld [vmem:[%s13570_s3 + $0x3ac] ss:$16 sps:$4 sm:$0xff]  }
 0x4e2   : > { %v7870_v51 = vrot.slane %v7861_v27, %v13129_v10  ;;  %v7863_v29 = vcombine.high %v7861_v27, %v7861_v27  ;;  %8719 = vmatprep.subr.bf16.mxu0 %v11796_v46  ;;  %v11865_v27 = vld [vmem:[%s13570_s3 + $0x36c] ss:$16 sps:$4 sm:$0xff]   ;;  %v11880_v46 = vld [vmem:[%s13570_s3 + $0x3c4] ss:$16 sps:$4 sm:$0xff]  }
 0x4e3   : > { %8791 = vmatpush1.bf16.msra.mxu1 %v11793_v43  ;;  %v11872_v43 = vld [vmem:[%s13570_s3 + $0x3a0] ss:$16 sps:$4 sm:$0xff]  }
 0x4e4   : > { %v7878_v41 = vcombine.high %v7870_v51, %v7870_v51  ;;  %v13343_v42 = vrot.slane %v7863_v29, %v13129_v10  ;;  %v11799_v10 = vld [vmem:[%s13570_s3 + $0x20c] ss:$16 sps:$4 sm:$0xff]   ;;  %v7884_v48 = vpack.c.bf16 %v7870_v51, %v7870_v51  ;;  %v11866_v51 = vld [vmem:[%s13570_s3 + $0x380] ss:$16 sps:$4 sm:$0xff]   ;;  %v11869_v29 = vld [vmem:[%s13570_s3 + $0x388] ss:$16 sps:$4 sm:$0xff]  }
 0x4e5   : > { %8801 = vmatprep.subr.bf16.mxu1 %v11799_v10  ;;  %v11883_v10 = vld [vmem:[%s13570_s3 + $0x3cc] ss:$16 sps:$4 sm:$0xff]  }
 0x4e6   : > { %v7885_v44 = vpack.c.bf16 %v7878_v41, %v7878_v41  ;;  %v7879_v47 = vcombine.high %v13343_v42, %v13343_v42  ;;  %v11874_v41 = vld [vmem:[%s13570_s3 + $0x3a4] ss:$16 sps:$4 sm:$0xff]  }
 0x4e8   : > { %8710 = vmatprep.mubr.bf16.mxu0 %v7885_v44  ;;  %8792 = vmatprep.mubr.bf16.mxu1 %v7885_v44  ;;  %v7887_v57 = vpack.c.bf16 %v7879_v47, %v7879_v47  ;;  %v11875_v44 = vld [vmem:[%s13570_s3 + $0x3a8] ss:$16 sps:$4 sm:$0xff]   ;;  %v11878_v47 = vld [vmem:[%s13570_s3 + $0x3c0] ss:$16 sps:$4 sm:$0xff]  }
 0x4e9   : > { %8711 = vmatmul.mubr.bf16.vlgmr.msra.gmra.mrb[0].mxu0 %v7884_v48  ;;  %8793 = vmatmul.mubr.bf16.vlgmr.msra.gmra.mrb[0].mxu1 %v7884_v48  ;;  %v11881_v48 = vld [vmem:[%s13570_s3 + $0x3c8] ss:$16 sps:$4 sm:$0xff]  }
 0x4ea   : > { %8720 = vmatpush1.bf16.msra.mxu0 %v11794_v49  ;;  %8802 = vmatpush1.bf16.msra.mxu1 %v11797_v52  ;;  %v11886_v49 = vld [vmem:[%s13570_s3 + $0x3e4] ss:$16 sps:$4 sm:$0xff]   ;;  %v11889_v52 = vld [vmem:[%s13570_s3 + $0x3ec] ss:$16 sps:$4 sm:$0xff]  }
 0x4eb   : > { %8721 = vmatprep.subr.bf16.mxu0 %v11802_v55  ;;  %8803 = vmatprep.subr.bf16.mxu1 %v11805_v56  ;;  %v11884_v55 = vld [vmem:[%s13570_s3 + $0x3e0] ss:$16 sps:$4 sm:$0xff]   ;;  %v11887_v56 = vld [vmem:[%s13570_s3 + $0x3e8] ss:$16 sps:$4 sm:$0xff]  }
 0x4ec   : > { %8751 = vmatprep.mubr.bf16.mxu0 %v7887_v57  ;;  %8833 = vmatprep.mubr.bf16.mxu1 %v7887_v57  ;;  %v7886_v57 = vpack.c.bf16 %v13343_v42, %v13343_v42 }
 0x4ee   : > { %8722 = vmatpush1.bf16.msra.mxu0 %v11800_v40  ;;  %8804 = vmatpush1.bf16.msra.mxu1 %v11803_v58  ;;  %v8016_v40 = vld [vmem:[%s13571_s4] sm:$0xf] }
 0x4ef   : > { %8723 = vmatprep.subr.bf16.mxu0 %v11808_v59  ;;  %8805 = vmatprep.subr.bf16.mxu1 %v11811_v60  ;;  %v8021_v58 = vrot.slane %v8016_v40, %v13267_v53  ;;  %v8029_v59 = vrot.slane %v8016_v40, %v13276_v63  ;;  %v8846_v60 = vld [vmem:[%s13572_s5] sm:$0xf]  ;;  %v8033_v42 = vrot.slane %v8016_v40, %v13282_v12 }
 0x4f2   : > { %8724 = vmatpush1.bf16.msra.mxu0 %v11806_v50  ;;  %8806 = vmatpush1.bf16.msra.mxu1 %v11809_v61  ;;  %v8025_v50 = vrot.slane %v8016_v40, %v13273_v7 }
 0x4f3   : > { %8725 = vmatprep.subr.bf16.mxu0 %v11814_v62  ;;  %8807 = vmatprep.subr.bf16.mxu1 %v11817_v15 }
 0x4f6   : > { %8726 = vmatpush1.bf16.msra.mxu0 %v11812_v1  ;;  %8808 = vmatpush1.bf16.msra.mxu1 %v11815_v2  ;;  %v8851_v1 = vrot.slane %v8846_v60, %v13267_v53 }
 0x4f7   : > { %8727 = vmatprep.subr.bf16.mxu0 %v11820_v37  ;;  %8809 = vmatprep.subr.bf16.mxu1 %v11823_v4 }
 0x4fa   : > { %8728 = vmatpush1.bf16.msra.mxu0 %v11818_v5  ;;  %8810 = vmatpush1.bf16.msra.mxu1 %v11821_v6  ;;  %v8859_v5 = vrot.slane %v8846_v60, %v13276_v63 }
 0x4fb   : > { %8729 = vmatprep.subr.bf16.mxu0 %v11826_v9  ;;  %8811 = vmatprep.subr.bf16.mxu1 %v11829_v14  ;;  %v8855_v9 = vrot.slane %v8846_v60, %v13273_v7 }
 0x4fe   : > { %8730 = vmatpush1.bf16.msra.mxu0 %v11824_v16  ;;  %8812 = vmatpush1.bf16.msra.mxu1 %v11827_v18 }
 0x4ff   : > { %8731 = vmatprep.subr.bf16.mxu0 %v11832_v3  ;;  %8813 = vmatprep.subr.bf16.mxu1 %v11835_v54 }
 0x502   : > { %8732 = vmatpush1.bf16.msra.mxu0 %v11830_v45  ;;  %8814 = vmatpush1.bf16.msra.mxu1 %v11833_v19 }
 0x503   : > { %8733 = vmatprep.subr.bf16.mxu0 %v11838_v20  ;;  %8815 = vmatprep.subr.bf16.mxu1 %v11841_v11 }
 0x506   : > { %8734 = vmatpush1.bf16.msra.mxu0 %v11836_v21  ;;  %8816 = vmatpush1.bf16.msra.mxu1 %v11839_v22  ;;  %v8863_v21 = vrot.slane %v8846_v60, %v13282_v12 }
 0x507   : > { %8735 = vmatprep.subr.bf16.mxu0 %v11844_v0  ;;  %8817 = vmatprep.subr.bf16.mxu1 %v11847_v26 }
 0x50a   : > { %8736 = vmatpush1.bf16.msra.mxu0 %v11842_v28  ;;  %8818 = vmatpush1.bf16.msra.mxu1 %v11845_v8 }
 0x50b   : > { %8737 = vmatprep.subr.bf16.mxu0 %v11850_v30  ;;  %8819 = vmatprep.subr.bf16.mxu1 %v11853_v31 }
 0x50e   : > { %8738 = vmatpush1.bf16.msra.mxu0 %v11848_v13  ;;  %8820 = vmatpush1.bf16.msra.mxu1 %v11851_v32  ;;  %v10057_v32 = vld [vmem:[#allocation3] ss:$0 sm:$0xff] }
 0x50f   : > { %8739 = vmatprep.subr.bf16.mxu0 %v11856_v17  ;;  %8821 = vmatprep.subr.bf16.mxu1 %v11859_v33 }
 0x512   : > { %8740 = vmatpush1.bf16.msra.mxu0 %v11854_v24  ;;  %8822 = vmatpush1.bf16.msra.mxu1 %v11857_v34 }
 0x513   : > { %8741 = vmatprep.subr.bf16.mxu0 %v11862_v35  ;;  %8823 = vmatprep.subr.bf16.mxu1 %v11865_v27 }
 0x516   : > { %8742 = vmatpush1.bf16.msra.mxu0 %v11860_v25  ;;  %8824 = vmatpush1.bf16.msra.mxu1 %v11863_v36 }
 0x517   : > { %8743 = vmatprep.subr.bf16.mxu0 %v11868_v38  ;;  %8825 = vmatprep.subr.bf16.mxu1 %v11871_v39 }
 0x51a   : > { %8744 = vmatpush1.bf16.msra.mxu0 %v11866_v51  ;;  %8826 = vmatpush1.bf16.msra.mxu1 %v11869_v29 }
 0x51b   : > { %8745 = vmatprep.subr.bf16.mxu0 %v11874_v41  ;;  %8827 = vmatprep.subr.bf16.mxu1 %v11877_v23 }
 0x51e   : > { %8746 = vmatpush1.bf16.msra.mxu0 %v11872_v43  ;;  %8828 = vmatpush1.bf16.msra.mxu1 %v11875_v44 }
 0x51f   : > { %8747 = vmatprep.subr.bf16.mxu0 %v11880_v46  ;;  %8829 = vmatprep.subr.bf16.mxu1 %v11883_v10 }
 0x522   : > { %8748 = vmatpush1.bf16.msra.mxu0 %v11878_v47  ;;  %8830 = vmatpush1.bf16.msra.mxu1 %v11881_v48 }
 0x523   : > { %8749 = vmatprep.subr.bf16.mxu0 %v11886_v49  ;;  %8831 = vmatprep.subr.bf16.mxu1 %v11889_v52 }
 0x526   : > { %8750 = vmatpush1.bf16.msra.mxu0 %v11884_v55  ;;  %8832 = vmatpush1.bf16.msra.mxu1 %v11887_v56 }
 0x529   : > { %8752 = vmatmul.mubr.bf16.vlgmr.msra.gmra.mrb[0].mxu0 %v7886_v57  ;;  %8834 = vmatmul.mubr.bf16.vlgmr.msra.gmra.mrb[0].mxu1 %v7886_v57 }
 0x5fc   : > { %v8753_v61 = vpop.f32.mrb[0].mxu0  ;;  %v8835_v62 = vpop.f32.mrb[0].mxu1 }
 0x5fd   : > { %v10181_v15 = vadd.f32 %v8753_v61, %v8021_v58  ;;  %v10183_v2 = vadd.f32 %v8835_v62, %v8029_v59  ;;  %v8755_v37 = vpop.f32.mrb[1].mxu0  ;;  %v8837_v4 = vpop.f32.mrb[1].mxu1 }
 0x5fe   : > { %v10182_v6 = vadd.f32 %v8755_v37, %v8025_v50  ;;  %v10184_v14 = vadd.f32 %v8837_v4, %v8033_v42  ;;  %v8757_v16 = vpop.f32.mrb[2].mxu0  ;;  %v8839_v18 = vpop.f32.mrb[2].mxu1 }
 0x5ff   : > { %v8842_v3 = vmax.f32 %v10181_v15, 0.0  ;;  %v8844_v54 = vmax.f32 %v10183_v2, 0.0  ;;  %v8758_v45 = vpop.f32.mrb[3].mxu0  ;;  %v8840_v19 = vpop.f32.mrb[3].mxu1 }
 0x600   : > { %v8843_v20 = vmax.f32 %v10182_v6, 0.0  ;;  %v8845_v11 = vmax.f32 %v10184_v14, 0.0 }
 0x601   : > { %v8868_v53 = vmul.f32 %v8851_v1, %v8842_v3  ;;  %v8870_v22 = vmul.f32 %v8859_v5, %v8844_v54 }
 0x602   : > { %v8869_v0 = vmul.f32 %v8855_v9, %v8843_v20  ;;  %v8871_v63 = vmul.f32 %v8863_v21, %v8845_v11 }
 0x603   : > { %v8873_v26 = vsel %vm8872_vm0, %v8868_v53, 0.0  ;;  %v8876_v7 = vsel %vm8872_vm0, %v8870_v22, 0.0 }
 0x604   : > { %v8874_v28 = vsel %vm8872_vm0, %v8869_v0, 0.0  ;;  %v8878_v31 = vsel %vm8872_vm0, %v8871_v63, 0.0 }
 0x605   : > { %v8875_v8 = vadd.f32 %v8874_v28, %v8873_v26 }
 0x607   : > { %v8877_v30 = vadd.f32 %v8876_v7, %v8875_v8 }
 0x609   : > { %v8879_v13 = vadd.f32 %v8878_v31, %v8877_v30 }
 0x60b   : > { %8880 = vadd.xlane.f32.xlu0 %v8879_v13 }
 0x698   : > { %v8881_v17 = vpop.xlane.xlu0 %8880 }
 0x699   : > { %v8889_v33 = vadd.f32 %v10057_v32, %v8881_v17 }
 0x69b   : > { %8891 = vst.msk [vmem:[%s13574_s7] sm:$0x3] %vm8890_vm1, %v8889_v33 }
 0x69c PF: > { %s19_s26 = sadd.s32 1, %s11897_s26  }
 0x69d   : > { %p16_p7 = scmp.ge.s32.totalorder %s19_s26, 6  }
 0x69f   :  { %18 = sbr.rel (!%p16_p7) target bundleno = 3 (0x3), region = 85 }

</bundles_post_ra>
